<compile_context>
chip_gen: v5e
topology: v5e:2x2
jax: 0.10.0
libtpu: 0.0.40
codegen_flags: <defaults>
</compile_context>

<pallas_src>
import math

import jax
import jax.numpy as jnp
import numpy as np
from jax import lax
from jax.experimental import pallas as pl
from jax.experimental.pallas import tpu as pltpu

# ---------------- static geometry (Tnn with a 16x16 input) ----------------
H0 = W0 = 16                   # input spatial size
C0, C1, C2, C3 = 3, 10, 20, 3  # channel counts
K1, K2, K3 = 3, 3, 4           # kernel sizes

# layer 1: ConvT(3->10, k3, s1, p1): zero-pad 1 -> 18x18, output 16x16
W1P = W0 + 2                   # 18   padded width
H1O = H0                       # 16   output rows
M1 = H1O * W1P                 # 288  outputs computed at full padded width
L1 = M1 + (K1 - 1) * W1P + (K1 - 1)          # 326 (slack for largest tap shift)

# layer 2: ConvT(10->20, k3, s2, p1): dilate to 31x31, pad 1 -> 33x33 content,
# stored at width 35 so its output lands directly in layer 3's padded frame.
W2P = 35                       # 33 content cols + 2 zero cols
H2O, W2O = 31, 31              # layer-2 output spatial
M2 = H2O * W2P                 # 1085
L2 = M2 + (K2 - 1) * W2P + (K2 - 1)          # 1157

# layer 3: ConvT(20->3, k4, s1, p1): 31x31 padded by 2 -> 35x35, output 32x32
W3P = 35
H3O, W3O = 32, 32
M3 = H3O * W3P                 # 1120 = output slab width stored per image
L3 = M3 + (K3 - 1) * W3P + (K3 - 1)          # 1228
X3_DATA_OFF = 2 * W3P + 2      # 72: where layer-2's masked output lands in x3
X3_TAIL = L3 - X3_DATA_OFF - M2              # 71 never-written tail columns


def _tnn_kernel(x_ref, w1_ref, b1_ref, w2_ref, b2_ref, w3_ref, b3_ref,
                p1_ref, d1_ref, mask_ref, o_ref, x1_ref, x2_ref, x3_ref):
    """One grid step == one batch image, all three layers, VMEM-resident."""
    f32 = jnp.float32

    # ---- layer-1 padded input via ONE placement matmul (writes whole plane,
    #      zero padding included -> no scratch zeroing, one dense store) ----
    x1_ref[...] = jnp.dot(x_ref[0, :, :], p1_ref[...],
                          preferred_element_type=f32)

    # ---- layer 1: sum of k*k shifted matmuls, then bias + relu ----
    acc1 = jnp.zeros((C1, M1), f32)
    for t in range(K1 * K1):
        kh, kw = divmod(t, K1)
        acc1 = acc1 + jnp.dot(w1_ref[t], x1_ref[:, pl.ds(kh * W1P + kw, M1)],
                              preferred_element_type=f32)
    acc1 = jnp.maximum(acc1 + b1_ref[...], 0.0)

    # ---- glue 1->2: ONE placement matmul builds the entire stride-2 dilated
    #      + zero-padded layer-2 frame (junk cols of acc1 hit zero rows of D1,
    #      pad/dilation columns are zero columns) -> one dense store ----
    x2_ref[...] = jnp.dot(acc1, d1_ref[...], preferred_element_type=f32)

    # ---- layer 2 ----
    acc2 = jnp.zeros((C2, M2), f32)
    for t in range(K2 * K2):
        kh, kw = divmod(t, K2)
        acc2 = acc2 + jnp.dot(w2_ref[t], x2_ref[:, pl.ds(kh * W2P + kw, M2)],
                              preferred_element_type=f32)
    # relu, then zero the junk columns (flat col % 35 >= 31) so they become the
    # zero padding of layer 3's input frame.
    acc2 = jnp.maximum(acc2 + b2_ref[...], 0.0) * mask_ref[...]

    # ---- glue 2->3: zero only the never-written pad head/tail (143 cols),
    #      then one dense shifted store of the masked layer-2 output ----
    x3_ref[:, pl.ds(0, X3_DATA_OFF)] = jnp.zeros((C2, X3_DATA_OFF), f32)
    x3_ref[:, pl.ds(X3_DATA_OFF + M2, X3_TAIL)] = jnp.zeros((C2, X3_TAIL), f32)
    x3_ref[:, pl.ds(X3_DATA_OFF, M2)] = acc2

    # ---- layer 3 ----
    acc3 = jnp.zeros((C3, M3), f32)
    for t in range(K3 * K3):
        kh, kw = divmod(t, K3)
        acc3 = acc3 + jnp.dot(w3_ref[t], x3_ref[:, pl.ds(kh * W3P + kw, M3)],
                              preferred_element_type=f32)
    acc3 = jax.nn.sigmoid(acc3 + b3_ref[...])

    # ---- ONE lane-dense store of the full [C3, 32*35] slab; the 35->32 crop
    #      happens in the JAX wrapper (reshape + slice) ----
    o_ref[0, :, :] = acc3.astype(o_ref.dtype)


def prepare_tnn_params(params):
    """One-time transform of PyTorch-layout params into kernel operands."""
    def taps(w):
        cin, cout, k, _ = w.shape
        # tap[t = kh*k + kw] = w[:, :, k-1-kh, k-1-kw].T  -> [Cout, Cin]
        return (jnp.flip(w, axis=(2, 3)).transpose(2, 3, 1, 0)
                .reshape(k * k, cout, cin).astype(jnp.float32))

    ih = np.repeat(np.arange(H0), W0)
    iw = np.tile(np.arange(W0), H0)

    # P1 [256, L1]: input pixel (ih, iw) -> layer-1 padded-frame column
    # (ih+1)*18 + (iw+1).  All other columns are zero, so x @ P1 writes the
    # whole padded frame (padding included) in one matmul.
    p1 = np.zeros((H0 * W0, L1), np.float32)
    p1[ih * W0 + iw, (ih + 1) * W1P + (iw + 1)] = 1.0

    # D1 [M1, L2]: layer-1 output column ih*18+iw (iw < 16 valid) -> layer-2
    # dilated+padded frame column (2*ih+1)*35 + (2*iw+1).  Junk acc1 columns
    # (iw >= 16) map to all-zero rows; unmapped frame columns (pad row, even
    # dilation rows, frame junk cols, tail slack) are all-zero columns, so
    # acc1 @ D1 writes the entire layer-2 input plane in one matmul.
    d1 = np.zeros((M1, L2), np.float32)
    d1[ih * W1P + iw, (2 * ih + 1) * W2P + (2 * iw + 1)] = 1.0

    # keep only the 31 valid output columns of layer 2 (junk cols -> 0 = padding)
    mask = (np.arange(M2) % W2P < W2O).astype(np.float32).reshape(1, M2)

    return {
        "w1": taps(params["w1"]),
        "b1": params["b1"].reshape(C1, 1).astype(jnp.float32),
        "w2": taps(params["w2"]),
        "b2": params["b2"].reshape(C2, 1).astype(jnp.float32),
        "w3": taps(params["w3"]),
        "b3": params["b3"].reshape(C3, 1).astype(jnp.float32),
        "p1": jnp.asarray(p1),
        "d1": jnp.asarray(d1),
        "mask": jnp.asarray(mask),
    }


@jax.jit
def tnn_forward(prep, x_nchw):
    """x_nchw: [N, 3, 16, 16] -> [N, 3, 32, 32] (PyTorch ConvTranspose semantics)."""
    N = x_nchw.shape[0]
    # NCHW flattened spatially IS the channels-on-sublane layout we want.
    x_flat = x_nchw.reshape(N, C0, H0 * W0).astype(jnp.float32)

    out_flat = pl.pallas_call(
        _tnn_kernel,
        out_shape=jax.ShapeDtypeStruct((N, C3, M3), jnp.float32),
        grid=(N,),                                   # one image per grid step
        in_specs=[
            pl.BlockSpec((1, C0, H0 * W0), lambda n: (n, 0, 0)),
            pl.BlockSpec((K1 * K1, C1, C0), lambda n: (0, 0, 0)),
            pl.BlockSpec((C1, 1), lambda n: (0, 0)),
            pl.BlockSpec((K2 * K2, C2, C1), lambda n: (0, 0, 0)),
            pl.BlockSpec((C2, 1), lambda n: (0, 0)),
            pl.BlockSpec((K3 * K3, C3, C2), lambda n: (0, 0, 0)),
            pl.BlockSpec((C3, 1), lambda n: (0, 0)),
            pl.BlockSpec((H0 * W0, L1), lambda n: (0, 0)),   # P1 pad matrix
            pl.BlockSpec((M1, L2), lambda n: (0, 0)),        # D1 dilate matrix
            pl.BlockSpec((1, M2), lambda n: (0, 0)),         # layer-2 col mask
        ],
        out_specs=pl.BlockSpec((1, C3, M3), lambda n: (n, 0, 0)),
        scratch_shapes=[
            pltpu.VMEM((C0, L1), jnp.float32),   # padded layer-1 input
            pltpu.VMEM((C1, L2), jnp.float32),   # dilated+padded layer-2 input
            pltpu.VMEM((C2, L3), jnp.float32),   # padded layer-3 input
        ],
        compiler_params=pltpu.CompilerParams(
            # batch axis parallel -> shards across the 2 TensorCores on v7x
            dimension_semantics=("parallel",)),
    )(x_flat, prep["w1"], prep["b1"], prep["w2"], prep["b2"],
      prep["w3"], prep["b3"], prep["p1"], prep["d1"], prep["mask"])

    # crop the 35-wide row slab to the 32 valid columns (NCHW already)
    return out_flat.reshape(N, C3, H3O, W3P)[:, :, :, :W3O]


def init_params(key):
    """Deterministic init, PyTorch-like uniform(-1/sqrt(fan), 1/sqrt(fan))."""
    def uinit(k_, shape, fan):
        bound = 1.0 / math.sqrt(fan)
        return jax.random.uniform(k_, shape, jnp.float32, -bound, bound)
    ks = jax.random.split(key, 6)
    return {
        # ConvTranspose2d weight layout: (Cin, Cout, kH, kW)
        "w1": uinit(ks[0], (3, 10, 3, 3), 3 * 3 * 3),
        "b1": uinit(ks[1], (10,), 3 * 3 * 3),
        "w2": uinit(ks[2], (10, 20, 3, 3), 10 * 3 * 3),
        "b2": uinit(ks[3], (20,), 10 * 3 * 3),
        "w3": uinit(ks[4], (20, 3, 4, 4), 20 * 4 * 4),
        "b3": uinit(ks[5], (3,), 20 * 4 * 4),
    }


# -------- pure-JAX reference (for correctness check only) --------
def _ref_convT(x, w, b, stride, padding):
    k = w.shape[2]
    w2 = jnp.flip(w, axis=(2, 3)).transpose(1, 0, 2, 3)       # -> OIHW
    pp = k - 1 - padding
    y = lax.conv_general_dilated(
        x, w2, window_strides=(1, 1), padding=((pp, pp), (pp, pp)),
        lhs_dilation=(stride, stride), rhs_dilation=(1, 1),
        dimension_numbers=("NCHW", "OIHW", "NCHW"))
    return y + b.reshape(1, -1, 1, 1)


def tnn_reference(params, x):
    y = jax.nn.relu(_ref_convT(x, params["w1"], params["b1"], 1, 1))
    y = jax.nn.relu(_ref_convT(y, params["w2"], params["b2"], 2, 1))
    y = jax.nn.sigmoid(_ref_convT(y, params["w3"], params["b3"], 1, 1))
    return y


if __name__ == "__main__":
    key = jax.random.PRNGKey(0)
    pkey, xkey = jax.random.split(key)
    params = init_params(pkey)
    prep = prepare_tnn_params(params)        # one-time weight prep (off hot path)

    # NCHW input, like the PyTorch module: batch=2, channels=3, 16x16
    x = jax.random.normal(xkey, (2, C0, H0, W0), jnp.float32)

    out = jax.block_until_ready(tnn_forward(prep, x))
    assert out.shape == (2, 3, 32, 32), out.shape   # 16 -> 16 -> 31 -> 32

    ref = tnn_reference(params, x)
    err = float(jnp.max(jnp.abs(out - ref)))
    assert err < 1e-3, f"max abs err {err}"

    print("KERNEL_OK")
</pallas_src>

<mosaic_0001>
module attributes {stable_mosaic.version = 11 : i64} {
  func.func @_tnn_kernel(%arg0: i32, %arg1: memref<1x3x256xf32, #tpu.memory_space<vmem>>, %arg2: memref<9x10x3xf32, #tpu.memory_space<vmem>>, %arg3: memref<10x1xf32, #tpu.memory_space<vmem>>, %arg4: memref<9x20x10xf32, #tpu.memory_space<vmem>>, %arg5: memref<20x1xf32, #tpu.memory_space<vmem>>, %arg6: memref<16x3x20xf32, #tpu.memory_space<vmem>>, %arg7: memref<3x1xf32, #tpu.memory_space<vmem>>, %arg8: memref<256x326xf32, #tpu.memory_space<vmem>>, %arg9: memref<288x1157xf32, #tpu.memory_space<vmem>>, %arg10: memref<1x1085xf32, #tpu.memory_space<vmem>>, %arg11: memref<1x3x1120xf32, #tpu.memory_space<vmem>>, %arg12: memref<3x326xf32, #tpu.memory_space<vmem>>, %arg13: memref<10x1157xf32, #tpu.memory_space<vmem>>, %arg14: memref<20x1228xf32, #tpu.memory_space<vmem>>) attributes {dimension_semantics = [#tpu.dimension_semantics<parallel>], iteration_bounds = array<i64: 2>, scalar_prefetch = 0 : i64, scratch_operands = 3 : i64, tpu.core_type = #tpu.core_type<tc>, window_params = [{transform_indices = @transform_0, window_bounds = array<i64: 1, 3, 256>}, {pipeline_mode = #tpu.pipeline_mode<synchronous>, transform_indices = @transform_1, window_bounds = array<i64: 9, 10, 3>}, {pipeline_mode = #tpu.pipeline_mode<synchronous>, transform_indices = @transform_2, window_bounds = array<i64: 10, 1>}, {pipeline_mode = #tpu.pipeline_mode<synchronous>, transform_indices = @transform_3, window_bounds = array<i64: 9, 20, 10>}, {pipeline_mode = #tpu.pipeline_mode<synchronous>, transform_indices = @transform_4, window_bounds = array<i64: 20, 1>}, {pipeline_mode = #tpu.pipeline_mode<synchronous>, transform_indices = @transform_5, window_bounds = array<i64: 16, 3, 20>}, {pipeline_mode = #tpu.pipeline_mode<synchronous>, transform_indices = @transform_6, window_bounds = array<i64: 3, 1>}, {pipeline_mode = #tpu.pipeline_mode<synchronous>, transform_indices = @transform_7, window_bounds = array<i64: 256, 326>}, {pipeline_mode = #tpu.pipeline_mode<synchronous>, transform_indices = @transform_8, window_bounds = array<i64: 288, 1157>}, {pipeline_mode = #tpu.pipeline_mode<synchronous>, transform_indices = @transform_9, window_bounds = array<i64: 1, 1085>}, {transform_indices = @transform_10, window_bounds = array<i64: 1, 3, 1120>}]} {
    %c0 = arith.constant 0 : index
    %c0_0 = arith.constant 0 : index
    %c0_1 = arith.constant 0 : index
    %0 = vector.load %arg1[%c0, %c0_0, %c0_1] : memref<1x3x256xf32, #tpu.memory_space<vmem>>, vector<1x3x256xf32>
    %1 = vector.shape_cast %0 : vector<1x3x256xf32> to vector<3x256xf32>
    %c0_2 = arith.constant 0 : index
    %c0_3 = arith.constant 0 : index
    %2 = vector.load %arg8[%c0_2, %c0_3] : memref<256x326xf32, #tpu.memory_space<vmem>>, vector<256x326xf32>
    %cst = arith.constant dense<0.000000e+00> : vector<3x326xf32>
    %3 = tpu.matmul %1, %2, %cst {dimension_numbers = #tpu.dot_dimension_numbers<[1], [0], [0], [1], [0, 0, 1, 1], [], []>} : vector<3x256xf32>, vector<256x326xf32>, vector<3x326xf32> -> vector<3x326xf32>
    %c0_4 = arith.constant 0 : index
    %c0_5 = arith.constant 0 : index
    %4 = vector.load %arg12[%c0_4, %c0_5] : memref<3x326xf32, #tpu.memory_space<vmem>>, vector<3x326xf32>
    tpu.vector_store %arg12[%c0_4, %c0_5], %3 {strides = array<i32>} : memref<3x326xf32, #tpu.memory_space<vmem>>, vector<3x326xf32>,
    %cst_6 = arith.constant 0.000000e+00 : f32
    %5 = vector.broadcast %cst_6 : f32 to vector<10x288xf32>
    %c0_7 = arith.constant 0 : index
    %c0_8 = arith.constant 0 : index
    %c0_9 = arith.constant 0 : index
    %6 = vector.load %arg2[%c0_7, %c0_8, %c0_9] : memref<9x10x3xf32, #tpu.memory_space<vmem>>, vector<1x10x3xf32>
    %7 = vector.shape_cast %6 : vector<1x10x3xf32> to vector<10x3xf32>
    %c0_10 = arith.constant 0 : index
    %c0_11 = arith.constant 0 : index
    %8 = vector.load %arg12[%c0_10, %c0_11] : memref<3x326xf32, #tpu.memory_space<vmem>>, vector<3x288xf32>
    %cst_12 = arith.constant dense<0.000000e+00> : vector<10x288xf32>
    %9 = tpu.matmul %7, %8, %cst_12 {dimension_numbers = #tpu.dot_dimension_numbers<[1], [0], [0], [1], [0, 0, 1, 1], [], []>} : vector<10x3xf32>, vector<3x288xf32>, vector<10x288xf32> -> vector<10x288xf32>
    %10 = arith.addf %5, %9 : vector<10x288xf32>
    %c1 = arith.constant 1 : index
    %c0_13 = arith.constant 0 : index
    %c0_14 = arith.constant 0 : index
    %11 = vector.load %arg2[%c1, %c0_13, %c0_14] : memref<9x10x3xf32, #tpu.memory_space<vmem>>, vector<1x10x3xf32>
    %12 = vector.shape_cast %11 : vector<1x10x3xf32> to vector<10x3xf32>
    %c0_15 = arith.constant 0 : index
    %c1_16 = arith.constant 1 : index
    %13 = vector.load %arg12[%c0_15, %c1_16] : memref<3x326xf32, #tpu.memory_space<vmem>>, vector<3x288xf32>
    %cst_17 = arith.constant dense<0.000000e+00> : vector<10x288xf32>
    %14 = tpu.matmul %12, %13, %cst_17 {dimension_numbers = #tpu.dot_dimension_numbers<[1], [0], [0], [1], [0, 0, 1, 1], [], []>} : vector<10x3xf32>, vector<3x288xf32>, vector<10x288xf32> -> vector<10x288xf32>
    %15 = arith.addf %10, %14 : vector<10x288xf32>
    %c2 = arith.constant 2 : index
    %c0_18 = arith.constant 0 : index
    %c0_19 = arith.constant 0 : index
    %16 = vector.load %arg2[%c2, %c0_18, %c0_19] : memref<9x10x3xf32, #tpu.memory_space<vmem>>, vector<1x10x3xf32>
    %17 = vector.shape_cast %16 : vector<1x10x3xf32> to vector<10x3xf32>
    %c0_20 = arith.constant 0 : index
    %c2_21 = arith.constant 2 : index
    %18 = vector.load %arg12[%c0_20, %c2_21] : memref<3x326xf32, #tpu.memory_space<vmem>>, vector<3x288xf32>
    %cst_22 = arith.constant dense<0.000000e+00> : vector<10x288xf32>
    %19 = tpu.matmul %17, %18, %cst_22 {dimension_numbers = #tpu.dot_dimension_numbers<[1], [0], [0], [1], [0, 0, 1, 1], [], []>} : vector<10x3xf32>, vector<3x288xf32>, vector<10x288xf32> -> vector<10x288xf32>
    %20 = arith.addf %15, %19 : vector<10x288xf32>
    %c3 = arith.constant 3 : index
    %c0_23 = arith.constant 0 : index
    %c0_24 = arith.constant 0 : index
    %21 = vector.load %arg2[%c3, %c0_23, %c0_24] : memref<9x10x3xf32, #tpu.memory_space<vmem>>, vector<1x10x3xf32>
    %22 = vector.shape_cast %21 : vector<1x10x3xf32> to vector<10x3xf32>
    %c0_25 = arith.constant 0 : index
    %c18 = arith.constant 18 : index
    %23 = vector.load %arg12[%c0_25, %c18] : memref<3x326xf32, #tpu.memory_space<vmem>>, vector<3x288xf32>
    %cst_26 = arith.constant dense<0.000000e+00> : vector<10x288xf32>
    %24 = tpu.matmul %22, %23, %cst_26 {dimension_numbers = #tpu.dot_dimension_numbers<[1], [0], [0], [1], [0, 0, 1, 1], [], []>} : vector<10x3xf32>, vector<3x288xf32>, vector<10x288xf32> -> vector<10x288xf32>
    %25 = arith.addf %20, %24 : vector<10x288xf32>
    %c4 = arith.constant 4 : index
    %c0_27 = arith.constant 0 : index
    %c0_28 = arith.constant 0 : index
    %26 = vector.load %arg2[%c4, %c0_27, %c0_28] : memref<9x10x3xf32, #tpu.memory_space<vmem>>, vector<1x10x3xf32>
    %27 = vector.shape_cast %26 : vector<1x10x3xf32> to vector<10x3xf32>
    %c0_29 = arith.constant 0 : index
    %c19 = arith.constant 19 : index
    %28 = vector.load %arg12[%c0_29, %c19] : memref<3x326xf32, #tpu.memory_space<vmem>>, vector<3x288xf32>
    %cst_30 = arith.constant dense<0.000000e+00> : vector<10x288xf32>
    %29 = tpu.matmul %27, %28, %cst_30 {dimension_numbers = #tpu.dot_dimension_numbers<[1], [0], [0], [1], [0, 0, 1, 1], [], []>} : vector<10x3xf32>, vector<3x288xf32>, vector<10x288xf32> -> vector<10x288xf32>
    %30 = arith.addf %25, %29 : vector<10x288xf32>
    %c5 = arith.constant 5 : index
    %c0_31 = arith.constant 0 : index
    %c0_32 = arith.constant 0 : index
    %31 = vector.load %arg2[%c5, %c0_31, %c0_32] : memref<9x10x3xf32, #tpu.memory_space<vmem>>, vector<1x10x3xf32>
    %32 = vector.shape_cast %31 : vector<1x10x3xf32> to vector<10x3xf32>
    %c0_33 = arith.constant 0 : index
    %c20 = arith.constant 20 : index
    %33 = vector.load %arg12[%c0_33, %c20] : memref<3x326xf32, #tpu.memory_space<vmem>>, vector<3x288xf32>
    %cst_34 = arith.constant dense<0.000000e+00> : vector<10x288xf32>
    %34 = tpu.matmul %32, %33, %cst_34 {dimension_numbers = #tpu.dot_dimension_numbers<[1], [0], [0], [1], [0, 0, 1, 1], [], []>} : vector<10x3xf32>, vector<3x288xf32>, vector<10x288xf32> -> vector<10x288xf32>
    %35 = arith.addf %30, %34 : vector<10x288xf32>
    %c6 = arith.constant 6 : index
    %c0_35 = arith.constant 0 : index
    %c0_36 = arith.constant 0 : index
    %36 = vector.load %arg2[%c6, %c0_35, %c0_36] : memref<9x10x3xf32, #tpu.memory_space<vmem>>, vector<1x10x3xf32>
    %37 = vector.shape_cast %36 : vector<1x10x3xf32> to vector<10x3xf32>
    %c0_37 = arith.constant 0 : index
    %c36 = arith.constant 36 : index
    %38 = vector.load %arg12[%c0_37, %c36] : memref<3x326xf32, #tpu.memory_space<vmem>>, vector<3x288xf32>
    %cst_38 = arith.constant dense<0.000000e+00> : vector<10x288xf32>
    %39 = tpu.matmul %37, %38, %cst_38 {dimension_numbers = #tpu.dot_dimension_numbers<[1], [0], [0], [1], [0, 0, 1, 1], [], []>} : vector<10x3xf32>, vector<3x288xf32>, vector<10x288xf32> -> vector<10x288xf32>
    %40 = arith.addf %35, %39 : vector<10x288xf32>
    %c7 = arith.constant 7 : index
    %c0_39 = arith.constant 0 : index
    %c0_40 = arith.constant 0 : index
    %41 = vector.load %arg2[%c7, %c0_39, %c0_40] : memref<9x10x3xf32, #tpu.memory_space<vmem>>, vector<1x10x3xf32>
    %42 = vector.shape_cast %41 : vector<1x10x3xf32> to vector<10x3xf32>
    %c0_41 = arith.constant 0 : index
    %c37 = arith.constant 37 : index
    %43 = vector.load %arg12[%c0_41, %c37] : memref<3x326xf32, #tpu.memory_space<vmem>>, vector<3x288xf32>
    %cst_42 = arith.constant dense<0.000000e+00> : vector<10x288xf32>
    %44 = tpu.matmul %42, %43, %cst_42 {dimension_numbers = #tpu.dot_dimension_numbers<[1], [0], [0], [1], [0, 0, 1, 1], [], []>} : vector<10x3xf32>, vector<3x288xf32>, vector<10x288xf32> -> vector<10x288xf32>
    %45 = arith.addf %40, %44 : vector<10x288xf32>
    %c8 = arith.constant 8 : index
    %c0_43 = arith.constant 0 : index
    %c0_44 = arith.constant 0 : index
    %46 = vector.load %arg2[%c8, %c0_43, %c0_44] : memref<9x10x3xf32, #tpu.memory_space<vmem>>, vector<1x10x3xf32>
    %47 = vector.shape_cast %46 : vector<1x10x3xf32> to vector<10x3xf32>
    %c0_45 = arith.constant 0 : index
    %c38 = arith.constant 38 : index
    %48 = vector.load %arg12[%c0_45, %c38] : memref<3x326xf32, #tpu.memory_space<vmem>>, vector<3x288xf32>
    %cst_46 = arith.constant dense<0.000000e+00> : vector<10x288xf32>
    %49 = tpu.matmul %47, %48, %cst_46 {dimension_numbers = #tpu.dot_dimension_numbers<[1], [0], [0], [1], [0, 0, 1, 1], [], []>} : vector<10x3xf32>, vector<3x288xf32>, vector<10x288xf32> -> vector<10x288xf32>
    %50 = arith.addf %45, %49 : vector<10x288xf32>
    %c0_47 = arith.constant 0 : index
    %c0_48 = arith.constant 0 : index
    %51 = vector.load %arg3[%c0_47, %c0_48] : memref<10x1xf32, #tpu.memory_space<vmem>>, vector<10x1xf32>
    %52 = vector.broadcast %51 : vector<10x1xf32> to vector<10x288xf32>
    %53 = arith.addf %50, %52 : vector<10x288xf32>
    %cst_49 = arith.constant 0.000000e+00 : f32
    %54 = vector.broadcast %cst_49 : f32 to vector<10x288xf32>
    %55 = arith.maximumf %53, %54 : vector<10x288xf32>
    %c0_50 = arith.constant 0 : index
    %c0_51 = arith.constant 0 : index
    %56 = vector.load %arg9[%c0_50, %c0_51] : memref<288x1157xf32, #tpu.memory_space<vmem>>, vector<288x1157xf32>
    %cst_52 = arith.constant dense<0.000000e+00> : vector<10x1157xf32>
    %57 = tpu.matmul %55, %56, %cst_52 {dimension_numbers = #tpu.dot_dimension_numbers<[1], [0], [0], [1], [0, 0, 1, 1], [], []>} : vector<10x288xf32>, vector<288x1157xf32>, vector<10x1157xf32> -> vector<10x1157xf32>
    %c0_53 = arith.constant 0 : index
    %c0_54 = arith.constant 0 : index
    %58 = vector.load %arg13[%c0_53, %c0_54] : memref<10x1157xf32, #tpu.memory_space<vmem>>, vector<10x1157xf32>
    tpu.vector_store %arg13[%c0_53, %c0_54], %57 {strides = array<i32>} : memref<10x1157xf32, #tpu.memory_space<vmem>>, vector<10x1157xf32>,
    %cst_55 = arith.constant 0.000000e+00 : f32
    %59 = vector.broadcast %cst_55 : f32 to vector<20x1085xf32>
    %c0_56 = arith.constant 0 : index
    %c0_57 = arith.constant 0 : index
    %c0_58 = arith.constant 0 : index
    %60 = vector.load %arg4[%c0_56, %c0_57, %c0_58] : memref<9x20x10xf32, #tpu.memory_space<vmem>>, vector<1x20x10xf32>
    %61 = vector.shape_cast %60 : vector<1x20x10xf32> to vector<20x10xf32>
    %c0_59 = arith.constant 0 : index
    %c0_60 = arith.constant 0 : index
    %62 = vector.load %arg13[%c0_59, %c0_60] : memref<10x1157xf32, #tpu.memory_space<vmem>>, vector<10x1085xf32>
    %cst_61 = arith.constant dense<0.000000e+00> : vector<20x1085xf32>
    %63 = tpu.matmul %61, %62, %cst_61 {dimension_numbers = #tpu.dot_dimension_numbers<[1], [0], [0], [1], [0, 0, 1, 1], [], []>} : vector<20x10xf32>, vector<10x1085xf32>, vector<20x1085xf32> -> vector<20x1085xf32>
    %64 = arith.addf %59, %63 : vector<20x1085xf32>
    %c1_62 = arith.constant 1 : index
    %c0_63 = arith.constant 0 : index
    %c0_64 = arith.constant 0 : index
    %65 = vector.load %arg4[%c1_62, %c0_63, %c0_64] : memref<9x20x10xf32, #tpu.memory_space<vmem>>, vector<1x20x10xf32>
    %66 = vector.shape_cast %65 : vector<1x20x10xf32> to vector<20x10xf32>
    %c0_65 = arith.constant 0 : index
    %c1_66 = arith.constant 1 : index
    %67 = vector.load %arg13[%c0_65, %c1_66] : memref<10x1157xf32, #tpu.memory_space<vmem>>, vector<10x1085xf32>
    %cst_67 = arith.constant dense<0.000000e+00> : vector<20x1085xf32>
    %68 = tpu.matmul %66, %67, %cst_67 {dimension_numbers = #tpu.dot_dimension_numbers<[1], [0], [0], [1], [0, 0, 1, 1], [], []>} : vector<20x10xf32>, vector<10x1085xf32>, vector<20x1085xf32> -> vector<20x1085xf32>
    %69 = arith.addf %64, %68 : vector<20x1085xf32>
    %c2_68 = arith.constant 2 : index
    %c0_69 = arith.constant 0 : index
    %c0_70 = arith.constant 0 : index
    %70 = vector.load %arg4[%c2_68, %c0_69, %c0_70] : memref<9x20x10xf32, #tpu.memory_space<vmem>>, vector<1x20x10xf32>
    %71 = vector.shape_cast %70 : vector<1x20x10xf32> to vector<20x10xf32>
    %c0_71 = arith.constant 0 : index
    %c2_72 = arith.constant 2 : index
    %72 = vector.load %arg13[%c0_71, %c2_72] : memref<10x1157xf32, #tpu.memory_space<vmem>>, vector<10x1085xf32>
    %cst_73 = arith.constant dense<0.000000e+00> : vector<20x1085xf32>
    %73 = tpu.matmul %71, %72, %cst_73 {dimension_numbers = #tpu.dot_dimension_numbers<[1], [0], [0], [1], [0, 0, 1, 1], [], []>} : vector<20x10xf32>, vector<10x1085xf32>, vector<20x1085xf32> -> vector<20x1085xf32>
    %74 = arith.addf %69, %73 : vector<20x1085xf32>
    %c3_74 = arith.constant 3 : index
    %c0_75 = arith.constant 0 : index
    %c0_76 = arith.constant 0 : index
    %75 = vector.load %arg4[%c3_74, %c0_75, %c0_76] : memref<9x20x10xf32, #tpu.memory_space<vmem>>, vector<1x20x10xf32>
    %76 = vector.shape_cast %75 : vector<1x20x10xf32> to vector<20x10xf32>
    %c0_77 = arith.constant 0 : index
    %c35 = arith.constant 35 : index
    %77 = vector.load %arg13[%c0_77, %c35] : memref<10x1157xf32, #tpu.memory_space<vmem>>, vector<10x1085xf32>
    %cst_78 = arith.constant dense<0.000000e+00> : vector<20x1085xf32>
    %78 = tpu.matmul %76, %77, %cst_78 {dimension_numbers = #tpu.dot_dimension_numbers<[1], [0], [0], [1], [0, 0, 1, 1], [], []>} : vector<20x10xf32>, vector<10x1085xf32>, vector<20x1085xf32> -> vector<20x1085xf32>
    %79 = arith.addf %74, %78 : vector<20x1085xf32>
    %c4_79 = arith.constant 4 : index
    %c0_80 = arith.constant 0 : index
    %c0_81 = arith.constant 0 : index
    %80 = vector.load %arg4[%c4_79, %c0_80, %c0_81] : memref<9x20x10xf32, #tpu.memory_space<vmem>>, vector<1x20x10xf32>
    %81 = vector.shape_cast %80 : vector<1x20x10xf32> to vector<20x10xf32>
    %c0_82 = arith.constant 0 : index
    %c36_83 = arith.constant 36 : index
    %82 = vector.load %arg13[%c0_82, %c36_83] : memref<10x1157xf32, #tpu.memory_space<vmem>>, vector<10x1085xf32>
    %cst_84 = arith.constant dense<0.000000e+00> : vector<20x1085xf32>
    %83 = tpu.matmul %81, %82, %cst_84 {dimension_numbers = #tpu.dot_dimension_numbers<[1], [0], [0], [1], [0, 0, 1, 1], [], []>} : vector<20x10xf32>, vector<10x1085xf32>, vector<20x1085xf32> -> vector<20x1085xf32>
    %84 = arith.addf %79, %83 : vector<20x1085xf32>
    %c5_85 = arith.constant 5 : index
    %c0_86 = arith.constant 0 : index
    %c0_87 = arith.constant 0 : index
    %85 = vector.load %arg4[%c5_85, %c0_86, %c0_87] : memref<9x20x10xf32, #tpu.memory_space<vmem>>, vector<1x20x10xf32>
    %86 = vector.shape_cast %85 : vector<1x20x10xf32> to vector<20x10xf32>
    %c0_88 = arith.constant 0 : index
    %c37_89 = arith.constant 37 : index
    %87 = vector.load %arg13[%c0_88, %c37_89] : memref<10x1157xf32, #tpu.memory_space<vmem>>, vector<10x1085xf32>
    %cst_90 = arith.constant dense<0.000000e+00> : vector<20x1085xf32>
    %88 = tpu.matmul %86, %87, %cst_90 {dimension_numbers = #tpu.dot_dimension_numbers<[1], [0], [0], [1], [0, 0, 1, 1], [], []>} : vector<20x10xf32>, vector<10x1085xf32>, vector<20x1085xf32> -> vector<20x1085xf32>
    %89 = arith.addf %84, %88 : vector<20x1085xf32>
    %c6_91 = arith.constant 6 : index
    %c0_92 = arith.constant 0 : index
    %c0_93 = arith.constant 0 : index
    %90 = vector.load %arg4[%c6_91, %c0_92, %c0_93] : memref<9x20x10xf32, #tpu.memory_space<vmem>>, vector<1x20x10xf32>
    %91 = vector.shape_cast %90 : vector<1x20x10xf32> to vector<20x10xf32>
    %c0_94 = arith.constant 0 : index
    %c70 = arith.constant 70 : index
    %92 = vector.load %arg13[%c0_94, %c70] : memref<10x1157xf32, #tpu.memory_space<vmem>>, vector<10x1085xf32>
    %cst_95 = arith.constant dense<0.000000e+00> : vector<20x1085xf32>
    %93 = tpu.matmul %91, %92, %cst_95 {dimension_numbers = #tpu.dot_dimension_numbers<[1], [0], [0], [1], [0, 0, 1, 1], [], []>} : vector<20x10xf32>, vector<10x1085xf32>, vector<20x1085xf32> -> vector<20x1085xf32>
    %94 = arith.addf %89, %93 : vector<20x1085xf32>
    %c7_96 = arith.constant 7 : index
    %c0_97 = arith.constant 0 : index
    %c0_98 = arith.constant 0 : index
    %95 = vector.load %arg4[%c7_96, %c0_97, %c0_98] : memref<9x20x10xf32, #tpu.memory_space<vmem>>, vector<1x20x10xf32>
    %96 = vector.shape_cast %95 : vector<1x20x10xf32> to vector<20x10xf32>
    %c0_99 = arith.constant 0 : index
    %c71 = arith.constant 71 : index
    %97 = vector.load %arg13[%c0_99, %c71] : memref<10x1157xf32, #tpu.memory_space<vmem>>, vector<10x1085xf32>
    %cst_100 = arith.constant dense<0.000000e+00> : vector<20x1085xf32>
    %98 = tpu.matmul %96, %97, %cst_100 {dimension_numbers = #tpu.dot_dimension_numbers<[1], [0], [0], [1], [0, 0, 1, 1], [], []>} : vector<20x10xf32>, vector<10x1085xf32>, vector<20x1085xf32> -> vector<20x1085xf32>
    %99 = arith.addf %94, %98 : vector<20x1085xf32>
    %c8_101 = arith.constant 8 : index
    %c0_102 = arith.constant 0 : index
    %c0_103 = arith.constant 0 : index
    %100 = vector.load %arg4[%c8_101, %c0_102, %c0_103] : memref<9x20x10xf32, #tpu.memory_space<vmem>>, vector<1x20x10xf32>
    %101 = vector.shape_cast %100 : vector<1x20x10xf32> to vector<20x10xf32>
    %c0_104 = arith.constant 0 : index
    %c72 = arith.constant 72 : index
    %102 = vector.load %arg13[%c0_104, %c72] : memref<10x1157xf32, #tpu.memory_space<vmem>>, vector<10x1085xf32>
    %cst_105 = arith.constant dense<0.000000e+00> : vector<20x1085xf32>
    %103 = tpu.matmul %101, %102, %cst_105 {dimension_numbers = #tpu.dot_dimension_numbers<[1], [0], [0], [1], [0, 0, 1, 1], [], []>} : vector<20x10xf32>, vector<10x1085xf32>, vector<20x1085xf32> -> vector<20x1085xf32>
    %104 = arith.addf %99, %103 : vector<20x1085xf32>
    %c0_106 = arith.constant 0 : index
    %c0_107 = arith.constant 0 : index
    %105 = vector.load %arg5[%c0_106, %c0_107] : memref<20x1xf32, #tpu.memory_space<vmem>>, vector<20x1xf32>
    %106 = vector.broadcast %105 : vector<20x1xf32> to vector<20x1085xf32>
    %107 = arith.addf %104, %106 : vector<20x1085xf32>
    %cst_108 = arith.constant 0.000000e+00 : f32
    %108 = vector.broadcast %cst_108 : f32 to vector<20x1085xf32>
    %109 = arith.maximumf %107, %108 : vector<20x1085xf32>
    %c0_109 = arith.constant 0 : index
    %c0_110 = arith.constant 0 : index
    %110 = vector.load %arg10[%c0_109, %c0_110] : memref<1x1085xf32, #tpu.memory_space<vmem>>, vector<1x1085xf32>
    %111 = vector.broadcast %110 : vector<1x1085xf32> to vector<20x1085xf32>
    %112 = arith.mulf %109, %111 : vector<20x1085xf32>
    %cst_111 = arith.constant 0.000000e+00 : f32
    %113 = vector.broadcast %cst_111 : f32 to vector<20x72xf32>
    %c0_112 = arith.constant 0 : index
    %c0_113 = arith.constant 0 : index
    %114 = vector.load %arg14[%c0_112, %c0_113] : memref<20x1228xf32, #tpu.memory_space<vmem>>, vector<20x72xf32>
    tpu.vector_store %arg14[%c0_112, %c0_113], %113 {strides = array<i32>} : memref<20x1228xf32, #tpu.memory_space<vmem>>, vector<20x72xf32>,
    %cst_114 = arith.constant 0.000000e+00 : f32
    %115 = vector.broadcast %cst_114 : f32 to vector<20x71xf32>
    %c0_115 = arith.constant 0 : index
    %c1157 = arith.constant 1157 : index
    %116 = vector.load %arg14[%c0_115, %c1157] : memref<20x1228xf32, #tpu.memory_space<vmem>>, vector<20x71xf32>
    tpu.vector_store %arg14[%c0_115, %c1157], %115 {strides = array<i32>} : memref<20x1228xf32, #tpu.memory_space<vmem>>, vector<20x71xf32>,
    %c0_116 = arith.constant 0 : index
    %c72_117 = arith.constant 72 : index
    %117 = vector.load %arg14[%c0_116, %c72_117] : memref<20x1228xf32, #tpu.memory_space<vmem>>, vector<20x1085xf32>
    tpu.vector_store %arg14[%c0_116, %c72_117], %112 {strides = array<i32>} : memref<20x1228xf32, #tpu.memory_space<vmem>>, vector<20x1085xf32>,
    %cst_118 = arith.constant 0.000000e+00 : f32
    %118 = vector.broadcast %cst_118 : f32 to vector<3x1120xf32>
    %c0_119 = arith.constant 0 : index
    %c0_120 = arith.constant 0 : index
    %c0_121 = arith.constant 0 : index
    %119 = vector.load %arg6[%c0_119, %c0_120, %c0_121] : memref<16x3x20xf32, #tpu.memory_space<vmem>>, vector<1x3x20xf32>
    %120 = vector.shape_cast %119 : vector<1x3x20xf32> to vector<3x20xf32>
    %c0_122 = arith.constant 0 : index
    %c0_123 = arith.constant 0 : index
    %121 = vector.load %arg14[%c0_122, %c0_123] : memref<20x1228xf32, #tpu.memory_space<vmem>>, vector<20x1120xf32>
    %cst_124 = arith.constant dense<0.000000e+00> : vector<3x1120xf32>
    %122 = tpu.matmul %120, %121, %cst_124 {dimension_numbers = #tpu.dot_dimension_numbers<[1], [0], [0], [1], [0, 0, 1, 1], [], []>} : vector<3x20xf32>, vector<20x1120xf32>, vector<3x1120xf32> -> vector<3x1120xf32>
    %123 = arith.addf %118, %122 : vector<3x1120xf32>
    %c1_125 = arith.constant 1 : index
    %c0_126 = arith.constant 0 : index
    %c0_127 = arith.constant 0 : index
    %124 = vector.load %arg6[%c1_125, %c0_126, %c0_127] : memref<16x3x20xf32, #tpu.memory_space<vmem>>, vector<1x3x20xf32>
    %125 = vector.shape_cast %124 : vector<1x3x20xf32> to vector<3x20xf32>
    %c0_128 = arith.constant 0 : index
    %c1_129 = arith.constant 1 : index
    %126 = vector.load %arg14[%c0_128, %c1_129] : memref<20x1228xf32, #tpu.memory_space<vmem>>, vector<20x1120xf32>
    %cst_130 = arith.constant dense<0.000000e+00> : vector<3x1120xf32>
    %127 = tpu.matmul %125, %126, %cst_130 {dimension_numbers = #tpu.dot_dimension_numbers<[1], [0], [0], [1], [0, 0, 1, 1], [], []>} : vector<3x20xf32>, vector<20x1120xf32>, vector<3x1120xf32> -> vector<3x1120xf32>
    %128 = arith.addf %123, %127 : vector<3x1120xf32>
    %c2_131 = arith.constant 2 : index
    %c0_132 = arith.constant 0 : index
    %c0_133 = arith.constant 0 : index
    %129 = vector.load %arg6[%c2_131, %c0_132, %c0_133] : memref<16x3x20xf32, #tpu.memory_space<vmem>>, vector<1x3x20xf32>
    %130 = vector.shape_cast %129 : vector<1x3x20xf32> to vector<3x20xf32>
    %c0_134 = arith.constant 0 : index
    %c2_135 = arith.constant 2 : index
    %131 = vector.load %arg14[%c0_134, %c2_135] : memref<20x1228xf32, #tpu.memory_space<vmem>>, vector<20x1120xf32>
    %cst_136 = arith.constant dense<0.000000e+00> : vector<3x1120xf32>
    %132 = tpu.matmul %130, %131, %cst_136 {dimension_numbers = #tpu.dot_dimension_numbers<[1], [0], [0], [1], [0, 0, 1, 1], [], []>} : vector<3x20xf32>, vector<20x1120xf32>, vector<3x1120xf32> -> vector<3x1120xf32>
    %133 = arith.addf %128, %132 : vector<3x1120xf32>
    %c3_137 = arith.constant 3 : index
    %c0_138 = arith.constant 0 : index
    %c0_139 = arith.constant 0 : index
    %134 = vector.load %arg6[%c3_137, %c0_138, %c0_139] : memref<16x3x20xf32, #tpu.memory_space<vmem>>, vector<1x3x20xf32>
    %135 = vector.shape_cast %134 : vector<1x3x20xf32> to vector<3x20xf32>
    %c0_140 = arith.constant 0 : index
    %c3_141 = arith.constant 3 : index
    %136 = vector.load %arg14[%c0_140, %c3_141] : memref<20x1228xf32, #tpu.memory_space<vmem>>, vector<20x1120xf32>
    %cst_142 = arith.constant dense<0.000000e+00> : vector<3x1120xf32>
    %137 = tpu.matmul %135, %136, %cst_142 {dimension_numbers = #tpu.dot_dimension_numbers<[1], [0], [0], [1], [0, 0, 1, 1], [], []>} : vector<3x20xf32>, vector<20x1120xf32>, vector<3x1120xf32> -> vector<3x1120xf32>
    %138 = arith.addf %133, %137 : vector<3x1120xf32>
    %c4_143 = arith.constant 4 : index
    %c0_144 = arith.constant 0 : index
    %c0_145 = arith.constant 0 : index
    %139 = vector.load %arg6[%c4_143, %c0_144, %c0_145] : memref<16x3x20xf32, #tpu.memory_space<vmem>>, vector<1x3x20xf32>
    %140 = vector.shape_cast %139 : vector<1x3x20xf32> to vector<3x20xf32>
    %c0_146 = arith.constant 0 : index
    %c35_147 = arith.constant 35 : index
    %141 = vector.load %arg14[%c0_146, %c35_147] : memref<20x1228xf32, #tpu.memory_space<vmem>>, vector<20x1120xf32>
    %cst_148 = arith.constant dense<0.000000e+00> : vector<3x1120xf32>
    %142 = tpu.matmul %140, %141, %cst_148 {dimension_numbers = #tpu.dot_dimension_numbers<[1], [0], [0], [1], [0, 0, 1, 1], [], []>} : vector<3x20xf32>, vector<20x1120xf32>, vector<3x1120xf32> -> vector<3x1120xf32>
    %143 = arith.addf %138, %142 : vector<3x1120xf32>
    %c5_149 = arith.constant 5 : index
    %c0_150 = arith.constant 0 : index
    %c0_151 = arith.constant 0 : index
    %144 = vector.load %arg6[%c5_149, %c0_150, %c0_151] : memref<16x3x20xf32, #tpu.memory_space<vmem>>, vector<1x3x20xf32>
    %145 = vector.shape_cast %144 : vector<1x3x20xf32> to vector<3x20xf32>
    %c0_152 = arith.constant 0 : index
    %c36_153 = arith.constant 36 : index
    %146 = vector.load %arg14[%c0_152, %c36_153] : memref<20x1228xf32, #tpu.memory_space<vmem>>, vector<20x1120xf32>
    %cst_154 = arith.constant dense<0.000000e+00> : vector<3x1120xf32>
    %147 = tpu.matmul %145, %146, %cst_154 {dimension_numbers = #tpu.dot_dimension_numbers<[1], [0], [0], [1], [0, 0, 1, 1], [], []>} : vector<3x20xf32>, vector<20x1120xf32>, vector<3x1120xf32> -> vector<3x1120xf32>
    %148 = arith.addf %143, %147 : vector<3x1120xf32>
    %c6_155 = arith.constant 6 : index
    %c0_156 = arith.constant 0 : index
    %c0_157 = arith.constant 0 : index
    %149 = vector.load %arg6[%c6_155, %c0_156, %c0_157] : memref<16x3x20xf32, #tpu.memory_space<vmem>>, vector<1x3x20xf32>
    %150 = vector.shape_cast %149 : vector<1x3x20xf32> to vector<3x20xf32>
    %c0_158 = arith.constant 0 : index
    %c37_159 = arith.constant 37 : index
    %151 = vector.load %arg14[%c0_158, %c37_159] : memref<20x1228xf32, #tpu.memory_space<vmem>>, vector<20x1120xf32>
    %cst_160 = arith.constant dense<0.000000e+00> : vector<3x1120xf32>
    %152 = tpu.matmul %150, %151, %cst_160 {dimension_numbers = #tpu.dot_dimension_numbers<[1], [0], [0], [1], [0, 0, 1, 1], [], []>} : vector<3x20xf32>, vector<20x1120xf32>, vector<3x1120xf32> -> vector<3x1120xf32>
    %153 = arith.addf %148, %152 : vector<3x1120xf32>
    %c7_161 = arith.constant 7 : index
    %c0_162 = arith.constant 0 : index
    %c0_163 = arith.constant 0 : index
    %154 = vector.load %arg6[%c7_161, %c0_162, %c0_163] : memref<16x3x20xf32, #tpu.memory_space<vmem>>, vector<1x3x20xf32>
    %155 = vector.shape_cast %154 : vector<1x3x20xf32> to vector<3x20xf32>
    %c0_164 = arith.constant 0 : index
    %c38_165 = arith.constant 38 : index
    %156 = vector.load %arg14[%c0_164, %c38_165] : memref<20x1228xf32, #tpu.memory_space<vmem>>, vector<20x1120xf32>
    %cst_166 = arith.constant dense<0.000000e+00> : vector<3x1120xf32>
    %157 = tpu.matmul %155, %156, %cst_166 {dimension_numbers = #tpu.dot_dimension_numbers<[1], [0], [0], [1], [0, 0, 1, 1], [], []>} : vector<3x20xf32>, vector<20x1120xf32>, vector<3x1120xf32> -> vector<3x1120xf32>
    %158 = arith.addf %153, %157 : vector<3x1120xf32>
    %c8_167 = arith.constant 8 : index
    %c0_168 = arith.constant 0 : index
    %c0_169 = arith.constant 0 : index
    %159 = vector.load %arg6[%c8_167, %c0_168, %c0_169] : memref<16x3x20xf32, #tpu.memory_space<vmem>>, vector<1x3x20xf32>
    %160 = vector.shape_cast %159 : vector<1x3x20xf32> to vector<3x20xf32>
    %c0_170 = arith.constant 0 : index
    %c70_171 = arith.constant 70 : index
    %161 = vector.load %arg14[%c0_170, %c70_171] : memref<20x1228xf32, #tpu.memory_space<vmem>>, vector<20x1120xf32>
    %cst_172 = arith.constant dense<0.000000e+00> : vector<3x1120xf32>
    %162 = tpu.matmul %160, %161, %cst_172 {dimension_numbers = #tpu.dot_dimension_numbers<[1], [0], [0], [1], [0, 0, 1, 1], [], []>} : vector<3x20xf32>, vector<20x1120xf32>, vector<3x1120xf32> -> vector<3x1120xf32>
    %163 = arith.addf %158, %162 : vector<3x1120xf32>
    %c9 = arith.constant 9 : index
    %c0_173 = arith.constant 0 : index
    %c0_174 = arith.constant 0 : index
    %164 = vector.load %arg6[%c9, %c0_173, %c0_174] : memref<16x3x20xf32, #tpu.memory_space<vmem>>, vector<1x3x20xf32>
    %165 = vector.shape_cast %164 : vector<1x3x20xf32> to vector<3x20xf32>
    %c0_175 = arith.constant 0 : index
    %c71_176 = arith.constant 71 : index
    %166 = vector.load %arg14[%c0_175, %c71_176] : memref<20x1228xf32, #tpu.memory_space<vmem>>, vector<20x1120xf32>
    %cst_177 = arith.constant dense<0.000000e+00> : vector<3x1120xf32>
    %167 = tpu.matmul %165, %166, %cst_177 {dimension_numbers = #tpu.dot_dimension_numbers<[1], [0], [0], [1], [0, 0, 1, 1], [], []>} : vector<3x20xf32>, vector<20x1120xf32>, vector<3x1120xf32> -> vector<3x1120xf32>
    %168 = arith.addf %163, %167 : vector<3x1120xf32>
    %c10 = arith.constant 10 : index
    %c0_178 = arith.constant 0 : index
    %c0_179 = arith.constant 0 : index
    %169 = vector.load %arg6[%c10, %c0_178, %c0_179] : memref<16x3x20xf32, #tpu.memory_space<vmem>>, vector<1x3x20xf32>
    %170 = vector.shape_cast %169 : vector<1x3x20xf32> to vector<3x20xf32>
    %c0_180 = arith.constant 0 : index
    %c72_181 = arith.constant 72 : index
    %171 = vector.load %arg14[%c0_180, %c72_181] : memref<20x1228xf32, #tpu.memory_space<vmem>>, vector<20x1120xf32>
    %cst_182 = arith.constant dense<0.000000e+00> : vector<3x1120xf32>
    %172 = tpu.matmul %170, %171, %cst_182 {dimension_numbers = #tpu.dot_dimension_numbers<[1], [0], [0], [1], [0, 0, 1, 1], [], []>} : vector<3x20xf32>, vector<20x1120xf32>, vector<3x1120xf32> -> vector<3x1120xf32>
    %173 = arith.addf %168, %172 : vector<3x1120xf32>
    %c11 = arith.constant 11 : index
    %c0_183 = arith.constant 0 : index
    %c0_184 = arith.constant 0 : index
    %174 = vector.load %arg6[%c11, %c0_183, %c0_184] : memref<16x3x20xf32, #tpu.memory_space<vmem>>, vector<1x3x20xf32>
    %175 = vector.shape_cast %174 : vector<1x3x20xf32> to vector<3x20xf32>
    %c0_185 = arith.constant 0 : index
    %c73 = arith.constant 73 : index
    %176 = vector.load %arg14[%c0_185, %c73] : memref<20x1228xf32, #tpu.memory_space<vmem>>, vector<20x1120xf32>
    %cst_186 = arith.constant dense<0.000000e+00> : vector<3x1120xf32>
    %177 = tpu.matmul %175, %176, %cst_186 {dimension_numbers = #tpu.dot_dimension_numbers<[1], [0], [0], [1], [0, 0, 1, 1], [], []>} : vector<3x20xf32>, vector<20x1120xf32>, vector<3x1120xf32> -> vector<3x1120xf32>
    %178 = arith.addf %173, %177 : vector<3x1120xf32>
    %c12 = arith.constant 12 : index
    %c0_187 = arith.constant 0 : index
    %c0_188 = arith.constant 0 : index
    %179 = vector.load %arg6[%c12, %c0_187, %c0_188] : memref<16x3x20xf32, #tpu.memory_space<vmem>>, vector<1x3x20xf32>
    %180 = vector.shape_cast %179 : vector<1x3x20xf32> to vector<3x20xf32>
    %c0_189 = arith.constant 0 : index
    %c105 = arith.constant 105 : index
    %181 = vector.load %arg14[%c0_189, %c105] : memref<20x1228xf32, #tpu.memory_space<vmem>>, vector<20x1120xf32>
    %cst_190 = arith.constant dense<0.000000e+00> : vector<3x1120xf32>
    %182 = tpu.matmul %180, %181, %cst_190 {dimension_numbers = #tpu.dot_dimension_numbers<[1], [0], [0], [1], [0, 0, 1, 1], [], []>} : vector<3x20xf32>, vector<20x1120xf32>, vector<3x1120xf32> -> vector<3x1120xf32>
    %183 = arith.addf %178, %182 : vector<3x1120xf32>
    %c13 = arith.constant 13 : index
    %c0_191 = arith.constant 0 : index
    %c0_192 = arith.constant 0 : index
    %184 = vector.load %arg6[%c13, %c0_191, %c0_192] : memref<16x3x20xf32, #tpu.memory_space<vmem>>, vector<1x3x20xf32>
    %185 = vector.shape_cast %184 : vector<1x3x20xf32> to vector<3x20xf32>
    %c0_193 = arith.constant 0 : index
    %c106 = arith.constant 106 : index
    %186 = vector.load %arg14[%c0_193, %c106] : memref<20x1228xf32, #tpu.memory_space<vmem>>, vector<20x1120xf32>
    %cst_194 = arith.constant dense<0.000000e+00> : vector<3x1120xf32>
    %187 = tpu.matmul %185, %186, %cst_194 {dimension_numbers = #tpu.dot_dimension_numbers<[1], [0], [0], [1], [0, 0, 1, 1], [], []>} : vector<3x20xf32>, vector<20x1120xf32>, vector<3x1120xf32> -> vector<3x1120xf32>
    %188 = arith.addf %183, %187 : vector<3x1120xf32>
    %c14 = arith.constant 14 : index
    %c0_195 = arith.constant 0 : index
    %c0_196 = arith.constant 0 : index
    %189 = vector.load %arg6[%c14, %c0_195, %c0_196] : memref<16x3x20xf32, #tpu.memory_space<vmem>>, vector<1x3x20xf32>
    %190 = vector.shape_cast %189 : vector<1x3x20xf32> to vector<3x20xf32>
    %c0_197 = arith.constant 0 : index
    %c107 = arith.constant 107 : index
    %191 = vector.load %arg14[%c0_197, %c107] : memref<20x1228xf32, #tpu.memory_space<vmem>>, vector<20x1120xf32>
    %cst_198 = arith.constant dense<0.000000e+00> : vector<3x1120xf32>
    %192 = tpu.matmul %190, %191, %cst_198 {dimension_numbers = #tpu.dot_dimension_numbers<[1], [0], [0], [1], [0, 0, 1, 1], [], []>} : vector<3x20xf32>, vector<20x1120xf32>, vector<3x1120xf32> -> vector<3x1120xf32>
    %193 = arith.addf %188, %192 : vector<3x1120xf32>
    %c15 = arith.constant 15 : index
    %c0_199 = arith.constant 0 : index
    %c0_200 = arith.constant 0 : index
    %194 = vector.load %arg6[%c15, %c0_199, %c0_200] : memref<16x3x20xf32, #tpu.memory_space<vmem>>, vector<1x3x20xf32>
    %195 = vector.shape_cast %194 : vector<1x3x20xf32> to vector<3x20xf32>
    %c0_201 = arith.constant 0 : index
    %c108 = arith.constant 108 : index
    %196 = vector.load %arg14[%c0_201, %c108] : memref<20x1228xf32, #tpu.memory_space<vmem>>, vector<20x1120xf32>
    %cst_202 = arith.constant dense<0.000000e+00> : vector<3x1120xf32>
    %197 = tpu.matmul %195, %196, %cst_202 {dimension_numbers = #tpu.dot_dimension_numbers<[1], [0], [0], [1], [0, 0, 1, 1], [], []>} : vector<3x20xf32>, vector<20x1120xf32>, vector<3x1120xf32> -> vector<3x1120xf32>
    %198 = arith.addf %193, %197 : vector<3x1120xf32>
    %c0_203 = arith.constant 0 : index
    %c0_204 = arith.constant 0 : index
    %199 = vector.load %arg7[%c0_203, %c0_204] : memref<3x1xf32, #tpu.memory_space<vmem>>, vector<3x1xf32>
    %200 = vector.broadcast %199 : vector<3x1xf32> to vector<3x1120xf32>
    %201 = arith.addf %198, %200 : vector<3x1120xf32>
    %202 = arith.negf %201 : vector<3x1120xf32>
    %203 = math.exp %202 : vector<3x1120xf32>
    %cst_205 = arith.constant 1.000000e+00 : f32
    %204 = vector.broadcast %cst_205 : f32 to vector<3x1120xf32>
    %205 = arith.addf %204, %203 : vector<3x1120xf32>
    %206 = arith.divf %204, %205 : vector<3x1120xf32>
    %c0_206 = arith.constant 0 : index
    %c0_207 = arith.constant 0 : index
    %c0_208 = arith.constant 0 : index
    %207 = vector.load %arg11[%c0_206, %c0_207, %c0_208] : memref<1x3x1120xf32, #tpu.memory_space<vmem>>, vector<1x3x1120xf32>
    %208 = vector.shape_cast %207 : vector<1x3x1120xf32> to vector<3x1120xf32>
    %209 = vector.shape_cast %206 : vector<3x1120xf32> to vector<1x3x1120xf32>
    tpu.vector_store %arg11[%c0_206, %c0_207, %c0_208], %209 {strides = array<i32>} : memref<1x3x1120xf32, #tpu.memory_space<vmem>>, vector<1x3x1120xf32>,
    return
  }
  func.func @transform_0(%arg0: i32) -> (i32, i32, i32) {
    %c0_i32 = arith.constant 0 : i32
    %c0_i32_0 = arith.constant 0 : i32
    %c0_i32_1 = arith.constant 0 : i32
    return %arg0, %c0_i32, %c0_i32_0 : i32, i32, i32
  }
  func.func @transform_1(%arg0: i32) -> (i32, i32, i32) {
    %c0_i32 = arith.constant 0 : i32
    %c0_i32_0 = arith.constant 0 : i32
    %c0_i32_1 = arith.constant 0 : i32
    %c0_i32_2 = arith.constant 0 : i32
    return %c0_i32, %c0_i32_0, %c0_i32_1 : i32, i32, i32
  }
  func.func @transform_2(%arg0: i32) -> (i32, i32) {
    %c0_i32 = arith.constant 0 : i32
    %c0_i32_0 = arith.constant 0 : i32
    %c0_i32_1 = arith.constant 0 : i32
    return %c0_i32, %c0_i32_0 : i32, i32
  }
  func.func @transform_3(%arg0: i32) -> (i32, i32, i32) {
    %c0_i32 = arith.constant 0 : i32
    %c0_i32_0 = arith.constant 0 : i32
    %c0_i32_1 = arith.constant 0 : i32
    %c0_i32_2 = arith.constant 0 : i32
    return %c0_i32, %c0_i32_0, %c0_i32_1 : i32, i32, i32
  }
  func.func @transform_4(%arg0: i32) -> (i32, i32) {
    %c0_i32 = arith.constant 0 : i32
    %c0_i32_0 = arith.constant 0 : i32
    %c0_i32_1 = arith.constant 0 : i32
    return %c0_i32, %c0_i32_0 : i32, i32
  }
  func.func @transform_5(%arg0: i32) -> (i32, i32, i32) {
    %c0_i32 = arith.constant 0 : i32
    %c0_i32_0 = arith.constant 0 : i32
    %c0_i32_1 = arith.constant 0 : i32
    %c0_i32_2 = arith.constant 0 : i32
    return %c0_i32, %c0_i32_0, %c0_i32_1 : i32, i32, i32
  }
  func.func @transform_6(%arg0: i32) -> (i32, i32) {
    %c0_i32 = arith.constant 0 : i32
    %c0_i32_0 = arith.constant 0 : i32
    %c0_i32_1 = arith.constant 0 : i32
    return %c0_i32, %c0_i32_0 : i32, i32
  }
  func.func @transform_7(%arg0: i32) -> (i32, i32) {
    %c0_i32 = arith.constant 0 : i32
    %c0_i32_0 = arith.constant 0 : i32
    %c0_i32_1 = arith.constant 0 : i32
    return %c0_i32, %c0_i32_0 : i32, i32
  }
  func.func @transform_8(%arg0: i32) -> (i32, i32) {
    %c0_i32 = arith.constant 0 : i32
    %c0_i32_0 = arith.constant 0 : i32
    %c0_i32_1 = arith.constant 0 : i32
    return %c0_i32, %c0_i32_0 : i32, i32
  }
  func.func @transform_9(%arg0: i32) -> (i32, i32) {
    %c0_i32 = arith.constant 0 : i32
    %c0_i32_0 = arith.constant 0 : i32
    %c0_i32_1 = arith.constant 0 : i32
    return %c0_i32, %c0_i32_0 : i32, i32
  }
  func.func @transform_10(%arg0: i32) -> (i32, i32, i32) {
    %c0_i32 = arith.constant 0 : i32
    %c0_i32_0 = arith.constant 0 : i32
    %c0_i32_1 = arith.constant 0 : i32
    return %arg0, %c0_i32, %c0_i32_0 : i32, i32, i32
  }
}

</mosaic_0001>

<bundles_post_ra>
// kernel: tnn_forward.1
= control target key start
LH: loop header
LB: loop body
LE: loop exit
PB: predicated region body
PF: predicated region fallthrough
CT: control target
= control target key end

     0   :  { %15 = vsyncpa [#allocation6], 0  ;;  %s20223_s0 = inlined_call_operand.vmem [shape: f32[2,3,256], index: 0, kind: input, shape index: {}]   ;;  %s20224_s1 = inlined_call_operand.vmem [shape: f32[9,10,3], index: 1, kind: input, shape index: {}]   ;;  %s20225_s2 = inlined_call_operand.vmem [shape: f32[10,1], index: 2, kind: input, shape index: {}]   ;;  %s20226_s3 = inlined_call_operand.vmem [shape: f32[9,20,10], index: 3, kind: input, shape index: {}]   ;;  %s20227_s4 = inlined_call_operand.vmem [shape: f32[20,1], index: 4, kind: input, shape index: {}]   ;;  %s20228_s5 = inlined_call_operand.vmem [shape: f32[16,3,20], index: 5, kind: input, shape index: {}]   ;;  %s20229_s6 = inlined_call_operand.vmem [shape: f32[3,1], index: 6, kind: input, shape index: {}]   ;;  %s20230_s7 = inlined_call_operand.vmem [shape: f32[256,326], index: 7, kind: input, shape index: {}]   ;;  %s20231_s8 = inlined_call_operand.hbm [shape: f32[288,1157], index: 8, kind: input, shape index: {}]   ;;  %s20232_s9 = inlined_call_operand.hbm [shape: f32[1,1085], index: 9, kind: input, shape index: {}]   ;;  %s20233_s10 = inlined_call_operand.vmem [shape: f32[2,3,1120], index: 10, kind: output, shape index: {}]  }
   0x1   :  { %16 = vsyncpa [#allocation8], 0  ;;  %s13475_s13 = smov 0  }
   0x2 LB: > { %s300_s16 = sshll.u32 %s20231_s8, 4  ;;  %s13484_s17 = sadd.s32 4294967295, %s13393_s13   ;;  %s13393_s13 = sphi %s13475_s13, %s22_s13   ;;  %s301_s16 = int_to_ptr.hbm [resolvable:$true] %s300_s16 }
   0x3   : > { %p11476_p0 = scmp.ge.s32.totalorder %s13393_s13, 1  ;;  %p268_p1 = scmp.lt.s32.totalorder %s13393_s13, 3 }
   0x4   : > { %p12282_p2 = scmp.eq.s32.totalorder %s13484_s17, 0  ;;  %s13395_s19 = smov [#allocation5]  }
   0x5   : > { %p13489_p3 = pnand %p11476_p0, %p268_p1  ;;  %s302_s20 = sshll.u32 %s13395_s19, 4  ;;  %s303_s20 = int_to_ptr.vmem [resolvable:$true] %s302_s20 }
   0x6   : > { %s315_s23 = sshll.u32 %s20232_s9, 4  ;;  %s13396_s24 = smov [#allocation7]   ;;  %s316_s23 = int_to_ptr.hbm [resolvable:$true] %s315_s23 }
   0x7   : > { %p12275_p4 = pneg %p13489_p3  ;;  %s317_s25 = sshll.u32 %s13396_s24, 4  ;;  %s318_s25 = int_to_ptr.vmem [resolvable:$true] %s317_s25 }
   0x8   : > { %s13397_s26 = smov 1280   ;;  %s13398_s27 = smov 80  }
   0x9   : > { %p12276_p5 = pnand %p12282_p2, %p12275_p4  ;;  %338 = sbr.rel (%p13489_p3) target bundleno = 2790 (0xae6), region = 60 }
   0xb   : > { %12278 = dma.hbm_to_vmem [thread:$0]  (!%p12276_p5), %s301_s16, 46080, %s303_s20, [#allocation6], %s13397_s26, %s13397_s26, %s13398_s27  }
   0xc   : > { %12281 = dma.hbm_to_vmem [thread:$0]  (!%p12276_p5), %s316_s23, 144, %s318_s25, [#allocation8]  }
   0xe   : > { %13384 = dma.done.wait (%p12282_p2), [#allocation6], 46080  }
   0xf   : > { %13386 = vsyncadd (%p12282_p2), [#allocation6], 4294921216 }
  0x10   : > { %13388 = dma.done.wait (%p12282_p2), [#allocation8], 144  }
  0x11   : > { %13390 = vsyncadd (%p12282_p2), [#allocation8], 4294967152  ;;  %v438_v0 = vld [vmem:[%s20230_s7 + $0x168] sm:$0xff]  ;;  %v439_v2 = vld [vmem:[%s20230_s7 + $0x170] sm:$0xff]  ;;  %p382_p6 = scmp.lt.s32.totalorder %s13484_s17, 1  ;;  %vm618_vm0 = vcmask 1043456  }
  0x12   : > { %v486_v1 = vld [vmem:[%s20230_s7 + $0x2e8] sm:$0xff]  ;;  %495 = vmatpush.msra.mxu0 %v438_v0  ;;  %v487_v3 = vld [vmem:[%s20230_s7 + $0x2f0] sm:$0xff]  ;;  %535 = vmatpush.msra.mxu2 %v439_v2  ;;  %v436_v6 = vld [vmem:[%s20230_s7 + $0x158] sm:$0xff]  ;;  %s13399_s27 = smov 127   ;;  %vm622_vm1 = vcmask 567296   ;;  %vm655_vm2 = vcmask 1042432  }
  0x13   : > { %515 = vmatpush.msra.mxu1 %v486_v1  ;;  %v435_v4 = vld [vmem:[%s20230_s7 + $0x150] sm:$0xff]  ;;  %555 = vmatpush.msra.mxu3 %v487_v3  ;;  %v484_v7 = vld [vmem:[%s20230_s7 + $0x2d8] sm:$0xff]  ;;  %v433_v10 = vld [vmem:[%s20230_s7 + $0x140] sm:$0xff]  ;;  %s21404_s17 = smov (!%p382_p6, %s13484_s17), 1  ;;  %s13400_s29 = smov 126   ;;  %vm648_vm3 = vcmask 23552  }
  0x14   : > { %v483_v5 = vld [vmem:[%s20230_s7 + $0x2d0] sm:$0xff]  ;;  %v432_v8 = vld [vmem:[%s20230_s7 + $0x138] sm:$0xff]  ;;  %496 = vmatpush.msra.mxu0 %v435_v4  ;;  %v481_v11 = vld [vmem:[%s20230_s7 + $0x2c0] sm:$0xff]  ;;  %536 = vmatpush.msra.mxu2 %v436_v6  ;;  %s12265_s28 = sshll.u32 %s21404_s17, 3  ;;  %s13402_s30 = smov 109   ;;  %vm645_vm4 = vcmask 1039360  }
  0x15   : > { %516 = vmatpush.msra.mxu1 %v483_v5  ;;  %v480_v9 = vld [vmem:[%s20230_s7 + $0x2b8] sm:$0xff]  ;;  %556 = vmatpush.msra.mxu3 %v484_v7  ;;  %v429_v12 = vld [vmem:[%s20230_s7 + $0x120] sm:$0xff]  ;;  %v430_v14 = vld [vmem:[%s20230_s7 + $0x128] sm:$0xff]  ;;  %s386_s25 = scalar_lea.vmem %s20223_s0, %s12265_s28  ;;  %s13403_s11 = smov 108   ;;  %vm837_vm5 = vcmask 1031168   ;;  %vm946_vm6 = vcmask 900096  }
  0x16   : > { %v477_v13 = vld [vmem:[%s20230_s7 + $0x2a0] sm:$0xff]  ;;  %497 = vmatpush.msra.mxu0 %v432_v8  ;;  %v478_v15 = vld [vmem:[%s20230_s7 + $0x2a8] sm:$0xff]  ;;  %537 = vmatpush.msra.mxu2 %v433_v10  ;;  %v427_v18 = vld [vmem:[%s20230_s7 + $0x110] sm:$0xff]  ;;  %s13404_s12 = smov 92   ;;  %s13405_s14 = smov 91   ;;  %vm1055_vm7 = vcmask 891904  }
  0x17   : > { %517 = vmatpush.msra.mxu1 %v480_v9  ;;  %557 = vmatpush.msra.mxu3 %v481_v11  ;;  %v426_v16 = vld [vmem:[%s20230_s7 + $0x108] sm:$0xff]  ;;  %v475_v19 = vld [vmem:[%s20230_s7 + $0x290] sm:$0xff]  ;;  %v424_v22 = vld [vmem:[%s20230_s7 + $0xf8] sm:$0xff]  ;;  %s13406_s15 = smov 90   ;;  %vm1164_vm8 = vcmask 883712   ;;  %vm1273_vm9 = vcmask 752640  }
  0x18   : > { %v474_v17 = vld [vmem:[%s20230_s7 + $0x288] sm:$0xff]  ;;  %498 = vmatpush.msra.mxu0 %v429_v12  ;;  %538 = vmatpush.msra.mxu2 %v430_v14  ;;  %v423_v20 = vld [vmem:[%s20230_s7 + $0xf0] sm:$0xff]  ;;  %v472_v23 = vld [vmem:[%s20230_s7 + $0x278] sm:$0xff]  ;;  %vm1382_vm10 = vcmask 744448   ;;  %vm1491_vm11 = vcmask 736256   ;;  %vm1965_vm12 = vcmask 261120  }
  0x19   : > { %518 = vmatpush.msra.mxu1 %v477_v13  ;;  %558 = vmatpush.msra.mxu3 %v478_v15  ;;  %v471_v21 = vld [vmem:[%s20230_s7 + $0x270] sm:$0xff]  ;;  %v420_v24 = vld [vmem:[%s20230_s7 + $0xd8] sm:$0xff]  ;;  %v421_v26 = vld [vmem:[%s20230_s7 + $0xe0] sm:$0xff]  ;;  %s13408_s16 = smov 93   ;;  %s13409_s18 = smov 58   ;;  %vm2798_vm13 = vcmask 1041408  }
  0x1a   : > { %499 = vmatpush.msra.mxu0 %v426_v16  ;;  %539 = vmatpush.msra.mxu2 %v427_v18  ;;  %v468_v25 = vld [vmem:[%s20230_s7 + $0x258] sm:$0xff]  ;;  %v469_v27 = vld [vmem:[%s20230_s7 + $0x260] sm:$0xff]  ;;  %v418_v30 = vld [vmem:[%s20230_s7 + $0xc8] sm:$0xff]  ;;  %vm2671_vm14 = vcmask 39936   ;;  %vm2682_vm15 = vcmask 33792   ;;  %s13410_s19 = smov 57  }
  0x1b   : > { %519 = vmatpush.msra.mxu1 %v474_v17  ;;  %559 = vmatpush.msra.mxu3 %v475_v19  ;;  %v417_v28 = vld [vmem:[%s20230_s7 + $0xc0] sm:$0xff]  ;;  %v466_v31 = vld [vmem:[%s20230_s7 + $0x248] sm:$0xff]  ;;  %v415_v34 = vld [vmem:[%s20230_s7 + $0xb0] sm:$0xff]  ;;  %s13415_s28 = smov 125   ;;  %s13416_s20 = smov 23  }
  0x1c   : > { %500 = vmatpush.msra.mxu0 %v423_v20  ;;  %540 = vmatpush.msra.mxu2 %v424_v22  ;;  %v465_v29 = vld [vmem:[%s20230_s7 + $0x240] sm:$0xff]  ;;  %v414_v32 = vld [vmem:[%s20230_s7 + $0xa8] sm:$0xff]  ;;  %v463_v35 = vld [vmem:[%s20230_s7 + $0x230] sm:$0xff]  ;;  %s12266_s21 = smul.u32 36, %s21404_s17 }
  0x1d   : > { %520 = vmatpush.msra.mxu1 %v471_v21  ;;  %560 = vmatpush.msra.mxu3 %v472_v23  ;;  %v462_v33 = vld [vmem:[%s20230_s7 + $0x228] sm:$0xff]  ;;  %v411_v36 = vld [vmem:[%s20230_s7 + $0x90] sm:$0xff]  ;;  %v412_v38 = vld [vmem:[%s20230_s7 + $0x98] sm:$0xff] }
  0x1e   : > { %501 = vmatpush.msra.mxu0 %v420_v24  ;;  %541 = vmatpush.msra.mxu2 %v421_v26  ;;  %v459_v37 = vld [vmem:[%s20230_s7 + $0x210] sm:$0xff]  ;;  %v460_v39 = vld [vmem:[%s20230_s7 + $0x218] sm:$0xff]  ;;  %v409_v42 = vld [vmem:[%s20230_s7 + $0x80] sm:$0xff] }
  0x1f   : > { %521 = vmatpush.msra.mxu1 %v468_v25  ;;  %561 = vmatpush.msra.mxu3 %v469_v27  ;;  %v408_v40 = vld [vmem:[%s20230_s7 + $0x78] sm:$0xff]  ;;  %v457_v43 = vld [vmem:[%s20230_s7 + $0x200] sm:$0xff]  ;;  %v406_v46 = vld [vmem:[%s20230_s7 + $0x68] sm:$0xff] }
  0x20   : > { %502 = vmatpush.msra.mxu0 %v417_v28  ;;  %542 = vmatpush.msra.mxu2 %v418_v30  ;;  %v456_v41 = vld [vmem:[%s20230_s7 + $0x1f8] sm:$0xff]  ;;  %v405_v44 = vld [vmem:[%s20230_s7 + $0x60] sm:$0xff]  ;;  %v454_v47 = vld [vmem:[%s20230_s7 + $0x1e8] sm:$0xff] }
  0x21   : > { %522 = vmatpush.msra.mxu1 %v465_v29  ;;  %562 = vmatpush.msra.mxu3 %v466_v31  ;;  %v453_v45 = vld [vmem:[%s20230_s7 + $0x1e0] sm:$0xff]  ;;  %v402_v49 = vld [vmem:[%s20230_s7 + $0x48] sm:$0xff]  ;;  %v403_v51 = vld [vmem:[%s20230_s7 + $0x50] sm:$0xff] }
  0x22   : > { %503 = vmatpush.msra.mxu0 %v414_v32  ;;  %543 = vmatpush.msra.mxu2 %v415_v34  ;;  %v392_v48 = vld [vmem:[%s386_s25] sm:$0x77]  ;;  %v450_v50 = vld [vmem:[%s20230_s7 + $0x1c8] sm:$0xff]  ;;  %v451_v52 = vld [vmem:[%s20230_s7 + $0x1d0] sm:$0xff]  ;;  %s13401_s25 = smov 110  }
  0x23   : > { %523 = vmatpush.msra.mxu1 %v462_v33  ;;  %563 = vmatpush.msra.mxu3 %v463_v35  ;;  %490 = vst [vmem:[#allocation1] ss:$2 sm:$0xff] %v392_v48  ;;  %v399_v53 = vld [vmem:[%s20230_s7 + $0x30] sm:$0xff]  ;;  %v400_v55 = vld [vmem:[%s20230_s7 + $0x38] sm:$0xff]  ;;  %v397_v59 = vld [vmem:[%s20230_s7 + $0x20] sm:$0xff] }
  0x24   : > { %504 = vmatpush.msra.mxu0 %v411_v36  ;;  %544 = vmatpush.msra.mxu2 %v412_v38  ;;  %v447_v54 = vld [vmem:[%s20230_s7 + $0x1b0] sm:$0xff]  ;;  %v448_v56 = vld [vmem:[%s20230_s7 + $0x1b8] sm:$0xff]  ;;  %v445_v60 = vld [vmem:[%s20230_s7 + $0x1a0] sm:$0xff] }
  0x25   : > { %524 = vmatpush.msra.mxu1 %v459_v37  ;;  %564 = vmatpush.msra.mxu3 %v460_v39  ;;  %v396_v57 = vld [vmem:[%s20230_s7 + $0x18] sm:$0xff]  ;;  %v393_v61 = vld [vmem:[%s20230_s7] sm:$0xff]  ;;  %v394_v63 = vld [vmem:[%s20230_s7 + $0x8] sm:$0xff] }
  0x26   : > { %505 = vmatpush.msra.mxu0 %v408_v40  ;;  %545 = vmatpush.msra.mxu2 %v409_v42  ;;  %v444_v58 = vld [vmem:[%s20230_s7 + $0x198] sm:$0xff]  ;;  %v441_v62 = vld [vmem:[%s20230_s7 + $0x180] sm:$0xff]  ;;  %v442_v0 = vld [vmem:[%s20230_s7 + $0x188] sm:$0xff] }
  0x27   : > { %525 = vmatpush.msra.mxu1 %v456_v41  ;;  %565 = vmatpush.msra.mxu3 %v457_v43  ;;  %v440_v3 = vld [vmem:[%s20230_s7 + $0x178] sm:$0xff]  ;;  %v437_v5 = vld [vmem:[%s20230_s7 + $0x160] sm:$0xff]  ;;  %v434_v7 = vld [vmem:[%s20230_s7 + $0x148] sm:$0xff] }
  0x28   : > { %506 = vmatpush.msra.mxu0 %v405_v44  ;;  %546 = vmatpush.msra.mxu2 %v406_v46  ;;  %v488_v4 = vld [vmem:[%s20230_s7 + $0x2f8] sm:$0xff]  ;;  %v485_v6 = vld [vmem:[%s20230_s7 + $0x2e0] sm:$0xff]  ;;  %v482_v8 = vld [vmem:[%s20230_s7 + $0x2c8] sm:$0xff] }
  0x29   : > { %526 = vmatpush.msra.mxu1 %v453_v45  ;;  %566 = vmatpush.msra.mxu3 %v454_v47  ;;  %v431_v9 = vld [vmem:[%s20230_s7 + $0x130] sm:$0xff]  ;;  %v428_v11 = vld [vmem:[%s20230_s7 + $0x118] sm:$0xff]  ;;  %v425_v13 = vld [vmem:[%s20230_s7 + $0x100] sm:$0xff] }
  0x2a   : > { %507 = vmatpush.msra.mxu0 %v402_v49  ;;  %547 = vmatpush.msra.mxu2 %v403_v51  ;;  %v13712_v1 = vld.sshfl [vmem:[#allocation1] sm:$0xff pattern:$0x75316420]  ;;  %v13714_v2 = vld.sshfl [vmem:[#allocation1 + $0x8] sm:$0xff pattern:$0x75316420] }
  0x2b   : > { %527 = vmatpush.msra.mxu1 %v450_v50  ;;  %567 = vmatpush.msra.mxu3 %v451_v52  ;;  %v479_v10 = vld [vmem:[%s20230_s7 + $0x2b0] sm:$0xff]  ;;  %v476_v12 = vld [vmem:[%s20230_s7 + $0x298] sm:$0xff]  ;;  %v473_v14 = vld [vmem:[%s20230_s7 + $0x280] sm:$0xff] }
  0x2c   : > { %508 = vmatpush.msra.mxu0 %v399_v53  ;;  %548 = vmatpush.msra.mxu2 %v400_v55  ;;  %v422_v15 = vld [vmem:[%s20230_s7 + $0xe8] sm:$0xff]  ;;  %v419_v17 = vld [vmem:[%s20230_s7 + $0xd0] sm:$0xff]  ;;  %v416_v19 = vld [vmem:[%s20230_s7 + $0xb8] sm:$0xff] }
  0x2d   : > { %528 = vmatpush.msra.mxu1 %v447_v54  ;;  %568 = vmatpush.msra.mxu3 %v448_v56  ;;  %v470_v16 = vld [vmem:[%s20230_s7 + $0x268] sm:$0xff]  ;;  %v467_v18 = vld [vmem:[%s20230_s7 + $0x250] sm:$0xff]  ;;  %v464_v20 = vld [vmem:[%s20230_s7 + $0x238] sm:$0xff] }
  0x2e   : > { %509 = vmatpush.msra.mxu0 %v396_v57  ;;  %549 = vmatpush.msra.mxu2 %v397_v59  ;;  %v413_v21 = vld [vmem:[%s20230_s7 + $0xa0] sm:$0xff]  ;;  %v410_v23 = vld [vmem:[%s20230_s7 + $0x88] sm:$0xff]  ;;  %v407_v25 = vld [vmem:[%s20230_s7 + $0x70] sm:$0xff] }
  0x2f   : > { %529 = vmatpush.msra.mxu1 %v444_v58  ;;  %569 = vmatpush.msra.mxu3 %v445_v60  ;;  %v461_v22 = vld [vmem:[%s20230_s7 + $0x220] sm:$0xff]  ;;  %v458_v24 = vld [vmem:[%s20230_s7 + $0x208] sm:$0xff]  ;;  %v455_v26 = vld [vmem:[%s20230_s7 + $0x1f0] sm:$0xff] }
  0x30   : > { %510 = vmatpush.msra.mxu0 %v393_v61  ;;  %550 = vmatpush.msra.mxu2 %v394_v63  ;;  %v404_v27 = vld [vmem:[%s20230_s7 + $0x58] sm:$0xff]  ;;  %v401_v29 = vld [vmem:[%s20230_s7 + $0x40] sm:$0xff]  ;;  %v398_v31 = vld [vmem:[%s20230_s7 + $0x28] sm:$0xff] }
  0x31   : > { %530 = vmatpush.msra.mxu1 %v441_v62  ;;  %570 = vmatpush.msra.mxu3 %v442_v0  ;;  %v452_v28 = vld [vmem:[%s20230_s7 + $0x1d8] sm:$0xff]  ;;  %v449_v30 = vld [vmem:[%s20230_s7 + $0x1c0] sm:$0xff]  ;;  %v446_v32 = vld [vmem:[%s20230_s7 + $0x1a8] sm:$0xff] }
  0x32   : > { %551 = vmatmul.f32.vlgmr.msra.gmra.mxu2 %v13712_v1  ;;  %571 = vmatmul.f32.vlgmr.msra.gmra.mxu3 %v13714_v2  ;;  %v395_v33 = vld [vmem:[%s20230_s7 + $0x10] sm:$0xff] }
  0x33   : > { %575 = vmatpush.msrb.mxu0 %v440_v3  ;;  %595 = vmatpush.msrb.mxu1 %v488_v4  ;;  %v443_v34 = vld [vmem:[%s20230_s7 + $0x190] sm:$0xff] }
  0x34   : > { %511 = vmatmul.f32.vlgmr.msra.gmra.mxu0 %v13712_v1  ;;  %531 = vmatmul.f32.vlgmr.msra.gmra.mxu1 %v13714_v2 }
  0x35   : > { %576 = vmatpush.msrb.mxu0 %v437_v5  ;;  %596 = vmatpush.msrb.mxu1 %v485_v6 }
  0x37   : > { %577 = vmatpush.msrb.mxu0 %v434_v7  ;;  %597 = vmatpush.msrb.mxu1 %v482_v8 }
  0x39   : > { %578 = vmatpush.msrb.mxu0 %v431_v9  ;;  %598 = vmatpush.msrb.mxu1 %v479_v10 }
  0x3b   : > { %579 = vmatpush.msrb.mxu0 %v428_v11  ;;  %599 = vmatpush.msrb.mxu1 %v476_v12 }
  0x3d   : > { %580 = vmatpush.msrb.mxu0 %v425_v13  ;;  %600 = vmatpush.msrb.mxu1 %v473_v14 }
  0x3f   : > { %581 = vmatpush.msrb.mxu0 %v422_v15  ;;  %601 = vmatpush.msrb.mxu1 %v470_v16 }
  0x41   : > { %582 = vmatpush.msrb.mxu0 %v419_v17  ;;  %602 = vmatpush.msrb.mxu1 %v467_v18 }
  0x43   : > { %583 = vmatpush.msrb.mxu0 %v416_v19  ;;  %603 = vmatpush.msrb.mxu1 %v464_v20 }
  0x45   : > { %584 = vmatpush.msrb.mxu0 %v413_v21  ;;  %604 = vmatpush.msrb.mxu1 %v461_v22 }
  0x47   : > { %585 = vmatpush.msrb.mxu0 %v410_v23  ;;  %605 = vmatpush.msrb.mxu1 %v458_v24 }
  0x49   : > { %586 = vmatpush.msrb.mxu0 %v407_v25  ;;  %606 = vmatpush.msrb.mxu1 %v455_v26  ;;  %v624_v25 = vld [vmem:[%s20224_s1] sm:$0xff]  ;;  %v625_v26 = vld [vmem:[%s20224_s1 + $0x8] sm:$0x3] }
  0x4b   : > { %587 = vmatpush.msrb.mxu0 %v404_v27  ;;  %607 = vmatpush.msrb.mxu1 %v452_v28 }
  0x4d   : > { %588 = vmatpush.msrb.mxu0 %v401_v29  ;;  %608 = vmatpush.msrb.mxu1 %v449_v30  ;;  %v11486_v30 = vld [vmem:[%s20224_s1 + $0x10] sm:$0xff] }
  0x4f   : > { %589 = vmatpush.msrb.mxu0 %v398_v31  ;;  %609 = vmatpush.msrb.mxu1 %v446_v32  ;;  %v11506_v32 = vld [vmem:[%s20224_s1 + $0x20] sm:$0xff] }
  0x51   : > { %590 = vmatpush.msrb.mxu0 %v395_v33  ;;  %610 = vmatpush.msrb.mxu1 %v443_v34  ;;  %v11487_v34 = vld [vmem:[%s20224_s1 + $0x18] sm:$0x3] }
  0x52   : > { %591 = vmatmul.f32.vlgmr.msrb.gmra.mxu0 %v13712_v1  ;;  %611 = vmatmul.f32.vlgmr.msrb.gmra.mxu1 %v13714_v2 }
  0xb1   : > { %v512_v35 = vpop.f32.mrf.mxu0  ;;  %v532_v36 = vpop.f32.mrf.mxu1 }
  0xb2   : > { %v533_v40 = vadd.f32 %v532_v36, %v512_v35  ;;  %v13866_v35 = vld [vmem:[%s20224_s1 + $0x28] sm:$0x3] }
  0xb5   : > { %v552_v37 = vpop.f32.mrf.mxu2  ;;  %v572_v38 = vpop.f32.mrf.mxu3 }
  0xb6   : > { %v573_v39 = vadd.f32 %v572_v38, %v552_v37 }
  0xb8   : > { %v617_v41 = vrot.slane %v573_v39, 4 }
  0xba   : > { %v619_v42 = vsel %vm618_vm0, %v533_v40, %v617_v41 }
  0xbb   : > { %621 = vst [vmem:[#allocation2] sm:$0x77] %v619_v42 }
  0xc2   : > { %v626_v43 = vld [vmem:[#allocation2] sm:$0x77] }
  0xc3   : > { %633 = vst [vmem:[#allocation1] ss:$2 sm:$0xff] %v626_v43  ;;  %v821_v50 = vld [vmem:[#allocation2] sm:$0x77] }
  0xc4   : > { %v930_v53 = vld [vmem:[#allocation2] sm:$0x77] }
  0xc5   : > { %v1039_v57 = vld [vmem:[#allocation2] sm:$0x77] }
  0xc6   : > { %v1148_v62 = vld [vmem:[#allocation2] sm:$0x77] }
  0xc7   : > { %v1257_v3 = vld [vmem:[#allocation2] sm:$0x77] }
  0xc8   : > { %v1366_v8 = vld [vmem:[#allocation2] sm:$0x77] }
  0xc9   : > { %v1475_v13 = vld [vmem:[#allocation2] sm:$0x77] }
  0xca   : > { %v636_v44 = vld.sshfl [vmem:[#allocation1] sm:$0xff pattern:$0x75316420]  ;;  %v637_v45 = vld.sshfl [vmem:[#allocation1 + $0x8] sm:$0xff pattern:$0x75316420] }
  0xcb   : > { %639 = vrot.lane.b32.xlu0 %v636_v44, %s13399_s27  ;;  %731 = vst [vmem:[#allocation1] ss:$2 sm:$0xff] %v626_v43 }
  0xcf   : > { %v592_v46 = vpop.f32.mrf.mxu0  ;;  %v612_v47 = vpop.f32.mrf.mxu1 }
  0xd0   : > { %v613_v48 = vadd.f32 %v612_v47, %v592_v46  ;;  %v11517_v46 = vld [vmem:[%s20224_s1 + $0x30] sm:$0xff] }
  0xd2   : > { %623 = vst.msk [vmem:[#allocation2 + $0x8] sm:$0x7] %vm622_vm1, %v613_v48  ;;  %v13820_v49 = vld.sshfl [vmem:[#allocation1] sm:$0xff pattern:$0x75316420]  ;;  %vm2788_vm1 = vcmask 80896  }
  0xd3   : > { %641 = vrot.lane.b32.xlu0 %v637_v45, %s13399_s27  ;;  %v735_v51 = vld.sshfl [vmem:[#allocation1 + $0x8] sm:$0xff pattern:$0x75316420] }
  0xd4   : > { %11500 = vmatpush.msk.msra.mxu0 %vm655_vm2, %v735_v51  ;;  %825 = vst [vmem:[#allocation1] ss:$2 sm:$0xff] %v821_v50 }
  0xd5   : > { %11501 = vmatmul.msk.f32.vlgmr.msra.gmra.mxu0 %vm648_vm3, %v624_v25 }
  0xd9   : > { %v627_v52 = vld [vmem:[#allocation2 + $0x8] sm:$0x7] }
  0xda   : > { %635 = vst [vmem:[#allocation1 + $0x10] ss:$2 sm:$0xff] %v627_v52  ;;  %v822_v61 = vld [vmem:[#allocation2 + $0x8] sm:$0x7] }
  0xdb   : > { %v828_v54 = vld.sshfl [vmem:[#allocation1] sm:$0xff pattern:$0x75316420]  ;;  %v829_v55 = vld.sshfl [vmem:[#allocation1 + $0x8] sm:$0xff pattern:$0x75316420] }
  0xdc   : > { %833 = vrot.lane.b32.xlu2 %v829_v55, %s13400_s29  ;;  %934 = vst [vmem:[#allocation1] ss:$2 sm:$0xff] %v930_v53  ;;  %v931_v2 = vld [vmem:[#allocation2 + $0x8] sm:$0x7]  ;;  %v11528_v53 = vld [vmem:[%s20224_s1 + $0x40] sm:$0xff] }
  0xdd   : > { %v1040_v7 = vld [vmem:[#allocation2 + $0x8] sm:$0x7]  ;;  %11502 = vmatmul.msk.f32.gmra.mxu0 %vm648_vm3, %v625_v26  ;;  %v11518_v55 = vld [vmem:[%s20224_s1 + $0x38] sm:$0x3] }
  0xde   : > { %v1149_v12 = vld [vmem:[#allocation2 + $0x8] sm:$0x7] }
  0xdf   : > { %v1258_v16 = vld [vmem:[#allocation2 + $0x8] sm:$0x7] }
  0xe0   : > { %v1367_v19 = vld [vmem:[#allocation2 + $0x8] sm:$0x7] }
  0xe1   : > { %v638_v56 = vld.sshfl [vmem:[#allocation1 + $0x10] sm:$0xff pattern:$0x75316420] }
  0xe2   : > { %643 = vrot.lane.b32.xlu1 %v638_v56, %s13399_s27  ;;  %733 = vst [vmem:[#allocation1 + $0x10] ss:$2 sm:$0xff] %v627_v52  ;;  %v1476_v21 = vld [vmem:[#allocation2 + $0x8] sm:$0x7] }
  0xe3   : > { %v937_v58 = vld.sshfl [vmem:[#allocation1] sm:$0xff pattern:$0x75316420]  ;;  %v938_v59 = vld.sshfl [vmem:[#allocation1 + $0x8] sm:$0xff pattern:$0x75316420] }
  0xe4   : > { %940 = vrot.lane.b32.xlu0 %v937_v58, %s13401_s25  ;;  %1043 = vst [vmem:[#allocation1] ss:$2 sm:$0xff] %v1039_v57 }
  0xe9   : > { %v736_v60 = vld.sshfl [vmem:[#allocation1 + $0x10] sm:$0xff pattern:$0x75316420] }
  0xea   : > { %11503 = vmatpush.msk.msra.mxu1 %vm655_vm2, %v736_v60  ;;  %827 = vst [vmem:[#allocation1 + $0x10] ss:$2 sm:$0xff] %v822_v61  ;;  %831 = vrot.lane.b32.xlu1 %v828_v54, %s13400_s29  ;;  %v11529_v60 = vld [vmem:[%s20224_s1 + $0x48] sm:$0x3] }
  0xeb   : > { %v1046_v63 = vld.sshfl [vmem:[#allocation1] sm:$0xff pattern:$0x75316420]  ;;  %v1047_v0 = vld.sshfl [vmem:[#allocation1 + $0x8] sm:$0xff pattern:$0x75316420]  ;;  %11504 = vmatmul.msk.f32.vlgmr.msra.gmra.mxu1 %vm648_vm3, %v624_v25 }
  0xec   : > { %1049 = vrot.lane.b32.xlu0 %v1046_v63, %s13402_s30  ;;  %1152 = vst [vmem:[#allocation1] ss:$2 sm:$0xff] %v1148_v62 }
  0xf1   : > { %v830_v1 = vld.sshfl [vmem:[#allocation1 + $0x10] sm:$0xff pattern:$0x75316420] }
  0xf2   : > { %936 = vst [vmem:[#allocation1 + $0x10] ss:$2 sm:$0xff] %v931_v2  ;;  %835 = vrot.lane.b32.xlu2 %v830_v1, %s13400_s29  ;;  %942 = vrot.lane.b32.xlu1 %v938_v59, %s13401_s25 }
  0xf3   : > { %v1155_v4 = vld.sshfl [vmem:[#allocation1] sm:$0xff pattern:$0x75316420]  ;;  %v1156_v5 = vld.sshfl [vmem:[#allocation1 + $0x8] sm:$0xff pattern:$0x75316420]  ;;  %11505 = vmatmul.msk.f32.gmra.mxu1 %vm648_vm3, %v625_v26 }
  0xf4   : > { %1158 = vrot.lane.b32.xlu0 %v1155_v4, %s13403_s11  ;;  %1261 = vst [vmem:[#allocation1] ss:$2 sm:$0xff] %v1257_v3 }
  0xf9   : > { %v939_v6 = vld.sshfl [vmem:[#allocation1 + $0x10] sm:$0xff pattern:$0x75316420] }
  0xfa   : > { %1045 = vst [vmem:[#allocation1 + $0x10] ss:$2 sm:$0xff] %v1040_v7  ;;  %944 = vrot.lane.b32.xlu2 %v939_v6, %s13401_s25  ;;  %1051 = vrot.lane.b32.xlu1 %v1047_v0, %s13402_s30  ;;  %v11539_v0 = vld [vmem:[%s20224_s1 + $0x50] sm:$0xff]  ;;  %s13411_s25 = smov 56  }
  0xfb   : > { %v1265_v9 = vld.sshfl [vmem:[#allocation1 + $0x8] sm:$0xff pattern:$0x75316420]  ;;  %v1264_v10 = vld.sshfl [vmem:[#allocation1] sm:$0xff pattern:$0x75316420] }
  0xfc   : > { %1267 = vrot.lane.b32.xlu0 %v1264_v10, %s13404_s12  ;;  %1370 = vst [vmem:[#allocation1] ss:$2 sm:$0xff] %v1366_v8  ;;  %v13407_v8 = vmov 0  }
  0xfd   : > { %12319 = vset.pattern.permute.xlu0 %v13407_v8  ;;  %12320 = vset.pattern.permute.xlu1 %v13407_v8 }
  0xfe   : > { %12481 = vset.pattern.permute.xlu2 %v13407_v8  ;;  %v1835_v8 = vld [vmem:[#allocation5 + $0x730] sm:$0xff] }
 0x101   : > { %v1048_v11 = vld.sshfl [vmem:[#allocation1 + $0x10] sm:$0xff pattern:$0x75316420] }
 0x102   : > { %1154 = vst [vmem:[#allocation1 + $0x10] ss:$2 sm:$0xff] %v1149_v12  ;;  %1053 = vrot.lane.b32.xlu2 %v1048_v11, %s13402_s30  ;;  %1160 = vrot.lane.b32.xlu1 %v1156_v5, %s13403_s11  ;;  %v11540_v5 = vld [vmem:[%s20224_s1 + $0x58] sm:$0x3]  ;;  %s13412_s30 = smov 72  }
 0x103   : > { %v1374_v14 = vld.sshfl [vmem:[#allocation1 + $0x8] sm:$0xff pattern:$0x75316420]  ;;  %v1373_v15 = vld.sshfl [vmem:[#allocation1] sm:$0xff pattern:$0x75316420] }
 0x104   : > { %1376 = vrot.lane.b32.xlu0 %v1373_v15, %s13405_s14  ;;  %1479 = vst [vmem:[#allocation1] ss:$2 sm:$0xff] %v1475_v13  ;;  %v1581_v15 = vld [vmem:[%s20225_s2] sm:$0xff] }
 0x109   : > { %v1157_v17 = vld.sshfl [vmem:[#allocation1 + $0x10] sm:$0xff pattern:$0x75316420] }
 0x10a   : > { %1263 = vst [vmem:[#allocation1 + $0x10] ss:$2 sm:$0xff] %v1258_v16  ;;  %1162 = vrot.lane.b32.xlu2 %v1157_v17, %s13403_s11  ;;  %1269 = vrot.lane.b32.xlu1 %v1265_v9, %s13404_s12  ;;  %v11551_v16 = vld [vmem:[%s20224_s1 + $0x68] sm:$0x3]  ;;  %v11561_v17 = vld [vmem:[%s20224_s1 + $0x70] sm:$0xff]  ;;  %s13414_s11 = smov 55  }
 0x10b   : > { %v1482_v18 = vld.sshfl [vmem:[#allocation1] sm:$0xff pattern:$0x75316420]  ;;  %v1483_v23 = vld.sshfl [vmem:[#allocation1 + $0x8] sm:$0xff pattern:$0x75316420] }
 0x10c   : > { %1485 = vrot.lane.b32.xlu0 %v1482_v18, %s13406_s15  ;;  %v1582_v18 = vld [vmem:[%s20225_s2 + $0x8] sm:$0x3] }
 0x111   : > { %v1266_v20 = vld.sshfl [vmem:[#allocation1 + $0x10] sm:$0xff pattern:$0x75316420] }
 0x112   : > { %1372 = vst [vmem:[#allocation1 + $0x10] ss:$2 sm:$0xff] %v1367_v19  ;;  %1271 = vrot.lane.b32.xlu2 %v1266_v20, %s13404_s12  ;;  %1378 = vrot.lane.b32.xlu1 %v1374_v14, %s13405_s14  ;;  %v11550_v14 = vld [vmem:[%s20224_s1 + $0x60] sm:$0xff]  ;;  %v11562_v20 = vld [vmem:[%s20224_s1 + $0x78] sm:$0x3] }
 0x113   : > { %v11572_v19 = vld [vmem:[%s20224_s1 + $0x80] sm:$0xff] }
 0x114   : > { %1585 = vperm.xlu0 %12319, %v1581_v15   ;;  %v1695_v15 = vld [vmem:[#allocation5 + $0x2d0] sm:$0xff] }
 0x119   : > { %v1375_v22 = vld.sshfl [vmem:[#allocation1 + $0x10] sm:$0xff pattern:$0x75316420] }
 0x11a   : > { %1481 = vst [vmem:[#allocation1 + $0x10] ss:$2 sm:$0xff] %v1476_v21  ;;  %1380 = vrot.lane.b32.xlu2 %v1375_v22, %s13405_s14  ;;  %1487 = vrot.lane.b32.xlu1 %v1483_v23, %s13406_s15  ;;  %v11573_v21 = vld [vmem:[%s20224_s1 + $0x88] sm:$0x3]  ;;  %v1756_v22 = vld [vmem:[#allocation5 + $0x4b8] sm:$0xff] }
 0x121   : > { %v1484_v24 = vld.sshfl [vmem:[#allocation1 + $0x10] sm:$0xff pattern:$0x75316420] }
 0x122   : > { %1489 = vrot.lane.b32.xlu2 %v1484_v24, %s13406_s15  ;;  %1590 = vperm.xlu1 %12320, %v1582_v18  }
 0x136   : > { %v834_v28 = vpop.permute.xlu2 %833 }
 0x13d   : > { %v640_v27 = vpop.permute.xlu0 %639 }
 0x145   : > { %v642_v29 = vpop.permute.xlu0 %641 }
 0x146   : > { %v646_v31 = vsel %vm645_vm4, %v640_v27, %v642_v29  ;;  %v1726_v27 = vld [vmem:[#allocation5 + $0x3c8] sm:$0xff] }
 0x147   : > { %11488 = vmatpush.msk.msrb.mxu2 %vm655_vm2, %v646_v31 }
 0x148   : > { %11489 = vmatmul.msk.f32.vlgmr.msrb.gmra.mxu2 %vm648_vm3, %v11486_v30 }
 0x14c   : > { %v836_v33 = vpop.permute.xlu2 %835 }
 0x14d   : > { %11514 = vmatpush.msk.msrb.mxu0 %vm655_vm2, %v836_v33  ;;  %v839_v38 = vsel %vm837_vm5, %v834_v28, %v836_v33  ;;  %v1696_v33 = vld [vmem:[#allocation5 + $0x2d8] sm:$0xff] }
 0x14e   : > { %11515 = vmatmul.msk.f32.vlgmr.msrb.gmra.mxu0 %vm648_vm3, %v11506_v32 }
 0x150   : > { %11490 = vmatmul.msk.f32.gmra.mxu2 %vm648_vm3, %v11487_v34 }
 0x152   : > { %v13993_v23 = vpop.f32.mrf.mxu0 }
 0x154   : > { %v644_v36 = vpop.permute.xlu1 %643  ;;  %v945_v39 = vpop.permute.xlu2 %944 }
 0x155   : > { %11494 = vmatpush.msk.msra.mxu2 %vm655_vm2, %v644_v36  ;;  %v647_v37 = vsel %vm645_vm4, %v642_v29, %v644_v36  ;;  %v1716_v29 = vld [vmem:[#allocation5 + $0x378] sm:$0xff] }
 0x156   : > { %11491 = vmatpush.msk.msrb.mxu3 %vm655_vm2, %v647_v37  ;;  %11516 = vmatmul.msk.f32.gmra.mxu0 %vm648_vm3, %v13866_v35  ;;  %v941_v40 = vpop.permute.xlu0 %940 }
 0x157   : > { %11492 = vmatmul.msk.f32.vlgmr.msrb.gmra.mxu3 %vm648_vm3, %v11486_v30 }
 0x158   : > { %11497 = vmatpush.msk.msra.mxu3 %vm655_vm2, %v13820_v49  ;;  %11495 = vmatmul.msk.f32.vlgmr.msra.gmra.mxu2 %vm648_vm3, %v11486_v30 }
 0x15a   : > { %11511 = vmatpush.msk.msrb.mxu3 %vm655_vm2, %v839_v38 }
 0x15c   : > { %v832_v41 = vpop.permute.xlu1 %831  ;;  %v1054_v43 = vpop.permute.xlu2 %1053 }
 0x15d   : > { %v838_v42 = vsel %vm837_vm5, %v832_v41, %v834_v28  ;;  %v13997_v28 = vpop.f32.mrf.mxu0  ;;  %v1656_v41 = vld [vmem:[#allocation5 + $0x198] sm:$0xff] }
 0x15e   : > { %11508 = vmatpush.msk.msrb.mxu2 %vm655_vm2, %v838_v42  ;;  %v1050_v44 = vpop.permute.xlu0 %1049  ;;  %v1646_v42 = vld [vmem:[#allocation5 + $0x148] sm:$0xff] }
 0x15f   : > { %11493 = vmatmul.msk.f32.gmra.mxu3 %vm648_vm3, %v11487_v34 }
 0x160   : > { %11496 = vmatmul.msk.f32.gmra.mxu2 %vm648_vm3, %v11487_v34  ;;  %v1686_v34 = vld [vmem:[#allocation5 + $0x288] sm:$0xff] }
 0x164   : > { %v943_v45 = vpop.permute.xlu1 %942  ;;  %v1163_v49 = vpop.permute.xlu2 %1162 }
 0x165   : > { %v947_v47 = vsel %vm946_vm6, %v941_v40, %v943_v45  ;;  %v948_v48 = vsel %vm946_vm6, %v943_v45, %v945_v39  ;;  %vm5169_vm6 = vcmask 465920  }
 0x166   : > { %11519 = vmatpush.msk.msrb.mxu1 %vm655_vm2, %v947_v47  ;;  %11522 = vmatpush.msk.msra.mxu2 %vm655_vm2, %v948_v48  ;;  %v1159_v54 = vpop.permute.xlu0 %1158  ;;  %v1905_v47 = vld [vmem:[#allocation5 + $0x960] sm:$0xff]  ;;  %v1626_v48 = vld [vmem:[#allocation5 + $0xa8] sm:$0xff] }
 0x167   : > { %11498 = vmatmul.msk.f32.vlgmr.msra.gmra.mxu3 %vm648_vm3, %v624_v25  ;;  %11520 = vmatmul.msk.f32.vlgmr.msrb.gmra.mxu1 %vm648_vm3, %v11517_v46  ;;  %v1746_v25 = vld [vmem:[#allocation5 + $0x468] sm:$0xff] }
 0x168   : > { %11525 = vmatpush.msk.msra.mxu3 %vm655_vm2, %v945_v39  ;;  %11509 = vmatmul.msk.f32.vlgmr.msrb.gmra.mxu2 %vm648_vm3, %v11506_v32  ;;  %v13999_v30 = vpop.f32.mrf.mxu1  ;;  %v1666_v39 = vld [vmem:[#allocation5 + $0x1e8] sm:$0xff] }
 0x169   : > { %11536 = vmatpush.msk.msrb.mxu2 %vm655_vm2, %v1054_v43 }
 0x16c   : > { %v1052_v50 = vpop.permute.xlu1 %1051  ;;  %v1272_v59 = vpop.permute.xlu2 %1271 }
 0x16d   : > { %v1056_v51 = vsel %vm1055_vm7, %v1050_v44, %v1052_v50  ;;  %v1057_v52 = vsel %vm1055_vm7, %v1052_v50, %v1054_v43  ;;  %v1915_v43 = vld [vmem:[#allocation5 + $0x9b0] sm:$0xff]  ;;  %v1636_v44 = vld [vmem:[#allocation5 + $0xf8] sm:$0xff]  ;;  %vm5529_vm7 = vcmask 457728  }
 0x16e   : > { %11530 = vmatpush.msk.msra.mxu0 %vm655_vm2, %v1056_v51  ;;  %11533 = vmatpush.msk.msra.mxu1 %vm655_vm2, %v1057_v52  ;;  %v1268_v61 = vpop.permute.xlu0 %1267  ;;  %v1895_v51 = vld [vmem:[#allocation5 + $0x910] sm:$0xff]  ;;  %v1616_v52 = vld [vmem:[#allocation5 + $0x58] sm:$0xff] }
 0x16f   : > { %11499 = vmatmul.msk.f32.gmra.mxu3 %vm648_vm3, %v625_v26  ;;  %11531 = vmatmul.msk.f32.vlgmr.msra.gmra.mxu0 %vm648_vm3, %v11528_v53  ;;  %v1736_v26 = vld [vmem:[#allocation5 + $0x418] sm:$0xff] }
 0x170   : > { %11547 = vmatpush.msk.msrb.mxu1 %vm655_vm2, %v1163_v49  ;;  %11510 = vmatmul.msk.f32.gmra.mxu2 %vm648_vm3, %v13866_v35  ;;  %v14009_v40 = vpop.f32.mrf.mxu1 }
 0x171   : > { %11521 = vmatmul.msk.f32.gmra.mxu1 %vm648_vm3, %v11518_v55 }
 0x174   : > { %v1161_v56 = vpop.permute.xlu1 %1160  ;;  %v1381_v1 = vpop.permute.xlu2 %1380 }
 0x175   : > { %v1165_v57 = vsel %vm1164_vm8, %v1159_v54, %v1161_v56  ;;  %v1166_v58 = vsel %vm1164_vm8, %v1161_v56, %v1163_v49  ;;  %v1606_v54 = vld [vmem:[#allocation5 + $0x8] sm:$0xff]  ;;  %v1875_v56 = vld [vmem:[#allocation5 + $0x870] sm:$0xff]  ;;  %vm5966_vm8 = vcmask 588800  }
 0x176   : > { %11544 = vmatpush.msk.msrb.mxu0 %vm655_vm2, %v1166_v58  ;;  %v1377_v2 = vpop.permute.xlu0 %1376 }
 0x177   : > { %11512 = vmatmul.msk.f32.vlgmr.msrb.gmra.mxu3 %vm648_vm3, %v11506_v32  ;;  %11532 = vmatmul.msk.f32.gmra.mxu0 %vm648_vm3, %v11529_v60  ;;  %v1706_v32 = vld [vmem:[#allocation5 + $0x328] sm:$0xff] }
 0x178   : > { %11558 = vmatpush.msk.msra.mxu0 %vm655_vm2, %v1272_v59  ;;  %11541 = vmatpush.msk.msrb.mxu3 %vm655_vm2, %v1165_v57  ;;  %v1917_v57 = vld [vmem:[#allocation5 + $0x9c0] sm:$0xff] }
 0x179   : > { %11523 = vmatmul.msk.f32.vlgmr.msra.gmra.mxu2 %vm648_vm3, %v11517_v46  ;;  %11534 = vmatmul.msk.f32.vlgmr.msra.gmra.mxu1 %vm648_vm3, %v11528_v53 }
 0x17c   : > { %v1270_v62 = vpop.permute.xlu1 %1269  ;;  %v1490_v9 = vpop.permute.xlu2 %1489 }
 0x17d   : > { %v1274_v63 = vsel %vm1273_vm9, %v1268_v61, %v1270_v62  ;;  %v1275_v6 = vsel %vm1273_vm9, %v1270_v62, %v1272_v59  ;;  %v1865_v61 = vld [vmem:[#allocation5 + $0x820] sm:$0xff]  ;;  %v1907_v62 = vld [vmem:[#allocation5 + $0x970] sm:$0xff] }
 0x17e   : > { %11552 = vmatpush.msk.msra.mxu2 %vm655_vm2, %v1274_v63  ;;  %v1486_v10 = vpop.permute.xlu0 %1485 }
 0x17f   : > { %11513 = vmatmul.msk.f32.gmra.mxu3 %vm648_vm3, %v13866_v35  ;;  %11545 = vmatmul.msk.f32.vlgmr.msrb.gmra.mxu0 %vm648_vm3, %v11539_v0  ;;  %v1676_v35 = vld [vmem:[#allocation5 + $0x238] sm:$0xff] }
 0x181   : > { %11524 = vmatmul.msk.f32.gmra.mxu2 %vm648_vm3, %v11518_v55  ;;  %11535 = vmatmul.msk.f32.gmra.mxu1 %vm648_vm3, %v11529_v60 }
 0x184   : > { %v1379_v3 = vpop.permute.xlu1 %1378 }
 0x185   : > { %v1383_v4 = vsel %vm1382_vm10, %v1377_v2, %v1379_v3  ;;  %v1384_v7 = vsel %vm1382_vm10, %v1379_v3, %v1381_v1  ;;  %v1897_v2 = vld [vmem:[#allocation5 + $0x920] sm:$0xff] }
 0x186   : > { %11563 = vmatpush.msk.msra.mxu1 %vm655_vm2, %v1383_v4  ;;  %v1725_v4 = vld [vmem:[#allocation5 + $0x3c0] sm:$0xff] }
 0x187   : > { %11526 = vmatmul.msk.f32.vlgmr.msra.gmra.mxu3 %vm648_vm3, %v11517_v46  ;;  %11546 = vmatmul.msk.f32.gmra.mxu0 %vm648_vm3, %v11540_v5 }
 0x188   : > { %11555 = vmatpush.msk.msra.mxu3 %vm655_vm2, %v1275_v6  ;;  %v1887_v6 = vld [vmem:[#allocation5 + $0x8d0] sm:$0xff] }
 0x189   : > { %11537 = vmatmul.msk.f32.vlgmr.msrb.gmra.mxu2 %vm648_vm3, %v11528_v53  ;;  %11548 = vmatmul.msk.f32.vlgmr.msrb.gmra.mxu1 %vm648_vm3, %v11539_v0  ;;  %v1885_v53 = vld [vmem:[#allocation5 + $0x8c0] sm:$0xff] }
 0x18a   : > { %11566 = vmatpush.msk.msrb.mxu2 %vm655_vm2, %v1384_v7  ;;  %v1715_v7 = vld [vmem:[#allocation5 + $0x370] sm:$0xff] }
 0x18c   : > { %v1488_v11 = vpop.permute.xlu1 %1487 }
 0x18d   : > { %v1492_v12 = vsel %vm1491_vm11, %v1486_v10, %v1488_v11  ;;  %v1493_v13 = vsel %vm1491_vm11, %v1488_v11, %v1490_v9 }
 0x18e   : > { %11574 = vmatpush.msk.msrb.mxu0 %vm655_vm2, %v1492_v12  ;;  %11577 = vmatpush.msk.msrb.mxu1 %vm655_vm2, %v1493_v13  ;;  %v1705_v12 = vld [vmem:[#allocation5 + $0x320] sm:$0xff] }
 0x18f   : > { %11527 = vmatmul.msk.f32.gmra.mxu3 %vm648_vm3, %v11518_v55  ;;  %11559 = vmatmul.msk.f32.vlgmr.msra.gmra.mxu0 %vm648_vm3, %v11550_v14  ;;  %v1755_v55 = vld [vmem:[#allocation5 + $0x4b0] sm:$0xff]  ;;  %v1825_v13 = vld [vmem:[#allocation5 + $0x6e0] sm:$0xff] }
 0x190   : > { %1995 = vmatpush.msra.mxu0 %v1915_v43 }
 0x191   : > { %11538 = vmatmul.msk.f32.gmra.mxu2 %vm648_vm3, %v11529_v60  ;;  %11549 = vmatmul.msk.f32.gmra.mxu1 %vm648_vm3, %v11540_v5  ;;  %v1745_v60 = vld [vmem:[#allocation5 + $0x460] sm:$0xff] }
 0x192   : > { %1996 = vmatpush.msra.mxu0 %v1905_v47  ;;  %v1955_v47 = vld [vmem:[#allocation5 + $0xaf0] sm:$0xff] }
 0x194   : > { %1997 = vmatpush.msra.mxu0 %v1895_v51  ;;  %v1765_v51 = vld [vmem:[#allocation5 + $0x500] sm:$0xff] }
 0x196   : > { %1998 = vmatpush.msra.mxu0 %v1885_v53  ;;  %v1945_v53 = vld [vmem:[#allocation5 + $0xaa0] sm:$0xff] }
 0x197   : > { %11542 = vmatmul.msk.f32.vlgmr.msrb.gmra.mxu3 %vm648_vm3, %v11539_v0  ;;  %11560 = vmatmul.msk.f32.gmra.mxu0 %vm648_vm3, %v11551_v16  ;;  %v1735_v0 = vld [vmem:[#allocation5 + $0x410] sm:$0xff] }
 0x198   : > { %11569 = vmatpush.msk.msrb.mxu3 %vm655_vm2, %v1381_v1  ;;  %1999 = vmatpush.msra.mxu0 %v1875_v56  ;;  %v1855_v1 = vld [vmem:[#allocation5 + $0x7d0] sm:$0xff]  ;;  %v1797_v56 = vld [vmem:[#allocation5 + $0x600] sm:$0xff] }
 0x199   : > { %11553 = vmatmul.msk.f32.vlgmr.msra.gmra.mxu2 %vm648_vm3, %v11550_v14  ;;  %11564 = vmatmul.msk.f32.vlgmr.msra.gmra.mxu1 %vm648_vm3, %v11561_v17 }
 0x19a   : > { %11580 = vmatpush.msk.msra.mxu2 %vm655_vm2, %v1490_v9  ;;  %2000 = vmatpush.msra.mxu0 %v1865_v61  ;;  %v1877_v9 = vld [vmem:[#allocation5 + $0x880] sm:$0xff]  ;;  %v1747_v61 = vld [vmem:[#allocation5 + $0x470] sm:$0xff]  ;;  %vm3705_vm2 = vcmask 760832  }
 0x19b   : > { %2030 = vmatpush.msra.mxu1 %v1955_v47 }
 0x19c   : > { %2001 = vmatpush.msra.mxu0 %v1855_v1  ;;  %v1625_v1 = vld [vmem:[#allocation5 + $0xa0] sm:$0xff] }
 0x19d   : > { %2031 = vmatpush.msra.mxu1 %v1945_v53  ;;  %v1657_v53 = vld [vmem:[#allocation5 + $0x1a0] sm:$0xff] }
 0x19f   : > { %11543 = vmatmul.msk.f32.gmra.mxu3 %vm648_vm3, %v11540_v5  ;;  %11575 = vmatmul.msk.f32.vlgmr.msrb.gmra.mxu0 %vm648_vm3, %v11572_v19  ;;  %v1845_v5 = vld [vmem:[#allocation5 + $0x780] sm:$0xff] }
 0x1a0   : > { %2002 = vmatpush.msra.mxu0 %v1845_v5 }
 0x1a1   : > { %11554 = vmatmul.msk.f32.gmra.mxu2 %vm648_vm3, %v11551_v16  ;;  %11565 = vmatmul.msk.f32.gmra.mxu1 %vm648_vm3, %v11562_v20 }
 0x1a2   : > { %2003 = vmatpush.msra.mxu0 %v1835_v8  ;;  %v1777_v8 = vld [vmem:[#allocation5 + $0x560] sm:$0xff] }
 0x1a4   : > { %2004 = vmatpush.msra.mxu0 %v1825_v13  ;;  %v1605_v13 = vld [vmem:[#allocation5] sm:$0xff] }
 0x1a7   : > { %11556 = vmatmul.msk.f32.vlgmr.msra.gmra.mxu3 %vm648_vm3, %v11550_v14  ;;  %11576 = vmatmul.msk.f32.gmra.mxu0 %vm648_vm3, %v11573_v21  ;;  %v1867_v14 = vld [vmem:[#allocation5 + $0x830] sm:$0xff] }
 0x1a8   : > { %1972 = vmatpush.msra.mxu3 %v1755_v55  ;;  %v1635_v55 = vld [vmem:[#allocation5 + $0xf0] sm:$0xff] }
 0x1a9   : > { %11567 = vmatmul.msk.f32.vlgmr.msrb.gmra.mxu2 %vm648_vm3, %v11561_v17  ;;  %11578 = vmatmul.msk.f32.vlgmr.msrb.gmra.mxu1 %vm648_vm3, %v11572_v19 }
 0x1aa   : > { %2041 = vmatpush.msrb.mxu2 %v1756_v22  ;;  %1973 = vmatpush.msra.mxu3 %v1745_v60  ;;  %v1847_v22 = vld [vmem:[#allocation5 + $0x790] sm:$0xff] }
 0x1ac   : > { %2042 = vmatpush.msrb.mxu2 %v1746_v25  ;;  %1974 = vmatpush.msra.mxu3 %v1735_v0  ;;  %v1675_v25 = vld [vmem:[#allocation5 + $0x230] sm:$0xff] }
 0x1ae   : > { %2043 = vmatpush.msrb.mxu2 %v1736_v26  ;;  %1975 = vmatpush.msra.mxu3 %v1725_v4  ;;  %v1795_v26 = vld [vmem:[#allocation5 + $0x5f0] sm:$0xff]  ;;  %v1737_v4 = vld [vmem:[#allocation5 + $0x420] sm:$0xff] }
 0x1af   : > { %11557 = vmatmul.msk.f32.gmra.mxu3 %vm648_vm3, %v11551_v16  ;;  %v1815_v16 = vld [vmem:[#allocation5 + $0x690] sm:$0xff] }
 0x1b0   : > { %2044 = vmatpush.msrb.mxu2 %v1726_v27  ;;  %1976 = vmatpush.msra.mxu3 %v1715_v7  ;;  %v1837_v27 = vld [vmem:[#allocation5 + $0x740] sm:$0xff]  ;;  %v1916_v7 = vld [vmem:[#allocation5 + $0x9b8] sm:$0xff] }
 0x1b1   : > { %11568 = vmatmul.msk.f32.gmra.mxu2 %vm648_vm3, %v11562_v20  ;;  %11579 = vmatmul.msk.f32.gmra.mxu1 %vm648_vm3, %v11573_v21 }
 0x1b2   : > { %2045 = vmatpush.msrb.mxu2 %v1716_v29  ;;  %1977 = vmatpush.msra.mxu3 %v1705_v12  ;;  %v1727_v12 = vld [vmem:[#allocation5 + $0x3d0] sm:$0xff] }
 0x1b3   : > { %2005 = vmatpush.msra.mxu0 %v1815_v16  ;;  %v1717_v16 = vld [vmem:[#allocation5 + $0x380] sm:$0xff] }
 0x1b4   : > { %2046 = vmatpush.msrb.mxu2 %v1706_v32  ;;  %1978 = vmatpush.msra.mxu3 %v1695_v15  ;;  %v1767_v15 = vld [vmem:[#allocation5 + $0x510] sm:$0xff] }
 0x1b6   : > { %2047 = vmatpush.msrb.mxu2 %v1696_v33  ;;  %v1665_v33 = vld [vmem:[#allocation5 + $0x1e0] sm:$0xff] }
 0x1b7   : > { %11570 = vmatmul.msk.f32.vlgmr.msrb.gmra.mxu3 %vm648_vm3, %v11561_v17  ;;  %v1857_v17 = vld [vmem:[#allocation5 + $0x7e0] sm:$0xff] }
 0x1b8   : > { %2048 = vmatpush.msrb.mxu2 %v1686_v34  ;;  %v1785_v34 = vld [vmem:[#allocation5 + $0x5a0] sm:$0xff] }
 0x1b9   : > { %11581 = vmatmul.msk.f32.vlgmr.msra.gmra.mxu2 %vm648_vm3, %v11572_v19 }
 0x1ba   : > { %2049 = vmatpush.msrb.mxu2 %v1676_v35  ;;  %v1827_v35 = vld [vmem:[#allocation5 + $0x6f0] sm:$0xff] }
 0x1bc   : > { %2050 = vmatpush.msrb.mxu2 %v1666_v39  ;;  %v1655_v39 = vld [vmem:[#allocation5 + $0x190] sm:$0xff] }
 0x1be   : > { %2051 = vmatpush.msrb.mxu2 %v1656_v41  ;;  %v1775_v41 = vld [vmem:[#allocation5 + $0x550] sm:$0xff] }
 0x1bf   : > { %11571 = vmatmul.msk.f32.gmra.mxu3 %vm648_vm3, %v11562_v20  ;;  %v1685_v20 = vld [vmem:[#allocation5 + $0x280] sm:$0xff] }
 0x1c0   : > { %2052 = vmatpush.msrb.mxu2 %v1646_v42  ;;  %1979 = vmatpush.msra.mxu3 %v1685_v20  ;;  %v1817_v42 = vld [vmem:[#allocation5 + $0x6a0] sm:$0xff] }
 0x1c1   : > { %11582 = vmatmul.msk.f32.gmra.mxu2 %vm648_vm3, %v11573_v21  ;;  %v1805_v21 = vld [vmem:[#allocation5 + $0x640] sm:$0xff]  ;;  %vm4809_vm3 = vcmask 474112  }
 0x1c2   : > { %2053 = vmatpush.msrb.mxu2 %v1636_v44  ;;  %2006 = vmatpush.msra.mxu0 %v1805_v21  ;;  %v1707_v21 = vld [vmem:[#allocation5 + $0x330] sm:$0xff] }
 0x1c3   : > { %1980 = vmatpush.msra.mxu3 %v1675_v25 }
 0x1c4   : > { %2054 = vmatpush.msrb.mxu2 %v1626_v48  ;;  %2007 = vmatpush.msra.mxu0 %v1795_v26  ;;  %v1645_v48 = vld [vmem:[#allocation5 + $0x140] sm:$0xff] }
 0x1c5   : > { %1981 = vmatpush.msra.mxu3 %v1665_v33  ;;  %v1876_v33 = vld [vmem:[#allocation5 + $0x878] sm:$0xff] }
 0x1c6   : > { %2055 = vmatpush.msrb.mxu2 %v1616_v52  ;;  %2008 = vmatpush.msra.mxu0 %v1785_v34  ;;  %v1807_v52 = vld [vmem:[#allocation5 + $0x650] sm:$0xff] }
 0x1c7   : > { %1982 = vmatpush.msra.mxu3 %v1655_v39 }
 0x1c8   : > { %2056 = vmatpush.msrb.mxu2 %v1606_v54  ;;  %2009 = vmatpush.msra.mxu0 %v1775_v41  ;;  %v1757_v54 = vld [vmem:[#allocation5 + $0x4c0] sm:$0xff] }
 0x1c9   : > { %1983 = vmatpush.msra.mxu3 %v1645_v48  ;;  %v1677_v48 = vld [vmem:[#allocation5 + $0x240] sm:$0xff] }
 0x1ca   : > { %2133 = vmatpush.msra.mxu2 %v1917_v57  ;;  %2010 = vmatpush.msra.mxu0 %v1765_v51  ;;  %v1935_v57 = vld [vmem:[#allocation5 + $0xa50] sm:$0xff] }
 0x1cb   : > { %v13995_v24 = vpop.f32.mrf.mxu2  ;;  %v14007_v38 = vpop.f32.mrf.mxu0  ;;  %1984 = vmatpush.msra.mxu3 %v1635_v55  ;;  %2032 = vmatpush.msra.mxu1 %v1935_v57  ;;  %v1667_v51 = vld [vmem:[#allocation5 + $0x1f0] sm:$0xff] }
 0x1cc   : > { %2134 = vmatpush.msra.mxu2 %v1907_v62  ;;  %2110 = vmatpush.msrb.mxu0 %v1757_v54  ;;  %v1787_v62 = vld [vmem:[#allocation5 + $0x5b0] sm:$0xff] }
 0x1cd   : > { %1985 = vmatpush.msra.mxu3 %v1625_v1 }
 0x1ce   : > { %2135 = vmatpush.msra.mxu2 %v1897_v2  ;;  %2111 = vmatpush.msrb.mxu0 %v1747_v61  ;;  %v1925_v2 = vld [vmem:[#allocation5 + $0xa00] sm:$0xff]  ;;  %v1647_v61 = vld [vmem:[#allocation5 + $0x150] sm:$0xff] }
 0x1cf   : > { %2033 = vmatpush.msra.mxu1 %v1925_v2 }
 0x1d0   : > { %2136 = vmatpush.msra.mxu2 %v1887_v6  ;;  %v1615_v6 = vld [vmem:[#allocation5 + $0x50] sm:$0xff]  ;;  %2112 = vmatpush.msrb.mxu0 %v1737_v4 }
 0x1d1   : > { %2064 = vmatpush.msrb.mxu1 %v1916_v7  ;;  %1986 = vmatpush.msra.mxu3 %v1615_v6 }
 0x1d2   : > { %2137 = vmatpush.msra.mxu2 %v1877_v9  ;;  %2113 = vmatpush.msrb.mxu0 %v1727_v12  ;;  %v1816_v12 = vld [vmem:[#allocation5 + $0x698] sm:$0xff] }
 0x1d3   : > { %v14001_v31 = vpop.f32.mrf.mxu2  ;;  %v14017_v50 = vpop.f32.mrf.mxu0  ;;  %1987 = vmatpush.msra.mxu3 %v1605_v13  ;;  %v1936_v13 = vld [vmem:[#allocation5 + $0xa58] sm:$0xff] }
 0x1d4   : > { %2138 = vmatpush.msra.mxu2 %v1867_v14  ;;  %v1906_v14 = vld [vmem:[#allocation5 + $0x968] sm:$0xff]  ;;  %2114 = vmatpush.msrb.mxu0 %v1717_v16 }
 0x1d5   : > { %2065 = vmatpush.msrb.mxu1 %v1906_v14  ;;  %v1627_v14 = vld [vmem:[#allocation5 + $0xb0] sm:$0xff] }
 0x1d6   : > { %2139 = vmatpush.msra.mxu2 %v1857_v17  ;;  %v1896_v17 = vld [vmem:[#allocation5 + $0x918] sm:$0xff]  ;;  %2115 = vmatpush.msrb.mxu0 %v1707_v21  ;;  %v1617_v21 = vld [vmem:[#allocation5 + $0x60] sm:$0xff] }
 0x1d7   : > { %2066 = vmatpush.msrb.mxu1 %v1896_v17 }
 0x1d8   : > { %2140 = vmatpush.msra.mxu2 %v1847_v22  ;;  %v1886_v22 = vld [vmem:[#allocation5 + $0x8c8] sm:$0xff] }
 0x1d9   : > { %2067 = vmatpush.msrb.mxu1 %v1886_v22 }
 0x1da   : > { %v14003_v36 = vpop.f32.mrf.mxu3  ;;  %2141 = vmatpush.msra.mxu2 %v1837_v27  ;;  %v1697_v27 = vld [vmem:[#allocation5 + $0x2e0] sm:$0xff] }
 0x1db   : > { %v14005_v37 = vpop.f32.mrf.mxu2  ;;  %2116 = vmatpush.msrb.mxu0 %v1697_v27  ;;  %2068 = vmatpush.msrb.mxu1 %v1876_v33  ;;  %v790_v6 = vadd.f32 %v13993_v23, %v14003_v36  ;;  %v1796_v36 = vld [vmem:[#allocation5 + $0x5f8] sm:$0xff]  ;;  %v1607_v33 = vld [vmem:[#allocation5 + $0x10] sm:$0xff] }
 0x1dc   : > { %2142 = vmatpush.msra.mxu2 %v1827_v35  ;;  %v1687_v35 = vld [vmem:[#allocation5 + $0x290] sm:$0xff] }
 0x1dd   : > { %2117 = vmatpush.msrb.mxu0 %v1687_v35 }
 0x1de   : > { %2143 = vmatpush.msra.mxu2 %v1817_v42  ;;  %v1866_v42 = vld [vmem:[#allocation5 + $0x828] sm:$0xff] }
 0x1df   : > { %2069 = vmatpush.msrb.mxu1 %v1866_v42  ;;  %2118 = vmatpush.msrb.mxu0 %v1677_v48  ;;  %v1776_v48 = vld [vmem:[#allocation5 + $0x558] sm:$0xff] }
 0x1e0   : > { %2144 = vmatpush.msra.mxu2 %v1807_v52  ;;  %v1846_v52 = vld [vmem:[#allocation5 + $0x788] sm:$0xff] }
 0x1e1   : > { %2119 = vmatpush.msrb.mxu0 %v1667_v51 }
 0x1e2   : > { %v14011_v45 = vpop.f32.mrf.mxu3  ;;  %2145 = vmatpush.msra.mxu2 %v1797_v56  ;;  %v1956_v56 = vld [vmem:[#allocation5 + $0xaf8] sm:$0xff] }
 0x1e3   : > { %v14013_v46 = vpop.f32.mrf.mxu2  ;;  %2099 = vmatpush.msrb.mxu3 %v1956_v56  ;;  %2120 = vmatpush.msrb.mxu0 %v1657_v53  ;;  %v1759_v56 = vld [vmem:[#allocation5 + $0x4d0] sm:$0xff] }
 0x1e4   : > { %v14015_v49 = vpop.f32.mrf.mxu1  ;;  %2146 = vmatpush.msra.mxu2 %v1787_v62 }
 0x1e5   : > { %2121 = vmatpush.msrb.mxu0 %v1647_v61  ;;  %v1957_v61 = vld [vmem:[#allocation5 + $0xb00] sm:$0xff] }
 0x1e6   : > { %2147 = vmatpush.msra.mxu2 %v1777_v8 }
 0x1e8   : > { %2148 = vmatpush.msra.mxu2 %v1767_v15  ;;  %v1926_v15 = vld [vmem:[#allocation5 + $0xa08] sm:$0xff] }
 0x1ea   : > { %v14019_v58 = vpop.f32.mrf.mxu3 }
 0x1eb   : > { %v14021_v59 = vpop.f32.mrf.mxu2  ;;  %v767_v26 = vadd.f32 %v14019_v58, %v13995_v24  ;;  %v1856_v58 = vld [vmem:[#allocation5 + $0x7d8] sm:$0xff] }
 0x1ec   : > { %v14023_v63 = vpop.f32.mrf.mxu0  ;;  %2070 = vmatpush.msrb.mxu1 %v1856_v58  ;;  %v793_v58 = vadd.f32 %v13997_v28, %v14011_v45  ;;  %v813_v28 = vadd.f32 %v13999_v30, %v14005_v37 }
 0x1ed   : > { %v921_v41 = vadd.f32 %v14021_v59, %v767_v26  ;;  %v1836_v59 = vld [vmem:[#allocation5 + $0x738] sm:$0xff]  ;;  %v14077_v26 = vpop.permute.xlu0 %1585 }
 0x1ee   : > { %v14025_v3 = vpop.f32.mrf.mxu1  ;;  %2071 = vmatpush.msrb.mxu1 %v1846_v52 }
 0x1ef   : > { %v1030_v54 = vadd.f32 %v14015_v49, %v921_v41  ;;  %v1826_v49 = vld [vmem:[#allocation5 + $0x6e8] sm:$0xff] }
 0x1f0   : > { %2072 = vmatpush.msrb.mxu1 %v1836_v59  ;;  %v1786_v41 = vld [vmem:[#allocation5 + $0x5a8] sm:$0xff] }
 0x1f1   : > { %v1139_v1 = vadd.f32 %v14023_v63, %v1030_v54  ;;  %v1806_v63 = vld [vmem:[#allocation5 + $0x648] sm:$0xff] }
 0x1f2   : > { %v14027_v10 = vpop.f32.mrf.mxu3  ;;  %2073 = vmatpush.msrb.mxu1 %v1826_v49  ;;  %v1766_v54 = vld [vmem:[#allocation5 + $0x508] sm:$0xff] }
 0x1f3   : > { %v14029_v11 = vpop.f32.mrf.mxu2  ;;  %v770_v55 = vadd.f32 %v14027_v10, %v14001_v31  ;;  %v1946_v31 = vld [vmem:[#allocation5 + $0xaa8] sm:$0xff]  ;;  %v1637_v10 = vld [vmem:[#allocation5 + $0x100] sm:$0xff] }
 0x1f4   : > { %v14031_v18 = vpop.f32.mrf.mxu0  ;;  %2100 = vmatpush.msrb.mxu3 %v1946_v31  ;;  %2122 = vmatpush.msrb.mxu0 %v1637_v10  ;;  %v1739_v31 = vld [vmem:[#allocation5 + $0x430] sm:$0xff]  ;;  %v1937_v10 = vld [vmem:[#allocation5 + $0xa60] sm:$0xff] }
 0x1f5   : > { %v924_v2 = vadd.f32 %v14029_v11, %v770_v55  ;;  %2074 = vmatpush.msrb.mxu1 %v1816_v12 }
 0x1f6   : > { %v14033_v19 = vpop.f32.mrf.mxu1  ;;  %2101 = vmatpush.msrb.mxu3 %v1936_v13  ;;  %2123 = vmatpush.msrb.mxu0 %v1627_v14  ;;  %v1729_v13 = vld [vmem:[#allocation5 + $0x3e0] sm:$0xff]  ;;  %v1927_v14 = vld [vmem:[#allocation5 + $0xa10] sm:$0xff] }
 0x1f7   : > { %v1033_v11 = vadd.f32 %v14025_v3, %v924_v2  ;;  %2075 = vmatpush.msrb.mxu1 %v1806_v63  ;;  %v1947_v2 = vld [vmem:[#allocation5 + $0xab0] sm:$0xff] }
 0x1f8   : > { %2102 = vmatpush.msrb.mxu3 %v1926_v15  ;;  %2124 = vmatpush.msrb.mxu0 %v1617_v21 }
 0x1f9   : > { %2076 = vmatpush.msrb.mxu1 %v1796_v36  ;;  %v1142_v35 = vadd.f32 %v14031_v18, %v1033_v11  ;;  %v1719_v11 = vld [vmem:[#allocation5 + $0x390] sm:$0xff] }
 0x1fa   : > { %v14035_v29 = vpop.f32.mrf.mxu3  ;;  %2125 = vmatpush.msrb.mxu0 %v1607_v33  ;;  %v1689_v33 = vld [vmem:[#allocation5 + $0x2a0] sm:$0xff] }
 0x1fb   : > { %v922_v16 = vadd.f32 %v14035_v29, %v790_v6  ;;  %2077 = vmatpush.msrb.mxu1 %v1786_v41  ;;  %v923_v6 = vadd.f32 %v14007_v38, %v813_v28  ;;  %v816_v38 = vadd.f32 %v14009_v40, %v14013_v46  ;;  %v1679_v41 = vld [vmem:[#allocation5 + $0x250] sm:$0xff]  ;;  %v1629_v28 = vld [vmem:[#allocation5 + $0xc0] sm:$0xff] }
 0x1fc   : > { %v14037_v32 = vpop.f32.mrf.mxu2  ;;  %v14039_v43 = vpop.f32.mrf.mxu0 }
 0x1fd   : > { %v1031_v3 = vadd.f32 %v14037_v32, %v922_v16  ;;  %2078 = vmatpush.msrb.mxu1 %v1776_v48  ;;  %v926_v36 = vadd.f32 %v14017_v50, %v816_v38  ;;  %v1669_v48 = vld [vmem:[#allocation5 + $0x200] sm:$0xff]  ;;  %v1940_v38 = vld [vmem:[#allocation5 + $0xa78] sm:$0xff] }
 0x1fe   : > { %v14041_v44 = vpop.f32.mrf.mxu1 }
 0x1ff   : > { %v1140_v55 = vadd.f32 %v14033_v19, %v1031_v3  ;;  %2079 = vmatpush.msrb.mxu1 %v1766_v54  ;;  %v14092_v19 = vpop.permute.xlu1 %1590 }
 0x202   : > { %v14043_v60 = vpop.f32.mrf.mxu3 }
 0x203   : > { %v925_v18 = vadd.f32 %v14043_v60, %v793_v58  ;;  %v1249_v60 = vadd.f32 %v14039_v43, %v1140_v55  ;;  %v1938_v58 = vld [vmem:[#allocation5 + $0xa68] sm:$0xff] }
 0x204   : > { %v14045_v0 = vpop.f32.mrf.mxu2  ;;  %v14047_v5 = vpop.f32.mrf.mxu0 }
 0x205   : > { %v1034_v49 = vadd.f32 %v14045_v0, %v925_v18 }
 0x206   : > { %v14049_v9 = vpop.f32.mrf.mxu1 }
 0x207   : > { %v1143_v43 = vadd.f32 %v14041_v44, %v1034_v49  ;;  %v1619_v49 = vld [vmem:[#allocation5 + $0x70] sm:$0xff] }
 0x209   : > { %v1252_v44 = vadd.f32 %v14047_v5, %v1143_v43  ;;  %v1728_v43 = vld [vmem:[#allocation5 + $0x3d8] sm:$0xff] }
 0x20a   : > { %v14051_v20 = vpop.f32.mrf.mxu3 }
 0x20b   : > { %v1032_v0 = vadd.f32 %v14051_v20, %v923_v6  ;;  %v1960_v6 = vld [vmem:[#allocation5 + $0xb18] sm:$0xff] }
 0x20c   : > { %v14053_v25 = vpop.f32.mrf.mxu2  ;;  %v14057_v34 = vpop.f32.mrf.mxu0 }
 0x20d   : > { %v1141_v20 = vadd.f32 %v14053_v25, %v1032_v0  ;;  %v1888_v0 = vld [vmem:[#allocation5 + $0x8d8] sm:$0xff] }
 0x20e   : > { %v14059_v39 = vpop.f32.mrf.mxu1 }
 0x212   : > { %v14062_v47 = vpop.f32.mrf.mxu3 }
 0x213   : > { %v1035_v5 = vadd.f32 %v14062_v47, %v926_v36  ;;  %v1698_v36 = vld [vmem:[#allocation5 + $0x2e8] sm:$0xff] }
 0x214   : > { %v14064_v24 = vpop.f32.mrf.mxu2  ;;  %v14069_v57 = vpop.f32.mrf.mxu0 }
 0x216   : > { %v1414_v62 = vpop.f32.mrf.mxu1 }
 0x21a   : > { %v1196_v4 = vpop.f32.mrf.mxu3 }
 0x21b   : > { %v1248_v7 = vadd.f32 %v1196_v4, %v1139_v1  ;;  %v1749_v1 = vld [vmem:[#allocation5 + $0x480] sm:$0xff] }
 0x21c   : > { %v1305_v8 = vpop.f32.mrf.mxu2  ;;  %v1523_v22 = vpop.f32.mrf.mxu0 }
 0x21d   : > { %v1357_v17 = vadd.f32 %v1305_v8, %v1248_v7 }
 0x21e   : > { %v1417_v27 = vpop.f32.mrf.mxu1 }
 0x21f   : > { %v1466_v23 = vadd.f32 %v1414_v62, %v1357_v17  ;;  %v1709_v17 = vld [vmem:[#allocation5 + $0x340] sm:$0xff] }
 0x221   : > { %v1575_v29 = vadd.f32 %v1523_v22, %v1466_v23  ;;  %v1699_v22 = vld [vmem:[#allocation5 + $0x2f0] sm:$0xff] }
 0x222   : > { %v1199_v42 = vpop.f32.mrf.mxu3 }
 0x223   : > { %v1593_v51 = vadd.f32 %v14077_v26, %v1575_v29  ;;  %v1251_v52 = vadd.f32 %v1199_v42, %v1142_v35  ;;  %v1958_v35 = vld [vmem:[#allocation5 + $0xb08] sm:$0xff]  ;;  %v1250_v29 = vadd.f32 %v14049_v9, %v1141_v20  ;;  %v1948_v42 = vld [vmem:[#allocation5 + $0xab8] sm:$0xff]  ;;  %v1144_v9 = vadd.f32 %v14064_v24, %v1035_v5  ;;  %v1901_v5 = vld [vmem:[#allocation5 + $0x940] sm:$0xff] }
 0x224   : > { %v1308_v53 = vpop.f32.mrf.mxu2  ;;  %v1526_v62 = vpop.f32.mrf.mxu0  ;;  %v1708_v20 = vld [vmem:[#allocation5 + $0x338] sm:$0xff] }
 0x225   : > { %v14086_v32 = vmax.f32 %v1593_v51, 0.0  ;;  %v1360_v59 = vadd.f32 %v1308_v53, %v1251_v52  ;;  %v1359_v51 = vadd.f32 %v14057_v34, %v1250_v29  ;;  %v1659_v52 = vld [vmem:[#allocation5 + $0x1b0] sm:$0xff]  ;;  %v1928_v53 = vld [vmem:[#allocation5 + $0xa18] sm:$0xff] }
 0x226   : > { %v1546_v37 = vpop.f32.mrf.mxu1  ;;  %v1639_v34 = vld [vmem:[#allocation5 + $0x110] sm:$0xff] }
 0x227   : > { %v1469_v45 = vadd.f32 %v1417_v27, %v1360_v59  ;;  %1988 = vmatmul.f32.vlgmr.msra.gmra.mxu3 %v14086_v32  ;;  %2057 = vmatmul.f32.vlgmr.msrb.gmra.mxu2 %v14086_v32  ;;  %v1859_v29 = vld [vmem:[#allocation5 + $0x7f0] sm:$0xff] }
 0x228   : > { %2248 = vmatpush.msrb.mxu2 %v1759_v56  ;;  %2168 = vmatpush.msra.mxu3 %v1957_v61  ;;  %v1649_v56 = vld [vmem:[#allocation5 + $0x160] sm:$0xff]  ;;  %v1253_v61 = vadd.f32 %v14059_v39, %v1144_v9  ;;  %v1839_v9 = vld [vmem:[#allocation5 + $0x750] sm:$0xff] }
 0x229   : > { %v1578_v4 = vadd.f32 %v1526_v62, %v1469_v45 }
 0x22a   : > { %2249 = vmatpush.msrb.mxu2 %v1749_v1  ;;  %v1328_v30 = vpop.f32.mrf.mxu3  ;;  %2169 = vmatpush.msra.mxu3 %v1947_v2  ;;  %v1362_v45 = vadd.f32 %v14069_v57, %v1253_v61  ;;  %v1758_v2 = vld [vmem:[#allocation5 + $0x4c8] sm:$0xff]  ;;  %v1609_v57 = vld [vmem:[#allocation5 + $0x20] sm:$0xff] }
 0x22b   : > { %v1596_v7 = vadd.f32 %v14092_v19, %v1578_v4  ;;  %v1358_v8 = vadd.f32 %v1328_v30, %v1249_v60  ;;  %v1918_v60 = vld [vmem:[#allocation5 + $0x9c8] sm:$0xff]  ;;  %v1919_v30 = vld [vmem:[#allocation5 + $0x9d0] sm:$0xff]  ;;  %v1861_v61 = vld [vmem:[#allocation5 + $0x800] sm:$0xff] }
 0x22c   : > { %v1437_v12 = vpop.f32.mrf.mxu2  ;;  %2250 = vmatpush.msrb.mxu2 %v1739_v31  ;;  %2170 = vmatpush.msra.mxu3 %v1937_v10  ;;  %v1748_v31 = vld [vmem:[#allocation5 + $0x478] sm:$0xff] }
 0x22d   : > { %v14100_v63 = vmax.f32 %v1596_v7, 0.0  ;;  %v1467_v15 = vadd.f32 %v1437_v12, %v1358_v8  ;;  %v1908_v10 = vld [vmem:[#allocation5 + $0x978] sm:$0xff]  ;;  %v1738_v7 = vld [vmem:[#allocation5 + $0x428] sm:$0xff] }
 0x22e   : > { %2251 = vmatpush.msrb.mxu2 %v1729_v13  ;;  %2171 = vmatpush.msra.mxu3 %v1927_v14  ;;  %v1549_v3 = vpop.f32.mrf.mxu1  ;;  %v1898_v8 = vld [vmem:[#allocation5 + $0x928] sm:$0xff]  ;;  %v1909_v13 = vld [vmem:[#allocation5 + $0x980] sm:$0xff] }
 0x22f   : > { %v1576_v16 = vadd.f32 %v1546_v37, %v1467_v15  ;;  %1991 = vmatmul.f32.gmra.mxu3 %v14100_v63  ;;  %2060 = vmatmul.f32.gmra.mxu2 %v14100_v63  ;;  %v1950_v14 = vld [vmem:[#allocation5 + $0xac8] sm:$0xff] }
 0x230   : > { %2252 = vmatpush.msrb.mxu2 %v1719_v11  ;;  %v1899_v11 = vld [vmem:[#allocation5 + $0x930] sm:$0xff] }
 0x231   : > { %v1594_v21 = vadd.f32 %v14077_v26, %v1576_v16  ;;  %v1878_v16 = vld [vmem:[#allocation5 + $0x888] sm:$0xff] }
 0x232   : > { %2253 = vmatpush.msrb.mxu2 %v1709_v17  ;;  %v1331_v23 = vpop.f32.mrf.mxu3  ;;  %v1889_v17 = vld [vmem:[#allocation5 + $0x8e0] sm:$0xff] }
 0x233   : > { %v14110_v27 = vmax.f32 %v1594_v21, 0.0  ;;  %v1361_v40 = vadd.f32 %v1331_v23, %v1252_v44  ;;  %v1930_v44 = vld [vmem:[#allocation5 + $0xa28] sm:$0xff]  ;;  %v1868_v21 = vld [vmem:[#allocation5 + $0x838] sm:$0xff]  ;;  %v1921_v23 = vld [vmem:[#allocation5 + $0x9e0] sm:$0xff] }
 0x234   : > { %v1440_v46 = vpop.f32.mrf.mxu2  ;;  %2254 = vmatpush.msrb.mxu2 %v1699_v22  ;;  %v1879_v22 = vld [vmem:[#allocation5 + $0x890] sm:$0xff] }
 0x235   : > { %v1470_v25 = vadd.f32 %v1440_v46, %v1361_v40  ;;  %2011 = vmatmul.f32.vlgmr.msra.gmra.mxu0 %v14110_v27  ;;  %v1858_v40 = vld [vmem:[#allocation5 + $0x7e8] sm:$0xff]  ;;  %v1869_v46 = vld [vmem:[#allocation5 + $0x840] sm:$0xff] }
 0x236   : > { %2255 = vmatpush.msrb.mxu2 %v1689_v33  ;;  %2237 = vmatpush.msra.mxu0 %v1958_v35  ;;  %v1911_v33 = vld [vmem:[#allocation5 + $0x990] sm:$0xff]  ;;  %v1688_v35 = vld [vmem:[#allocation5 + $0x298] sm:$0xff] }
 0x237   : > { %v1579_v50 = vadd.f32 %v1549_v3, %v1470_v25  ;;  %2149 = vmatmul.f32.vlgmr.msra.gmra.mxu2 %v14110_v27  ;;  %v1848_v3 = vld [vmem:[#allocation5 + $0x798] sm:$0xff]  ;;  %v1678_v25 = vld [vmem:[#allocation5 + $0x248] sm:$0xff] }
 0x238   : > { %2256 = vmatpush.msrb.mxu2 %v1679_v41  ;;  %2238 = vmatpush.msra.mxu0 %v1948_v42  ;;  %v1838_v41 = vld [vmem:[#allocation5 + $0x748] sm:$0xff]  ;;  %v1849_v42 = vld [vmem:[#allocation5 + $0x7a0] sm:$0xff] }
 0x239   : > { %v1597_v47 = vadd.f32 %v14092_v19, %v1579_v50  ;;  %v1891_v50 = vld [vmem:[#allocation5 + $0x8f0] sm:$0xff] }
 0x23a   : > { %2257 = vmatpush.msrb.mxu2 %v1669_v48  ;;  %v1460_v54 = vpop.f32.mrf.mxu3  ;;  %2239 = vmatpush.msra.mxu0 %v1938_v58  ;;  %v1668_v48 = vld [vmem:[#allocation5 + $0x1f8] sm:$0xff] }
 0x23b   : > { %v14119_v55 = vmax.f32 %v1597_v47, 0.0  ;;  %v1468_v18 = vadd.f32 %v1460_v54, %v1359_v51  ;;  %v1828_v58 = vld [vmem:[#allocation5 + $0x6f8] sm:$0xff]  ;;  %v1881_v51 = vld [vmem:[#allocation5 + $0x8a0] sm:$0xff]  ;;  %v1658_v47 = vld [vmem:[#allocation5 + $0x1a8] sm:$0xff] }
 0x23c   : > { %v1569_v59 = vpop.f32.mrf.mxu2  ;;  %2258 = vmatpush.msrb.mxu2 %v1659_v52  ;;  %2240 = vmatpush.msra.mxu0 %v1928_v53  ;;  %v1818_v52 = vld [vmem:[#allocation5 + $0x6a8] sm:$0xff]  ;;  %v1829_v53 = vld [vmem:[#allocation5 + $0x700] sm:$0xff]  ;;  %v1871_v54 = vld [vmem:[#allocation5 + $0x850] sm:$0xff] }
 0x23d   : > { %v1577_v62 = vadd.f32 %v1569_v59, %v1468_v18  ;;  %2014 = vmatmul.f32.gmra.mxu0 %v14119_v55  ;;  %v1648_v18 = vld [vmem:[#allocation5 + $0x158] sm:$0xff] }
 0x23e   : > { %2259 = vmatpush.msrb.mxu2 %v1649_v56  ;;  %v1808_v59 = vld [vmem:[#allocation5 + $0x658] sm:$0xff]  ;;  %v1819_v56 = vld [vmem:[#allocation5 + $0x6b0] sm:$0xff] }
 0x23f   : > { %v1595_v24 = vadd.f32 %v14077_v26, %v1577_v62  ;;  %2152 = vmatmul.f32.gmra.mxu2 %v14119_v55  ;;  %v1638_v62 = vld [vmem:[#allocation5 + $0x108] sm:$0xff] }
 0x240   : > { %2260 = vmatpush.msrb.mxu2 %v1639_v34  ;;  %v1798_v34 = vld [vmem:[#allocation5 + $0x608] sm:$0xff] }
 0x241   : > { %v14126_v1 = vmax.f32 %v1595_v24, 0.0  ;;  %v1809_v24 = vld [vmem:[#allocation5 + $0x660] sm:$0xff] }
 0x242   : > { %2261 = vmatpush.msrb.mxu2 %v1629_v28  ;;  %v1463_v39 = vpop.f32.mrf.mxu3  ;;  %v1851_v28 = vld [vmem:[#allocation5 + $0x7b0] sm:$0xff] }
 0x243   : > { %v1471_v4 = vadd.f32 %v1463_v39, %v1362_v45  ;;  %11583 = vmatmul.msk.f32.vlgmr.msra.gmra.mxu1 %vm1965_vm12, %v14126_v1  ;;  %11585 = vmatmul.msk.f32.vlgmr.msrb.gmra.mxu3 %vm1965_vm12, %v14126_v1  ;;  %v1628_v45 = vld [vmem:[#allocation5 + $0xb8] sm:$0xff]  ;;  %v1799_v39 = vld [vmem:[#allocation5 + $0x610] sm:$0xff] }
 0x244   : > { %v1572_v26 = vpop.f32.mrf.mxu2  ;;  %2179 = vmatpush.msra.mxu1 %v1758_v2  ;;  %2202 = vmatpush.msrb.mxu3 %v1918_v60  ;;  %v1788_v2 = vld [vmem:[#allocation5 + $0x5b8] sm:$0xff]  ;;  %v1841_v60 = vld [vmem:[#allocation5 + $0x760] sm:$0xff] }
 0x245   : > { %2262 = vmatpush.msrb.mxu2 %v1619_v49  ;;  %v1580_v37 = vadd.f32 %v1572_v26, %v1471_v4  ;;  %2126 = vmatmul.f32.vlgmr.msrb.gmra.mxu0 %v14086_v32  ;;  %v1618_v49 = vld [vmem:[#allocation5 + $0x68] sm:$0xff]  ;;  %v1789_v26 = vld [vmem:[#allocation5 + $0x5c0] sm:$0xff] }
 0x246   : > { %2180 = vmatpush.msra.mxu1 %v1748_v31  ;;  %2203 = vmatpush.msrb.mxu3 %v1908_v10  ;;  %v1778_v4 = vld [vmem:[#allocation5 + $0x568] sm:$0xff]  ;;  %v1831_v31 = vld [vmem:[#allocation5 + $0x710] sm:$0xff]  ;;  %v1608_v10 = vld [vmem:[#allocation5 + $0x18] sm:$0xff] }
 0x247   : > { %v1598_v12 = vadd.f32 %v14092_v19, %v1580_v37  ;;  %2263 = vmatpush.msrb.mxu2 %v1609_v57  ;;  %2271 = vmatpush.msrb.mxu0 %v1919_v30  ;;  %v1718_v19 = vld [vmem:[#allocation5 + $0x388] sm:$0xff]  ;;  %v1768_v57 = vld [vmem:[#allocation5 + $0x518] sm:$0xff]  ;;  %v1779_v30 = vld [vmem:[#allocation5 + $0x570] sm:$0xff] }
 0x248   : > { %2181 = vmatpush.msra.mxu1 %v1738_v7  ;;  %2204 = vmatpush.msrb.mxu3 %v1898_v8  ;;  %v1821_v37 = vld [vmem:[#allocation5 + $0x6c0] sm:$0xff]  ;;  %v1760_v7 = vld [vmem:[#allocation5 + $0x4d8] sm:$0xff] }
 0x249   : > { %2375 = vmatpush.msra.mxu2 %v1960_v6  ;;  %v14134_v15 = vmax.f32 %v1598_v12, 0.0  ;;  %2272 = vmatpush.msrb.mxu0 %v1909_v13  ;;  %v1959_v6 = vld [vmem:[#allocation5 + $0xb10] sm:$0xff]  ;;  %v1769_v8 = vld [vmem:[#allocation5 + $0x520] sm:$0xff] }
 0x24a   : > { %2264 = vmatmul.f32.vlgmr.msrb.gmra.mxu2 %v14086_v32  ;;  %2182 = vmatpush.msra.mxu1 %v1728_v43  ;;  %v1811_v12 = vld [vmem:[#allocation5 + $0x670] sm:$0xff]  ;;  %v1949_v13 = vld [vmem:[#allocation5 + $0xac0] sm:$0xff] }
 0x24b   : > { %2376 = vmatpush.msra.mxu2 %v1950_v14  ;;  %2205 = vmatpush.msrb.mxu3 %v1888_v0  ;;  %v1750_v14 = vld [vmem:[#allocation5 + $0x488] sm:$0xff]  ;;  %v1761_v43 = vld [vmem:[#allocation5 + $0x4e0] sm:$0xff] }
 0x24c   : > { %2273 = vmatpush.msrb.mxu0 %v1899_v11  ;;  %11584 = vmatmul.msk.f32.gmra.mxu1 %vm1965_vm12, %v14134_v15  ;;  %v1801_v0 = vld [vmem:[#allocation5 + $0x620] sm:$0xff]  ;;  %v1939_v11 = vld [vmem:[#allocation5 + $0xa70] sm:$0xff] }
 0x24d   : > { %2377 = vmatpush.msra.mxu2 %v1940_v38  ;;  %11586 = vmatmul.msk.f32.gmra.mxu3 %vm1965_vm12, %v14134_v15  ;;  %v1740_v38 = vld [vmem:[#allocation5 + $0x438] sm:$0xff] }
 0x24e   : > { %2183 = vmatpush.msra.mxu1 %v1718_v19  ;;  %2206 = vmatpush.msrb.mxu3 %v1878_v16  ;;  %v1751_v19 = vld [vmem:[#allocation5 + $0x490] sm:$0xff] }
 0x24f   : > { %2274 = vmatpush.msrb.mxu0 %v1889_v17  ;;  %2378 = vmatpush.msra.mxu2 %v1930_v44  ;;  %v1791_v16 = vld [vmem:[#allocation5 + $0x5d0] sm:$0xff]  ;;  %v1929_v17 = vld [vmem:[#allocation5 + $0xa20] sm:$0xff]  ;;  %v1730_v44 = vld [vmem:[#allocation5 + $0x3e8] sm:$0xff] }
 0x250   : > { %2129 = vmatmul.f32.gmra.mxu0 %v14100_v63  ;;  %2184 = vmatpush.msra.mxu1 %v1708_v20  ;;  %v1741_v20 = vld [vmem:[#allocation5 + $0x440] sm:$0xff] }
 0x251   : > { %2207 = vmatpush.msrb.mxu3 %v1868_v21  ;;  %2275 = vmatpush.msrb.mxu0 %v1879_v22  ;;  %v1920_v21 = vld [vmem:[#allocation5 + $0x9d8] sm:$0xff]  ;;  %v1781_v22 = vld [vmem:[#allocation5 + $0x580] sm:$0xff] }
 0x252   : > { %2409 = vmatpush.msrb.mxu2 %v1921_v23  ;;  %2185 = vmatpush.msra.mxu1 %v1698_v36  ;;  %v1720_v23 = vld [vmem:[#allocation5 + $0x398] sm:$0xff]  ;;  %v1731_v36 = vld [vmem:[#allocation5 + $0x3f0] sm:$0xff] }
 0x253   : > { %2208 = vmatpush.msrb.mxu3 %v1858_v40  ;;  %2267 = vmatmul.f32.gmra.mxu2 %v14100_v63  ;;  %v1910_v40 = vld [vmem:[#allocation5 + $0x988] sm:$0xff] }
 0x254   : > { %2276 = vmatpush.msrb.mxu0 %v1869_v46  ;;  %2410 = vmatpush.msrb.mxu2 %v1911_v33  ;;  %v1771_v46 = vld [vmem:[#allocation5 + $0x530] sm:$0xff]  ;;  %v1710_v33 = vld [vmem:[#allocation5 + $0x348] sm:$0xff] }
 0x255   : > { %2186 = vmatpush.msra.mxu1 %v1688_v35  ;;  %2209 = vmatpush.msrb.mxu3 %v1848_v3  ;;  %v1721_v35 = vld [vmem:[#allocation5 + $0x3a0] sm:$0xff]  ;;  %v1763_v3 = vld [vmem:[#allocation5 + $0x4f0] sm:$0xff] }
 0x256   : > { %2277 = vmatpush.msrb.mxu0 %v1859_v29  ;;  %2411 = vmatpush.msrb.mxu2 %v1901_v5  ;;  %v1900_v29 = vld [vmem:[#allocation5 + $0x938] sm:$0xff] }
 0x257   : > { %2080 = vmatmul.f32.vlgmr.msrb.gmra.mxu1 %v14110_v27  ;;  %11587 = vmatmul.msk.f32.vlgmr.msra.gmra.mxu3 %vm1965_vm12, %v14126_v1  ;;  %v1700_v5 = vld [vmem:[#allocation5 + $0x2f8] sm:$0xff] }
 0x258   : > { %2187 = vmatpush.msra.mxu1 %v1678_v25  ;;  %2210 = vmatpush.msrb.mxu3 %v1838_v41  ;;  %v1711_v25 = vld [vmem:[#allocation5 + $0x350] sm:$0xff]  ;;  %v1753_v41 = vld [vmem:[#allocation5 + $0x4a0] sm:$0xff] }
 0x259   : > { %2278 = vmatpush.msrb.mxu0 %v1849_v42  ;;  %2412 = vmatpush.msrb.mxu2 %v1891_v50  ;;  %v1890_v42 = vld [vmem:[#allocation5 + $0x8e8] sm:$0xff] }
 0x25a   : > { %2188 = vmatpush.msra.mxu1 %v1668_v48  ;;  %2211 = vmatpush.msrb.mxu3 %v1828_v58  ;;  %v1690_v50 = vld [vmem:[#allocation5 + $0x2a8] sm:$0xff]  ;;  %v1701_v48 = vld [vmem:[#allocation5 + $0x300] sm:$0xff]  ;;  %v1743_v58 = vld [vmem:[#allocation5 + $0x450] sm:$0xff] }
 0x25b   : > { %11589 = vmatmul.msk.f32.vlgmr.msra.gmra.mxu0 %vm1965_vm12, %v14126_v1  ;;  %2413 = vmatpush.msrb.mxu2 %v1881_v51  ;;  %v1880_v51 = vld [vmem:[#allocation5 + $0x898] sm:$0xff] }
 0x25c   : > { %2279 = vmatpush.msrb.mxu0 %v1839_v9  ;;  %2189 = vmatpush.msra.mxu1 %v1658_v47  ;;  %v1680_v9 = vld [vmem:[#allocation5 + $0x258] sm:$0xff]  ;;  %v1691_v47 = vld [vmem:[#allocation5 + $0x2b0] sm:$0xff] }
 0x25d   : > { %2212 = vmatpush.msrb.mxu3 %v1818_v52  ;;  %11593 = vmatmul.msk.f32.vlgmr.msra.gmra.mxu2 %vm1965_vm12, %v14126_v1  ;;  %v1733_v52 = vld [vmem:[#allocation5 + $0x400] sm:$0xff] }
 0x25e   : > { %2280 = vmatpush.msrb.mxu0 %v1829_v53  ;;  %2414 = vmatpush.msrb.mxu2 %v1871_v54  ;;  %v1870_v53 = vld [vmem:[#allocation5 + $0x848] sm:$0xff] }
 0x25f   : > { %2190 = vmatpush.msra.mxu1 %v1648_v18  ;;  %2213 = vmatpush.msrb.mxu3 %v1808_v59  ;;  %v1670_v54 = vld [vmem:[#allocation5 + $0x208] sm:$0xff]  ;;  %v1681_v18 = vld [vmem:[#allocation5 + $0x260] sm:$0xff]  ;;  %v1723_v59 = vld [vmem:[#allocation5 + $0x3b0] sm:$0xff] }
 0x260   : > { %2281 = vmatpush.msrb.mxu0 %v1819_v56  ;;  %2415 = vmatpush.msrb.mxu2 %v1861_v61  ;;  %v1860_v56 = vld [vmem:[#allocation5 + $0x7f8] sm:$0xff] }
 0x261   : > { %2083 = vmatmul.f32.gmra.mxu1 %v14119_v55  ;;  %11588 = vmatmul.msk.f32.gmra.mxu3 %vm1965_vm12, %v14134_v15  ;;  %v1660_v61 = vld [vmem:[#allocation5 + $0x1b8] sm:$0xff] }
 0x262   : > { %2191 = vmatpush.msra.mxu1 %v1638_v62  ;;  %2214 = vmatpush.msrb.mxu3 %v1798_v34  ;;  %v1671_v62 = vld [vmem:[#allocation5 + $0x210] sm:$0xff]  ;;  %v1713_v34 = vld [vmem:[#allocation5 + $0x360] sm:$0xff] }
 0x263   : > { %2282 = vmatpush.msrb.mxu0 %v1809_v24  ;;  %2416 = vmatpush.msrb.mxu2 %v1851_v28  ;;  %v1850_v24 = vld [vmem:[#allocation5 + $0x7a8] sm:$0xff] }
 0x264   : > { %2192 = vmatpush.msra.mxu1 %v1628_v45  ;;  %2215 = vmatpush.msrb.mxu3 %v1788_v2  ;;  %v1650_v28 = vld [vmem:[#allocation5 + $0x168] sm:$0xff]  ;;  %v1661_v45 = vld [vmem:[#allocation5 + $0x1c0] sm:$0xff]  ;;  %v1703_v2 = vld [vmem:[#allocation5 + $0x310] sm:$0xff] }
 0x265   : > { %11590 = vmatmul.msk.f32.gmra.mxu0 %vm1965_vm12, %v14134_v15  ;;  %2417 = vmatpush.msrb.mxu2 %v1841_v60  ;;  %v1840_v60 = vld [vmem:[#allocation5 + $0x758] sm:$0xff] }
 0x266   : > { %2283 = vmatpush.msrb.mxu0 %v1799_v39  ;;  %2193 = vmatpush.msra.mxu1 %v1618_v49  ;;  %v1640_v39 = vld [vmem:[#allocation5 + $0x118] sm:$0xff]  ;;  %v1651_v49 = vld [vmem:[#allocation5 + $0x170] sm:$0xff] }
 0x267   : > { %2216 = vmatpush.msrb.mxu3 %v1778_v4  ;;  %11594 = vmatmul.msk.f32.gmra.mxu2 %vm1965_vm12, %v14134_v15  ;;  %v1693_v4 = vld [vmem:[#allocation5 + $0x2c0] sm:$0xff] }
 0x268   : > { %2284 = vmatpush.msrb.mxu0 %v1789_v26  ;;  %2418 = vmatpush.msrb.mxu2 %v1831_v31  ;;  %v1830_v26 = vld [vmem:[#allocation5 + $0x708] sm:$0xff] }
 0x269   : > { %2194 = vmatpush.msra.mxu1 %v1608_v10  ;;  %2217 = vmatpush.msrb.mxu3 %v1768_v57  ;;  %v1630_v31 = vld [vmem:[#allocation5 + $0xc8] sm:$0xff]  ;;  %v1641_v10 = vld [vmem:[#allocation5 + $0x120] sm:$0xff]  ;;  %v1683_v57 = vld [vmem:[#allocation5 + $0x270] sm:$0xff] }
 0x26a   : > { %2285 = vmatpush.msrb.mxu0 %v1779_v30  ;;  %2419 = vmatpush.msrb.mxu2 %v1821_v37  ;;  %v1820_v30 = vld [vmem:[#allocation5 + $0x6b8] sm:$0xff] }
 0x26b   : > { %2306 = vmatpush.msrb.mxu1 %v1959_v6  ;;  %2317 = vmatpush.msra.mxu3 %v1760_v7  ;;  %v1620_v37 = vld [vmem:[#allocation5 + $0x78] sm:$0xff]  ;;  %v1631_v6 = vld [vmem:[#allocation5 + $0xd0] sm:$0xff]  ;;  %v1673_v7 = vld [vmem:[#allocation5 + $0x220] sm:$0xff] }
 0x26c   : > { %2195 = vmatmul.f32.vlgmr.msra.gmra.mxu1 %v14086_v32  ;;  %2218 = vmatmul.f32.vlgmr.msrb.gmra.mxu3 %v14110_v27 }
 0x26d   : > { %2286 = vmatpush.msrb.mxu0 %v1769_v8  ;;  %2420 = vmatpush.msrb.mxu2 %v1811_v12  ;;  %v1810_v8 = vld [vmem:[#allocation5 + $0x668] sm:$0xff] }
 0x26e   : > { %2307 = vmatpush.msrb.mxu1 %v1949_v13  ;;  %2318 = vmatpush.msra.mxu3 %v1750_v14  ;;  %v1610_v12 = vld [vmem:[#allocation5 + $0x28] sm:$0xff]  ;;  %v1621_v13 = vld [vmem:[#allocation5 + $0x80] sm:$0xff]  ;;  %v1663_v14 = vld [vmem:[#allocation5 + $0x1d0] sm:$0xff] }
 0x26f   : > { %2386 = vmatpush.msra.mxu0 %v1761_v43  ;;  %2421 = vmatpush.msrb.mxu2 %v1801_v0  ;;  %v1800_v43 = vld [vmem:[#allocation5 + $0x618] sm:$0xff]  ;;  %v1961_v0 = vld [vmem:[#allocation5 + $0xb20] sm:$0xff] }
 0x270   : > { %2287 = vmatmul.f32.vlgmr.msrb.gmra.mxu0 %v14110_v27  ;;  %2308 = vmatpush.msrb.mxu1 %v1939_v11  ;;  %v1611_v11 = vld [vmem:[#allocation5 + $0x30] sm:$0xff] }
 0x271   : > { %2319 = vmatpush.msra.mxu3 %v1740_v38  ;;  %2387 = vmatpush.msra.mxu0 %v1751_v19  ;;  %v1653_v38 = vld [vmem:[#allocation5 + $0x180] sm:$0xff]  ;;  %v1790_v19 = vld [vmem:[#allocation5 + $0x5c8] sm:$0xff] }
 0x272   : > { %2422 = vmatpush.msrb.mxu2 %v1791_v16  ;;  %2309 = vmatpush.msrb.mxu1 %v1929_v17  ;;  %v1951_v16 = vld [vmem:[#allocation5 + $0xad0] sm:$0xff]  ;;  %v1962_v17 = vld [vmem:[#allocation5 + $0xb28] sm:$0xff] }
 0x273   : > { %2320 = vmatpush.msra.mxu3 %v1730_v44  ;;  %2388 = vmatpush.msra.mxu0 %v1741_v20  ;;  %v1643_v44 = vld [vmem:[#allocation5 + $0x130] sm:$0xff]  ;;  %v1780_v20 = vld [vmem:[#allocation5 + $0x578] sm:$0xff] }
 0x274   : > { %2340 = vmatpush.msra.mxu1 %v1920_v21  ;;  %2423 = vmatpush.msrb.mxu2 %v1781_v22  ;;  %v1941_v21 = vld [vmem:[#allocation5 + $0xa80] sm:$0xff]  ;;  %v1952_v22 = vld [vmem:[#allocation5 + $0xad8] sm:$0xff] }
 0x275   : > { %2321 = vmatpush.msra.mxu3 %v1720_v23  ;;  %2389 = vmatpush.msra.mxu0 %v1731_v36  ;;  %v1633_v23 = vld [vmem:[#allocation5 + $0xe0] sm:$0xff]  ;;  %v1770_v36 = vld [vmem:[#allocation5 + $0x528] sm:$0xff] }
 0x276   : > { %2198 = vmatmul.f32.gmra.mxu1 %v14100_v63  ;;  %2221 = vmatmul.f32.gmra.mxu3 %v14119_v55 }
 0x277   : > { %2341 = vmatpush.msra.mxu1 %v1910_v40  ;;  %2424 = vmatpush.msrb.mxu2 %v1771_v46  ;;  %v1931_v40 = vld [vmem:[#allocation5 + $0xa30] sm:$0xff]  ;;  %v1942_v46 = vld [vmem:[#allocation5 + $0xa88] sm:$0xff] }
 0x278   : > { %2322 = vmatpush.msra.mxu3 %v1710_v33  ;;  %2390 = vmatpush.msra.mxu0 %v1721_v35  ;;  %v1762_v33 = vld [vmem:[#allocation5 + $0x4e8] sm:$0xff] }
 0x279   : > { %2425 = vmatmul.f32.vlgmr.msrb.gmra.mxu2 %v14110_v27  ;;  %2290 = vmatmul.f32.gmra.mxu0 %v14119_v55  ;;  %v1922_v35 = vld [vmem:[#allocation5 + $0x9e8] sm:$0xff] }
 0x27a   : > { %2524 = vmatpush.msra.mxu2 %v1763_v3  ;;  %2342 = vmatpush.msra.mxu1 %v1900_v29  ;;  %v1623_v3 = vld [vmem:[#allocation5 + $0x90] sm:$0xff]  ;;  %v1932_v29 = vld [vmem:[#allocation5 + $0xa38] sm:$0xff] }
 0x27b   : > { %2323 = vmatpush.msra.mxu3 %v1700_v5  ;;  %2391 = vmatpush.msra.mxu0 %v1711_v25  ;;  %v1752_v5 = vld [vmem:[#allocation5 + $0x498] sm:$0xff] }
 0x27c   : > { %2525 = vmatpush.msra.mxu2 %v1753_v41  ;;  %2343 = vmatpush.msra.mxu1 %v1890_v42  ;;  %v1912_v25 = vld [vmem:[#allocation5 + $0x998] sm:$0xff]  ;;  %v1613_v41 = vld [vmem:[#allocation5 + $0x40] sm:$0xff]  ;;  %v1923_v42 = vld [vmem:[#allocation5 + $0x9f0] sm:$0xff] }
 0x27d   : > { %2324 = vmatpush.msra.mxu3 %v1690_v50  ;;  %2392 = vmatpush.msra.mxu0 %v1701_v48  ;;  %v1742_v50 = vld [vmem:[#allocation5 + $0x448] sm:$0xff] }
 0x27e   : > { %2526 = vmatpush.msra.mxu2 %v1743_v58  ;;  %2344 = vmatpush.msra.mxu1 %v1880_v51  ;;  %v1902_v48 = vld [vmem:[#allocation5 + $0x948] sm:$0xff]  ;;  %v1913_v58 = vld [vmem:[#allocation5 + $0x9a0] sm:$0xff]  ;;  %v1732_v51 = vld [vmem:[#allocation5 + $0x3f8] sm:$0xff] }
 0x27f   : > { %2325 = vmatpush.msra.mxu3 %v1680_v9  ;;  %2393 = vmatpush.msra.mxu0 %v1691_v47  ;;  %v1964_v9 = vld [vmem:[#allocation5 + $0xb38] sm:$0xff] }
 0x280   : > { %2527 = vmatpush.msra.mxu2 %v1733_v52  ;;  %11591 = vmatmul.msk.f32.vlgmr.msrb.gmra.mxu1 %vm1965_vm12, %v14126_v1  ;;  %v1892_v47 = vld [vmem:[#allocation5 + $0x8f8] sm:$0xff]  ;;  %v1903_v52 = vld [vmem:[#allocation5 + $0x950] sm:$0xff] }
 0x281   : > { %2345 = vmatpush.msra.mxu1 %v1870_v53  ;;  %2326 = vmatpush.msra.mxu3 %v1670_v54  ;;  %v1722_v53 = vld [vmem:[#allocation5 + $0x3a8] sm:$0xff] }
 0x282   : > { %2394 = vmatpush.msra.mxu0 %v1681_v18  ;;  %2428 = vmatmul.f32.gmra.mxu2 %v14119_v55  ;;  %v1882_v54 = vld [vmem:[#allocation5 + $0x8a8] sm:$0xff]  ;;  %v1893_v18 = vld [vmem:[#allocation5 + $0x900] sm:$0xff] }
 0x283   : > { %2528 = vmatpush.msra.mxu2 %v1723_v59  ;;  %2346 = vmatpush.msra.mxu1 %v1860_v56  ;;  %v1954_v59 = vld [vmem:[#allocation5 + $0xae8] sm:$0xff]  ;;  %v1712_v56 = vld [vmem:[#allocation5 + $0x358] sm:$0xff] }
 0x284   : > { %2327 = vmatpush.msra.mxu3 %v1660_v61  ;;  %2395 = vmatpush.msra.mxu0 %v1671_v62  ;;  %v1872_v61 = vld [vmem:[#allocation5 + $0x858] sm:$0xff]  ;;  %v1883_v62 = vld [vmem:[#allocation5 + $0x8b0] sm:$0xff] }
 0x285   : > { %2529 = vmatpush.msra.mxu2 %v1713_v34  ;;  %2347 = vmatpush.msra.mxu1 %v1850_v24  ;;  %v1702_v34 = vld [vmem:[#allocation5 + $0x308] sm:$0xff] }
 0x286   : > { %2328 = vmatpush.msra.mxu3 %v1650_v28  ;;  %2396 = vmatpush.msra.mxu0 %v1661_v45  ;;  %v1862_v24 = vld [vmem:[#allocation5 + $0x808] sm:$0xff]  ;;  %v1873_v28 = vld [vmem:[#allocation5 + $0x860] sm:$0xff]  ;;  %v1692_v45 = vld [vmem:[#allocation5 + $0x2b8] sm:$0xff] }
 0x287   : > { %2530 = vmatpush.msra.mxu2 %v1703_v2  ;;  %2348 = vmatpush.msra.mxu1 %v1840_v60  ;;  %v1944_v2 = vld [vmem:[#allocation5 + $0xa98] sm:$0xff] }
 0x288   : > { %2329 = vmatpush.msra.mxu3 %v1640_v39  ;;  %2397 = vmatpush.msra.mxu0 %v1651_v49  ;;  %v1852_v60 = vld [vmem:[#allocation5 + $0x7b8] sm:$0xff]  ;;  %v1863_v39 = vld [vmem:[#allocation5 + $0x810] sm:$0xff]  ;;  %v1682_v49 = vld [vmem:[#allocation5 + $0x268] sm:$0xff] }
 0x289   : > { %2531 = vmatpush.msra.mxu2 %v1693_v4  ;;  %11592 = vmatmul.msk.f32.gmra.mxu1 %vm1965_vm12, %v14134_v15  ;;  %v1842_v4 = vld [vmem:[#allocation5 + $0x768] sm:$0xff] }
 0x28a   : > { %2349 = vmatpush.msra.mxu1 %v1830_v26  ;;  %2330 = vmatpush.msra.mxu3 %v1630_v31  ;;  %v1853_v26 = vld [vmem:[#allocation5 + $0x7c0] sm:$0xff]  ;;  %v1672_v31 = vld [vmem:[#allocation5 + $0x218] sm:$0xff] }
 0x28b   : > { %2398 = vmatpush.msra.mxu0 %v1641_v10  ;;  %2532 = vmatpush.msra.mxu2 %v1683_v57  ;;  %v1934_v10 = vld [vmem:[#allocation5 + $0xa48] sm:$0xff]  ;;  %v1832_v57 = vld [vmem:[#allocation5 + $0x718] sm:$0xff] }
 0x28c   : > { %2350 = vmatpush.msra.mxu1 %v1820_v30  ;;  %2331 = vmatpush.msra.mxu3 %v1620_v37  ;;  %v1843_v30 = vld [vmem:[#allocation5 + $0x770] sm:$0xff]  ;;  %v1662_v37 = vld [vmem:[#allocation5 + $0x1c8] sm:$0xff] }
 0x28d   : > { %2399 = vmatpush.msra.mxu0 %v1631_v6  ;;  %2533 = vmatpush.msra.mxu2 %v1673_v7  ;;  %v1822_v6 = vld [vmem:[#allocation5 + $0x6c8] sm:$0xff]  ;;  %v1833_v7 = vld [vmem:[#allocation5 + $0x720] sm:$0xff] }
 0x28e   : > { %2351 = vmatpush.msra.mxu1 %v1810_v8  ;;  %2332 = vmatpush.msra.mxu3 %v1610_v12  ;;  %v1652_v8 = vld [vmem:[#allocation5 + $0x178] sm:$0xff] }
 0x28f   : > { %2400 = vmatpush.msra.mxu0 %v1621_v13  ;;  %2534 = vmatpush.msra.mxu2 %v1663_v14  ;;  %v1812_v12 = vld [vmem:[#allocation5 + $0x678] sm:$0xff]  ;;  %v1823_v13 = vld [vmem:[#allocation5 + $0x6d0] sm:$0xff]  ;;  %v1642_v14 = vld [vmem:[#allocation5 + $0x128] sm:$0xff] }
 0x290   : > { %2333 = vmatmul.f32.vlgmr.msra.gmra.mxu3 %v14086_v32  ;;  %2352 = vmatpush.msra.mxu1 %v1800_v43  ;;  %v1802_v43 = vld [vmem:[#allocation5 + $0x628] sm:$0xff] }
 0x291   : > { %2444 = vmatpush.msrb.mxu3 %v1961_v0  ;;  %2401 = vmatpush.msra.mxu0 %v1611_v11  ;;  %v1813_v0 = vld [vmem:[#allocation5 + $0x680] sm:$0xff]  ;;  %v1632_v11 = vld [vmem:[#allocation5 + $0xd8] sm:$0xff] }
 0x292   : > { %2535 = vmatpush.msra.mxu2 %v1653_v38  ;;  %2353 = vmatpush.msra.mxu1 %v1790_v19  ;;  %v1792_v38 = vld [vmem:[#allocation5 + $0x5d8] sm:$0xff]  ;;  %v1803_v19 = vld [vmem:[#allocation5 + $0x630] sm:$0xff] }
 0x293   : > { %2402 = vmatmul.f32.vlgmr.msra.gmra.mxu0 %v14086_v32  ;;  %2445 = vmatpush.msrb.mxu3 %v1951_v16 }
 0x294   : > { %2513 = vmatpush.msrb.mxu0 %v1962_v17  ;;  %2536 = vmatpush.msra.mxu2 %v1643_v44  ;;  %v1622_v17 = vld [vmem:[#allocation5 + $0x88] sm:$0xff] }
 0x295   : > { %2354 = vmatpush.msra.mxu1 %v1780_v20  ;;  %2446 = vmatpush.msrb.mxu3 %v1941_v21  ;;  %v1782_v44 = vld [vmem:[#allocation5 + $0x588] sm:$0xff]  ;;  %v1793_v20 = vld [vmem:[#allocation5 + $0x5e0] sm:$0xff]  ;;  %v1612_v21 = vld [vmem:[#allocation5 + $0x38] sm:$0xff] }
 0x296   : > { %2514 = vmatpush.msrb.mxu0 %v1952_v22  ;;  %2537 = vmatpush.msra.mxu2 %v1633_v23  ;;  %v1772_v22 = vld [vmem:[#allocation5 + $0x538] sm:$0xff]  ;;  %v1783_v23 = vld [vmem:[#allocation5 + $0x590] sm:$0xff] }
 0x297   : > { %2355 = vmatpush.msra.mxu1 %v1770_v36  ;;  %2447 = vmatpush.msrb.mxu3 %v1931_v40  ;;  %v1963_v36 = vld [vmem:[#allocation5 + $0xb30] sm:$0xff]  ;;  %v1764_v40 = vld [vmem:[#allocation5 + $0x4f8] sm:$0xff] }
 0x298   : > { %2515 = vmatpush.msrb.mxu0 %v1942_v46  ;;  %2356 = vmatmul.f32.vlgmr.msra.gmra.mxu1 %v14110_v27  ;;  %v1773_v46 = vld [vmem:[#allocation5 + $0x540] sm:$0xff] }
 0x299   : > { %2455 = vmatpush.msrb.mxu1 %v1762_v33  ;;  %2478 = vmatpush.msra.mxu3 %v1922_v35  ;;  %v1953_v33 = vld [vmem:[#allocation5 + $0xae0] sm:$0xff]  ;;  %v1754_v35 = vld [vmem:[#allocation5 + $0x4a8] sm:$0xff] }
 0x29a   : > { %2538 = vmatpush.msra.mxu2 %v1623_v3  ;;  %2336 = vmatmul.f32.gmra.mxu3 %v14100_v63 }
 0x29b   : > { %2516 = vmatpush.msrb.mxu0 %v1932_v29  ;;  %2456 = vmatpush.msrb.mxu1 %v1752_v5  ;;  %v1943_v29 = vld [vmem:[#allocation5 + $0xa90] sm:$0xff]  ;;  %v1744_v5 = vld [vmem:[#allocation5 + $0x458] sm:$0xff] }
 0x29c   : > { %2479 = vmatpush.msra.mxu3 %v1912_v25  ;;  %2539 = vmatpush.msra.mxu2 %v1613_v41  ;;  %v1933_v41 = vld [vmem:[#allocation5 + $0xa40] sm:$0xff] }
 0x29d   : > { %2547 = vmatpush.msra.mxu0 %v1923_v42  ;;  %2540 = vmatmul.f32.vlgmr.msra.gmra.mxu2 %v14086_v32 }
 0x29e   : > { %2405 = vmatmul.f32.gmra.mxu0 %v14100_v63  ;;  %2457 = vmatpush.msrb.mxu1 %v1742_v50  ;;  %v1734_v50 = vld [vmem:[#allocation5 + $0x408] sm:$0xff] }
 0x29f   : > { %2480 = vmatpush.msra.mxu3 %v1902_v48  ;;  %2548 = vmatpush.msra.mxu0 %v1913_v58  ;;  %v1924_v48 = vld [vmem:[#allocation5 + $0x9f8] sm:$0xff] }
 0x2a0   : > { %2458 = vmatpush.msrb.mxu1 %v1732_v51  ;;  %2651 = vmatpush.msrb.mxu2 %v1964_v9  ;;  %v1724_v9 = vld [vmem:[#allocation5 + $0x3b8] sm:$0xff] }
 0x2a1   : > { %2481 = vmatpush.msra.mxu3 %v1892_v47  ;;  %2549 = vmatpush.msra.mxu0 %v1903_v52  ;;  %v1914_v47 = vld [vmem:[#allocation5 + $0x9a8] sm:$0xff] }
 0x2a2   : > { %2359 = vmatmul.f32.gmra.mxu1 %v14119_v55  ;;  %11595 = vmatmul.msk.f32.vlgmr.msrb.gmra.mxu3 %vm1965_vm12, %v14126_v1 }
 0x2a3   : > { %2459 = vmatpush.msrb.mxu1 %v1722_v53  ;;  %2482 = vmatpush.msra.mxu3 %v1882_v54  ;;  %v1714_v53 = vld [vmem:[#allocation5 + $0x368] sm:$0xff]  ;;  %v1904_v54 = vld [vmem:[#allocation5 + $0x958] sm:$0xff] }
 0x2a4   : > { %2550 = vmatpush.msra.mxu0 %v1893_v18  ;;  %2652 = vmatpush.msrb.mxu2 %v1954_v59  ;;  %v1704_v18 = vld [vmem:[#allocation5 + $0x318] sm:$0xff]  ;;  %v1894_v59 = vld [vmem:[#allocation5 + $0x908] sm:$0xff] }
 0x2a5   : > { %2460 = vmatpush.msrb.mxu1 %v1712_v56  ;;  %2483 = vmatpush.msra.mxu3 %v1872_v61 }
 0x2a6   : > { %2551 = vmatpush.msra.mxu0 %v1883_v62  ;;  %2543 = vmatmul.f32.gmra.mxu2 %v14100_v63  ;;  %v1694_v62 = vld [vmem:[#allocation5 + $0x2c8] sm:$0xff] }
 0x2a7   : > { %11597 = vmatmul.msk.f32.vlgmr.msrb.gmra.mxu0 %vm1965_vm12, %v14126_v1  ;;  %2461 = vmatpush.msrb.mxu1 %v1702_v34  ;;  %v1884_v34 = vld [vmem:[#allocation5 + $0x8b8] sm:$0xff] }
 0x2a8   : > { %2484 = vmatpush.msra.mxu3 %v1862_v24  ;;  %2552 = vmatpush.msra.mxu0 %v1873_v28  ;;  %v1684_v28 = vld [vmem:[#allocation5 + $0x278] sm:$0xff] }
 0x2a9   : > { %2462 = vmatpush.msrb.mxu1 %v1692_v45  ;;  %2653 = vmatpush.msrb.mxu2 %v1944_v2  ;;  %v1874_v45 = vld [vmem:[#allocation5 + $0x868] sm:$0xff] }
 0x2aa   : > { %2485 = vmatpush.msra.mxu3 %v1852_v60  ;;  %2553 = vmatpush.msra.mxu0 %v1863_v39  ;;  %v1989_v16 = vpop.f32.mrf.mxu3  ;;  %v2058_v52 = vpop.f32.mrf.mxu2  ;;  %v1674_v39 = vld [vmem:[#allocation5 + $0x228] sm:$0xff] }
 0x2ab   : > { %2463 = vmatpush.msrb.mxu1 %v1682_v49  ;;  %11596 = vmatmul.msk.f32.gmra.mxu3 %vm1965_vm12, %v14134_v15  ;;  %v1864_v49 = vld [vmem:[#allocation5 + $0x818] sm:$0xff] }
 0x2ac   : > { %2486 = vmatpush.msra.mxu3 %v1842_v4  ;;  %2554 = vmatpush.msra.mxu0 %v1853_v26  ;;  %v1664_v26 = vld [vmem:[#allocation5 + $0x1d8] sm:$0xff] }
 0x2ad   : > { %2464 = vmatpush.msrb.mxu1 %v1672_v31  ;;  %2654 = vmatpush.msrb.mxu2 %v1934_v10  ;;  %v1854_v31 = vld [vmem:[#allocation5 + $0x7c8] sm:$0xff] }
 0x2ae   : > { %2487 = vmatpush.msra.mxu3 %v1832_v57  ;;  %2555 = vmatpush.msra.mxu0 %v1843_v30  ;;  %v1654_v10 = vld [vmem:[#allocation5 + $0x188] sm:$0xff]  ;;  %v1844_v57 = vld [vmem:[#allocation5 + $0x778] sm:$0xff] }
 0x2af   : > { %11598 = vmatmul.msk.f32.gmra.mxu0 %vm1965_vm12, %v14134_v15  ;;  %11601 = vmatmul.msk.f32.vlgmr.msrb.gmra.mxu2 %vm1965_vm12, %v14126_v1 }
 0x2b0   : > { %2465 = vmatpush.msrb.mxu1 %v1662_v37  ;;  %2488 = vmatpush.msra.mxu3 %v1822_v6  ;;  %v1644_v6 = vld [vmem:[#allocation5 + $0x138] sm:$0xff] }
 0x2b1   : > { %2556 = vmatpush.msra.mxu0 %v1833_v7  ;;  %v1834_v7 = vld [vmem:[#allocation5 + $0x728] sm:$0xff] }
 0x2b2   : > { %2466 = vmatpush.msrb.mxu1 %v1652_v8  ;;  %2489 = vmatpush.msra.mxu3 %v1812_v12  ;;  %v2012_v3 = vpop.f32.mrf.mxu0  ;;  %v1992_v25 = vpop.f32.mrf.mxu3  ;;  %v1824_v8 = vld [vmem:[#allocation5 + $0x6d8] sm:$0xff] }
 0x2b3   : > { %2557 = vmatpush.msra.mxu0 %v1823_v13  ;;  %v2013_v42 = vadd.f32 %v2012_v3, %v1989_v16  ;;  %v2061_v4 = vpop.f32.mrf.mxu2 }
 0x2b4   : > { %2467 = vmatpush.msrb.mxu1 %v1642_v14  ;;  %2490 = vmatpush.msra.mxu3 %v1802_v43  ;;  %v1624_v43 = vld [vmem:[#allocation5 + $0x98] sm:$0xff] }
 0x2b5   : > { %2558 = vmatpush.msra.mxu0 %v1813_v0  ;;  %v1814_v0 = vld [vmem:[#allocation5 + $0x688] sm:$0xff] }
 0x2b6   : > { %2468 = vmatpush.msrb.mxu1 %v1632_v11  ;;  %2491 = vmatpush.msra.mxu3 %v1792_v38  ;;  %v1614_v38 = vld [vmem:[#allocation5 + $0x48] sm:$0xff] }
 0x2b7   : > { %2559 = vmatpush.msra.mxu0 %v1803_v19  ;;  %11602 = vmatmul.msk.f32.gmra.mxu2 %vm1965_vm12, %v14134_v15  ;;  %v1804_v19 = vld [vmem:[#allocation5 + $0x638] sm:$0xff] }
 0x2b8   : > { %2469 = vmatpush.msrb.mxu1 %v1622_v17  ;;  %2492 = vmatpush.msra.mxu3 %v1782_v44  ;;  %v1794_v17 = vld [vmem:[#allocation5 + $0x5e8] sm:$0xff] }
 0x2b9   : > { %2560 = vmatpush.msra.mxu0 %v1793_v20 }
 0x2ba   : > { %2470 = vmatpush.msrb.mxu1 %v1612_v21  ;;  %2493 = vmatpush.msra.mxu3 %v1772_v22  ;;  %v2015_v56 = vpop.f32.mrf.mxu0  ;;  %v1784_v22 = vld [vmem:[#allocation5 + $0x598] sm:$0xff] }
 0x2bb   : > { %2561 = vmatpush.msra.mxu0 %v1783_v23  ;;  %2471 = vmatmul.f32.vlgmr.msrb.gmra.mxu1 %v14086_v32  ;;  %v2016_v24 = vadd.f32 %v2015_v56, %v1992_v25  ;;  %v2150_v11 = vpop.f32.mrf.mxu2 }
 0x2bc   : > { %2494 = vmatmul.f32.vlgmr.msra.gmra.mxu3 %v14110_v27  ;;  %2582 = vmatpush.msra.mxu1 %v1963_v36  ;;  %v1774_v36 = vld [vmem:[#allocation5 + $0x548] sm:$0xff] }
 0x2bd   : > { %2593 = vmatpush.msrb.mxu3 %v1764_v40  ;;  %2562 = vmatpush.msra.mxu0 %v1773_v46 }
 0x2be   : > { %2563 = vmatmul.f32.vlgmr.msra.gmra.mxu0 %v14110_v27  ;;  %2583 = vmatpush.msra.mxu1 %v1953_v33 }
 0x2bf   : > { %2594 = vmatpush.msrb.mxu3 %v1754_v35 }
 0x2c0   : > { %2584 = vmatpush.msra.mxu1 %v1943_v29  ;;  %v2035_v58 = vpop.f32.mrf.mxu1 }
 0x2c1   : > { %2595 = vmatpush.msrb.mxu3 %v1744_v5  ;;  %v14192_v51 = vadd.f32 %v2035_v58, %v2013_v42 }
 0x2c2   : > { %2585 = vmatpush.msra.mxu1 %v1933_v41  ;;  %v2127_v30 = vpop.f32.mrf.mxu0 }
 0x2c3   : > { %2596 = vmatpush.msrb.mxu3 %v1734_v50  ;;  %2474 = vmatmul.f32.gmra.mxu1 %v14100_v63  ;;  %v2151_v16 = vadd.f32 %v2150_v11, %v2127_v30  ;;  %v2153_v33 = vpop.f32.mrf.mxu2 }
 0x2c4   : > { %2616 = vmatpush.msrb.mxu1 %v1924_v48  ;;  %2497 = vmatmul.f32.gmra.mxu3 %v14119_v55 }
 0x2c5   : > { %2597 = vmatpush.msrb.mxu3 %v1724_v9 }
 0x2c6   : > { %2617 = vmatpush.msrb.mxu1 %v1914_v47  ;;  %2566 = vmatmul.f32.gmra.mxu0 %v14119_v55  ;;  %v2104_v61 = vpop.f32.mrf.mxu3 }
 0x2c7   : > { %2598 = vmatpush.msrb.mxu3 %v1714_v53 }
 0x2c8   : > { %2618 = vmatpush.msrb.mxu1 %v1904_v54 }
 0x2c9   : > { %2599 = vmatpush.msrb.mxu3 %v1704_v18  ;;  %v2038_v2 = vpop.f32.mrf.mxu1 }
 0x2ca   : > { %2619 = vmatpush.msrb.mxu1 %v1894_v59  ;;  %v2039_v60 = vadd.f32 %v2038_v2, %v2016_v24 }
 0x2cb   : > { %2600 = vmatpush.msrb.mxu3 %v1694_v62  ;;  %11599 = vmatmul.msk.f32.vlgmr.msra.gmra.mxu1 %vm1965_vm12, %v14126_v1  ;;  %v1634_v1 = vld [vmem:[#allocation5 + $0xe8] sm:$0xff] }
 0x2cc   : > { %2620 = vmatpush.msrb.mxu1 %v1884_v34  ;;  %2673 = vst [vmem:[#allocation3 + $0x50] sm:$0x3] %v2039_v60 }
 0x2cd   : > { %2601 = vmatpush.msrb.mxu3 %v1684_v28  ;;  %v2130_v44 = vpop.f32.mrf.mxu0  ;;  %v2265_v47 = vpop.f32.mrf.mxu2 }
 0x2ce   : > { %2621 = vmatpush.msrb.mxu1 %v1874_v45  ;;  %v2154_v35 = vadd.f32 %v2153_v33, %v2130_v44 }
 0x2cf   : > { %2602 = vmatpush.msrb.mxu3 %v1674_v39 }
 0x2d0   : > { %2622 = vmatpush.msrb.mxu1 %v1864_v49  ;;  %v2107_v37 = vpop.f32.mrf.mxu3 }
 0x2d1   : > { %2603 = vmatpush.msrb.mxu3 %v1664_v26 }
 0x2d2   : > { %2623 = vmatpush.msrb.mxu1 %v1854_v31 }
 0x2d3   : > { %2604 = vmatpush.msrb.mxu3 %v1654_v10  ;;  %11600 = vmatmul.msk.f32.gmra.mxu1 %vm1965_vm12, %v14134_v15  ;;  %v14201_v13 = vld [vmem:[#allocation3 + $0x50] sm:$0x3]  ;;  %vm5969_vm12 = vcmask 584704  }
 0x2d4   : > { %2624 = vmatpush.msrb.mxu1 %v1844_v57  ;;  %v2081_v12 = vpop.f32.mrf.mxu1  ;;  %3687 = vrot.lane.b32.xlu0 %v14201_v13, %s13408_s16  ;;  %v14214_v23 = vld [vmem:[#allocation3 + $0x50] sm:$0x3] }
 0x2d5   : > { %2605 = vmatpush.msrb.mxu3 %v1644_v6  ;;  %v2082_v14 = vadd.f32 %v2081_v12, %v2058_v52  ;;  %3334 = vrot.lane.b32.xlu1 %v14201_v13, %s13400_s29 }
 0x2d6   : > { %2625 = vmatpush.msrb.mxu1 %v1834_v7  ;;  %2745 = vrot.lane.b32.xlu2 %v14201_v13, %s13399_s27  ;;  %v2268_v34 = vpop.f32.mrf.mxu2 }
 0x2d7   : > { %2606 = vmatpush.msrb.mxu3 %v1634_v1  ;;  %v14207_v15 = vadd.f32 %v2104_v61, %v2082_v14 }
 0x2d8   : > { %2626 = vmatpush.msrb.mxu1 %v1824_v8  ;;  %v2242_v3 = vpop.f32.mrf.mxu0 }
 0x2d9   : > { %2607 = vmatpush.msrb.mxu3 %v1624_v43  ;;  %v14226_v5 = vpack.i.bf16 %v14207_v15, %v14192_v51 }
 0x2da   : > { %2627 = vmatpush.msrb.mxu1 %v1814_v0  ;;  %v2173_v20 = vpop.f32.mrf.mxu3 }
 0x2db   : > { %2608 = vmatpush.msrb.mxu3 %v1614_v38  ;;  %v14211_v21 = vadd.f32 %v2173_v20, %v2151_v16 }
 0x2dc   : > { %2628 = vmatpush.msrb.mxu1 %v1804_v19  ;;  %2609 = vmatmul.f32.vlgmr.msrb.gmra.mxu3 %v14086_v32 }
 0x2dd   : > { %4789 = vrot.lane.b32.xlu0 %v14214_v23, %s13409_s18  ;;  %4394 = vrot.lane.b32.xlu1 %v14201_v13, %s13405_s14 }
 0x2de   : > { %2629 = vmatpush.msrb.mxu1 %v1794_v17  ;;  %v2084_v40 = vpop.f32.mrf.mxu1  ;;  %4041 = vrot.lane.b32.xlu2 %v14201_v13, %s13404_s12 }
 0x2df   : > { %v2085_v46 = vadd.f32 %v2084_v40, %v2061_v4 }
 0x2e0   : > { %2630 = vmatpush.msrb.mxu1 %v1784_v22  ;;  %v2380_v60 = vpop.f32.mrf.mxu2 }
 0x2e1   : > { %v2108_v32 = vadd.f32 %v2107_v37, %v2085_v46 }
 0x2e2   : > { %2631 = vmatpush.msrb.mxu1 %v1774_v36  ;;  %v2245_v41 = vpop.f32.mrf.mxu0 }
 0x2e3   : > { %2632 = vmatmul.f32.vlgmr.msrb.gmra.mxu1 %v14110_v27  ;;  %2674 = vst [vmem:[#allocation3 + $0x58] sm:$0x3] %v2108_v32 }
 0x2e4   : > { %2612 = vmatmul.f32.gmra.mxu3 %v14100_v63  ;;  %v2176_v29 = vpop.f32.mrf.mxu3 }
 0x2e5   : > { %v2177_v25 = vadd.f32 %v2176_v29, %v2154_v35  ;;  %12337 = vrot.lane.b32.xlu0 %v14226_v5, %s13404_s12  ;;  %12332 = vrot.lane.b32.xlu1 %v14226_v5, %s13408_s16 }
 0x2e6   : > { %12322 = vrot.lane.b32.xlu2 %v14226_v5, %s13399_s27 }
 0x2e7   : > { %2675 = vst [vmem:[#allocation3 + $0x60] sm:$0x3] %v2177_v25 }
 0x2e9   : > { %v2196_v27 = vpop.f32.mrf.mxu1 }
 0x2ea   : > { %v14235_v63 = vld [vmem:[#allocation3 + $0x58] sm:$0x3]  ;;  %v2383_v10 = vpop.f32.mrf.mxu2 }
 0x2eb   : > { %2635 = vmatmul.f32.gmra.mxu1 %v14119_v55  ;;  %v14253_v56 = vld [vmem:[#allocation3 + $0x58] sm:$0x3] }
 0x2ed   : > { %2747 = vrot.lane.b32.xlu0 %v14235_v63, %s13399_s27  ;;  %12347 = vrot.lane.b32.xlu1 %v14226_v5, %s13409_s18  ;;  %v2288_v55 = vpop.f32.mrf.mxu0 }
 0x2ee   : > { %12327 = vrot.lane.b32.xlu2 %v14226_v5, %s13400_s29  ;;  %v2289_v53 = vadd.f32 %v2288_v55, %v2265_v47  ;;  %v14251_v59 = vld [vmem:[#allocation3 + $0x60] sm:$0x3] }
 0x2ef   : > { %v2219_v42 = vpop.f32.mrf.mxu3  ;;  %v14283_v26 = vld [vmem:[#allocation3 + $0x60] sm:$0x3] }
 0x2f0   : > { %v2220_v50 = vadd.f32 %v2219_v42, %v2196_v27 }
 0x2f2   : > { %v14243_v48 = vadd.f32 %v2242_v3, %v2220_v50 }
 0x2f3   : > { %v2199_v58 = vpop.f32.mrf.mxu1 }
 0x2f4   : > { %v14271_v2 = vpack.i.bf16 %v14243_v48, %v14211_v21 }
 0x2f5   : > { %4043 = vrot.lane.b32.xlu0 %v14235_v63, %s13404_s12  ;;  %3689 = vrot.lane.b32.xlu1 %v14235_v63, %s13408_s16 }
 0x2f6   : > { %12342 = vrot.lane.b32.xlu2 %v14226_v5, %s13405_s14  ;;  %v2291_v62 = vpop.f32.mrf.mxu0 }
 0x2f7   : > { %v2292_v24 = vadd.f32 %v2291_v62, %v2268_v34 }
 0x2f9   : > { %v2222_v9 = vpop.f32.mrf.mxu3 }
 0x2fa   : > { %v2223_v52 = vadd.f32 %v2222_v9, %v2199_v58 }
 0x2fc   : > { %v2246_v54 = vadd.f32 %v2245_v41, %v2223_v52  ;;  %v2426_v1 = vpop.f32.mrf.mxu2 }
 0x2fd   : > { %v2311_v18 = vpop.f32.mrf.mxu1  ;;  %3338 = vrot.lane.b32.xlu0 %v14251_v59, %s13400_s29  ;;  %4791 = vrot.lane.b32.xlu1 %v14253_v56, %s13409_s18 }
 0x2fe   : > { %2676 = vst [vmem:[#allocation3 + $0x68] sm:$0x3] %v2246_v54  ;;  %v14255_v61 = vadd.f32 %v2311_v18, %v2289_v53  ;;  %3336 = vrot.lane.b32.xlu2 %v14235_v63, %s13400_s29 }
 0x305   : > { %4398 = vrot.lane.b32.xlu0 %v14251_v59, %s13405_s14  ;;  %2749 = vrot.lane.b32.xlu1 %v14251_v59, %s13399_s27  ;;  %v14289_v37 = vld [vmem:[#allocation3 + $0x68] sm:$0x3]  ;;  %v2429_v38 = vpop.f32.mrf.mxu2 }
 0x306   : > { %v2314_v28 = vpop.f32.mrf.mxu1  ;;  %4396 = vrot.lane.b32.xlu2 %v14235_v63, %s13405_s14  ;;  %v14297_v43 = vld [vmem:[#allocation3 + $0x68] sm:$0x3] }
 0x307   : > { %v2315_v45 = vadd.f32 %v2314_v28, %v2292_v24 }
 0x309   : > { %2677 = vst [vmem:[#allocation3 + $0x70] sm:$0x3] %v2315_v45 }
 0x30d   : > { %12357 = vrot.lane.b32.xlu0 %v14271_v2, %s13400_s29  ;;  %4045 = vrot.lane.b32.xlu1 %v14251_v59, %s13404_s12 }
 0x30e   : > { %3691 = vrot.lane.b32.xlu2 %v14251_v59, %s13408_s16 }
 0x310   : > { %v2403_v57 = vpop.f32.mrf.mxu0  ;;  %v14307_v16 = vld [vmem:[#allocation3 + $0x70] sm:$0x3] }
 0x311   : > { %v2427_v12 = vadd.f32 %v2426_v1, %v2403_v57  ;;  %v14329_v33 = vld [vmem:[#allocation3 + $0x70] sm:$0x3] }
 0x313   : > { %v2334_v39 = vpop.f32.mrf.mxu3 }
 0x315   : > { %v2357_v49 = vpop.f32.mrf.mxu1  ;;  %12372 = vrot.lane.b32.xlu0 %v14271_v2, %s13405_s14  ;;  %12352 = vrot.lane.b32.xlu1 %v14271_v2, %s13399_s27 }
 0x316   : > { %v2358_v4 = vadd.f32 %v2357_v49, %v2334_v39  ;;  %4793 = vrot.lane.b32.xlu2 %v14283_v26, %s13409_s18 }
 0x318   : > { %v14285_v31 = vadd.f32 %v2380_v60, %v2358_v4 }
 0x31a   : > { %v14327_v32 = vpack.i.bf16 %v14285_v31, %v14255_v61 }
 0x31b   : > { %v2406_v11 = vpop.f32.mrf.mxu0 }
 0x31c   : > { %v2430_v19 = vadd.f32 %v2429_v38, %v2406_v11 }
 0x31d   : > { %v2337_v30 = vpop.f32.mrf.mxu3  ;;  %3693 = vrot.lane.b32.xlu0 %v14289_v37, %s13408_s16  ;;  %12367 = vrot.lane.b32.xlu1 %v14271_v2, %s13404_s12 }
 0x31e   : > { %12362 = vrot.lane.b32.xlu2 %v14271_v2, %s13408_s16 }
 0x31f   : > { %v2360_v6 = vpop.f32.mrf.mxu1 }
 0x320   : > { %v2361_v7 = vadd.f32 %v2360_v6, %v2337_v30  ;;  %v2541_v42 = vpop.f32.mrf.mxu2 }
 0x322   : > { %v2384_v8 = vadd.f32 %v2383_v10, %v2361_v7 }
 0x324   : > { %2678 = vst [vmem:[#allocation3 + $0x78] sm:$0x3] %v2384_v8  ;;  %v2518_v20 = vpop.f32.mrf.mxu0 }
 0x325   : > { %v2449_v14 = vpop.f32.mrf.mxu3  ;;  %4795 = vrot.lane.b32.xlu0 %v14297_v43, %s13409_s18  ;;  %3340 = vrot.lane.b32.xlu1 %v14289_v37, %s13400_s29 }
 0x326   : > { %v14299_v0 = vadd.f32 %v2449_v14, %v2427_v12  ;;  %12377 = vrot.lane.b32.xlu2 %v14271_v2, %s13409_s18 }
 0x329   : > { %v2544_v24 = vpop.f32.mrf.mxu2 }
 0x32b   : > { %v14355_v34 = vld [vmem:[#allocation3 + $0x78] sm:$0x3] }
 0x32c   : > { %v2521_v46 = vpop.f32.mrf.mxu0 }
 0x32d   : > { %2753 = vrot.lane.b32.xlu0 %v14307_v16, %s13399_s27  ;;  %4400 = vrot.lane.b32.xlu1 %v14289_v37, %s13405_s14 }
 0x32e   : > { %v2452_v17 = vpop.f32.mrf.mxu3  ;;  %2751 = vrot.lane.b32.xlu2 %v14289_v37, %s13399_s27 }
 0x32f   : > { %v2453_v44 = vadd.f32 %v2452_v17, %v2430_v19 }
 0x330   : > { %v14315_v22 = vpop.permute.xlu2 %2745 }
 0x331   : > { %2679 = vst [vmem:[#allocation3 + $0x80] sm:$0x3] %v2453_v44 }
 0x332   : > { %v2656_v7 = vpop.f32.mrf.mxu2 }
 0x335   : > { %4049 = vrot.lane.b32.xlu0 %v14307_v16, %s13404_s12  ;;  %3695 = vrot.lane.b32.xlu1 %v14307_v16, %s13408_s16 }
 0x336   : > { %4047 = vrot.lane.b32.xlu2 %v14289_v37, %s13404_s12 }
 0x338   : > { %v2472_v36 = vpop.f32.mrf.mxu1  ;;  %v14323_v40 = vpop.permute.xlu2 %4041  ;;  %v14381_v6 = vld [vmem:[#allocation3 + $0x80] sm:$0x3] }
 0x339   : > { %20538 = vst [vmem:[#allocation11_spill] sm:$0xff] %v14323_v40 }
 0x33b   : > { %v2564_v41 = vpop.f32.mrf.mxu0 }
 0x33c   : > { %v2565_v58 = vadd.f32 %v2564_v41, %v2541_v42 }
 0x33d   : > { %12392 = vrot.lane.b32.xlu0 %v14327_v32, %s13408_s16  ;;  %4797 = vrot.lane.b32.xlu1 %v14329_v33, %s13409_s18 }
 0x33e   : > { %3342 = vrot.lane.b32.xlu2 %v14307_v16, %s13400_s29 }
 0x33f   : > { %v2495_v35 = vpop.f32.mrf.mxu3 }
 0x340   : > { %v2496_v3 = vadd.f32 %v2495_v35, %v2472_v36  ;;  %v2475_v29 = vpop.f32.mrf.mxu1  ;;  %v14339_v27 = vpop.permute.xlu2 %12322 }
 0x341   : > { %v12325_v1 = vunpack.i.h.bf16 %v14339_v27  ;;  %v12324_v8 = vunpack.i.l.bf16 %v14339_v27 }
 0x342   : > { %v14337_v25 = vadd.f32 %v2518_v20, %v2496_v3  ;;  %v14408_v3 = vld [vmem:[#allocation3 + $0x78] sm:$0x3] }
 0x343   : > { %v2567_v62 = vpop.f32.mrf.mxu0  ;;  %v2763_v36 = vsel %vm645_vm4, %v12324_v8, %v12325_v1 }
 0x344   : > { %v2568_v28 = vadd.f32 %v2567_v62, %v2544_v24 }
 0x345   : > { %12407 = vrot.lane.b32.xlu0 %v14327_v32, %s13409_s18  ;;  %12387 = vrot.lane.b32.xlu1 %v14327_v32, %s13400_s29 }
 0x346   : > { %4402 = vrot.lane.b32.xlu2 %v14307_v16, %s13405_s14  ;;  %v14347_v9 = vpop.permute.xlu0 %3687 }
 0x347   : > { %v2498_v50 = vpop.f32.mrf.mxu3  ;;  %v14349_v47 = vpop.permute.xlu1 %3334 }
 0x348   : > { %v2499_v55 = vadd.f32 %v2498_v50, %v2475_v29  ;;  %v2587_v52 = vpop.f32.mrf.mxu1  ;;  %v14353_v18 = vpop.permute.xlu2 %12327 }
 0x349   : > { %v14351_v54 = vadd.f32 %v2587_v52, %v2565_v58  ;;  %v2659_v50 = vpop.f32.mrf.mxu2  ;;  %v14420_v52 = vpack.i.bf16 %v14337_v25, %v14299_v0 }
 0x34a   : > { %v2522_v53 = vadd.f32 %v2521_v46, %v2499_v55  ;;  %v14402_v46 = vld [vmem:[#allocation3 + $0x80] sm:$0x3] }
 0x34c   : > { %2680 = vst [vmem:[#allocation3 + $0x88] sm:$0x3] %v2522_v53 }
 0x34d   : > { %3344 = vrot.lane.b32.xlu0 %v14355_v34, %s13400_s29  ;;  %12402 = vrot.lane.b32.xlu1 %v14327_v32, %s13405_s14 }
 0x34e   : > { %12382 = vrot.lane.b32.xlu2 %v14327_v32, %s13399_s27 }
 0x34f   : > { %v14363_v45 = vpop.permute.xlu0 %4789  ;;  %v14365_v60 = vpop.permute.xlu1 %4394 }
 0x350   : > { %20539 = vst [vmem:[#allocation12_spill] sm:$0xff] %v14363_v45  ;;  %v2590_v39 = vpop.f32.mrf.mxu1  ;;  %v14367_v4 = vpop.permute.xlu2 %12342 }
 0x351   : > { %20540 = vst [vmem:[#allocation13_spill] sm:$0xff] %v14365_v60  ;;  %v2591_v49 = vadd.f32 %v2590_v39, %v2568_v28 }
 0x352   : > { %20541 = vst [vmem:[#allocation14_spill] sm:$0xff] %v14367_v4 }
 0x353   : > { %2681 = vst [vmem:[#allocation3 + $0x90] sm:$0x3] %v2591_v49  ;;  %v14446_v8 = vld [vmem:[#allocation3 + $0x88] sm:$0x3] }
 0x355   : > { %4404 = vrot.lane.b32.xlu0 %v14355_v34, %s13405_s14  ;;  %2755 = vrot.lane.b32.xlu1 %v14355_v34, %s13399_s27 }
 0x356   : > { %12397 = vrot.lane.b32.xlu2 %v14327_v32, %s13404_s12 }
 0x357   : > { %v14375_v10 = vpop.permute.xlu0 %12337  ;;  %v14377_v57 = vpop.permute.xlu1 %12332 }
 0x358   : > { %v14379_v30 = vpop.permute.xlu2 %3336 }
 0x35d   : > { %3699 = vrot.lane.b32.xlu0 %v14381_v6, %s13408_s16  ;;  %4051 = vrot.lane.b32.xlu1 %v14355_v34, %s13404_s12 }
 0x35e   : > { %3697 = vrot.lane.b32.xlu2 %v14355_v34, %s13408_s16 }
 0x35f   : > { %v2610_v12 = vpop.f32.mrf.mxu3  ;;  %v2748_v38 = vpop.permute.xlu0 %2747 }
 0x360   : > { %v2633_v14 = vpop.f32.mrf.mxu1  ;;  %v14391_v19 = vpop.permute.xlu1 %12347  ;;  %v2771_v17 = vsel %vm645_vm4, %v14315_v22, %v2748_v38 }
 0x361   : > { %v2634_v11 = vadd.f32 %v2633_v14, %v2610_v12  ;;  %20542 = vst [vmem:[#allocation15_spill] sm:$0xff] %v14391_v19  ;;  %v14395_v20 = vpop.permute.xlu2 %4396  ;;  %11606 = vmatpush.msk.msrb.mxu0 %vm2798_vm13, %v2771_v17 }
 0x362   : > { %20543 = vst [vmem:[#allocation16_spill] sm:$0xff] %v14395_v20 }
 0x363   : > { %v2657_v44 = vadd.f32 %v2656_v7, %v2634_v11  ;;  %2832 = vmatpush.msrb.mxu0 %v2763_v36 }
 0x365   : > { %2672 = vst.msk [vmem:[#allocation3 + $0x48] sm:$0xff] %vm2671_vm14, %v2657_v44  ;;  %4801 = vrot.lane.b32.xlu0 %v14402_v46, %s13409_s18  ;;  %3346 = vrot.lane.b32.xlu1 %v14381_v6, %s13400_s29 }
 0x366   : > { %4799 = vrot.lane.b32.xlu2 %v14408_v3, %s13409_s18 }
 0x367   : > { %v2613_v22 = vpop.f32.mrf.mxu3  ;;  %v14412_v41 = vpop.permute.xlu0 %4043 }
 0x368   : > { %v2636_v35 = vpop.f32.mrf.mxu1  ;;  %v14414_v42 = vpop.permute.xlu1 %3689 }
 0x369   : > { %v2637_v29 = vadd.f32 %v2636_v35, %v2613_v22  ;;  %v14416_v55 = vpop.permute.xlu2 %3691 }
 0x36b   : > { %v2660_v58 = vadd.f32 %v2659_v50, %v2637_v29 }
 0x36d   : > { %2683 = vst.msk [vmem:[#allocation3 + $0x98] sm:$0x3] %vm2682_vm15, %v2660_v58  ;;  %12412 = vrot.lane.b32.xlu0 %v14420_v52, %s13399_s27  ;;  %4406 = vrot.lane.b32.xlu1 %v14381_v6, %s13405_s14  ;;  %vm5971_vm15 = vcmask 621608  }
 0x36e   : > { %2757 = vrot.lane.b32.xlu2 %v14381_v6, %s13399_s27 }
 0x36f   : > { %v14428_v53 = vpop.permute.xlu0 %3338 }
 0x370   : > { %v14430_v62 = vpop.permute.xlu1 %4791 }
 0x371   : > { %20544 = vst [vmem:[#allocation17_spill] sm:$0xff] %v14430_v62  ;;  %v14432_v24 = vpop.permute.xlu2 %4793 }
 0x372   : > { %20545 = vst [vmem:[#allocation18_spill] sm:$0xff] %v14432_v24 }
 0x375   : > { %12427 = vrot.lane.b32.xlu0 %v14420_v52, %s13404_s12  ;;  %12422 = vrot.lane.b32.xlu1 %v14420_v52, %s13408_s16 }
 0x376   : > { %4053 = vrot.lane.b32.xlu2 %v14381_v6, %s13404_s12 }
 0x377   : > { %v14440_v28 = vpop.permute.xlu0 %4398 }
 0x378   : > { %20546 = vst [vmem:[#allocation19_spill] sm:$0xff] %v14440_v28  ;;  %v2750_v39 = vpop.permute.xlu1 %2749 }
 0x379   : > { %v2772_v49 = vsel %vm645_vm4, %v2748_v38, %v2750_v39  ;;  %v14443_v7 = vpop.permute.xlu2 %12362 }
 0x37a   : > { %11610 = vmatpush.msk.msra.mxu2 %vm2798_vm13, %v2772_v49 }
 0x37d   : > { %2759 = vrot.lane.b32.xlu0 %v14446_v8, %s13399_s27  ;;  %12437 = vrot.lane.b32.xlu1 %v14420_v52, %s13409_s18 }
 0x37e   : > { %12417 = vrot.lane.b32.xlu2 %v14420_v52, %s13400_s29 }
 0x37f   : > { %v14454_v12 = vpop.permute.xlu0 %12357 }
 0x380   : > { %v14456_v14 = vpop.permute.xlu1 %4045 }
 0x381   : > { %v14458_v11 = vpop.permute.xlu2 %12377 }
 0x382   : > { %20547 = vst [vmem:[#allocation20_spill] sm:$0xff] %v14458_v11 }
 0x385   : > { %3332 = vrot.lane.b32.xlu0 %v14351_v54, %s13400_s29  ;;  %2743 = vrot.lane.b32.xlu1 %v14351_v54, %s13399_s27 }
 0x386   : > { %12432 = vrot.lane.b32.xlu2 %v14420_v52, %s13405_s14 }
 0x387   : > { %v14466_v38 = vpop.permute.xlu0 %12372 }
 0x388   : > { %20548 = vst [vmem:[#allocation21_spill] sm:$0xff] %v14466_v38  ;;  %v12353_v17 = vpop.permute.xlu1 %12352 }
 0x389   : > { %v12355_v44 = vunpack.i.h.bf16 %v12353_v17  ;;  %v12354_v36 = vunpack.i.l.bf16 %v12353_v17  ;;  %v2752_v22 = vpop.permute.xlu2 %2751 }
 0x38a   : > { %v2773_v35 = vsel %vm645_vm4, %v2750_v39, %v2752_v22 }
 0x38b   : > { %v2764_v29 = vsel %vm645_vm4, %v12325_v1, %v12354_v36  ;;  %v2765_v50 = vsel %vm645_vm4, %v12354_v36, %v12355_v44  ;;  %11614 = vmatpush.msk.msra.mxu3 %vm2798_vm13, %v2773_v35  ;;  %v14500_v36 = vld [vmem:[#allocation3 + $0x88] sm:$0x3] }
 0x38c   : > { %2858 = vmatpush.msra.mxu2 %v2764_v29 }
 0x38d   : > { %2884 = vmatpush.msra.mxu3 %v2765_v50  ;;  %4055 = vrot.lane.b32.xlu0 %v14446_v8, %s13404_s12 }
 0x38e   : > { %3701 = vrot.lane.b32.xlu1 %v14446_v8, %s13408_s16  ;;  %3348 = vrot.lane.b32.xlu2 %v14446_v8, %s13400_s29 }
 0x38f   : > { %v14480_v58 = vpop.permute.xlu0 %3693 }
 0x390   : > { %v14482_v27 = vpop.permute.xlu1 %12367 }
 0x391   : > { %v14484_v1 = vpop.permute.xlu2 %4047 }
 0x395   : > { %4392 = vrot.lane.b32.xlu0 %v14351_v54, %s13405_s14 }
 0x396   : > { %4039 = vrot.lane.b32.xlu1 %v14351_v54, %s13404_s12  ;;  %3685 = vrot.lane.b32.xlu2 %v14351_v54, %s13408_s16 }
 0x397   : > { %v14492_v39 = vpop.permute.xlu0 %4795 }
 0x398   : > { %20549 = vst [vmem:[#allocation22_spill] sm:$0xff] %v14492_v39  ;;  %v14494_v49 = vpop.permute.xlu1 %3340  ;;  %v14514_v39 = vld [vmem:[#allocation3 + $0x90] sm:$0x3] }
 0x399   : > { %v14496_v17 = vpop.permute.xlu2 %3342 }
 0x39d   : > { %12452 = vrot.lane.b32.xlu0 %v14327_v32, %s13410_s19 }
 0x39e   : > { %4803 = vrot.lane.b32.xlu1 %v14500_v36, %s13409_s18  ;;  %4408 = vrot.lane.b32.xlu2 %v14446_v8, %s13405_s14 }
 0x39f   : > { %v2754_v35 = vpop.permute.xlu0 %2753 }
 0x3a0   : > { %v14506_v29 = vpop.permute.xlu1 %4400  ;;  %v2774_v50 = vsel %vm645_vm4, %v2752_v22, %v2754_v35 }
 0x3a1   : > { %20550 = vst [vmem:[#allocation23_spill] sm:$0xff] %v14506_v29  ;;  %v14509_v24 = vpop.permute.xlu2 %4402  ;;  %11618 = vmatpush.msk.msra.mxu1 %vm2798_vm13, %v2774_v50  ;;  %v14530_v50 = vld [vmem:[%s20226_s3 + $0x18] sm:$0xff] }
 0x3a2   : > { %20551 = vst [vmem:[#allocation24_spill] sm:$0xff] %v14509_v24  ;;  %11611 = vmatmul.msk.f32.vlgmr.msra.gmra.mxu2 %vm2788_vm1, %v14530_v50  ;;  %11615 = vmatmul.msk.f32.vlgmr.msra.gmra.mxu3 %vm2788_vm1, %v14530_v50  ;;  %v14556_v24 = vld [vmem:[%s20226_s3 + $0x20] sm:$0xff] }
 0x3a3   : > { %11607 = vmatmul.msk.f32.vlgmr.msrb.gmra.mxu0 %vm2788_vm1, %v14530_v50 }
 0x3a5   : > { %5149 = vrot.lane.b32.xlu0 %v14214_v23, %s13410_s19 }
 0x3a6   : > { %2761 = vrot.lane.b32.xlu1 %v14514_v39, %s13399_s27  ;;  %12447 = vrot.lane.b32.xlu2 %v14271_v2, %s13410_s19 }
 0x3a7   : > { %v14520_v11 = vpop.permute.xlu0 %4049 }
 0x3a8   : > { %20552 = vst [vmem:[#allocation25_spill] sm:$0xff] %v14520_v11  ;;  %v14522_v45 = vpop.permute.xlu1 %3695  ;;  %v14581_v11 = vld [vmem:[%s20226_s3 + $0x28] sm:$0xf] }
 0x3a9   : > { %v14524_v22 = vpop.permute.xlu2 %12382 }
 0x3aa   : > { %v12384_v62 = vunpack.i.l.bf16 %v14524_v22  ;;  %11612 = vmatmul.msk.f32.gmra.mxu2 %vm2788_vm1, %v14556_v24  ;;  %11616 = vmatmul.msk.f32.gmra.mxu3 %vm2788_vm1, %v14556_v24 }
 0x3ab   : > { %11608 = vmatmul.msk.f32.gmra.mxu0 %vm2788_vm1, %v14556_v24 }
 0x3ac   : > { %v2766_v19 = vsel %vm645_vm4, %v12355_v44, %v12384_v62 }
 0x3ad   : > { %2910 = vmatpush.msra.mxu1 %v2766_v19  ;;  %5155 = vrot.lane.b32.xlu0 %v14297_v43, %s13410_s19 }
 0x3ae   : > { %12442 = vrot.lane.b32.xlu1 %v14226_v5, %s13410_s19  ;;  %5153 = vrot.lane.b32.xlu2 %v14283_v26, %s13410_s19 }
 0x3af   : > { %v14545_v44 = vpop.permute.xlu0 %12392  ;;  %11619 = vmatmul.msk.f32.vlgmr.msra.gmra.mxu1 %vm2788_vm1, %v14530_v50 }
 0x3b0   : > { %v14547_v29 = vpop.permute.xlu1 %4797 }
 0x3b1   : > { %20553 = vst [vmem:[#allocation26_spill] sm:$0xff] %v14547_v29  ;;  %v14551_v19 = vpop.permute.xlu2 %12397 }
 0x3b2   : > { %11613 = vmatmul.msk.f32.gmra.mxu2 %vm2788_vm1, %v14581_v11  ;;  %11617 = vmatmul.msk.f32.gmra.mxu3 %vm2788_vm1, %v14581_v11 }
 0x3b3   : > { %11609 = vmatmul.msk.f32.gmra.mxu0 %vm2788_vm1, %v14581_v11 }
 0x3b5   : > { %5161 = vrot.lane.b32.xlu0 %v14402_v46, %s13410_s19 }
 0x3b6   : > { %12457 = vrot.lane.b32.xlu1 %v14420_v52, %s13410_s19  ;;  %5159 = vrot.lane.b32.xlu2 %v14408_v3, %s13410_s19 }
 0x3b7   : > { %v14570_v29 = vpop.permute.xlu0 %12407  ;;  %11620 = vmatmul.msk.f32.gmra.mxu1 %vm2788_vm1, %v14556_v24 }
 0x3b8   : > { %20554 = vst [vmem:[#allocation27_spill] sm:$0xff] %v14570_v29  ;;  %v14572_v28 = vpop.permute.xlu1 %12387 }
 0x3b9   : > { %v14576_v38 = vpop.permute.xlu2 %3697 }
 0x3bd   : > { %12472 = vrot.lane.b32.xlu0 %v14327_v32, %s13411_s25  ;;  %v12385_v32 = vunpack.i.h.bf16 %v14524_v22 }
 0x3be   : > { %5151 = vrot.lane.b32.xlu1 %v14253_v56, %s13410_s19  ;;  %12467 = vrot.lane.b32.xlu2 %v14271_v2, %s13411_s25 }
 0x3bf   : > { %v14595_v29 = vpop.permute.xlu0 %3344  ;;  %11621 = vmatmul.msk.f32.gmra.mxu1 %vm2788_vm1, %v14581_v11 }
 0x3c0   : > { %v14597_v60 = vpop.permute.xlu1 %12402 }
 0x3c1   : > { %20555 = vst [vmem:[#allocation28_spill] sm:$0xff] %v14597_v60  ;;  %v14601_v20 = vpop.permute.xlu2 %4799 }
 0x3c2   : > { %20556 = vst [vmem:[#allocation29_spill] sm:$0xff] %v14601_v20 }
 0x3c5   : > { %5509 = vrot.lane.b32.xlu0 %v14214_v23, %s13411_s25  ;;  %v2767_v23 = vsel %vm645_vm4, %v12384_v62, %v12385_v32 }
 0x3c6   : > { %5157 = vrot.lane.b32.xlu1 %v14329_v33, %s13410_s19  ;;  %5513 = vrot.lane.b32.xlu2 %v14283_v26, %s13411_s25 }
 0x3c7   : > { %v14610_v2 = vpop.permute.xlu0 %4404 }
 0x3c8   : > { %v2756_v4 = vpop.permute.xlu1 %2755 }
 0x3c9   : > { %v2775_v60 = vsel %vm645_vm4, %v2754_v35, %v2756_v4  ;;  %v2758_v40 = vpop.permute.xlu2 %2757 }
 0x3ca   : > { %11622 = vmatpush.msk.msra.mxu0 %vm2798_vm13, %v2775_v60  ;;  %v2776_v20 = vsel %vm645_vm4, %v2756_v4, %v2758_v40  ;;  %v5846_v4 = vld [vmem:[%s20227_s4 + $0x8] sm:$0xff] }
 0x3cb   : > { %11626 = vmatpush.msk.msrb.mxu2 %vm2798_vm13, %v2776_v20 }
 0x3cc   : > { %2936 = vmatpush.msra.mxu0 %v2767_v23 }
 0x3cd   : > { %11623 = vmatmul.msk.f32.vlgmr.msra.gmra.mxu0 %vm2788_vm1, %v14530_v50  ;;  %5515 = vrot.lane.b32.xlu0 %v14297_v43, %s13411_s25 }
 0x3ce   : > { %5163 = vrot.lane.b32.xlu1 %v14500_v36, %s13410_s19  ;;  %5519 = vrot.lane.b32.xlu2 %v14408_v3, %s13411_s25  ;;  %v5847_v3 = vld [vmem:[%s20227_s4 + $0x10] sm:$0xf] }
 0x3cf   : > { %v14625_v26 = vpop.permute.xlu0 %3699 }
 0x3d0   : > { %v14627_v60 = vpop.permute.xlu1 %4051 }
 0x3d1   : > { %v14673_v23 = vpop.permute.xlu2 %4053 }
 0x3d5   : > { %11624 = vmatmul.msk.f32.gmra.mxu0 %vm2788_vm1, %v14556_v24  ;;  %5521 = vrot.lane.b32.xlu0 %v14402_v46, %s13411_s25 }
 0x3d6   : > { %12462 = vrot.lane.b32.xlu1 %v14226_v5, %s13411_s25  ;;  %5855 = vperm.xlu2 %12481, %v5846_v4  }
 0x3d7   : > { %v14638_v43 = vpop.permute.xlu0 %4801 }
 0x3d8   : > { %20557 = vst [vmem:[#allocation30_spill] sm:$0xff] %v14638_v43  ;;  %v14640_v20 = vpop.permute.xlu1 %3346 }
 0x3d9   : > { %v14694_v4 = vpop.permute.xlu2 %12417 }
 0x3dd   : > { %11625 = vmatmul.msk.f32.gmra.mxu0 %vm2788_vm1, %v14581_v11  ;;  %5860 = vperm.xlu0 %12319, %v5847_v3  }
 0x3de   : > { %12477 = vrot.lane.b32.xlu1 %v14420_v52, %s13411_s25  ;;  %3703 = vrot.lane.b32.xlu2 %v14514_v39, %s13408_s16  ;;  %v4747_v52 = vld [vmem:[#allocation3 + $0x90] sm:$0x3] }
 0x3df   : > { %v14651_v5 = vpop.permute.xlu0 %12412 }
 0x3e0   : > { %v14653_v46 = vpop.permute.xlu1 %4406  ;;  %v12414_v62 = vunpack.i.l.bf16 %v14651_v5 }
 0x3e1   : > { %20558 = vst [vmem:[#allocation31_spill] sm:$0xff] %v14653_v46  ;;  %v12360_v46 = vunpack.i.h.bf16 %v14454_v12 }
 0x3e2   : > { %v2768_v35 = vsel %vm645_vm4, %v12385_v32, %v12414_v62 }
 0x3e3   : > { %2962 = vmatpush.msrb.mxu2 %v2768_v35 }
 0x3e4   : > { %11627 = vmatmul.msk.f32.vlgmr.msrb.gmra.mxu2 %vm2788_vm1, %v14530_v50 }
 0x3e5   : > { %11642 = vmatpush.msk.msra.mxu2 %vm2798_vm13, %v14201_v13  ;;  %3350 = vrot.lane.b32.xlu0 %v14514_v39, %s13400_s29  ;;  %v20250_v13 = vunpack.i.h.bf16 %v14651_v5 }
 0x3e6   : > { %5511 = vrot.lane.b32.xlu1 %v14253_v56, %s13411_s25  ;;  %4805 = vrot.lane.b32.xlu2 %v4747_v52, %s13409_s18 }
 0x3e7   : > { %3093 = vmatpush.msra.mxu2 %v14192_v51  ;;  %v14667_v22 = vpop.permute.xlu0 %12427 }
 0x3e8   : > { %v14669_v32 = vpop.permute.xlu1 %12422 }
 0x3e9   : > { %11658 = vmatpush.msk.msrb.mxu2 %vm2798_vm13, %v14307_v16  ;;  %v2769_v16 = vsel %vm645_vm4, %v12414_v62, %v20250_v13  ;;  %v14714_v62 = vld [vmem:[%s20226_s3] sm:$0xff] }
 0x3eb   : > { %3197 = vmatpush.msrb.mxu2 %v14255_v61 }
 0x3ec   : > { %11628 = vmatmul.msk.f32.gmra.mxu2 %vm2788_vm1, %v14556_v24 }
 0x3ed   : > { %4410 = vrot.lane.b32.xlu0 %v14514_v39, %s13405_s14 }
 0x3ee   : > { %5517 = vrot.lane.b32.xlu1 %v14329_v33, %s13411_s25  ;;  %5165 = vrot.lane.b32.xlu2 %v4747_v52, %s13410_s19  ;;  %v4748_v33 = vld [vmem:[#allocation3 + $0x98] sm:$0x3] }
 0x3ef   : > { %v14684_v51 = vpop.permute.xlu0 %2759 }
 0x3f0   : > { %v14686_v56 = vpop.permute.xlu1 %12437  ;;  %v2777_v61 = vsel %vm645_vm4, %v2758_v40, %v14684_v51 }
 0x3f1   : > { %20559 = vst [vmem:[#allocation32_spill] sm:$0xff] %v14686_v56  ;;  %11630 = vmatpush.msk.msrb.mxu3 %vm2798_vm13, %v2777_v61 }
 0x3f3   : > { %2988 = vmatpush.msrb.mxu3 %v2769_v16 }
 0x3f4   : > { %11629 = vmatmul.msk.f32.gmra.mxu2 %vm2788_vm1, %v14581_v11  ;;  %11631 = vmatmul.msk.f32.vlgmr.msrb.gmra.mxu3 %vm2788_vm1, %v14530_v50 }
 0x3f5   : > { %11646 = vmatpush.msk.msra.mxu3 %vm2798_vm13, %v14235_v63  ;;  %4807 = vrot.lane.b32.xlu0 %v4748_v33, %s13409_s18  ;;  %v4738_v63 = vld [vmem:[#allocation3 + $0x48] sm:$0xff] }
 0x3f6   : > { %5523 = vrot.lane.b32.xlu1 %v14500_v36, %s13411_s25  ;;  %5525 = vrot.lane.b32.xlu2 %v4747_v52, %s13411_s25  ;;  %v5845_v36 = vld [vmem:[%s20227_s4] sm:$0xff]  ;;  %v14739_v52 = vld [vmem:[%s20226_s3 + $0x8] sm:$0xff] }
 0x3f7   : > { %3119 = vmatpush.msra.mxu3 %v14207_v15  ;;  %v14707_v40 = vpop.permute.xlu0 %3332  ;;  %v14724_v15 = vpop.permute.xlu2 %12432 }
 0x3f8   : > { %v2744_v3 = vpop.permute.xlu1 %2743 }
 0x3f9   : > { %11662 = vmatpush.msk.msrb.mxu3 %vm2798_vm13, %v14355_v34 }
 0x3fb   : > { %3223 = vmatpush.msrb.mxu3 %v14285_v31  ;;  %v12482_v31 = vpack.i.bf16 %v4738_v63, %v14351_v54  ;;  %v14758_v63 = vld [vmem:[%s20226_s3 + $0x10] sm:$0xf] }
 0x3fc   : > { %11632 = vmatmul.msk.f32.gmra.mxu3 %vm2788_vm1, %v14556_v24  ;;  %11643 = vmatmul.msk.f32.vlgmr.msra.gmra.mxu2 %vm2788_vm1, %v14714_v62 }
 0x3fd   : > { %11674 = vmatpush.msk.msra.mxu2 %vm2798_vm13, %v14514_v39  ;;  %5167 = vrot.lane.b32.xlu0 %v4748_v33, %s13410_s19 }
 0x3fe   : > { %5850 = vperm.xlu1 %12320, %v5845_v36   ;;  %12483 = vrot.lane.b32.xlu2 %v12482_v31, %s13409_s18  ;;  %v20255_v36 = vunpack.i.h.bf16 %v14353_v18 }
 0x3ff   : > { %3301 = vmatpush.msra.mxu2 %v14351_v54  ;;  %v14732_v34 = vpop.permute.xlu0 %4055  ;;  %v14748_v54 = vpop.permute.xlu2 %3348 }
 0x400   : > { %v14734_v35 = vpop.permute.xlu1 %3701 }
 0x404   : > { %11633 = vmatmul.msk.f32.gmra.mxu3 %vm2788_vm1, %v14581_v11  ;;  %11644 = vmatmul.msk.f32.gmra.mxu2 %vm2788_vm1, %v14739_v52 }
 0x405   : > { %5527 = vrot.lane.b32.xlu0 %v4748_v33, %s13411_s25  ;;  %v12329_v33 = vunpack.i.l.bf16 %v14353_v18 }
 0x406   : > { %4057 = vrot.lane.b32.xlu1 %v14514_v39, %s13404_s12  ;;  %12488 = vrot.lane.b32.xlu2 %v12482_v31, %s13410_s19  ;;  %v3360_v39 = vsel %vm837_vm5, %v14349_v47, %v14379_v30 }
 0x407   : > { %v14751_v61 = vpop.permute.xlu0 %4392  ;;  %v3352_v13 = vsel %vm837_vm5, %v12329_v33, %v20255_v36  ;;  %v14778_v47 = vpop.permute.xlu2 %3685 }
 0x408   : > { %20560 = vst [vmem:[#allocation33_spill] sm:$0xff] %v14751_v61  ;;  %v14753_v16 = vpop.permute.xlu1 %4039  ;;  %v12389_v61 = vunpack.i.l.bf16 %v14572_v28 }
 0x40c   : > { %11645 = vmatmul.msk.f32.gmra.mxu2 %vm2788_vm1, %v14758_v63  ;;  %11647 = vmatmul.msk.f32.vlgmr.msra.gmra.mxu3 %vm2788_vm1, %v14714_v62 }
 0x40d   : > { %11681 = vmatpush.msk.msra.mxu3 %vm2798_vm13, %v3360_v39  ;;  %v3363_v39 = vsel %vm837_vm5, %v14494_v49, %v14496_v17 }
 0x40e   : > { %12493 = vrot.lane.b32.xlu2 %v12482_v31, %s13411_s25 }
 0x40f   : > { %3419 = vmatpush.msra.mxu3 %v3352_v13  ;;  %v14774_v43 = vpop.permute.xlu0 %12452  ;;  %v3355_v13 = vsel %vm837_vm5, %v12360_v46, %v12389_v61 }
 0x410   : > { %20561 = vst [vmem:[#allocation34_spill] sm:$0xff] %v14774_v43  ;;  %v14776_v56 = vpop.permute.xlu1 %4803  ;;  %v14797_v43 = vpop.permute.xlu2 %4408 }
 0x411   : > { %20562 = vst [vmem:[#allocation35_spill] sm:$0xff] %v14776_v56  ;;  %v20564_v56 = vunpack.i.h.bf16 %v14651_v5 }
 0x414   : > { %11648 = vmatmul.msk.f32.gmra.mxu3 %vm2788_vm1, %v14739_v52  ;;  %11659 = vmatmul.msk.f32.vlgmr.msrb.gmra.mxu2 %vm2788_vm1, %v14714_v62 }
 0x415   : > { %11693 = vmatpush.msk.msrb.mxu2 %vm2798_vm13, %v3363_v39  ;;  %v2770_v39 = vsel %vm645_vm4, %v20564_v56, %v2744_v3 }
 0x417   : > { %3497 = vmatpush.msrb.mxu2 %v3355_v13  ;;  %v14791_v31 = vpop.permute.xlu0 %5149  ;;  %v3366_v13 = vsel %vm837_vm5, %v14640_v20, %v14748_v54 }
 0x418   : > { %20563 = vst [vmem:[#allocation36_spill] sm:$0xff] %v14791_v31  ;;  %v2762_v33 = vpop.permute.xlu1 %2761 }
 0x419   : > { %v2778_v36 = vsel %vm645_vm4, %v14684_v51, %v2762_v33  ;;  %11638 = vmatpush.msk.msrb.mxu0 %vm2798_vm13, %v2762_v33  ;;  %v3365_v33 = vsel %vm837_vm5, %v14595_v29, %v14640_v20 }
 0x41a   : > { %11634 = vmatpush.msk.msrb.mxu1 %vm2798_vm13, %v2778_v36  ;;  %v14918_v36 = vld [vmem:[%s20226_s3 + $0x40] sm:$0xf] }
 0x41b   : > { %3040 = vmatpush.msrb.mxu0 %v2744_v3  ;;  %v12420_v3 = vunpack.i.h.bf16 %v14694_v4 }
 0x41c   : > { %3014 = vmatpush.msrb.mxu1 %v2770_v39  ;;  %11639 = vmatmul.msk.f32.vlgmr.msrb.gmra.mxu0 %vm2788_vm1, %v14530_v50 }
 0x41d   : > { %11654 = vmatpush.msk.msra.mxu0 %vm2798_vm13, %v14289_v37  ;;  %11635 = vmatmul.msk.f32.vlgmr.msrb.gmra.mxu1 %vm2788_vm1, %v14530_v50 }
 0x41e   : > { %11649 = vmatmul.msk.f32.gmra.mxu3 %vm2788_vm1, %v14758_v63  ;;  %11650 = vmatpush.msk.msra.mxu1 %vm2798_vm13, %v14251_v59  ;;  %v12390_v59 = vunpack.i.h.bf16 %v14572_v28  ;;  %v3362_v28 = vsel %vm837_vm5, %v14428_v53, %v14494_v49 }
 0x41f   : > { %11660 = vmatmul.msk.f32.gmra.mxu2 %vm2788_vm1, %v14739_v52  ;;  %3171 = vmatpush.msra.mxu0 %v14243_v48  ;;  %v14815_v5 = vpop.permute.xlu0 %5155  ;;  %v14827_v48 = vpop.permute.xlu2 %12447 }
 0x420   : > { %3145 = vmatpush.msra.mxu1 %v14211_v21  ;;  %v3364_v21 = vsel %vm837_vm5, %v14496_v17, %v14595_v29  ;;  %v14882_v17 = vld [vmem:[%s20226_s3 + $0x30] sm:$0xff] }
 0x421   : > { %11670 = vmatpush.msk.msrb.mxu0 %vm2798_vm13, %v14446_v8  ;;  %v3361_v8 = vsel %vm837_vm5, %v14379_v30, %v14428_v53 }
 0x422   : > { %11666 = vmatpush.msk.msrb.mxu1 %vm2798_vm13, %v14381_v6 }
 0x423   : > { %3275 = vmatpush.msrb.mxu0 %v14337_v25 }
 0x424   : > { %3249 = vmatpush.msrb.mxu1 %v14299_v0  ;;  %11640 = vmatmul.msk.f32.gmra.mxu0 %vm2788_vm1, %v14556_v24  ;;  %v3356_v0 = vsel %vm837_vm5, %v12389_v61, %v12390_v59  ;;  %v12419_v61 = vunpack.i.l.bf16 %v14694_v4 }
 0x425   : > { %11636 = vmatmul.msk.f32.gmra.mxu1 %vm2788_vm1, %v14556_v24  ;;  %v12359_v24 = vunpack.i.l.bf16 %v14454_v12  ;;  %v14911_v56 = vpop.f32.mrf.mxu2 }
 0x426   : > { %11663 = vmatmul.msk.f32.vlgmr.msrb.gmra.mxu3 %vm2788_vm1, %v14714_v62  ;;  %v3358_v4 = vsel %vm837_vm5, %v12419_v61, %v12420_v3  ;;  %v3357_v29 = vsel %vm837_vm5, %v12390_v59, %v12419_v61  ;;  %v3716_v61 = vsel %vm3705_vm2, %v14416_v55, %v14480_v58 }
 0x427   : > { %11661 = vmatmul.msk.f32.gmra.mxu2 %vm2788_vm1, %v14758_v63  ;;  %11697 = vmatpush.msk.msrb.mxu3 %vm2798_vm13, %v3364_v21  ;;  %v14839_v37 = vpop.permute.xlu0 %5161  ;;  %v14848_v25 = vpop.permute.xlu2 %5153  ;;  %v3354_v12 = vsel %vm837_vm5, %v12359_v24, %v12360_v46  ;;  %v14899_v46 = vld [vmem:[%s20226_s3 + $0x38] sm:$0xff] }
 0x428   : > { %v14942_v21 = vpop.permute.xlu1 %12442 }
 0x429   : > { %3523 = vmatpush.msrb.mxu3 %v3356_v0  ;;  %20574 = vst [vmem:[#allocation45_spill] sm:$0xff] %v14942_v21 }
 0x42c   : > { %11641 = vmatmul.msk.f32.gmra.mxu0 %vm2788_vm1, %v14581_v11 }
 0x42d   : > { %11637 = vmatmul.msk.f32.gmra.mxu1 %vm2788_vm1, %v14581_v11  ;;  %v20566_v11 = vunpack.i.h.bf16 %v14353_v18  ;;  %v14944_v0 = vpop.f32.mrf.mxu2 }
 0x42e   : > { %11664 = vmatmul.msk.f32.gmra.mxu3 %vm2788_vm1, %v14739_v52 }
 0x42f   : > { %11675 = vmatmul.msk.f32.vlgmr.msra.gmra.mxu2 %vm2788_vm1, %v14714_v62  ;;  %v14852_v6 = vpop.permute.xlu0 %12472  ;;  %v3353_v30 = vsel %vm837_vm5, %v20566_v11, %v12359_v24  ;;  %v14877_v49 = vpop.permute.xlu2 %5159  ;;  %v20258_v24 = vunpack.i.l.bf16 %v14545_v44 }
 0x430   : > { %20565 = vst [vmem:[#allocation37_spill] sm:$0xff] %v14852_v6  ;;  %v14966_v11 = vpop.permute.xlu1 %12457  ;;  %v12339_v6 = vunpack.i.l.bf16 %v14375_v10 }
 0x431   : > { %20568 = vst [vmem:[#allocation39_spill] sm:$0xff] %v14877_v49 }
 0x434   : > { %11655 = vmatmul.msk.f32.vlgmr.msra.gmra.mxu0 %vm2788_vm1, %v14714_v62 }
 0x435   : > { %11689 = vmatpush.msk.msra.mxu0 %vm2798_vm13, %v3362_v28  ;;  %11651 = vmatmul.msk.f32.vlgmr.msra.gmra.mxu1 %vm2788_vm1, %v14714_v62 }
 0x436   : > { %11665 = vmatmul.msk.f32.gmra.mxu3 %vm2788_vm1, %v14758_v63  ;;  %11685 = vmatpush.msk.msra.mxu1 %vm2798_vm13, %v3361_v8  ;;  %v12365_v8 = vunpack.i.h.bf16 %v14443_v7 }
 0x437   : > { %11676 = vmatmul.msk.f32.gmra.mxu2 %vm2788_vm1, %v14739_v52  ;;  %3471 = vmatpush.msra.mxu0 %v3354_v12  ;;  %v14875_v53 = vpop.permute.xlu0 %5509  ;;  %v14894_v50 = vpop.permute.xlu2 %12467  ;;  %v3717_v12 = vsel %vm3705_vm2, %v14480_v58, %v14522_v45 }
 0x438   : > { %20567 = vst [vmem:[#allocation38_spill] sm:$0xff] %v14875_v53  ;;  %3445 = vmatpush.msra.mxu1 %v3353_v30  ;;  %v14971_v30 = vpop.f32.mrf.mxu3 }
 0x439   : > { %20570 = vst [vmem:[#allocation41_spill] sm:$0xff] %v14894_v50 }
 0x43c   : > { %11656 = vmatmul.msk.f32.gmra.mxu0 %vm2788_vm1, %v14739_v52 }
 0x43d   : > { %11652 = vmatmul.msk.f32.gmra.mxu1 %vm2788_vm1, %v14739_v52 }
 0x43e   : > { %11682 = vmatmul.msk.f32.vlgmr.msra.gmra.mxu3 %vm2788_vm1, %v14882_v17 }
 0x43f   : > { %11677 = vmatmul.msk.f32.gmra.mxu2 %vm2788_vm1, %v14758_v63  ;;  %v14892_v18 = vpop.permute.xlu0 %5515  ;;  %v14928_v39 = vpop.permute.xlu2 %5513 }
 0x440   : > { %20569 = vst [vmem:[#allocation40_spill] sm:$0xff] %v14892_v18 }
 0x441   : > { %20572 = vst [vmem:[#allocation43_spill] sm:$0xff] %v14928_v39 }
 0x444   : > { %11657 = vmatmul.msk.f32.gmra.mxu0 %vm2788_vm1, %v14758_v63 }
 0x445   : > { %11653 = vmatmul.msk.f32.gmra.mxu1 %vm2788_vm1, %v14758_v63 }
 0x446   : > { %11683 = vmatmul.msk.f32.gmra.mxu3 %vm2788_vm1, %v14899_v46 }
 0x447   : > { %11694 = vmatmul.msk.f32.vlgmr.msrb.gmra.mxu2 %vm2788_vm1, %v14882_v17  ;;  %v14909_v51 = vpop.permute.xlu0 %5521 }
 0x448   : > { %20571 = vst [vmem:[#allocation42_spill] sm:$0xff] %v14909_v51 }
 0x44c   : > { %11671 = vmatmul.msk.f32.vlgmr.msrb.gmra.mxu0 %vm2788_vm1, %v14714_v62 }
 0x44d   : > { %11705 = vmatpush.msk.msrb.mxu0 %vm2798_vm13, %v3366_v13  ;;  %11667 = vmatmul.msk.f32.vlgmr.msrb.gmra.mxu1 %vm2788_vm1, %v14714_v62  ;;  %v14952_v62 = vpop.permute.xlu2 %5519  ;;  %v14988_v13 = vpop.f32.mrf.mxu2 }
 0x44e   : > { %11684 = vmatmul.msk.f32.gmra.mxu3 %vm2788_vm1, %v14918_v36  ;;  %11701 = vmatpush.msk.msrb.mxu1 %vm2798_vm13, %v3365_v33  ;;  %20575 = vst [vmem:[#allocation46_spill] sm:$0xff] %v14952_v62  ;;  %v14990_v33 = vpop.f32.mrf.mxu0 }
 0x44f   : > { %11695 = vmatmul.msk.f32.gmra.mxu2 %vm2788_vm1, %v14899_v46  ;;  %3575 = vmatpush.msrb.mxu0 %v3358_v4  ;;  %v14940_v20 = vpop.permute.xlu0 %5860  ;;  %v3720_v4 = vsel %vm3705_vm2, %v14625_v26, %v14734_v35 }
 0x450   : > { %20573 = vst [vmem:[#allocation44_spill] sm:$0xff] %v14940_v20  ;;  %3549 = vmatpush.msrb.mxu1 %v3357_v29  ;;  %v3719_v20 = vsel %vm3705_vm2, %v14576_v38, %v14625_v26  ;;  %v20581_v26 = vunpack.i.l.bf16 %v14669_v32 }
 0x454   : > { %11672 = vmatmul.msk.f32.gmra.mxu0 %vm2788_vm1, %v14739_v52 }
 0x455   : > { %11668 = vmatmul.msk.f32.gmra.mxu1 %vm2788_vm1, %v14739_v52  ;;  %v12364_v52 = vunpack.i.l.bf16 %v14443_v7  ;;  %v3709_v7 = vsel %vm3705_vm2, %v12365_v8, %v20258_v24  ;;  %v12395_v24 = vunpack.i.h.bf16 %v14545_v44 }
 0x456   : > { %11698 = vmatmul.msk.f32.vlgmr.msrb.gmra.mxu3 %vm2788_vm1, %v14882_v17 }
 0x457   : > { %11696 = vmatmul.msk.f32.gmra.mxu2 %vm2788_vm1, %v14918_v36  ;;  %v3351_v59 = vpop.permute.xlu0 %3350  ;;  %v3708_v58 = vsel %vm3705_vm2, %v12364_v52, %v12365_v8  ;;  %v3715_v8 = vsel %vm3705_vm2, %v14414_v42, %v14416_v55 }
 0x458   : > { %v3367_v28 = vsel %vm837_vm5, %v14748_v54, %v3351_v59  ;;  %11713 = vmatpush.msk.msra.mxu3 %vm2798_vm13, %v3351_v59  ;;  %v3359_v54 = vsel %vm837_vm5, %v12420_v3, %v14707_v40  ;;  %v20259_v3 = vunpack.i.l.bf16 %v14669_v32  ;;  %v12335_v59 = vunpack.i.h.bf16 %v14377_v57 }
 0x459   : > { %11709 = vmatpush.msk.msra.mxu2 %vm2798_vm13, %v3367_v28  ;;  %v12334_v28 = vunpack.i.l.bf16 %v14377_v57 }
 0x45a   : > { %3627 = vmatpush.msra.mxu3 %v14707_v40  ;;  %v12425_v40 = vunpack.i.h.bf16 %v14669_v32  ;;  %v3707_v57 = vsel %vm3705_vm2, %v12335_v59, %v12364_v52  ;;  %v15129_v32 = vld [vmem:[%s20226_s3 + $0x58] sm:$0xf] }
 0x45b   : > { %3601 = vmatpush.msra.mxu2 %v3359_v54  ;;  %v15014_v54 = vpop.f32.mrf.mxu3  ;;  %v3706_v55 = vsel %vm3705_vm2, %v12334_v28, %v12335_v59 }
 0x45c   : > { %11732 = vmatpush.msk.msrb.mxu3 %vm2798_vm13, %v3717_v12  ;;  %11673 = vmatmul.msk.f32.gmra.mxu0 %vm2788_vm1, %v14758_v63  ;;  %v3712_v29 = vsel %vm3705_vm2, %v20259_v3, %v12425_v40  ;;  %v15010_v12 = vpop.permute.xlu1 %5151  ;;  %20578 = vst [vmem:[#allocation49_spill] sm:$0xff] %v15014_v54  ;;  %v3713_v59 = vsel %vm3705_vm2, %v12425_v40, %v14778_v47  ;;  %v20262_v40 = vunpack.i.h.bf16 %v14375_v10 }
 0x45d   : > { %11728 = vmatpush.msk.msrb.mxu2 %vm2798_vm13, %v3716_v61  ;;  %11669 = vmatmul.msk.f32.gmra.mxu1 %vm2788_vm1, %v14758_v63  ;;  %v15000_v63 = vpop.permute.xlu2 %5855  ;;  %20577 = vst [vmem:[#allocation48_spill] sm:$0xff] %v15010_v12  ;;  %v3714_v61 = vsel %vm3705_vm2, %v14347_v9, %v14414_v42  ;;  %v15031_v9 = vpop.f32.mrf.mxu0 }
 0x45e   : > { %3851 = vmatpush.msrb.mxu3 %v3709_v7  ;;  %20576 = vst [vmem:[#allocation47_spill] sm:$0xff] %v15000_v63  ;;  %v15098_v63 = vpop.f32.mrf.mxu1 }
 0x45f   : > { %11699 = vmatmul.msk.f32.gmra.mxu3 %vm2788_vm1, %v14899_v46  ;;  %3825 = vmatpush.msrb.mxu2 %v3708_v58 }
 0x460   : > { %11710 = vmatmul.msk.f32.vlgmr.msra.gmra.mxu2 %vm2788_vm1, %v14882_v17 }
 0x461   : > { %11744 = vmatpush.msk.msra.mxu2 %vm2798_vm13, %v3720_v4 }
 0x463   : > { %3929 = vmatpush.msra.mxu2 %v3712_v29  ;;  %v15046_v4 = vpop.f32.mrf.mxu3 }
 0x464   : > { %11690 = vmatmul.msk.f32.vlgmr.msra.gmra.mxu0 %vm2788_vm1, %v14882_v17  ;;  %v15039_v52 = vpop.permute.xlu1 %5157  ;;  %20579 = vst [vmem:[#allocation50_spill] sm:$0xff] %v15046_v4 }
 0x465   : > { %11724 = vmatpush.msk.msra.mxu0 %vm2798_vm13, %v3715_v8  ;;  %11686 = vmatmul.msk.f32.vlgmr.msra.gmra.mxu1 %vm2788_vm1, %v14882_v17  ;;  %v15033_v42 = vpop.permute.xlu2 %3703  ;;  %v15055_v28 = vpop.f32.mrf.mxu0  ;;  %v12369_v8 = vunpack.i.l.bf16 %v14482_v27 }
 0x466   : > { %11720 = vmatpush.msk.msra.mxu1 %vm2798_vm13, %v3714_v61  ;;  %v3721_v58 = vsel %vm3705_vm2, %v14734_v35, %v15033_v42  ;;  %v15062_v35 = vld [vmem:[%s20226_s3 + $0x48] sm:$0xff]  ;;  %v4068_v61 = vsel %vm1273_vm9, %v14412_v41, %v14456_v14 }
 0x467   : > { %11700 = vmatmul.msk.f32.gmra.mxu3 %vm2788_vm1, %v14918_v36  ;;  %3799 = vmatpush.msra.mxu0 %v3707_v57  ;;  %v15029_v7 = vpop.f32.mrf.mxu2 }
 0x468   : > { %11711 = vmatmul.msk.f32.gmra.mxu2 %vm2788_vm1, %v14899_v46  ;;  %3773 = vmatpush.msra.mxu1 %v3706_v55 }
 0x46c   : > { %11691 = vmatmul.msk.f32.gmra.mxu0 %vm2788_vm1, %v14899_v46  ;;  %v15077_v55 = vpop.permute.xlu1 %5163 }
 0x46d   : > { %11687 = vmatmul.msk.f32.gmra.mxu1 %vm2788_vm1, %v14899_v46  ;;  %v15086_v3 = vpop.f32.mrf.mxu0 }
 0x46f   : > { %11714 = vmatmul.msk.f32.vlgmr.msra.gmra.mxu3 %vm2788_vm1, %v14882_v17  ;;  %v15051_v29 = vpop.f32.mrf.mxu2 }
 0x470   : > { %11712 = vmatmul.msk.f32.gmra.mxu2 %vm2788_vm1, %v14918_v36  ;;  %11748 = vmatpush.msk.msra.mxu3 %vm2798_vm13, %v3721_v58 }
 0x472   : > { %3955 = vmatpush.msra.mxu3 %v3713_v59  ;;  %v4060_v59 = vsel %vm1273_vm9, %v20262_v40, %v12369_v8  ;;  %v3711_v40 = vsel %vm3705_vm2, %v12395_v24, %v20581_v26 }
 0x474   : > { %11692 = vmatmul.msk.f32.gmra.mxu0 %vm2788_vm1, %v14918_v36  ;;  %v15121_v53 = vpop.permute.xlu1 %12462 }
 0x475   : > { %11688 = vmatmul.msk.f32.gmra.mxu1 %vm2788_vm1, %v14918_v36  ;;  %20584 = vst [vmem:[#allocation53_spill] sm:$0xff] %v15121_v53 }
 0x477   : > { %11715 = vmatmul.msk.f32.gmra.mxu3 %vm2788_vm1, %v14899_v46  ;;  %v15075_v57 = vpop.f32.mrf.mxu2  ;;  %v15080_v58 = vpop.f32.mrf.mxu3 }
 0x478   : > { %11729 = vmatmul.msk.f32.vlgmr.msrb.gmra.mxu2 %vm2788_vm1, %v15062_v35  ;;  %20580 = vst [vmem:[#allocation51_spill] sm:$0xff] %v15080_v58 }
 0x479   : > { %11763 = vmatpush.msk.msrb.mxu2 %vm2798_vm13, %v4068_v61  ;;  %v15096_v61 = vld [vmem:[%s20226_s3 + $0x50] sm:$0xff] }
 0x47b   : > { %4152 = vmatpush.msrb.mxu2 %v4060_v59  ;;  %v3718_v59 = vsel %vm3705_vm2, %v14522_v45, %v14576_v38  ;;  %v20582_v45 = vunpack.i.l.bf16 %v14545_v44  ;;  %v15133_v44 = vpop.f32.mrf.mxu0 }
 0x47c   : > { %11706 = vmatmul.msk.f32.vlgmr.msrb.gmra.mxu0 %vm2788_vm1, %v14882_v17 }
 0x47d   : > { %11740 = vmatpush.msk.msrb.mxu0 %vm2798_vm13, %v3719_v20  ;;  %11702 = vmatmul.msk.f32.vlgmr.msrb.gmra.mxu1 %vm2788_vm1, %v14882_v17  ;;  %v3710_v38 = vsel %vm3705_vm2, %v20582_v45, %v12395_v24  ;;  %v4069_v24 = vsel %vm1273_vm9, %v14456_v14, %v14484_v1  ;;  %v15152_v14 = vpop.permute.xlu1 %12477 }
 0x47e   : > { %11736 = vmatpush.msk.msrb.mxu1 %vm2798_vm13, %v3718_v59  ;;  %v20263_v59 = vunpack.i.h.bf16 %v14482_v27  ;;  %20586 = vst [vmem:[#allocation55_spill] sm:$0xff] %v15152_v14  ;;  %v20587_v14 = vld [vmem:[#allocation11_spill] sm:$0xff] }
 0x47f   : > { %11716 = vmatmul.msk.f32.gmra.mxu3 %vm2788_vm1, %v14918_v36  ;;  %3903 = vmatpush.msrb.mxu0 %v3711_v40  ;;  %v15117_v20 = vpop.f32.mrf.mxu2  ;;  %v15119_v17 = vpop.f32.mrf.mxu3  ;;  %v4067_v18 = vsel %vm1273_vm9, %v20587_v14, %v14412_v41 }
 0x480   : > { %11730 = vmatmul.msk.f32.gmra.mxu2 %vm2788_vm1, %v15096_v61  ;;  %3877 = vmatpush.msrb.mxu1 %v3710_v38  ;;  %20583 = vst [vmem:[#allocation52_spill] sm:$0xff] %v15119_v17  ;;  %v15140_v40 = vpop.f32.mrf.mxu1  ;;  %v12429_v38 = vunpack.i.l.bf16 %v14667_v22  ;;  %v20272_v17 = vunpack.i.h.bf16 %v14667_v22 }
 0x484   : > { %11707 = vmatmul.msk.f32.gmra.mxu0 %vm2788_vm1, %v14899_v46 }
 0x485   : > { %11703 = vmatmul.msk.f32.gmra.mxu1 %vm2788_vm1, %v14899_v46  ;;  %v4061_v46 = vsel %vm1273_vm9, %v12369_v8, %v20263_v59  ;;  %v4072_v8 = vsel %vm1273_vm9, %v14627_v60, %v14673_v23  ;;  %v2944_v59 = vpop.f32.mrf.mxu0 }
 0x487   : > { %11733 = vmatmul.msk.f32.vlgmr.msrb.gmra.mxu3 %vm2788_vm1, %v15062_v35  ;;  %v15145_v26 = vpop.f32.mrf.mxu2  ;;  %v15150_v45 = vpop.f32.mrf.mxu3 }
 0x488   : > { %11731 = vmatmul.msk.f32.gmra.mxu2 %vm2788_vm1, %v15129_v32  ;;  %11767 = vmatpush.msk.msrb.mxu3 %vm2798_vm13, %v4069_v24  ;;  %20585 = vst [vmem:[#allocation54_spill] sm:$0xff] %v15150_v45  ;;  %v20269_v24 = vunpack.i.h.bf16 %v14551_v19 }
 0x48a   : > { %4178 = vmatpush.msrb.mxu3 %v4061_v46  ;;  %v4064_v51 = vsel %vm1273_vm9, %v20269_v24, %v12429_v38 }
 0x48c   : > { %11708 = vmatmul.msk.f32.gmra.mxu0 %vm2788_vm1, %v14918_v36 }
 0x48d   : > { %11704 = vmatmul.msk.f32.gmra.mxu1 %vm2788_vm1, %v14918_v36  ;;  %v15172_v36 = vpop.f32.mrf.mxu1 }
 0x48f   : > { %11734 = vmatmul.msk.f32.gmra.mxu3 %vm2788_vm1, %v15096_v61  ;;  %v15167_v46 = vpop.f32.mrf.mxu2  ;;  %v15170_v62 = vpop.f32.mrf.mxu3 }
 0x490   : > { %11745 = vmatmul.msk.f32.vlgmr.msra.gmra.mxu2 %vm2788_vm1, %v15062_v35 }
 0x491   : > { %11779 = vmatpush.msk.msra.mxu2 %vm2798_vm13, %v4072_v8  ;;  %v15186_v8 = vpop.permute.xlu1 %5511 }
 0x492   : > { %20588 = vst [vmem:[#allocation11_spill] sm:$0xff] %v15186_v8 }
 0x493   : > { %4256 = vmatpush.msra.mxu2 %v4064_v51  ;;  %v20589_v51 = vunpack.i.h.bf16 %v14375_v10  ;;  %v4073_v10 = vsel %vm1273_vm9, %v14673_v23, %v14732_v34 }
 0x494   : > { %11725 = vmatmul.msk.f32.vlgmr.msra.gmra.mxu0 %vm2788_vm1, %v15062_v35 }
 0x495   : > { %11759 = vmatpush.msk.msra.mxu0 %vm2798_vm13, %v4067_v18  ;;  %11721 = vmatmul.msk.f32.vlgmr.msra.gmra.mxu1 %vm2788_vm1, %v15062_v35  ;;  %v4059_v41 = vsel %vm1273_vm9, %v12339_v6, %v20589_v51  ;;  %v4065_v6 = vsel %vm1273_vm9, %v12429_v38, %v20272_v17 }
 0x496   : > { %11752 = vmatpush.msk.msra.mxu1 %vm2798_vm13, %v15033_v42 }
 0x497   : > { %11735 = vmatmul.msk.f32.gmra.mxu3 %vm2788_vm1, %v15129_v32  ;;  %4126 = vmatpush.msra.mxu0 %v4059_v41  ;;  %v15198_v18 = vpop.f32.mrf.mxu3  ;;  %v15200_v14 = vpop.f32.mrf.mxu2 }
 0x498   : > { %11746 = vmatmul.msk.f32.gmra.mxu2 %vm2788_vm1, %v15096_v61  ;;  %3981 = vmatpush.msra.mxu1 %v14778_v47 }
 0x499   : > { %v3042_v24 = vpop.f32.mrf.mxu0  ;;  %v15217_v47 = vpop.permute.xlu1 %5517 }
 0x49a   : > { %v15202_v45 = vpop.f32.mrf.mxu1  ;;  %20590 = vst [vmem:[#allocation56_spill] sm:$0xff] %v15217_v47  ;;  %v20591_v47 = vld [vmem:[#allocation14_spill] sm:$0xff] }
 0x49b   : > { %v12345_v38 = vunpack.i.h.bf16 %v20591_v47 }
 0x49c   : > { %11726 = vmatmul.msk.f32.gmra.mxu0 %vm2788_vm1, %v15096_v61 }
 0x49d   : > { %11722 = vmatmul.msk.f32.gmra.mxu1 %vm2788_vm1, %v15096_v61 }
 0x49f   : > { %11749 = vmatmul.msk.f32.vlgmr.msra.gmra.mxu3 %vm2788_vm1, %v15062_v35 }
 0x4a0   : > { %11747 = vmatmul.msk.f32.gmra.mxu2 %vm2788_vm1, %v15129_v32  ;;  %11783 = vmatpush.msk.msra.mxu3 %vm2798_vm13, %v4073_v10  ;;  %v15234_v10 = vld [vmem:[%s20226_s3 + $0x60] sm:$0xff] }
 0x4a1   : > { %v3127_v42 = vpop.f32.mrf.mxu3  ;;  %v3045_v51 = vpop.f32.mrf.mxu0 }
 0x4a2   : > { %4282 = vmatpush.msra.mxu3 %v4065_v6  ;;  %v15223_v41 = vadd.f32 %v3127_v42, %v14988_v13  ;;  %v15225_v23 = vpop.f32.mrf.mxu2  ;;  %v15227_v49 = vpop.f32.mrf.mxu1  ;;  %v12344_v6 = vunpack.i.l.bf16 %v20591_v47  ;;  %v20592_v13 = vld [vmem:[#allocation16_spill] sm:$0xff]  ;;  %v20593_v42 = vld [vmem:[#allocation13_spill] sm:$0xff]  ;;  %v12399_v47 = vunpack.i.l.bf16 %v14551_v19 }
 0x4a3   : > { %v4420_v17 = vsel %vm1382_vm10, %v20593_v42, %v20592_v13  ;;  %v20595_v42 = vld [vmem:[#allocation25_spill] sm:$0xff] }
 0x4a4   : > { %11727 = vmatmul.msk.f32.gmra.mxu0 %vm2788_vm1, %v15129_v32  ;;  %v4412_v8 = vsel %vm1382_vm10, %v12344_v6, %v12345_v38  ;;  %v4071_v54 = vsel %vm1273_vm9, %v20595_v42, %v14627_v60  ;;  %v20597_v60 = vunpack.i.h.bf16 %v14551_v19 }
 0x4a5   : > { %11723 = vmatmul.msk.f32.gmra.mxu1 %vm2788_vm1, %v15129_v32 }
 0x4a7   : > { %11750 = vmatmul.msk.f32.gmra.mxu3 %vm2788_vm1, %v15096_v61 }
 0x4a8   : > { %11764 = vmatmul.msk.f32.vlgmr.msrb.gmra.mxu2 %vm2788_vm1, %v15234_v10 }
 0x4a9   : > { %11798 = vmatpush.msk.msrb.mxu2 %vm2798_vm13, %v4420_v17  ;;  %v3225_v39 = vpop.f32.mrf.mxu3  ;;  %v3048_v50 = vpop.f32.mrf.mxu0 }
 0x4aa   : > { %v3205_v53 = vpop.f32.mrf.mxu2  ;;  %v15251_v58 = vadd.f32 %v3225_v39, %v15029_v7  ;;  %v15253_v4 = vpop.f32.mrf.mxu1  ;;  %v4070_v39 = vsel %vm1273_vm9, %v14484_v1, %v20595_v42  ;;  %v20598_v1 = vunpack.i.h.bf16 %v14482_v27  ;;  %v15301_v27 = vld [vmem:[%s20226_s3 + $0x70] sm:$0xf] }
 0x4ab   : > { %4479 = vmatpush.msrb.mxu2 %v4412_v8  ;;  %v15255_v31 = vadd.f32 %v3205_v53, %v2944_v59  ;;  %v15260_v17 = vpop.permute.xlu1 %5523  ;;  %v15267_v8 = vld [vmem:[%s20226_s3 + $0x68] sm:$0xff]  ;;  %v4063_v53 = vsel %vm1273_vm9, %v12399_v47, %v20597_v60  ;;  %v20600_v60 = vld [vmem:[#allocation21_spill] sm:$0xff] }
 0x4ac   : > { %20594 = vst [vmem:[#allocation14_spill] sm:$0xff] %v15251_v58  ;;  %11741 = vmatmul.msk.f32.vlgmr.msrb.gmra.mxu0 %vm2788_vm1, %v15062_v35 }
 0x4ad   : > { %20596 = vst [vmem:[#allocation16_spill] sm:$0xff] %v15260_v17  ;;  %11775 = vmatpush.msk.msrb.mxu0 %vm2798_vm13, %v4071_v54  ;;  %11737 = vmatmul.msk.f32.vlgmr.msrb.gmra.mxu1 %vm2788_vm1, %v15062_v35  ;;  %v4062_v54 = vsel %vm1273_vm9, %v20598_v1, %v12399_v47  ;;  %v20279_v17 = vunpack.i.l.bf16 %v20600_v60 }
 0x4ae   : > { %11771 = vmatpush.msk.msrb.mxu1 %vm2798_vm13, %v4070_v39 }
 0x4af   : > { %11751 = vmatmul.msk.f32.gmra.mxu3 %vm2788_vm1, %v15129_v32  ;;  %4230 = vmatpush.msrb.mxu0 %v4063_v53 }
 0x4b0   : > { %11765 = vmatmul.msk.f32.gmra.mxu2 %vm2788_vm1, %v15267_v8  ;;  %4204 = vmatpush.msrb.mxu1 %v4062_v54 }
 0x4b1   : > { %v3228_v7 = vpop.f32.mrf.mxu3  ;;  %v15286_v59 = vpop.f32.mrf.mxu0 }
 0x4b2   : > { %v15289_v6 = vadd.f32 %v3228_v7, %v15051_v29  ;;  %v3303_v42 = vpop.f32.mrf.mxu2  ;;  %v15291_v39 = vpop.f32.mrf.mxu1  ;;  %v20601_v29 = vld [vmem:[#allocation19_spill] sm:$0xff] }
 0x4b3   : > { %v15293_v19 = vadd.f32 %v3303_v42, %v3042_v24  ;;  %v4421_v47 = vsel %vm1382_vm10, %v20592_v13, %v20601_v29  ;;  %v15308_v53 = vpop.permute.xlu1 %5850  ;;  %v4413_v24 = vsel %vm1382_vm10, %v12345_v38, %v20279_v17 }
 0x4b4   : > { %20599 = vst [vmem:[#allocation13_spill] sm:$0xff] %v15289_v6  ;;  %11742 = vmatmul.msk.f32.gmra.mxu0 %vm2788_vm1, %v15096_v61 }
 0x4b5   : > { %11738 = vmatmul.msk.f32.gmra.mxu1 %vm2788_vm1, %v15096_v61  ;;  %20602 = vst [vmem:[#allocation25_spill] sm:$0xff] %v15308_v53 }
 0x4b7   : > { %11768 = vmatmul.msk.f32.vlgmr.msrb.gmra.mxu3 %vm2788_vm1, %v15234_v10 }
 0x4b8   : > { %11766 = vmatmul.msk.f32.gmra.mxu2 %vm2788_vm1, %v15301_v27  ;;  %11802 = vmatpush.msk.msrb.mxu3 %vm2798_vm13, %v4421_v47  ;;  %v20605_v47 = vld [vmem:[#allocation28_spill] sm:$0xff] }
 0x4b9   : > { %v3231_v1 = vpop.f32.mrf.mxu3  ;;  %v15318_v54 = vpop.f32.mrf.mxu0  ;;  %v12405_v6 = vunpack.i.h.bf16 %v20605_v47  ;;  %v12404_v58 = vunpack.i.l.bf16 %v20605_v47 }
 0x4ba   : > { %4505 = vmatpush.msrb.mxu3 %v4413_v24  ;;  %v15321_v13 = vadd.f32 %v3231_v1, %v15075_v57  ;;  %v3306_v7 = vpop.f32.mrf.mxu2  ;;  %v15323_v42 = vpop.f32.mrf.mxu1  ;;  %v20606_v57 = vld [vmem:[#allocation24_spill] sm:$0xff]  ;;  %v3096_v24 = vadd.f32 %v15117_v20, %v14990_v33  ;;  %v3099_v20 = vadd.f32 %v15145_v26, %v15031_v9  ;;  %v3102_v9 = vadd.f32 %v15167_v46, %v15055_v28 }
 0x4bb   : > { %20604 = vst [vmem:[#allocation19_spill] sm:$0xff] %v15323_v42  ;;  %v15325_v53 = vadd.f32 %v3306_v7, %v3045_v51  ;;  %v4424_v38 = vsel %vm1382_vm10, %v20606_v57, %v14610_v2  ;;  %v4058_v51 = vpop.permute.xlu1 %4057  ;;  %v4416_v1 = vsel %vm1382_vm10, %v12404_v58, %v12405_v6  ;;  %v15406_v28 = vld [vmem:[%s20226_s3 + $0x78] sm:$0xff]  ;;  %v15412_v46 = vpop.permute.xlu0 %4410 }
 0x4bc   : > { %20603 = vst [vmem:[#allocation21_spill] sm:$0xff] %v15321_v13  ;;  %11743 = vmatmul.msk.f32.gmra.mxu0 %vm2788_vm1, %v15129_v32  ;;  %v4074_v33 = vsel %vm1273_vm9, %v14732_v34, %v4058_v51 }
 0x4bd   : > { %11739 = vmatmul.msk.f32.gmra.mxu1 %vm2788_vm1, %v15129_v32 }
 0x4bf   : > { %11769 = vmatmul.msk.f32.gmra.mxu3 %vm2788_vm1, %v15267_v8 }
 0x4c0   : > { %11780 = vmatmul.msk.f32.vlgmr.msra.gmra.mxu2 %vm2788_vm1, %v15234_v10 }
 0x4c1   : > { %11814 = vmatpush.msk.msra.mxu2 %vm2798_vm13, %v4424_v38  ;;  %v3421_v7 = vpop.f32.mrf.mxu3  ;;  %v3179_v17 = vpop.f32.mrf.mxu0 }
 0x4c2   : > { %v3309_v13 = vpop.f32.mrf.mxu2  ;;  %v15346_v42 = vadd.f32 %v3421_v7, %v3096_v24  ;;  %v15348_v12 = vpop.f32.mrf.mxu1 }
 0x4c3   : > { %4583 = vmatpush.msra.mxu2 %v4416_v1  ;;  %v15350_v21 = vadd.f32 %v3309_v13, %v3048_v50  ;;  %v20608_v50 = vunpack.i.h.bf16 %v14667_v22  ;;  %v20282_v1 = vunpack.i.l.bf16 %v14724_v15  ;;  %v20611_v22 = vld [vmem:[#allocation31_spill] sm:$0xff] }
 0x4c4   : > { %20607 = vst [vmem:[#allocation28_spill] sm:$0xff] %v15346_v42  ;;  %11760 = vmatmul.msk.f32.vlgmr.msra.gmra.mxu0 %vm2788_vm1, %v15234_v10 }
 0x4c5   : > { %11791 = vmatpush.msk.msra.mxu0 %vm2798_vm13, %v4058_v51  ;;  %11753 = vmatmul.msk.f32.vlgmr.msra.gmra.mxu1 %vm2788_vm1, %v15062_v35  ;;  %v4066_v34 = vsel %vm1273_vm9, %v20608_v50, %v14753_v16  ;;  %v4417_v26 = vsel %vm1382_vm10, %v12405_v6, %v20282_v1  ;;  %v3200_v6 = vadd.f32 %v15200_v14, %v15086_v3  ;;  %v20617_v3 = vld [vmem:[#allocation23_spill] sm:$0xff] }
 0x4c6   : > { %11787 = vmatpush.msk.msra.mxu1 %vm2798_vm13, %v4074_v33  ;;  %v4423_v14 = vsel %vm1382_vm10, %v20617_v3, %v20606_v57 }
 0x4c7   : > { %11770 = vmatmul.msk.f32.gmra.mxu3 %vm2788_vm1, %v15301_v27  ;;  %4334 = vmatpush.msra.mxu0 %v14753_v16  ;;  %v4425_v16 = vsel %vm1382_vm10, %v14610_v2, %v20611_v22 }
 0x4c8   : > { %11781 = vmatmul.msk.f32.gmra.mxu2 %vm2788_vm1, %v15267_v8  ;;  %4308 = vmatpush.msra.mxu1 %v4066_v34  ;;  %v3180_v34 = vadd.f32 %v3179_v17, %v15172_v36  ;;  %v15437_v36 = vld [vmem:[%s20226_s3 + $0x80] sm:$0xff]  ;;  %v4422_v17 = vsel %vm1382_vm10, %v20601_v29, %v20617_v3  ;;  %v20618_v29 = vunpack.i.l.bf16 %v20600_v60 }
 0x4c9   : > { %v3424_v35 = vpop.f32.mrf.mxu3  ;;  %v3277_v13 = vpop.f32.mrf.mxu0 }
 0x4ca   : > { %v15371_v38 = vadd.f32 %v3424_v35, %v3099_v20  ;;  %v15373_v51 = vpop.f32.mrf.mxu2  ;;  %v15375_v24 = vpop.f32.mrf.mxu1 }
 0x4cb   : > { %20610 = vst [vmem:[#allocation57_spill] sm:$0xff] %v15375_v24 }
 0x4cc   : > { %20609 = vst [vmem:[#allocation24_spill] sm:$0xff] %v15371_v38  ;;  %11761 = vmatmul.msk.f32.gmra.mxu0 %vm2788_vm1, %v15267_v8 }
 0x4cd   : > { %11754 = vmatmul.msk.f32.gmra.mxu1 %vm2788_vm1, %v15096_v61 }
 0x4cf   : > { %11784 = vmatmul.msk.f32.vlgmr.msra.gmra.mxu3 %vm2788_vm1, %v15234_v10 }
 0x4d0   : > { %11782 = vmatmul.msk.f32.gmra.mxu2 %vm2788_vm1, %v15301_v27  ;;  %11818 = vmatpush.msk.msra.mxu3 %vm2798_vm13, %v4425_v16  ;;  %v20614_v16 = vld [vmem:[#allocation33_spill] sm:$0xff] }
 0x4d1   : > { %v3427_v61 = vpop.f32.mrf.mxu3  ;;  %v3280_v7 = vpop.f32.mrf.mxu0 }
 0x4d2   : > { %4609 = vmatpush.msra.mxu3 %v4417_v26  ;;  %v15395_v33 = vadd.f32 %v3427_v61, %v3102_v9  ;;  %v15397_v2 = vpop.f32.mrf.mxu2  ;;  %v15399_v50 = vpop.f32.mrf.mxu1  ;;  %v12375_v61 = vunpack.i.h.bf16 %v20600_v60  ;;  %v20620_v60 = vld [vmem:[#allocation15_spill] sm:$0xff] }
 0x4d3   : > { %20613 = vst [vmem:[#allocation58_spill] sm:$0xff] %v15399_v50  ;;  %v12435_v50 = vunpack.i.h.bf16 %v14724_v15 }
 0x4d4   : > { %20612 = vst [vmem:[#allocation31_spill] sm:$0xff] %v15395_v33  ;;  %11762 = vmatmul.msk.f32.gmra.mxu0 %vm2788_vm1, %v15301_v27  ;;  %v4415_v57 = vsel %vm1382_vm10, %v12375_v61, %v12404_v58 }
 0x4d5   : > { %11755 = vmatmul.msk.f32.gmra.mxu1 %vm2788_vm1, %v15129_v32 }
 0x4d7   : > { %11785 = vmatmul.msk.f32.gmra.mxu3 %vm2788_vm1, %v15267_v8 }
 0x4d8   : > { %11799 = vmatmul.msk.f32.vlgmr.msrb.gmra.mxu2 %vm2788_vm1, %v15406_v28 }
 0x4d9   : > { %11830 = vmatpush.msk.msrb.mxu2 %vm2798_vm13, %v15412_v46  ;;  %v3525_v20 = vpop.f32.mrf.mxu3  ;;  %v3283_v35 = vpop.f32.mrf.mxu0 }
 0x4da   : > { %v3505_v32 = vpop.f32.mrf.mxu2  ;;  %v15422_v9 = vadd.f32 %v3525_v20, %v3200_v6  ;;  %v15424_v26 = vpop.f32.mrf.mxu1  ;;  %v4414_v6 = vsel %vm1382_vm10, %v20618_v29, %v12375_v61  ;;  %v3203_v20 = vadd.f32 %v15225_v23, %v15133_v44  ;;  %v20283_v61 = vunpack.i.h.bf16 %v20620_v60  ;;  %v15476_v44 = vld [vmem:[%s20226_s3 + $0x88] sm:$0xf]  ;;  %v20622_v23 = vld [vmem:[#allocation12_spill] sm:$0xff] }
 0x4db   : > { %4687 = vmatpush.msrb.mxu2 %v20614_v16  ;;  %20616 = vst [vmem:[#allocation59_spill] sm:$0xff] %v15424_v26  ;;  %v15427_v1 = vadd.f32 %v3505_v32, %v3180_v34  ;;  %v15456_v34 = vpop.permute.xlu2 %4805  ;;  %v3278_v32 = vadd.f32 %v3277_v13, %v15202_v45  ;;  %v12349_v29 = vunpack.i.l.bf16 %v20620_v60  ;;  %v20621_v45 = vld [vmem:[#allocation17_spill] sm:$0xff] }
 0x4dc   : > { %20615 = vst [vmem:[#allocation33_spill] sm:$0xff] %v15422_v9  ;;  %11776 = vmatmul.msk.f32.vlgmr.msrb.gmra.mxu0 %vm2788_vm1, %v15234_v10  ;;  %v4819_v13 = vsel %vm4809_vm3, %v20622_v23, %v20621_v45 }
 0x4dd   : > { %11810 = vmatpush.msk.msrb.mxu0 %vm2798_vm13, %v4423_v14  ;;  %11772 = vmatmul.msk.f32.vlgmr.msrb.gmra.mxu1 %vm2788_vm1, %v15234_v10 }
 0x4de   : > { %11806 = vmatpush.msk.msrb.mxu1 %vm2798_vm13, %v4422_v17 }
 0x4df   : > { %11786 = vmatmul.msk.f32.gmra.mxu3 %vm2788_vm1, %v15301_v27  ;;  %4557 = vmatpush.msrb.mxu0 %v4415_v57 }
 0x4e0   : > { %11800 = vmatmul.msk.f32.gmra.mxu2 %vm2788_vm1, %v15437_v36  ;;  %4531 = vmatpush.msrb.mxu1 %v4414_v6  ;;  %v4810_v6 = vsel %vm4809_vm3, %v12349_v29, %v20283_v61  ;;  %v20624_v29 = vld [vmem:[#allocation27_spill] sm:$0xff] }
 0x4e1   : > { %v15461_v47 = vpop.f32.mrf.mxu0 }
 0x4e2   : > { %v3528_v3 = vpop.f32.mrf.mxu3  ;;  %v15465_v17 = vpop.f32.mrf.mxu1 }
 0x4e3   : > { %v15463_v58 = vadd.f32 %v3528_v3, %v3203_v20  ;;  %v3603_v14 = vpop.f32.mrf.mxu2  ;;  %v3281_v20 = vadd.f32 %v3280_v7, %v15227_v49  ;;  %v15501_v33 = vpop.permute.xlu2 %5165  ;;  %v20626_v7 = vld [vmem:[#allocation26_spill] sm:$0xff] }
 0x4e4   : > { %v15467_v57 = vadd.f32 %v3603_v14, %v3278_v32  ;;  %11777 = vmatmul.msk.f32.gmra.mxu0 %vm2788_vm1, %v15267_v8 }
 0x4e5   : > { %20619 = vst [vmem:[#allocation23_spill] sm:$0xff] %v15463_v58  ;;  %11773 = vmatmul.msk.f32.gmra.mxu1 %vm2788_vm1, %v15267_v8 }
 0x4e7   : > { %11803 = vmatmul.msk.f32.vlgmr.msrb.gmra.mxu3 %vm2788_vm1, %v15406_v28 }
 0x4e8   : > { %11801 = vmatmul.msk.f32.gmra.mxu2 %vm2788_vm1, %v15476_v44  ;;  %11837 = vmatpush.msk.msrb.mxu3 %vm2798_vm13, %v4819_v13  ;;  %v12409_v13 = vunpack.i.l.bf16 %v20624_v29 }
 0x4e9   : > { %v15492_v3 = vpop.f32.mrf.mxu0 }
 0x4ea   : > { %4879 = vmatpush.msrb.mxu3 %v4810_v6  ;;  %v3531_v32 = vpop.f32.mrf.mxu3  ;;  %v15497_v58 = vpop.f32.mrf.mxu1  ;;  %v20627_v6 = vld [vmem:[#allocation22_spill] sm:$0xff] }
 0x4eb   : > { %v15495_v14 = vadd.f32 %v3531_v32, %v15255_v31  ;;  %v3606_v23 = vpop.f32.mrf.mxu2  ;;  %v20625_v31 = vld [vmem:[#allocation20_spill] sm:$0xff]  ;;  %v3284_v32 = vadd.f32 %v3283_v35, %v15253_v4  ;;  %v4427_v4 = vsel %vm1382_vm10, %v14797_v43, %v15412_v46  ;;  %v4426_v35 = vsel %vm1382_vm10, %v20611_v22, %v14797_v43 }
 0x4ec   : > { %v15499_v9 = vadd.f32 %v3606_v23, %v3281_v20  ;;  %11778 = vmatmul.msk.f32.gmra.mxu0 %vm2788_vm1, %v15301_v27  ;;  %v20285_v49 = vunpack.i.h.bf16 %v20625_v31  ;;  %v4822_v20 = vsel %vm4809_vm3, %v20627_v6, %v20626_v7  ;;  %v20629_v43 = vunpack.i.l.bf16 %v14724_v15  ;;  %v20631_v15 = vld [vmem:[#allocation29_spill] sm:$0xff] }
 0x4ed   : > { %20623 = vst [vmem:[#allocation15_spill] sm:$0xff] %v15495_v14  ;;  %11774 = vmatmul.msk.f32.gmra.mxu1 %vm2788_vm1, %v15301_v27 }
 0x4ee   : > { %v4813_v23 = vsel %vm4809_vm3, %v20285_v49, %v12409_v13  ;;  %v4418_v22 = vsel %vm1382_vm10, %v20629_v43, %v12435_v50 }
 0x4ef   : > { %11804 = vmatmul.msk.f32.gmra.mxu3 %vm2788_vm1, %v15437_v36 }
 0x4f0   : > { %11815 = vmatmul.msk.f32.vlgmr.msra.gmra.mxu2 %vm2788_vm1, %v15406_v28 }
 0x4f1   : > { %11849 = vmatpush.msk.msra.mxu2 %vm2798_vm13, %v4822_v20  ;;  %v15521_v14 = vpop.f32.mrf.mxu0 }
 0x4f2   : > { %v3629_v61 = vpop.f32.mrf.mxu3  ;;  %v15526_v42 = vpop.f32.mrf.mxu1 }
 0x4f3   : > { %4957 = vmatpush.msra.mxu2 %v4813_v23  ;;  %v3609_v38 = vpop.f32.mrf.mxu2  ;;  %v15524_v26 = vadd.f32 %v3629_v61, %v15293_v19  ;;  %v15542_v19 = vpop.permute.xlu2 %5525 }
 0x4f4   : > { %v15529_v24 = vadd.f32 %v3609_v38, %v3284_v32  ;;  %11792 = vmatmul.msk.f32.vlgmr.msra.gmra.mxu0 %vm2788_vm1, %v15234_v10  ;;  %v4419_v38 = vsel %vm1382_vm10, %v12435_v50, %v20614_v16  ;;  %v20284_v16 = vunpack.i.h.bf16 %v20624_v29  ;;  %v4823_v50 = vsel %vm4809_vm3, %v20626_v7, %v20631_v15 }
 0x4f5   : > { %20628 = vst [vmem:[#allocation17_spill] sm:$0xff] %v15524_v26  ;;  %11826 = vmatpush.msk.msra.mxu0 %vm2798_vm13, %v4427_v4  ;;  %11788 = vmatmul.msk.f32.vlgmr.msra.gmra.mxu1 %vm2788_vm1, %v15234_v10  ;;  %v20641_v26 = vld [vmem:[#allocation30_spill] sm:$0xff] }
 0x4f6   : > { %11822 = vmatpush.msk.msra.mxu1 %vm2798_vm13, %v4426_v35  ;;  %v4814_v23 = vsel %vm4809_vm3, %v12409_v13, %v20284_v16  ;;  %v3174_v13 = vadd.f32 %v15286_v59, %v15098_v63 }
 0x4f7   : > { %11805 = vmatmul.msk.f32.gmra.mxu3 %vm2788_vm1, %v15476_v44  ;;  %4661 = vmatpush.msra.mxu0 %v4419_v38 }
 0x4f8   : > { %11816 = vmatmul.msk.f32.gmra.mxu2 %vm2788_vm1, %v15437_v36  ;;  %4635 = vmatpush.msra.mxu1 %v4418_v22  ;;  %v20633_v22 = vld [vmem:[#allocation32_spill] sm:$0xff] }
 0x4f9   : > { %v15554_v46 = vpop.f32.mrf.mxu0 }
 0x4fa   : > { %v3632_v10 = vpop.f32.mrf.mxu3  ;;  %v15561_v32 = vpop.f32.mrf.mxu1 }
 0x4fb   : > { %v15557_v61 = vadd.f32 %v3632_v10, %v15325_v53  ;;  %v15559_v20 = vpop.f32.mrf.mxu2  ;;  %v12484_v53 = vpop.permute.xlu2 %12483  ;;  %v20634_v10 = vld [vmem:[#allocation35_spill] sm:$0xff] }
 0x4fc   : > { %11793 = vmatmul.msk.f32.gmra.mxu0 %vm2788_vm1, %v15267_v8  ;;  %v12485_v43 = vunpack.i.l.bf16 %v12484_v53 }
 0x4fd   : > { %20630 = vst [vmem:[#allocation12_spill] sm:$0xff] %v15557_v61  ;;  %11789 = vmatmul.msk.f32.gmra.mxu1 %vm2788_vm1, %v15267_v8 }
 0x4ff   : > { %11819 = vmatmul.msk.f32.vlgmr.msra.gmra.mxu3 %vm2788_vm1, %v15406_v28 }
 0x500   : > { %11817 = vmatmul.msk.f32.gmra.mxu2 %vm2788_vm1, %v15476_v44  ;;  %11853 = vmatpush.msk.msra.mxu3 %vm2798_vm13, %v4823_v50  ;;  %v4826_v50 = vsel %vm4809_vm3, %v20634_v10, %v15456_v34 }
 0x501   : > { %v15579_v8 = vpop.f32.mrf.mxu0 }
 0x502   : > { %4983 = vmatpush.msra.mxu3 %v4814_v23  ;;  %v3635_v4 = vpop.f32.mrf.mxu3  ;;  %v15586_v38 = vpop.f32.mrf.mxu1  ;;  %v3641_v23 = vadd.f32 %v15373_v51, %v3174_v13  ;;  %v20635_v51 = vld [vmem:[#allocation18_spill] sm:$0xff] }
 0x503   : > { %v15582_v35 = vadd.f32 %v3635_v4, %v15350_v21  ;;  %v15584_v7 = vpop.f32.mrf.mxu2  ;;  %v20286_v21 = vunpack.i.h.bf16 %v20633_v22  ;;  %v12379_v4 = vunpack.i.l.bf16 %v20625_v31  ;;  %v4821_v13 = vsel %vm4809_vm3, %v20635_v51, %v20627_v6 }
 0x504   : > { %11794 = vmatmul.msk.f32.gmra.mxu0 %vm2788_vm1, %v15301_v27  ;;  %v20636_v6 = vunpack.i.h.bf16 %v20625_v31 }
 0x505   : > { %20632 = vst [vmem:[#allocation27_spill] sm:$0xff] %v15582_v35  ;;  %11790 = vmatmul.msk.f32.gmra.mxu1 %vm2788_vm1, %v15301_v27  ;;  %v4817_v63 = vsel %vm4809_vm3, %v20286_v21, %v12485_v43 }
 0x507   : > { %11820 = vmatmul.msk.f32.gmra.mxu3 %vm2788_vm1, %v15437_v36 }
 0x508   : > { %11831 = vmatmul.msk.f32.vlgmr.msrb.gmra.mxu2 %vm2788_vm1, %v15406_v28 }
 0x509   : > { %11865 = vmatpush.msk.msrb.mxu2 %vm2798_vm13, %v4826_v50  ;;  %v15607_v27 = vpop.f32.mrf.mxu0  ;;  %v4820_v50 = vsel %vm4809_vm3, %v20621_v45, %v20635_v51  ;;  %v20637_v45 = vunpack.i.h.bf16 %v20620_v60  ;;  %v12486_v60 = vunpack.i.h.bf16 %v12484_v53 }
 0x50a   : > { %v3853_v59 = vpop.f32.mrf.mxu3  ;;  %v15614_v35 = vpop.f32.mrf.mxu1 }
 0x50b   : > { %5061 = vmatpush.msrb.mxu2 %v4817_v63  ;;  %v15610_v16 = vpop.f32.mrf.mxu2  ;;  %v15612_v49 = vadd.f32 %v3853_v59, %v3641_v23  ;;  %v3177_v23 = vadd.f32 %v15318_v54, %v15140_v40  ;;  %v4812_v63 = vsel %vm4809_vm3, %v12379_v4, %v20636_v6  ;;  %v4811_v59 = vsel %vm4809_vm3, %v20637_v45, %v12379_v4  ;;  %v4808_v6 = vpop.permute.xlu0 %4807 }
 0x50c   : > { %11811 = vmatmul.msk.f32.vlgmr.msrb.gmra.mxu0 %vm2788_vm1, %v15406_v28  ;;  %v4818_v4 = vsel %vm4809_vm3, %v12485_v43, %v12486_v60  ;;  %v12450_v43 = vunpack.i.h.bf16 %v14827_v48 }
 0x50d   : > { %11845 = vmatpush.msk.msrb.mxu0 %vm2798_vm13, %v4821_v13  ;;  %11807 = vmatmul.msk.f32.vlgmr.msrb.gmra.mxu1 %vm2788_vm1, %v15406_v28  ;;  %v3650_v51 = vadd.f32 %v15397_v2, %v3177_v23  ;;  %v4827_v2 = vsel %vm4809_vm3, %v15456_v34, %v4808_v6  ;;  %v15674_v34 = vld [vmem:[%s20226_s3 + $0x98] sm:$0xff] }
 0x50e   : > { %11841 = vmatpush.msk.msrb.mxu1 %vm2798_vm13, %v4820_v50 }
 0x50f   : > { %11821 = vmatmul.msk.f32.gmra.mxu3 %vm2788_vm1, %v15476_v44  ;;  %4931 = vmatpush.msrb.mxu0 %v4812_v63  ;;  %v15650_v63 = vld [vmem:[%s20226_s3 + $0x90] sm:$0xff] }
 0x510   : > { %11832 = vmatmul.msk.f32.gmra.mxu2 %vm2788_vm1, %v15437_v36  ;;  %4905 = vmatpush.msrb.mxu1 %v4811_v59 }
 0x511   : > { %v3801_v54 = vpop.f32.mrf.mxu0 }
 0x512   : > { %v3856_v40 = vpop.f32.mrf.mxu3  ;;  %v15645_v31 = vpop.f32.mrf.mxu1 }
 0x513   : > { %v15641_v13 = vadd.f32 %v3856_v40, %v3650_v51  ;;  %v15643_v50 = vpop.f32.mrf.mxu2  ;;  %v20287_v40 = vunpack.i.l.bf16 %v14827_v48 }
 0x514   : > { %11812 = vmatmul.msk.f32.gmra.mxu0 %vm2788_vm1, %v15437_v36 }
 0x515   : > { %20638 = vst [vmem:[#allocation20_spill] sm:$0xff] %v15641_v13  ;;  %11808 = vmatmul.msk.f32.gmra.mxu1 %vm2788_vm1, %v15437_v36  ;;  %v5172_v6 = vsel %vm5169_vm6, %v20287_v40, %v12450_v43  ;;  %v4825_v40 = vsel %vm4809_vm3, %v20641_v26, %v20634_v10  ;;  %v20642_v10 = vunpack.i.h.bf16 %v20633_v22 }
 0x517   : > { %11838 = vmatmul.msk.f32.vlgmr.msrb.gmra.mxu3 %vm2788_vm1, %v15650_v63 }
 0x518   : > { %11833 = vmatmul.msk.f32.gmra.mxu2 %vm2788_vm1, %v15476_v44  ;;  %11869 = vmatpush.msk.msrb.mxu3 %vm2798_vm13, %v4827_v2 }
 0x519   : > { %v3804_v23 = vpop.f32.mrf.mxu0 }
 0x51a   : > { %5087 = vmatpush.msrb.mxu3 %v4818_v4  ;;  %v3859_v53 = vpop.f32.mrf.mxu3  ;;  %v15669_v51 = vpop.f32.mrf.mxu1  ;;  %v12439_v4 = vunpack.i.l.bf16 %v20633_v22 }
 0x51b   : > { %v15665_v45 = vadd.f32 %v3859_v53, %v15427_v1  ;;  %v15667_v59 = vpop.f32.mrf.mxu2  ;;  %v5181_v1 = vsel %vm5169_vm6, %v14848_v25, %v14815_v5 }
 0x51c   : > { %11813 = vmatmul.msk.f32.gmra.mxu0 %vm2788_vm1, %v15476_v44 }
 0x51d   : > { %20639 = vst [vmem:[#allocation26_spill] sm:$0xff] %v15665_v45  ;;  %11809 = vmatmul.msk.f32.gmra.mxu1 %vm2788_vm1, %v15476_v44 }
 0x51f   : > { %11839 = vmatmul.msk.f32.gmra.mxu3 %vm2788_vm1, %v15674_v34 }
 0x520   : > { %11850 = vmatmul.msk.f32.vlgmr.msra.gmra.mxu2 %vm2788_vm1, %v15650_v63 }
 0x521   : > { %11884 = vmatpush.msk.msra.mxu2 %vm2798_vm13, %v5181_v1  ;;  %v3807_v2 = vpop.f32.mrf.mxu0  ;;  %v15704_v1 = vld [vmem:[%s20226_s3 + $0xa0] sm:$0xf] }
 0x522   : > { %v3957_v60 = vpop.f32.mrf.mxu3  ;;  %v15699_v61 = vpop.f32.mrf.mxu1 }
 0x523   : > { %5291 = vmatpush.msra.mxu2 %v5172_v6  ;;  %v15694_v53 = vpop.f32.mrf.mxu2  ;;  %v15697_v21 = vadd.f32 %v3957_v60, %v15467_v57  ;;  %v4824_v6 = vsel %vm4809_vm3, %v20631_v15, %v20641_v26  ;;  %v3122_v57 = vadd.f32 %v15170_v62, %v14911_v56  ;;  %v4816_v60 = vsel %vm4809_vm3, %v12439_v4, %v20642_v10 }
 0x524   : > { %11827 = vmatmul.msk.f32.vlgmr.msra.gmra.mxu0 %vm2788_vm1, %v15406_v28  ;;  %v20643_v56 = vunpack.i.h.bf16 %v20624_v29  ;;  %v3125_v29 = vadd.f32 %v15198_v18, %v14944_v0 }
 0x525   : > { %20640 = vst [vmem:[#allocation22_spill] sm:$0xff] %v15697_v21  ;;  %11861 = vmatpush.msk.msra.mxu0 %vm2798_vm13, %v4825_v40  ;;  %11823 = vmatmul.msk.f32.vlgmr.msra.gmra.mxu1 %vm2788_vm1, %v15406_v28  ;;  %v3639_v21 = vadd.f32 %v15465_v17, %v3122_v57  ;;  %v20645_v57 = vld [vmem:[#allocation34_spill] sm:$0xff] }
 0x526   : > { %11857 = vmatpush.msk.msra.mxu1 %vm2798_vm13, %v4824_v6  ;;  %v4815_v62 = vsel %vm4809_vm3, %v20643_v56, %v12439_v4  ;;  %v12454_v10 = vunpack.i.l.bf16 %v20645_v57  ;;  %v3148_v56 = vadd.f32 %v15291_v39, %v14971_v30  ;;  %v3657_v30 = vadd.f32 %v15526_v42, %v15223_v41 }
 0x527   : > { %11840 = vmatmul.msk.f32.gmra.mxu3 %vm2788_vm1, %v15704_v1  ;;  %5035 = vmatpush.msra.mxu0 %v4816_v60  ;;  %v3993_v28 = vadd.f32 %v3801_v54, %v3639_v21  ;;  %v3648_v21 = vadd.f32 %v15497_v58, %v3125_v29 }
 0x528   : > { %11851 = vmatmul.msk.f32.gmra.mxu2 %vm2788_vm1, %v15674_v34  ;;  %5009 = vmatpush.msra.mxu1 %v4815_v62  ;;  %v5173_v0 = vsel %vm5169_vm6, %v12450_v43, %v12454_v10  ;;  %v12459_v43 = vunpack.i.l.bf16 %v14966_v11  ;;  %v5185_v62 = vsel %vm5169_vm6, %v14839_v37, %v15077_v55 }
 0x529   : > { %v15731_v15 = vpop.f32.mrf.mxu0  ;;  %v4002_v18 = vadd.f32 %v3804_v23, %v3648_v21  ;;  %v12460_v23 = vunpack.i.h.bf16 %v14966_v11 }
 0x52a   : > { %v3960_v26 = vpop.f32.mrf.mxu3  ;;  %v15736_v6 = vpop.f32.mrf.mxu1 }
 0x52b   : > { %v15734_v40 = vadd.f32 %v3960_v26, %v15499_v9  ;;  %v4154_v22 = vpop.f32.mrf.mxu2  ;;  %v5182_v9 = vsel %vm5169_vm6, %v14815_v5, %v15039_v52 }
 0x52c   : > { %v15738_v17 = vadd.f32 %v4154_v22, %v3993_v28  ;;  %11828 = vmatmul.msk.f32.gmra.mxu0 %vm2788_vm1, %v15437_v36  ;;  %v20647_v22 = vld [vmem:[#allocation45_spill] sm:$0xff] }
 0x52d   : > { %20644 = vst [vmem:[#allocation29_spill] sm:$0xff] %v15734_v40  ;;  %11824 = vmatmul.msk.f32.gmra.mxu1 %vm2788_vm1, %v15437_v36  ;;  %v12445_v29 = vunpack.i.h.bf16 %v20647_v22 }
 0x52f   : > { %11854 = vmatmul.msk.f32.vlgmr.msra.gmra.mxu3 %vm2788_vm1, %v15650_v63 }
 0x530   : > { %11852 = vmatmul.msk.f32.gmra.mxu2 %vm2788_vm1, %v15704_v1  ;;  %11888 = vmatpush.msk.msra.mxu3 %vm2798_vm13, %v5182_v9 }
 0x531   : > { %v15759_v54 = vpop.f32.mrf.mxu0 }
 0x532   : > { %5317 = vmatpush.msra.mxu3 %v5173_v0  ;;  %v3963_v36 = vpop.f32.mrf.mxu3  ;;  %v15764_v60 = vpop.f32.mrf.mxu1 }
 0x533   : > { %v15762_v5 = vadd.f32 %v3963_v36, %v15529_v24  ;;  %v4157_v4 = vpop.f32.mrf.mxu2  ;;  %v3640_v24 = vadd.f32 %v15461_v47, %v3148_v56  ;;  %v5176_v47 = vsel %vm5169_vm6, %v12459_v43, %v12460_v23  ;;  %v20651_v36 = vld [vmem:[#allocation19_spill] sm:$0xff]  ;;  %v20652_v56 = vld [vmem:[#allocation36_spill] sm:$0xff] }
 0x534   : > { %v15766_v58 = vadd.f32 %v4157_v4, %v4002_v18  ;;  %11829 = vmatmul.msk.f32.gmra.mxu0 %vm2788_vm1, %v15476_v44  ;;  %v20650_v18 = vld [vmem:[#allocation49_spill] sm:$0xff] }
 0x535   : > { %20646 = vst [vmem:[#allocation32_spill] sm:$0xff] %v15762_v5  ;;  %11825 = vmatmul.msk.f32.gmra.mxu1 %vm2788_vm1, %v15476_v44  ;;  %v3994_v39 = vadd.f32 %v15559_v20, %v3640_v24  ;;  %v4011_v44 = vadd.f32 %v3807_v2, %v3657_v30  ;;  %v12444_v20 = vunpack.i.l.bf16 %v20647_v22  ;;  %v20649_v2 = vld [vmem:[#allocation48_spill] sm:$0xff]  ;;  %v3151_v4 = vadd.f32 %v20651_v36, %v20650_v18 }
 0x536   : > { %v5180_v0 = vsel %vm5169_vm6, %v20649_v2, %v14848_v25  ;;  %v5179_v24 = vsel %vm5169_vm6, %v20652_v56, %v20649_v2  ;;  %v20653_v25 = vunpack.i.l.bf16 %v14827_v48 }
 0x537   : > { %11855 = vmatmul.msk.f32.gmra.mxu3 %vm2788_vm1, %v15674_v34 }
 0x538   : > { %11866 = vmatmul.msk.f32.vlgmr.msrb.gmra.mxu2 %vm2788_vm1, %v15650_v63  ;;  %v5171_v30 = vsel %vm5169_vm6, %v12445_v29, %v20653_v25 }
 0x539   : > { %11900 = vmatpush.msk.msrb.mxu2 %vm2798_vm13, %v5185_v62  ;;  %v15791_v26 = vpop.f32.mrf.mxu0  ;;  %v3649_v62 = vadd.f32 %v15492_v3, %v3151_v4  ;;  %v20657_v4 = vld [vmem:[#allocation13_spill] sm:$0xff] }
 0x53a   : > { %v4180_v28 = vpop.f32.mrf.mxu3  ;;  %v15796_v42 = vpop.f32.mrf.mxu1  ;;  %v3652_v56 = vadd.f32 %v15586_v38, %v20657_v4 }
 0x53b   : > { %5395 = vmatpush.msrb.mxu2 %v5176_v47  ;;  %v4160_v9 = vpop.f32.mrf.mxu2  ;;  %v15794_v41 = vadd.f32 %v4180_v28, %v3994_v39  ;;  %20648 = vst [vmem:[#allocation35_spill] sm:$0xff] %v15796_v42  ;;  %v20654_v39 = vld [vmem:[#allocation14_spill] sm:$0xff]  ;;  %v5170_v47 = vsel %vm5169_vm6, %v12444_v20, %v12445_v29  ;;  %v15826_v28 = vpop.permute.xlu2 %12488  ;;  %v4003_v3 = vadd.f32 %v15584_v7, %v3649_v62 }
 0x53c   : > { %v15799_v21 = vadd.f32 %v4160_v9, %v4011_v44  ;;  %11846 = vmatmul.msk.f32.vlgmr.msrb.gmra.mxu0 %vm2788_vm1, %v15650_v63  ;;  %v3643_v44 = vadd.f32 %v15561_v32, %v20654_v39  ;;  %v12490_v36 = vunpack.i.l.bf16 %v15826_v28  ;;  %v20656_v29 = vld [vmem:[#allocation50_spill] sm:$0xff]  ;;  %v5186_v7 = vsel %vm5169_vm6, %v15077_v55, %v15501_v33 }
 0x53d   : > { %11880 = vmatpush.msk.msrb.mxu0 %vm2798_vm13, %v5180_v0  ;;  %11842 = vmatmul.msk.f32.vlgmr.msrb.gmra.mxu1 %vm2788_vm1, %v15650_v63  ;;  %v3154_v20 = vadd.f32 %v15348_v12, %v20656_v29  ;;  %v4006_v55 = vadd.f32 %v15759_v54, %v3652_v56  ;;  %v15876_v54 = vld [vmem:[%s20226_s3 + $0xa8] sm:$0xff] }
 0x53e   : > { %11876 = vmatpush.msk.msrb.mxu1 %vm2798_vm13, %v5179_v24  ;;  %v3997_v22 = vadd.f32 %v15731_v15, %v3643_v44  ;;  %v5177_v24 = vsel %vm5169_vm6, %v12460_v23, %v12490_v36  ;;  %v20659_v44 = vld [vmem:[#allocation51_spill] sm:$0xff]  ;;  %v20661_v23 = vld [vmem:[#allocation53_spill] sm:$0xff] }
 0x53f   : > { %11856 = vmatmul.msk.f32.gmra.mxu3 %vm2788_vm1, %v15704_v1  ;;  %5265 = vmatpush.msrb.mxu0 %v5171_v30  ;;  %v3658_v15 = vadd.f32 %v15521_v14, %v3154_v20  ;;  %v20663_v29 = vld [vmem:[#allocation43_spill] sm:$0xff] }
 0x540   : > { %11867 = vmatmul.msk.f32.gmra.mxu2 %vm2788_vm1, %v15674_v34  ;;  %5239 = vmatpush.msrb.mxu1 %v5170_v47  ;;  %v20660_v47 = vld [vmem:[#allocation57_spill] sm:$0xff]  ;;  %v20664_v20 = vld [vmem:[#allocation11_spill] sm:$0xff] }
 0x541   : > { %v15830_v48 = vpop.f32.mrf.mxu0  ;;  %v4012_v12 = vadd.f32 %v15610_v16, %v3658_v15  ;;  %v3252_v16 = vadd.f32 %v20660_v47, %v20659_v44  ;;  %v20665_v15 = vld [vmem:[#allocation21_spill] sm:$0xff]  ;;  %v12455_v44 = vunpack.i.h.bf16 %v20645_v57  ;;  %v20672_v57 = vld [vmem:[#allocation54_spill] sm:$0xff] }
 0x542   : > { %v4183_v9 = vpop.f32.mrf.mxu3  ;;  %v15834_v32 = vpop.f32.mrf.mxu1  ;;  %v3661_v4 = vadd.f32 %v15614_v35, %v20665_v15  ;;  %v15915_v15 = vld [vmem:[%s20226_s3 + $0xb0] sm:$0xff] }
 0x543   : > { %v15832_v2 = vadd.f32 %v4183_v9, %v4003_v3  ;;  %v4258_v0 = vpop.f32.mrf.mxu2  ;;  %20655 = vst [vmem:[#allocation18_spill] sm:$0xff] %v15834_v32  ;;  %v12465_v3 = vunpack.i.h.bf16 %v20661_v23  ;;  %v20662_v9 = vld [vmem:[#allocation41_spill] sm:$0xff] }
 0x544   : > { %v15836_v18 = vadd.f32 %v4258_v0, %v3997_v22  ;;  %11847 = vmatmul.msk.f32.gmra.mxu0 %vm2788_vm1, %v15674_v34  ;;  %v3644_v22 = vadd.f32 %v15554_v46, %v3252_v16  ;;  %v12469_v0 = vunpack.i.l.bf16 %v20662_v9  ;;  %v4015_v46 = vadd.f32 %v15791_v26, %v3661_v4  ;;  %v20669_v16 = vld [vmem:[#allocation52_spill] sm:$0xff] }
 0x545   : > { %11843 = vmatmul.msk.f32.gmra.mxu1 %vm2788_vm1, %v15674_v34 }
 0x546   : > { %v3998_v56 = vadd.f32 %v15643_v50, %v3644_v22  ;;  %v20668_v50 = vld [vmem:[#allocation39_spill] sm:$0xff]  ;;  %v20670_v22 = vld [vmem:[#allocation58_spill] sm:$0xff] }
 0x547   : > { %11870 = vmatmul.msk.f32.vlgmr.msrb.gmra.mxu3 %vm2788_vm1, %v15650_v63  ;;  %v5184_v26 = vsel %vm5169_vm6, %v20668_v50, %v14839_v37  ;;  %v5183_v4 = vsel %vm5169_vm6, %v15039_v52, %v20668_v50  ;;  %v5174_v52 = vsel %vm5169_vm6, %v12454_v10, %v12455_v44 }
 0x548   : > { %11868 = vmatmul.msk.f32.gmra.mxu2 %vm2788_vm1, %v15704_v1  ;;  %11904 = vmatpush.msk.msrb.mxu3 %vm2798_vm13, %v5186_v7  ;;  %v5540_v7 = vsel %vm5529_vm7, %v20664_v20, %v20663_v29 }
 0x549   : > { %v15861_v62 = vpop.f32.mrf.mxu0 }
 0x54a   : > { %5421 = vmatpush.msrb.mxu3 %v5177_v24  ;;  %v4186_v14 = vpop.f32.mrf.mxu3  ;;  %v15865_v30 = vpop.f32.mrf.mxu1 }
 0x54b   : > { %v15863_v25 = vadd.f32 %v4186_v14, %v4012_v12  ;;  %v4261_v38 = vpop.f32.mrf.mxu2  ;;  %20658 = vst [vmem:[#allocation30_spill] sm:$0xff] %v15865_v30  ;;  %v5531_v12 = vsel %vm5529_vm7, %v12465_v3, %v12469_v0 }
 0x54c   : > { %v15867_v39 = vadd.f32 %v4261_v38, %v4006_v55  ;;  %11848 = vmatmul.msk.f32.gmra.mxu0 %vm2788_vm1, %v15704_v1 }
 0x54d   : > { %11844 = vmatmul.msk.f32.gmra.mxu1 %vm2788_vm1, %v15704_v1 }
 0x54f   : > { %11871 = vmatmul.msk.f32.gmra.mxu3 %vm2788_vm1, %v15674_v34 }
 0x550   : > { %11885 = vmatmul.msk.f32.vlgmr.msra.gmra.mxu2 %vm2788_vm1, %v15876_v54 }
 0x551   : > { %11919 = vmatpush.msk.msra.mxu2 %vm2798_vm13, %v5540_v7  ;;  %v4134_v55 = vpop.f32.mrf.mxu0  ;;  %v3255_v7 = vadd.f32 %v20670_v22, %v20669_v16  ;;  %v20673_v16 = vld [vmem:[#allocation59_spill] sm:$0xff] }
 0x552   : > { %v4284_v24 = vpop.f32.mrf.mxu3  ;;  %v15900_v35 = vpop.f32.mrf.mxu1  ;;  %v3258_v10 = vadd.f32 %v20673_v16, %v20672_v57  ;;  %v20683_v57 = vld [vmem:[#allocation31_spill] sm:$0xff] }
 0x553   : > { %5625 = vmatpush.msra.mxu2 %v5531_v12  ;;  %v4264_v14 = vpop.f32.mrf.mxu2  ;;  %v15898_v38 = vadd.f32 %v4284_v24, %v3998_v56  ;;  %20666 = vst [vmem:[#allocation34_spill] sm:$0xff] %v15900_v35  ;;  %v3653_v37 = vadd.f32 %v15579_v8, %v3255_v7  ;;  %v5175_v56 = vsel %vm5169_vm6, %v12455_v44, %v12459_v43  ;;  %v20675_v7 = vld [vmem:[#allocation24_spill] sm:$0xff] }
 0x554   : > { %v15903_v47 = vadd.f32 %v4264_v14, %v4015_v46  ;;  %11862 = vmatmul.msk.f32.vlgmr.msra.gmra.mxu0 %vm2788_vm1, %v15650_v63  ;;  %v20671_v46 = vld [vmem:[#allocation28_spill] sm:$0xff]  ;;  %v3662_v22 = vadd.f32 %v15607_v27, %v3258_v10  ;;  %v4010_v16 = vadd.f32 %v15699_v61, %v20683_v57  ;;  %v5168_v10 = vpop.permute.xlu0 %5167 }
 0x555   : > { %11896 = vmatpush.msk.msra.mxu0 %vm2798_vm13, %v5184_v26  ;;  %11858 = vmatmul.msk.f32.vlgmr.msra.gmra.mxu1 %vm2788_vm1, %v15650_v63  ;;  %v3992_v12 = vadd.f32 %v15645_v31, %v20671_v46  ;;  %v4007_v8 = vadd.f32 %v15667_v59, %v3653_v37  ;;  %v12470_v26 = vunpack.i.h.bf16 %v20662_v9  ;;  %v15955_v59 = vld [vmem:[%s20226_s3 + $0xb8] sm:$0xf] }
 0x556   : > { %20667 = vst [vmem:[#allocation45_spill] sm:$0xff] %v15903_v47  ;;  %11892 = vmatpush.msk.msra.mxu1 %vm2798_vm13, %v5183_v4  ;;  %v4001_v4 = vadd.f32 %v15669_v51, %v20675_v7  ;;  %v4016_v37 = vadd.f32 %v15694_v53, %v3662_v22  ;;  %v20679_v53 = vld [vmem:[#allocation55_spill] sm:$0xff]  ;;  %v16306_v47 = vld [vmem:[#allocation7] sm:$0xff] }
 0x557   : > { %11872 = vmatmul.msk.f32.gmra.mxu3 %vm2788_vm1, %v15704_v1  ;;  %5369 = vmatpush.msra.mxu0 %v5175_v56  ;;  %v4345_v63 = vadd.f32 %v15830_v48, %v3992_v12  ;;  %v20674_v48 = vld [vmem:[#allocation40_spill] sm:$0xff] }
 0x558   : > { %11886 = vmatmul.msk.f32.gmra.mxu2 %vm2788_vm1, %v15915_v15  ;;  %5343 = vmatpush.msra.mxu1 %v5174_v52  ;;  %v5541_v44 = vsel %vm5529_vm7, %v20663_v29, %v20674_v48  ;;  %v4354_v29 = vadd.f32 %v15861_v62, %v4001_v4  ;;  %v20680_v62 = vld [vmem:[#allocation37_spill] sm:$0xff]  ;;  %v12464_v4 = vunpack.i.l.bf16 %v20661_v23 }
 0x559   : > { %v15939_v11 = vpop.f32.mrf.mxu0 }
 0x55a   : > { %v4287_v24 = vpop.f32.mrf.mxu3  ;;  %v15943_v31 = vpop.f32.mrf.mxu1 }
 0x55b   : > { %v15941_v43 = vadd.f32 %v4287_v24, %v4007_v8  ;;  %v4481_v14 = vpop.f32.mrf.mxu2  ;;  %v12479_v8 = vunpack.i.l.bf16 %v20679_v53  ;;  %v20682_v24 = vld [vmem:[#allocation46_spill] sm:$0xff] }
 0x55c   : > { %v15945_v50 = vadd.f32 %v4481_v14, %v4345_v63  ;;  %11863 = vmatmul.msk.f32.gmra.mxu0 %vm2788_vm1, %v15674_v34  ;;  %v20681_v63 = vld [vmem:[#allocation42_spill] sm:$0xff] }
 0x55d   : > { %11859 = vmatmul.msk.f32.gmra.mxu1 %vm2788_vm1, %v15674_v34  ;;  %v5532_v34 = vsel %vm5529_vm7, %v12469_v0, %v12470_v26  ;;  %v12475_v0 = vunpack.i.h.bf16 %v20680_v62  ;;  %v5544_v14 = vsel %vm5529_vm7, %v20682_v24, %v20681_v63 }
 0x55f   : > { %11889 = vmatmul.msk.f32.vlgmr.msra.gmra.mxu3 %vm2788_vm1, %v15876_v54 }
 0x560   : > { %11887 = vmatmul.msk.f32.gmra.mxu2 %vm2788_vm1, %v15955_v59  ;;  %11923 = vmatpush.msk.msra.mxu3 %vm2798_vm13, %v5541_v44  ;;  %v4363_v44 = vadd.f32 %v4134_v55, %v4010_v16  ;;  %v20686_v55 = vld [vmem:[#allocation38_spill] sm:$0xff] }
 0x561   : > { %v15975_v56 = vpop.f32.mrf.mxu0 }
 0x562   : > { %5651 = vmatpush.msra.mxu3 %v5532_v34  ;;  %v4290_v27 = vpop.f32.mrf.mxu3  ;;  %20676 = vst [vmem:[#allocation48_spill] sm:$0xff] %v15975_v56  ;;  %v15979_v12 = vpop.f32.mrf.mxu1 }
 0x563   : > { %v15977_v46 = vadd.f32 %v4290_v27, %v4016_v37  ;;  %v4484_v51 = vpop.f32.mrf.mxu2  ;;  %20678 = vst [vmem:[#allocation19_spill] sm:$0xff] %v15979_v12  ;;  %v20731_v12 = vld [vmem:[#allocation25_spill] sm:$0xff] }
 0x564   : > { %v15981_v52 = vadd.f32 %v4484_v51, %v4354_v29  ;;  %11864 = vmatmul.msk.f32.gmra.mxu0 %vm2788_vm1, %v15704_v1  ;;  %v12491_v29 = vunpack.i.h.bf16 %v15826_v28  ;;  %v5539_v51 = vsel %vm5529_vm7, %v20686_v55, %v20664_v20  ;;  %v20689_v28 = vld [vmem:[#allocation16_spill] sm:$0xff] }
 0x565   : > { %20677 = vst [vmem:[#allocation49_spill] sm:$0xff] %v15977_v46  ;;  %11860 = vmatmul.msk.f32.gmra.mxu1 %vm2788_vm1, %v15704_v1  ;;  %v5535_v1 = vsel %vm5529_vm7, %v12475_v0, %v12479_v8 }
 0x567   : > { %11890 = vmatmul.msk.f32.gmra.mxu3 %vm2788_vm1, %v15915_v15 }
 0x568   : > { %11901 = vmatmul.msk.f32.vlgmr.msrb.gmra.mxu2 %vm2788_vm1, %v15876_v54 }
 0x569   : > { %11935 = vmatpush.msk.msrb.mxu2 %vm2798_vm13, %v5544_v14  ;;  %v16002_v7 = vpop.f32.mrf.mxu0  ;;  %v5187_v14 = vsel %vm5169_vm6, %v15501_v33, %v5168_v10  ;;  %v5178_v33 = vsel %vm5169_vm6, %v12490_v36, %v12491_v29  ;;  %v5545_v36 = vsel %vm5529_vm7, %v20681_v63, %v20689_v28  ;;  %v12474_v29 = vunpack.i.l.bf16 %v20680_v62  ;;  %v16130_v62 = vld [vmem:[%s20226_s3 + $0xd0] sm:$0xf] }
 0x56a   : > { %v4507_v22 = vpop.f32.mrf.mxu3  ;;  %20684 = vst [vmem:[#allocation36_spill] sm:$0xff] %v16002_v7  ;;  %v16008_v34 = vpop.f32.mrf.mxu1 }
 0x56b   : > { %5729 = vmatpush.msrb.mxu2 %v5535_v1  ;;  %v4487_v37 = vpop.f32.mrf.mxu2  ;;  %v16006_v61 = vadd.f32 %v4507_v22, %v15738_v17  ;;  %20685 = vst [vmem:[#allocation14_spill] sm:$0xff] %v16008_v34  ;;  %v5530_v17 = vsel %vm5529_vm7, %v12464_v4, %v12465_v3  ;;  %v20288_v3 = vunpack.i.h.bf16 %v20679_v53 }
 0x56c   : > { %v16011_v27 = vadd.f32 %v4487_v37, %v4363_v44  ;;  %11881 = vmatmul.msk.f32.vlgmr.msrb.gmra.mxu0 %vm2788_vm1, %v15876_v54  ;;  %v16073_v37 = vld [vmem:[%s20226_s3 + $0xc0] sm:$0xff] }
 0x56d   : > { %11915 = vmatpush.msk.msrb.mxu0 %vm2798_vm13, %v5539_v51  ;;  %11877 = vmatmul.msk.f32.vlgmr.msrb.gmra.mxu1 %vm2788_vm1, %v15876_v54 }
 0x56e   : > { %11908 = vmatpush.msk.msrb.mxu1 %vm2798_vm13, %v5187_v14  ;;  %v20696_v14 = vld [vmem:[#allocation56_spill] sm:$0xff] }
 0x56f   : > { %11891 = vmatmul.msk.f32.gmra.mxu3 %vm2788_vm1, %v15955_v59  ;;  %5599 = vmatpush.msrb.mxu0 %v5530_v17  ;;  %v5543_v17 = vsel %vm5529_vm7, %v20696_v14, %v20682_v24  ;;  %v5534_v24 = vsel %vm5529_vm7, %v12474_v29, %v12475_v0 }
 0x570   : > { %11902 = vmatmul.msk.f32.gmra.mxu2 %vm2788_vm1, %v15915_v15  ;;  %5447 = vmatpush.msrb.mxu1 %v5178_v33  ;;  %v16098_v33 = vld [vmem:[%s20226_s3 + $0xc8] sm:$0xff] }
 0x571   : > { %v16034_v57 = vpop.f32.mrf.mxu0 }
 0x572   : > { %v4510_v20 = vpop.f32.mrf.mxu3  ;;  %20687 = vst [vmem:[#allocation50_spill] sm:$0xff] %v16034_v57  ;;  %v16041_v23 = vpop.f32.mrf.mxu1 }
 0x573   : > { %v16037_v16 = vadd.f32 %v4510_v20, %v15766_v58  ;;  %v16039_v10 = vpop.f32.mrf.mxu2  ;;  %20688 = vst [vmem:[#allocation13_spill] sm:$0xff] %v16041_v23  ;;  %v5536_v58 = vsel %vm5529_vm7, %v12479_v8, %v20288_v3  ;;  %v5542_v20 = vsel %vm5529_vm7, %v20674_v48, %v20696_v14  ;;  %v5533_v48 = vsel %vm5529_vm7, %v12470_v26, %v12474_v29 }
 0x574   : > { %11882 = vmatmul.msk.f32.gmra.mxu0 %vm2788_vm1, %v15915_v15 }
 0x575   : > { %11878 = vmatmul.msk.f32.gmra.mxu1 %vm2788_vm1, %v15915_v15 }
 0x577   : > { %11905 = vmatmul.msk.f32.vlgmr.msrb.gmra.mxu3 %vm2788_vm1, %v15876_v54 }
 0x578   : > { %11903 = vmatmul.msk.f32.gmra.mxu2 %vm2788_vm1, %v15955_v59  ;;  %11939 = vmatpush.msk.msrb.mxu3 %vm2798_vm13, %v5545_v36 }
 0x579   : > { %v16059_v1 = vpop.f32.mrf.mxu0 }
 0x57a   : > { %5755 = vmatpush.msrb.mxu3 %v5536_v58  ;;  %v4513_v44 = vpop.f32.mrf.mxu3  ;;  %20690 = vst [vmem:[#allocation51_spill] sm:$0xff] %v16059_v1  ;;  %v16066_v4 = vpop.f32.mrf.mxu1 }
 0x57b   : > { %v16062_v22 = vadd.f32 %v4513_v44, %v15799_v21  ;;  %v16064_v63 = vpop.f32.mrf.mxu2  ;;  %20692 = vst [vmem:[#allocation53_spill] sm:$0xff] %v16066_v4 }
 0x57c   : > { %20691 = vst [vmem:[#allocation57_spill] sm:$0xff] %v16064_v63  ;;  %11883 = vmatmul.msk.f32.gmra.mxu0 %vm2788_vm1, %v15955_v59 }
 0x57d   : > { %11879 = vmatmul.msk.f32.gmra.mxu1 %vm2788_vm1, %v15955_v59 }
 0x57f   : > { %11906 = vmatmul.msk.f32.gmra.mxu3 %vm2788_vm1, %v15915_v15 }
 0x580   : > { %11920 = vmatmul.msk.f32.vlgmr.msra.gmra.mxu2 %vm2788_vm1, %v16073_v37 }
 0x581   : > { %v16083_v8 = vpop.f32.mrf.mxu0 }
 0x582   : > { %v16081_v21 = vpop.f32.mrf.mxu3  ;;  %20693 = vst [vmem:[#allocation41_spill] sm:$0xff] %v16083_v8  ;;  %v16088_v51 = vpop.f32.mrf.mxu1 }
 0x583   : > { %v16086_v55 = vpop.f32.mrf.mxu2  ;;  %20695 = vst [vmem:[#allocation11_spill] sm:$0xff] %v16088_v51 }
 0x584   : > { %20694 = vst [vmem:[#allocation43_spill] sm:$0xff] %v16086_v55  ;;  %11897 = vmatmul.msk.f32.vlgmr.msra.gmra.mxu0 %vm2788_vm1, %v15876_v54 }
 0x585   : > { %11931 = vmatpush.msk.msra.mxu0 %vm2798_vm13, %v5543_v17  ;;  %11893 = vmatmul.msk.f32.vlgmr.msra.gmra.mxu1 %vm2788_vm1, %v15876_v54  ;;  %v12494_v17 = vpop.permute.xlu2 %12493 }
 0x586   : > { %11927 = vmatpush.msk.msra.mxu1 %vm2798_vm13, %v5542_v20  ;;  %v5528_v20 = vpop.permute.xlu0 %5527  ;;  %v12496_v3 = vunpack.i.h.bf16 %v12494_v17  ;;  %v12495_v51 = vunpack.i.l.bf16 %v12494_v17 }
 0x587   : > { %11907 = vmatmul.msk.f32.gmra.mxu3 %vm2788_vm1, %v15955_v59  ;;  %5703 = vmatpush.msra.mxu0 %v5534_v24  ;;  %v5547_v35 = vsel %vm5529_vm7, %v15542_v19, %v5528_v20  ;;  %v20703_v20 = vunpack.i.h.bf16 %v20679_v53 }
 0x588   : > { %11921 = vmatmul.msk.f32.gmra.mxu2 %vm2788_vm1, %v16098_v33  ;;  %5677 = vmatpush.msra.mxu1 %v5533_v48  ;;  %v5538_v17 = vsel %vm5529_vm7, %v12495_v51, %v12496_v3 }
 0x589   : > { %v16119_v58 = vpop.f32.mrf.mxu0 }
 0x58a   : > { %v16117_v36 = vpop.f32.mrf.mxu3  ;;  %v16123_v14 = vpop.f32.mrf.mxu1 }
 0x58b   : > { %v16121_v44 = vpop.f32.mrf.mxu2 }
 0x58c   : > { %20697 = vst [vmem:[#allocation21_spill] sm:$0xff] %v16121_v44  ;;  %11898 = vmatmul.msk.f32.gmra.mxu0 %vm2788_vm1, %v15915_v15 }
 0x58d   : > { %11894 = vmatmul.msk.f32.gmra.mxu1 %vm2788_vm1, %v15915_v15 }
 0x58f   : > { %11924 = vmatmul.msk.f32.vlgmr.msra.gmra.mxu3 %vm2788_vm1, %v16073_v37 }
 0x590   : > { %11922 = vmatmul.msk.f32.gmra.mxu2 %vm2788_vm1, %v16130_v62 }
 0x591   : > { %v16140_v26 = vpop.f32.mrf.mxu0 }
 0x592   : > { %v16138_v9 = vpop.f32.mrf.mxu3  ;;  %20699 = vst [vmem:[#allocation52_spill] sm:$0xff] %v16140_v26  ;;  %v16144_v29 = vpop.f32.mrf.mxu1 }
 0x593   : > { %20698 = vst [vmem:[#allocation39_spill] sm:$0xff] %v16138_v9  ;;  %v16142_v0 = vpop.f32.mrf.mxu2 }
 0x594   : > { %20700 = vst [vmem:[#allocation58_spill] sm:$0xff] %v16142_v0  ;;  %11899 = vmatmul.msk.f32.gmra.mxu0 %vm2788_vm1, %v15955_v59  ;;  %v5546_v0 = vsel %vm5529_vm7, %v20689_v28, %v15542_v19  ;;  %v5537_v19 = vsel %vm5529_vm7, %v20703_v20, %v12495_v51 }
 0x595   : > { %11895 = vmatmul.msk.f32.gmra.mxu1 %vm2788_vm1, %v15955_v59 }
 0x597   : > { %11925 = vmatmul.msk.f32.gmra.mxu3 %vm2788_vm1, %v16098_v33 }
 0x598   : > { %11936 = vmatmul.msk.f32.vlgmr.msrb.gmra.mxu2 %vm2788_vm1, %v16073_v37 }
 0x599   : > { %v16156_v48 = vpop.f32.mrf.mxu0 }
 0x59a   : > { %v16154_v24 = vpop.f32.mrf.mxu3  ;;  %20701 = vst [vmem:[#allocation28_spill] sm:$0xff] %v16156_v48  ;;  %v16160_v8 = vpop.f32.mrf.mxu1 }
 0x59b   : > { %v16158_v5 = vpop.f32.mrf.mxu2 }
 0x59c   : > { %20702 = vst [vmem:[#allocation54_spill] sm:$0xff] %v16158_v5  ;;  %11916 = vmatmul.msk.f32.vlgmr.msrb.gmra.mxu0 %vm2788_vm1, %v16073_v37 }
 0x59d   : > { %11947 = vmatpush.msk.msrb.mxu0 %vm2798_vm13, %v5547_v35  ;;  %11909 = vmatmul.msk.f32.vlgmr.msrb.gmra.mxu1 %vm2788_vm1, %v15876_v54 }
 0x59e   : > { %11943 = vmatpush.msk.msrb.mxu1 %vm2798_vm13, %v5546_v0  ;;  %vm6111_vm13 = vcmask 1048128  }
 0x59f   : > { %11926 = vmatmul.msk.f32.gmra.mxu3 %vm2788_vm1, %v16130_v62  ;;  %5807 = vmatpush.msrb.mxu0 %v5538_v17 }
 0x5a0   : > { %11937 = vmatmul.msk.f32.gmra.mxu2 %vm2788_vm1, %v16098_v33  ;;  %5781 = vmatpush.msrb.mxu1 %v5537_v19 }
 0x5a1   : > { %v16183_v28 = vpop.f32.mrf.mxu0 }
 0x5a2   : > { %v16181_v35 = vpop.f32.mrf.mxu3  ;;  %20704 = vst [vmem:[#allocation59_spill] sm:$0xff] %v16183_v28  ;;  %v16187_v5 = vpop.f32.mrf.mxu1 }
 0x5a3   : > { %v16185_v54 = vpop.f32.mrf.mxu2 }
 0x5a4   : > { %20705 = vst [vmem:[#allocation40_spill] sm:$0xff] %v16185_v54  ;;  %11917 = vmatmul.msk.f32.gmra.mxu0 %vm2788_vm1, %v16098_v33 }
 0x5a5   : > { %11910 = vmatmul.msk.f32.gmra.mxu1 %vm2788_vm1, %v15915_v15 }
 0x5a7   : > { %11940 = vmatmul.msk.f32.vlgmr.msrb.gmra.mxu3 %vm2788_vm1, %v16073_v37 }
 0x5a8   : > { %11938 = vmatmul.msk.f32.gmra.mxu2 %vm2788_vm1, %v16130_v62 }
 0x5a9   : > { %v16199_v3 = vpop.f32.mrf.mxu0 }
 0x5aa   : > { %v16197_v53 = vpop.f32.mrf.mxu3  ;;  %20706 = vst [vmem:[#allocation24_spill] sm:$0xff] %v16199_v3  ;;  %v16203_v0 = vpop.f32.mrf.mxu1 }
 0x5ab   : > { %v16201_v51 = vpop.f32.mrf.mxu2 }
 0x5ac   : > { %20707 = vst [vmem:[#allocation55_spill] sm:$0xff] %v16201_v51  ;;  %11918 = vmatmul.msk.f32.gmra.mxu0 %vm2788_vm1, %v16130_v62 }
 0x5ad   : > { %11911 = vmatmul.msk.f32.gmra.mxu1 %vm2788_vm1, %v15955_v59 }
 0x5af   : > { %11941 = vmatmul.msk.f32.gmra.mxu3 %vm2788_vm1, %v16098_v33 }
 0x5b1   : > { %v16213_v17 = vpop.f32.mrf.mxu0 }
 0x5b2   : > { %v16211_v15 = vpop.f32.mrf.mxu3  ;;  %20709 = vst [vmem:[#allocation42_spill] sm:$0xff] %v16213_v17  ;;  %v16217_v19 = vpop.f32.mrf.mxu1 }
 0x5b3   : > { %20708 = vst [vmem:[#allocation37_spill] sm:$0xff] %v16211_v15  ;;  %v16215_v20 = vpop.f32.mrf.mxu2 }
 0x5b4   : > { %20710 = vst [vmem:[#allocation46_spill] sm:$0xff] %v16215_v20  ;;  %11932 = vmatmul.msk.f32.vlgmr.msra.gmra.mxu0 %vm2788_vm1, %v16073_v37 }
 0x5b5   : > { %20711 = vst [vmem:[#allocation31_spill] sm:$0xff] %v16217_v19  ;;  %11928 = vmatmul.msk.f32.vlgmr.msra.gmra.mxu1 %vm2788_vm1, %v16073_v37 }
 0x5b7   : > { %11942 = vmatmul.msk.f32.gmra.mxu3 %vm2788_vm1, %v16130_v62 }
 0x5b9   : > { %v16227_v3 = vpop.f32.mrf.mxu0 }
 0x5ba   : > { %v16225_v59 = vpop.f32.mrf.mxu3  ;;  %v4907_v17 = vpop.f32.mrf.mxu1 }
 0x5bb   : > { %20712 = vst [vmem:[#allocation38_spill] sm:$0xff] %v16225_v59  ;;  %v16229_v4 = vpop.f32.mrf.mxu2 }
 0x5bc   : > { %20713 = vst [vmem:[#allocation16_spill] sm:$0xff] %v16229_v4  ;;  %11933 = vmatmul.msk.f32.gmra.mxu0 %vm2788_vm1, %v16098_v33 }
 0x5bd   : > { %11929 = vmatmul.msk.f32.gmra.mxu1 %vm2788_vm1, %v16098_v33 }
 0x5c1   : > { %v16237_v1 = vpop.f32.mrf.mxu0 }
 0x5c2   : > { %v16235_v40 = vpop.f32.mrf.mxu3  ;;  %v4910_v28 = vpop.f32.mrf.mxu1 }
 0x5c3   : > { %20714 = vst [vmem:[#allocation56_spill] sm:$0xff] %v16235_v40  ;;  %v16239_v30 = vpop.f32.mrf.mxu2 }
 0x5c4   : > { %20715 = vst [vmem:[#allocation60_spill] sm:$0xff] %v16239_v30  ;;  %11934 = vmatmul.msk.f32.gmra.mxu0 %vm2788_vm1, %v16130_v62 }
 0x5c5   : > { %11930 = vmatmul.msk.f32.gmra.mxu1 %vm2788_vm1, %v16130_v62 }
 0x5c9   : > { %v16247_v44 = vpop.f32.mrf.mxu0 }
 0x5ca   : > { %v16245_v4 = vpop.f32.mrf.mxu3  ;;  %v4913_v57 = vpop.f32.mrf.mxu1 }
 0x5cb   : > { %20716 = vst [vmem:[#allocation61_spill] sm:$0xff] %v16245_v4  ;;  %v16249_v23 = vpop.f32.mrf.mxu2 }
 0x5cc   : > { %20717 = vst [vmem:[#allocation62_spill] sm:$0xff] %v16249_v23  ;;  %11948 = vmatmul.msk.f32.vlgmr.msrb.gmra.mxu0 %vm2788_vm1, %v16073_v37 }
 0x5cd   : > { %11944 = vmatmul.msk.f32.vlgmr.msrb.gmra.mxu1 %vm2788_vm1, %v16073_v37 }
 0x5d1   : > { %v16257_v32 = vpop.f32.mrf.mxu0 }
 0x5d2   : > { %v16255_v30 = vpop.f32.mrf.mxu3  ;;  %v16259_v40 = vpop.f32.mrf.mxu1 }
 0x5d3   : > { %20718 = vst [vmem:[#allocation63_spill] sm:$0xff] %v16255_v30  ;;  %v5293_v20 = vpop.f32.mrf.mxu2 }
 0x5d4   : > { %11949 = vmatmul.msk.f32.gmra.mxu0 %vm2788_vm1, %v16098_v33 }
 0x5d5   : > { %11945 = vmatmul.msk.f32.gmra.mxu1 %vm2788_vm1, %v16098_v33 }
 0x5d9   : > { %v16267_v4 = vpop.f32.mrf.mxu0 }
 0x5da   : > { %v16265_v23 = vpop.f32.mrf.mxu3  ;;  %20720 = vst [vmem:[#allocation65_spill] sm:$0xff] %v16267_v4  ;;  %v16271_v37 = vpop.f32.mrf.mxu1 }
 0x5db   : > { %20719 = vst [vmem:[#allocation64_spill] sm:$0xff] %v16265_v23  ;;  %v16269_v48 = vpop.f32.mrf.mxu2 }
 0x5dc   : > { %11950 = vmatmul.msk.f32.gmra.mxu0 %vm2788_vm1, %v16130_v62 }
 0x5dd   : > { %11946 = vmatmul.msk.f32.gmra.mxu1 %vm2788_vm1, %v16130_v62  ;;  %vm6132_vm1 = vcmask 1044032  }
 0x5e1   : > { %v16279_v55 = vpop.f32.mrf.mxu0 }
 0x5e2   : > { %v16277_v30 = vpop.f32.mrf.mxu3  ;;  %20722 = vst [vmem:[#allocation67_spill] sm:$0xff] %v16279_v55  ;;  %v16283_v33 = vpop.f32.mrf.mxu1 }
 0x5e3   : > { %20721 = vst [vmem:[#allocation66_spill] sm:$0xff] %v16277_v30  ;;  %v16281_v34 = vpop.f32.mrf.mxu2 }
 0x5e4   : > { %20723 = vst [vmem:[#allocation68_spill] sm:$0xff] %v16283_v33 }
 0x5e9   : > { %v5267_v45 = vpop.f32.mrf.mxu0 }
 0x5ea   : > { %v16285_v23 = vpop.f32.mrf.mxu3  ;;  %v5241_v51 = vpop.f32.mrf.mxu1 }
 0x5eb   : > { %20724 = vst [vmem:[#allocation69_spill] sm:$0xff] %v16285_v23  ;;  %v16287_v7 = vpop.f32.mrf.mxu2  ;;  %v5099_v23 = vadd.f32 %v4907_v17, %v16006_v61 }
 0x5ed   : > { %v5459_v33 = vadd.f32 %v5267_v45, %v5099_v23 }
 0x5f1   : > { %v5270_v59 = vpop.f32.mrf.mxu0 }
 0x5f2   : > { %v16289_v42 = vpop.f32.mrf.mxu3  ;;  %v16293_v62 = vpop.f32.mrf.mxu1 }
 0x5f3   : > { %20725 = vst [vmem:[#allocation70_spill] sm:$0xff] %v16289_v42  ;;  %v16291_v19 = vpop.f32.mrf.mxu2 }
 0x5f4   : > { %20726 = vst [vmem:[#allocation71_spill] sm:$0xff] %v16291_v19 }
 0x5f9   : > { %v5273_v55 = vpop.f32.mrf.mxu0 }
 0x5fa   : > { %v16295_v46 = vpop.f32.mrf.mxu3  ;;  %v16299_v63 = vpop.f32.mrf.mxu1 }
 0x5fb   : > { %20727 = vst [vmem:[#allocation72_spill] sm:$0xff] %v16295_v46  ;;  %v16297_v26 = vpop.f32.mrf.mxu2  ;;  %v5922_v46 = vperm.slane %v16306_v47, 1 }
 0x5fc   : > { %20728 = vst [vmem:[#allocation73_spill] sm:$0xff] %v16297_v26  ;;  %v5108_v26 = vadd.f32 %v4910_v28, %v16037_v16  ;;  %v5117_v16 = vadd.f32 %v4913_v57, %v16062_v22  ;;  %v4703_v57 = vadd.f32 %v16081_v21, %v15836_v18  ;;  %v20735_v22 = vld [vmem:[#allocation44_spill] sm:$0xff] }
 0x5fe   : > { %v5468_v4 = vadd.f32 %v5270_v59, %v5108_v26  ;;  %v5477_v28 = vadd.f32 %v5273_v55, %v5117_v16 }
 0x601   : > { %v5371_v54 = vpop.f32.mrf.mxu0 }
 0x602   : > { %v16302_v30 = vpop.f32.mrf.mxu3  ;;  %v16304_v42 = vpop.f32.mrf.mxu1 }
 0x603   : > { %20729 = vst [vmem:[#allocation74_spill] sm:$0xff] %v16302_v30  ;;  %v5627_v9 = vpop.f32.mrf.mxu2 }
 0x604   : > { %20730 = vst [vmem:[#allocation75_spill] sm:$0xff] %v16304_v42  ;;  %v5819_v19 = vadd.f32 %v5627_v9, %v5459_v33  ;;  %v4700_v9 = vadd.f32 %v16123_v14, %v15794_v41  ;;  %v5098_v14 = vadd.f32 %v16154_v24, %v15945_v50 }
 0x606   : > { %v5864_v13 = vadd.f32 %v20731_v12, %v5819_v19  ;;  %v20734_v19 = vld [vmem:[#allocation47_spill] sm:$0xff] }
 0x608   : > { %v5891_v56 = vmax.f32 %v5864_v13, 0.0  ;;  %v5100_v13 = vadd.f32 %v16227_v3, %v4700_v9 }
 0x609   : > { %v16313_v61 = vpop.f32.mrf.mxu0 }
 0x60a   : > { %v16311_v15 = vpop.f32.mrf.mxu3  ;;  %v5940_v45 = vmul.f32 %v5922_v46, %v5891_v56  ;;  %v16315_v17 = vpop.f32.mrf.mxu1  ;;  %v5460_v56 = vadd.f32 %v5293_v20, %v5100_v13  ;;  %v5103_v20 = vadd.f32 %v16259_v40, %v4703_v57 }
 0x60b   : > { %20732 = vst [vmem:[#allocation25_spill] sm:$0xff] %v16311_v15  ;;  %v5630_v23 = vpop.f32.mrf.mxu2 }
 0x60c   : > { %20733 = vst [vmem:[#allocation76_spill] sm:$0xff] %v16315_v17  ;;  %v5828_v30 = vadd.f32 %v5630_v23, %v5468_v4  ;;  %6005 = vrot.lane.b32.xlu2 %v5940_v45, %s13412_s30 }
 0x60e   : > { %v5873_v33 = vadd.f32 %v20734_v19, %v5828_v30  ;;  %v16330_v30 = vperm.slane %v16306_v47, 2 }
 0x610   : > { %v5900_v26 = vmax.f32 %v5873_v33, 0.0  ;;  %v5458_v33 = vadd.f32 %v5241_v51, %v5098_v14  ;;  %v16349_v51 = vperm.slane %v16306_v47, 0 }
 0x611   : > { %v16323_v42 = vpop.f32.mrf.mxu0 }
 0x612   : > { %v5949_v59 = vmul.f32 %v5922_v46, %v5900_v26  ;;  %v5653_v15 = vpop.f32.mrf.mxu3  ;;  %v16325_v17 = vpop.f32.mrf.mxu1  ;;  %v5463_v26 = vadd.f32 %v5371_v54, %v5103_v20  ;;  %v16353_v54 = vperm.slane %v16306_v47, 5 }
 0x613   : > { %v5633_v4 = vpop.f32.mrf.mxu2  ;;  %v5820_v23 = vadd.f32 %v5653_v15, %v5460_v56  ;;  %v4709_v15 = vadd.f32 %v16144_v29, %v15832_v2 }
 0x614   : > { %v5837_v45 = vadd.f32 %v5633_v4, %v5477_v28  ;;  %6023 = vrot.lane.b32.xlu2 %v5949_v59, %s13412_s30  ;;  %v5107_v59 = vadd.f32 %v16181_v35, %v15981_v52 }
 0x615   : > { %v5865_v41 = vadd.f32 %v20731_v12, %v5820_v23  ;;  %v5109_v16 = vadd.f32 %v16237_v1, %v4709_v15 }
 0x616   : > { %v5882_v55 = vadd.f32 %v20735_v22, %v5837_v45  ;;  %v5467_v45 = vadd.f32 %v16293_v62, %v5107_v59 }
 0x617   : > { %v5892_v3 = vmax.f32 %v5865_v41, 0.0  ;;  %v5469_v2 = vadd.f32 %v16269_v48, %v5109_v16  ;;  %v4712_v48 = vadd.f32 %v16117_v36, %v15867_v39  ;;  %v4704_v36 = vadd.f32 %v16187_v5, %v15898_v38 }
 0x618   : > { %v5909_v9 = vmax.f32 %v5882_v55, 0.0 }
 0x619   : > { %v5941_v13 = vmul.f32 %v16330_v30, %v5892_v3  ;;  %v5601_v21 = vpop.f32.mrf.mxu0  ;;  %v5112_v57 = vadd.f32 %v16271_v37, %v4712_v48 }
 0x61a   : > { %v5958_v56 = vmul.f32 %v5922_v46, %v5909_v9  ;;  %v5656_v18 = vpop.f32.mrf.mxu3  ;;  %v5818_v50 = vadd.f32 %v5601_v21, %v5458_v33  ;;  %v16343_v24 = vpop.f32.mrf.mxu1  ;;  %v5116_v33 = vadd.f32 %v16197_v53, %v16011_v27 }
 0x61b   : > { %v5731_v28 = vpop.f32.mrf.mxu2  ;;  %6007 = vrot.lane.b32.xlu0 %v5941_v13, %s13412_s30  ;;  %v5829_v1 = vadd.f32 %v5656_v18, %v5469_v2  ;;  %v5472_v39 = vadd.f32 %v16313_v61, %v5112_v57  ;;  %v5104_v13 = vadd.f32 %v16257_v32, %v4704_v36  ;;  %v4718_v61 = vadd.f32 %v16160_v8, %v15863_v25  ;;  %v20742_v57 = vld [vmem:[#allocation19_spill] sm:$0xff] }
 0x61c   : > { %v5823_v29 = vadd.f32 %v5731_v28, %v5463_v26  ;;  %6041 = vrot.lane.b32.xlu2 %v5958_v56, %s13412_s30  ;;  %v5863_v40 = vadd.f32 %v20731_v12, %v5818_v50  ;;  %v20736_v26 = vld [vmem:[#allocation33_spill] sm:$0xff]  ;;  %v5476_v5 = vadd.f32 %v16299_v63, %v5116_v33  ;;  %v4348_v25 = vadd.f32 %v15943_v31, %v15612_v49 }
 0x61d   : > { %v5874_v55 = vadd.f32 %v20734_v19, %v5829_v1  ;;  %v3996_v56 = vadd.f32 %v15736_v6, %v20736_v26  ;;  %v5464_v18 = vadd.f32 %v16287_v7, %v5104_v13  ;;  %v5118_v28 = vadd.f32 %v16247_v44, %v4718_v61  ;;  %v20737_v1 = vld [vmem:[#allocation23_spill] sm:$0xff]  ;;  %v20749_v13 = vld [vmem:[#allocation68_spill] sm:$0xff] }
 0x61e   : > { %v5868_v46 = vadd.f32 %v20731_v12, %v5823_v29  ;;  %v5890_v4 = vmax.f32 %v5863_v40, 0.0  ;;  %v4713_v63 = vadd.f32 %v16203_v0, %v15941_v43  ;;  %v16398_v44 = vperm.slane %v16306_v47, 6  ;;  %v20740_v0 = vld [vmem:[#allocation48_spill] sm:$0xff] }
 0x61f   : > { %v5901_v37 = vmax.f32 %v5874_v55, 0.0  ;;  %v4349_v21 = vadd.f32 %v15939_v11, %v3996_v56  ;;  %v5478_v11 = vadd.f32 %v16281_v34, %v5118_v28  ;;  %v4701_v49 = vadd.f32 %v16119_v58, %v4348_v25  ;;  %v20738_v34 = vld [vmem:[#allocation37_spill] sm:$0xff]  ;;  %v20753_v25 = vld [vmem:[#allocation31_spill] sm:$0xff] }
 0x620   : > { %v5895_v23 = vmax.f32 %v5868_v46, 0.0  ;;  %v5939_v41 = vmul.f32 %v16349_v51, %v5890_v4  ;;  %v4005_v46 = vadd.f32 %v15764_v60, %v20737_v1  ;;  %v20739_v4 = vld [vmem:[#allocation65_spill] sm:$0xff] }
 0x621   : > { %v5604_v15 = vpop.f32.mrf.mxu0  ;;  %v5950_v27 = vmul.f32 %v16330_v30, %v5901_v37  ;;  %v4702_v7 = vadd.f32 %v16039_v10, %v4349_v21  ;;  %v5113_v48 = vadd.f32 %v20739_v4, %v4713_v63 }
 0x622   : > { %v5944_v14 = vmul.f32 %v16353_v54, %v5895_v23  ;;  %v5659_v3 = vpop.f32.mrf.mxu3  ;;  %v5827_v9 = vadd.f32 %v5604_v15, %v5467_v45  ;;  %v16364_v52 = vpop.f32.mrf.mxu1  ;;  %6003 = vrot.lane.b32.xlu1 %v5939_v41, %s13412_s30  ;;  %v4358_v45 = vadd.f32 %v20740_v0, %v4005_v46  ;;  %v20741_v41 = vld [vmem:[#allocation20_spill] sm:$0xff]  ;;  %v20744_v15 = vld [vmem:[#allocation39_spill] sm:$0xff] }
 0x623   : > { %v5734_v20 = vpop.f32.mrf.mxu2  ;;  %v5838_v31 = vadd.f32 %v5659_v3, %v5478_v11  ;;  %v5102_v59 = vadd.f32 %v20738_v34, %v4702_v7  ;;  %v4357_v55 = vadd.f32 %v20742_v57, %v20741_v41  ;;  %v20747_v3 = vld [vmem:[#allocation75_spill] sm:$0xff]  ;;  %v20759_v57 = vld [vmem:[#allocation73_spill] sm:$0xff] }
 0x624   : > { %6013 = vrot.lane.b32.xlu0 %v5944_v14, %s13412_s30  ;;  %v5872_v35 = vadd.f32 %v20734_v19, %v5827_v9  ;;  %v5832_v62 = vadd.f32 %v5734_v20, %v5472_v39  ;;  %v20743_v14 = vld [vmem:[#allocation45_spill] sm:$0xff]  ;;  %v20745_v9 = vld [vmem:[#allocation40_spill] sm:$0xff]  ;;  %v20746_v39 = vld [vmem:[#allocation71_spill] sm:$0xff] }
 0x625   : > { %v4721_v20 = vadd.f32 %v20744_v15, %v20743_v14  ;;  %v5101_v60 = vadd.f32 %v20745_v9, %v4701_v49  ;;  %v5473_v58 = vadd.f32 %v20746_v39, %v5113_v48  ;;  %v5462_v36 = vadd.f32 %v20747_v3, %v5102_v59  ;;  %v20756_v48 = vld [vmem:[#allocation15_spill] sm:$0xff]  ;;  %v20760_v14 = vld [vmem:[#allocation76_spill] sm:$0xff] }
 0x626   : > { %v5899_v16 = vmax.f32 %v5872_v35, 0.0  ;;  %v5877_v32 = vadd.f32 %v20734_v19, %v5832_v62  ;;  %v20748_v62 = vld [vmem:[#allocation66_spill] sm:$0xff]  ;;  %v5883_v26 = vadd.f32 %v20735_v22, %v5838_v31  ;;  %v16436_v49 = vperm.slane %v16306_v47, 3  ;;  %v20758_v0 = vld [vmem:[#allocation55_spill] sm:$0xff] }
 0x627   : > { %v5461_v33 = vadd.f32 %v20748_v62, %v5101_v60  ;;  %v20761_v60 = vld [vmem:[#allocation69_spill] sm:$0xff] }
 0x628   : > { %v5948_v38 = vmul.f32 %v16349_v51, %v5899_v16  ;;  %v5904_v10 = vmax.f32 %v5877_v32, 0.0  ;;  %v5121_v16 = vadd.f32 %v20749_v13, %v4721_v20 }
 0x629   : > { %v5607_v50 = vpop.f32.mrf.mxu0 }
 0x62a   : > { %v5757_v53 = vpop.f32.mrf.mxu3  ;;  %v5836_v2 = vadd.f32 %v5607_v50, %v5476_v5  ;;  %v16386_v29 = vpop.f32.mrf.mxu1  ;;  %6021 = vrot.lane.b32.xlu1 %v5948_v38, %s13412_s30  ;;  %v5953_v56 = vmul.f32 %v16353_v54, %v5904_v10  ;;  %v5481_v50 = vadd.f32 %v16323_v42, %v5121_v16  ;;  %v20754_v42 = vld [vmem:[#allocation38_spill] sm:$0xff]  ;;  %v20755_v10 = vld [vmem:[#allocation67_spill] sm:$0xff] }
 0x62b   : > { %v5824_v6 = vadd.f32 %v5757_v53, %v5464_v18  ;;  %v5737_v5 = vpop.f32.mrf.mxu2  ;;  %v20751_v53 = vld [vmem:[#allocation52_spill] sm:$0xff] }
 0x62c   : > { %6025 = vrot.lane.b32.xlu0 %v5950_v27, %s13412_s30  ;;  %v5881_v40 = vadd.f32 %v20735_v22, %v5836_v2  ;;  %v20750_v27 = vld [vmem:[#allocation57_spill] sm:$0xff]  ;;  %v5841_v1 = vadd.f32 %v5737_v5, %v5481_v50 }
 0x62d   : > { %v5869_v8 = vadd.f32 %v20731_v12, %v5824_v6  ;;  %v4711_v32 = vadd.f32 %v20750_v27, %v4358_v45  ;;  %v20752_v2 = vld [vmem:[#allocation49_spill] sm:$0xff] }
 0x62e   : > { %v5908_v43 = vmax.f32 %v5881_v40, 0.0  ;;  %v4722_v7 = vadd.f32 %v20753_v25, %v20752_v2  ;;  %v5910_v40 = vmax.f32 %v5883_v26, 0.0  ;;  %v5886_v3 = vadd.f32 %v20735_v22, %v5841_v1  ;;  %v20769_v1 = vld [vmem:[#allocation17_spill] sm:$0xff] }
 0x62f   : > { %v5896_v23 = vmax.f32 %v5869_v8, 0.0  ;;  %v16432_v8 = vperm.slane %v16306_v47, 4  ;;  %v5111_v31 = vadd.f32 %v20754_v42, %v4711_v32  ;;  %v20766_v32 = vld [vmem:[#allocation28_spill] sm:$0xff] }
 0x630   : > { %v5957_v37 = vmul.f32 %v16349_v51, %v5908_v43  ;;  %v4710_v51 = vadd.f32 %v20751_v53, %v4357_v55  ;;  %v5122_v34 = vadd.f32 %v20755_v10, %v4722_v7 }
 0x631   : > { %v16415_v35 = vmul.f32 %v16398_v44, %v5896_v23  ;;  %v5705_v18 = vpop.f32.mrf.mxu0  ;;  %v20757_v23 = vld [vmem:[#allocation35_spill] sm:$0xff]  ;;  %v5471_v15 = vadd.f32 %v20760_v14, %v5111_v31 }
 0x632   : > { %v5760_v61 = vpop.f32.mrf.mxu3  ;;  %v5822_v21 = vadd.f32 %v5705_v18, %v5462_v36  ;;  %v5679_v28 = vpop.f32.mrf.mxu1  ;;  %6039 = vrot.lane.b32.xlu1 %v5957_v37, %s13412_s30  ;;  %v4014_v43 = vadd.f32 %v20757_v23, %v20756_v48  ;;  %v5110_v45 = vadd.f32 %v20758_v0, %v4710_v51  ;;  %v5482_v55 = vadd.f32 %v20759_v57, %v5122_v34  ;;  %v20764_v18 = vld [vmem:[#allocation14_spill] sm:$0xff] }
 0x633   : > { %v5833_v38 = vadd.f32 %v5760_v61, %v5473_v58  ;;  %v5821_v6 = vadd.f32 %v5679_v28, %v5461_v33  ;;  %v5959_v58 = vmul.f32 %v16330_v30, %v5910_v40  ;;  %v20762_v33 = vld [vmem:[#allocation36_spill] sm:$0xff]  ;;  %v20763_v61 = vld [vmem:[#allocation26_spill] sm:$0xff]  ;;  %v20765_v30 = vld [vmem:[#allocation43_spill] sm:$0xff]  ;;  %v5913_v51 = vmax.f32 %v5886_v3, 0.0 }
 0x634   : > { %6031 = vrot.lane.b32.xlu0 %v5953_v56, %s13412_s30  ;;  %v5867_v63 = vadd.f32 %v20731_v12, %v5822_v21  ;;  %v5470_v39 = vadd.f32 %v20761_v60, %v5110_v45  ;;  %v4367_v13 = vadd.f32 %v20762_v33, %v4014_v43  ;;  %v4366_v5 = vadd.f32 %v20764_v18, %v20763_v61  ;;  %v20772_v0 = vld [vmem:[#allocation50_spill] sm:$0xff]  ;;  %v20776_v60 = vld [vmem:[#allocation59_spill] sm:$0xff]  ;;  %v20777_v3 = vld [vmem:[#allocation61_spill] sm:$0xff] }
 0x635   : > { %v5878_v11 = vadd.f32 %v20734_v19, %v5833_v38  ;;  %v5866_v46 = vadd.f32 %v20731_v12, %v5821_v6  ;;  %v20767_v6 = vld [vmem:[#allocation56_spill] sm:$0xff]  ;;  %v5962_v48 = vmul.f32 %v16353_v54, %v5913_v51  ;;  %v20783_v51 = vld [vmem:[#allocation29_spill] sm:$0xff] }
 0x636   : > { %v5894_v4 = vmax.f32 %v5867_v63, 0.0  ;;  %v4720_v21 = vadd.f32 %v20765_v30, %v4367_v13  ;;  %v4719_v53 = vadd.f32 %v20766_v32, %v4366_v5  ;;  %v20781_v5 = vld [vmem:[#allocation72_spill] sm:$0xff] }
 0x637   : > { %v5905_v59 = vmax.f32 %v5878_v11, 0.0  ;;  %v5893_v41 = vmax.f32 %v5866_v46, 0.0  ;;  %v20768_v11 = vld [vmem:[#allocation46_spill] sm:$0xff] }
 0x638   : > { %v5943_v9 = vmul.f32 %v16432_v8, %v5894_v4  ;;  %v5120_v2 = vadd.f32 %v20767_v6, %v4720_v21  ;;  %v5119_v63 = vadd.f32 %v20768_v11, %v4719_v53  ;;  %v20770_v46 = vld [vmem:[#allocation18_spill] sm:$0xff]  ;;  %v20786_v11 = vld [vmem:[#allocation24_spill] sm:$0xff] }
 0x639   : > { %v16446_v20 = vmul.f32 %v16398_v44, %v5905_v59  ;;  %v5942_v36 = vmul.f32 %v16436_v49, %v5893_v41  ;;  %v5708_v62 = vpop.f32.mrf.mxu0  ;;  %v4000_v42 = vadd.f32 %v20770_v46, %v20769_v1  ;;  %v20771_v59 = vld [vmem:[#allocation70_spill] sm:$0xff]  ;;  %v20787_v1 = vld [vmem:[#allocation63_spill] sm:$0xff] }
 0x63a   : > { %v5763_v37 = vpop.f32.mrf.mxu3  ;;  %v5831_v26 = vadd.f32 %v5708_v62, %v5471_v15  ;;  %v5682_v56 = vpop.f32.mrf.mxu1  ;;  %6011 = vrot.lane.b32.xlu2 %v5943_v9, %s13412_s30  ;;  %v5480_v31 = vadd.f32 %v16325_v17, %v5120_v2  ;;  %v5479_v4 = vadd.f32 %v20771_v59, %v5119_v63  ;;  %v20774_v17 = vld [vmem:[#allocation13_spill] sm:$0xff]  ;;  %v20778_v62 = vld [vmem:[#allocation16_spill] sm:$0xff] }
 0x63b   : > { %v5842_v16 = vadd.f32 %v5763_v37, %v5482_v55  ;;  %v5830_v38 = vadd.f32 %v5682_v56, %v5470_v39  ;;  %6009 = vrot.lane.b32.xlu1 %v5942_v36, %s13412_s30  ;;  %v4353_v45 = vadd.f32 %v20772_v0, %v4000_v42  ;;  %v20773_v55 = vld [vmem:[#allocation22_spill] sm:$0xff]  ;;  %v20775_v15 = vld [vmem:[#allocation21_spill] sm:$0xff] }
 0x63c   : > { %6043 = vrot.lane.b32.xlu0 %v5959_v58, %s13412_s30  ;;  %v5876_v27 = vadd.f32 %v20734_v19, %v5831_v26  ;;  %v4352_v14 = vadd.f32 %v20774_v17, %v20773_v55  ;;  %v20780_v26 = vld [vmem:[#allocation30_spill] sm:$0xff]  ;;  %v20792_v17 = vld [vmem:[#allocation41_spill] sm:$0xff] }
 0x63d   : > { %v5887_v28 = vadd.f32 %v20735_v22, %v5842_v16  ;;  %v5875_v50 = vadd.f32 %v20734_v19, %v5830_v38  ;;  %v4706_v9 = vadd.f32 %v20775_v15, %v4353_v45  ;;  %v20779_v16 = vld [vmem:[#allocation12_spill] sm:$0xff]  ;;  %v20791_v45 = vld [vmem:[#allocation74_spill] sm:$0xff]  ;;  %v20794_v15 = vld [vmem:[#allocation11_spill] sm:$0xff] }
 0x63e   : > { %v5903_v7 = vmax.f32 %v5876_v27, 0.0  ;;  %v4705_v39 = vadd.f32 %v20776_v60, %v4352_v14  ;;  %v4009_v56 = vadd.f32 %v20780_v26, %v20779_v16 }
 0x63f   : > { %v5914_v25 = vmax.f32 %v5887_v28, 0.0  ;;  %v5902_v40 = vmax.f32 %v5875_v50, 0.0  ;;  %v5106_v36 = vadd.f32 %v20777_v3, %v4706_v9  ;;  %v20782_v28 = vld [vmem:[#allocation51_spill] sm:$0xff]  ;;  %v20784_v50 = vld [vmem:[#allocation53_spill] sm:$0xff] }
 0x640   : > { %v5952_v34 = vmul.f32 %v16432_v8, %v5903_v7  ;;  %v5105_v33 = vadd.f32 %v20778_v62, %v4705_v39  ;;  %v4362_v27 = vadd.f32 %v20782_v28, %v4009_v56  ;;  %v4361_v6 = vadd.f32 %v20784_v50, %v20783_v51  ;;  %v13232_v7 = vld [vmem:[#allocation7 + $0x8] ss:$0 sm:$0xff] }
 0x641   : > { %v16470_v10 = vmul.f32 %v16398_v44, %v5914_v25  ;;  %v5951_v23 = vmul.f32 %v16436_v49, %v5902_v40  ;;  %v5711_v43 = vpop.f32.mrf.mxu0  ;;  %v5466_v61 = vadd.f32 %v16343_v24, %v5106_v36  ;;  %v20785_v24 = vld [vmem:[#allocation58_spill] sm:$0xff]  ;;  %v5928_v40 = vperm.slane %v16306_v47, 7 }
 0x642   : > { %v5840_v41 = vadd.f32 %v5711_v43, %v5480_v31  ;;  %v5685_v57 = vpop.f32.mrf.mxu1  ;;  %6029 = vrot.lane.b32.xlu2 %v5952_v34, %s13412_s30  ;;  %v5465_v38 = vadd.f32 %v20781_v5, %v5105_v33  ;;  %v4715_v25 = vadd.f32 %v20785_v24, %v4362_v27  ;;  %v20788_v31 = vld [vmem:[#allocation60_spill] sm:$0xff]  ;;  %v13413_v50 = vmov 0.0  }
 0x643   : > { %v5839_v44 = vadd.f32 %v5685_v57, %v5479_v4  ;;  %6027 = vrot.lane.b32.xlu1 %v5951_v23, %s13412_s30  ;;  %v20789_v4 = vld [vmem:[#allocation27_spill] sm:$0xff]  ;;  %5967 = vst.msk [vmem:[#allocation4] sm:$0xff] %vm5966_vm8, %v13413_v50 }
 0x644   : > { %6049 = vrot.lane.b32.xlu0 %v5962_v48, %s13412_s30  ;;  %v5885_v54 = vadd.f32 %v20735_v22, %v5840_v41  ;;  %v5115_v46 = vadd.f32 %v20787_v1, %v4715_v25  ;;  %v20790_v48 = vld [vmem:[#allocation34_spill] sm:$0xff]  ;;  %5968 = vst.msk [vmem:[#allocation4 + $0x50] sm:$0xff] %vm5966_vm8, %v13413_v50 }
 0x645   : > { %v5884_v58 = vadd.f32 %v20735_v22, %v5839_v44  ;;  %v4018_v23 = vadd.f32 %v20790_v48, %v20789_v4  ;;  %v20793_v44 = vld [vmem:[#allocation32_spill] sm:$0xff]  ;;  %5970 = vst.msk [vmem:[#allocation4 + $0xa0] sm:$0xf] %vm5969_vm12, %v13413_v50  ;;  %vm5974_vm12 = vcmask 617512  }
 0x646   : > { %v5912_v37 = vmax.f32 %v5885_v54, 0.0  ;;  %v5475_v43 = vadd.f32 %v16364_v52, %v5115_v46  ;;  %v4370_v9 = vadd.f32 %v20794_v15, %v20793_v44  ;;  %v20795_v52 = vld [vmem:[#allocation54_spill] sm:$0xff]  ;;  %5972 = vst.msk [vmem:[#allocation4 + $0x48] sm:$0xff] %vm5971_vm15, %v13413_v50 }
 0x647   : > { %v5911_v13 = vmax.f32 %v5884_v58, 0.0  ;;  %v20796_v58 = vld [vmem:[#allocation42_spill] sm:$0xff]  ;;  %5973 = vst.msk [vmem:[#allocation4 + $0x98] sm:$0xff] %vm5971_vm15, %v13413_v50  ;;  %vm9658_vm15 = vcmask 449536  }
 0x648   : > { %v5961_v18 = vmul.f32 %v16432_v8, %v5912_v37  ;;  %v4723_v3 = vadd.f32 %v20796_v58, %v4370_v9  ;;  %v20797_v37 = vld [vmem:[#allocation64_spill] sm:$0xff]  ;;  %5975 = vst.msk [vmem:[#allocation4 + $0xe8] sm:$0xf] %vm5974_vm12, %v13413_v50 }
 0x649   : > { %v5960_v30 = vmul.f32 %v16436_v49, %v5911_v13  ;;  %v5809_v21 = vpop.f32.mrf.mxu0  ;;  %v4714_v49 = vadd.f32 %v20786_v11, %v4361_v6  ;;  %v20798_v13 = vld [vmem:[#allocation62_spill] sm:$0xff] }
 0x64a   : > { %v5826_v32 = vadd.f32 %v5809_v21, %v5466_v61  ;;  %v5783_v53 = vpop.f32.mrf.mxu1  ;;  %6047 = vrot.lane.b32.xlu2 %v5961_v18, %s13412_s30  ;;  %v5123_v16 = vadd.f32 %v20798_v13, %v4723_v3  ;;  %v20799_v18 = vld [vmem:[#allocation25_spill] sm:$0xff] }
 0x64b   : > { %v5825_v2 = vadd.f32 %v5783_v53, %v5465_v38  ;;  %6045 = vrot.lane.b32.xlu1 %v5960_v30, %s13412_s30  ;;  %v5114_v34 = vadd.f32 %v20788_v31, %v4714_v49 }
 0x64c   : > { %v5871_v8 = vadd.f32 %v20731_v12, %v5826_v32  ;;  %v5483_v5 = vadd.f32 %v20799_v18, %v5123_v16 }
 0x64d   : > { %v5870_v63 = vadd.f32 %v20731_v12, %v5825_v2  ;;  %v5474_v41 = vadd.f32 %v20791_v45, %v5114_v34  ;;  %v4371_v12 = vadd.f32 %v20792_v17, %v4018_v23 }
 0x64e   : > { %v5898_v42 = vmax.f32 %v5871_v8, 0.0 }
 0x64f   : > { %v5897_v59 = vmax.f32 %v5870_v63, 0.0  ;;  %v4724_v60 = vadd.f32 %v20795_v52, %v4371_v12 }
 0x650   : > { %v5947_v0 = vmul.f32 %v13232_v7, %v5898_v42 }
 0x651   : > { %v5946_v57 = vmul.f32 %v5928_v40, %v5897_v59  ;;  %v5812_v55 = vpop.f32.mrf.mxu0  ;;  %v5124_v62 = vadd.f32 %v20797_v37, %v4724_v60 }
 0x652   : > { %v5835_v14 = vadd.f32 %v5812_v55, %v5475_v43  ;;  %v5786_v47 = vpop.f32.mrf.mxu1  ;;  %6019 = vrot.lane.b32.xlu0 %v5947_v0, %s13412_s30 }
 0x653   : > { %v5834_v54 = vadd.f32 %v5786_v47, %v5474_v41  ;;  %6017 = vrot.lane.b32.xlu2 %v5946_v57, %s13412_s30  ;;  %6015 = vrot.lane.b32.xlu1 %v16415_v35, %s13412_s30  ;;  %v5484_v56 = vadd.f32 %v16386_v29, %v5124_v62 }
 0x654   : > { %v5880_v39 = vadd.f32 %v20734_v19, %v5835_v14 }
 0x655   : > { %v5879_v36 = vadd.f32 %v20734_v19, %v5834_v54 }
 0x656   : > { %v5907_v33 = vmax.f32 %v5880_v39, 0.0 }
 0x657   : > { %v5906_v26 = vmax.f32 %v5879_v36, 0.0 }
 0x658   : > { %v5956_v61 = vmul.f32 %v13232_v7, %v5907_v33 }
 0x659   : > { %v5955_v35 = vmul.f32 %v5928_v40, %v5906_v26  ;;  %v5815_v38 = vpop.f32.mrf.mxu0 }
 0x65a   : > { %v5844_v30 = vadd.f32 %v5815_v38, %v5484_v56  ;;  %v5789_v21 = vpop.f32.mrf.mxu1  ;;  %6037 = vrot.lane.b32.xlu0 %v5956_v61, %s13412_s30 }
 0x65b   : > { %v5843_v28 = vadd.f32 %v5789_v21, %v5483_v5  ;;  %6035 = vrot.lane.b32.xlu2 %v5955_v35, %s13412_s30  ;;  %6033 = vrot.lane.b32.xlu1 %v16446_v20, %s13412_s30 }
 0x65c   : > { %v5889_v19 = vadd.f32 %v20735_v22, %v5844_v30 }
 0x65d   : > { %v5888_v27 = vadd.f32 %v20735_v22, %v5843_v28 }
 0x65e   : > { %v5916_v29 = vmax.f32 %v5889_v19, 0.0 }
 0x65f   : > { %v5915_v32 = vmax.f32 %v5888_v27, 0.0 }
 0x660   : > { %v5965_v53 = vmul.f32 %v13232_v7, %v5916_v29 }
 0x661   : > { %v5964_v51 = vmul.f32 %v5928_v40, %v5915_v32 }
 0x662   : > { %6055 = vrot.lane.b32.xlu0 %v5965_v53, %s13412_s30 }
 0x663   : > { %6053 = vrot.lane.b32.xlu2 %v5964_v51, %s13412_s30  ;;  %6051 = vrot.lane.b32.xlu1 %v16470_v10, %s13412_s30 }
 0x666   : > { %v6006_v22 = vpop.permute.xlu2 %6005 }
 0x66e   : > { %v6024_v20 = vpop.permute.xlu2 %6023 }
 0x676   : > { %v6042_v6 = vpop.permute.xlu2 %6041 }
 0x68d   : > { %v6008_v2 = vpop.permute.xlu0 %6007 }
 0x68e   : > { %v16541_v24 = vsel %vm5966_vm8, %v6006_v22, %v6008_v2 }
 0x68f   : > { %6114 = vst [vmem:[#allocation4 + $0x10] sm:$0xff] %v16541_v24 }
 0x694   : > { %v6004_v10 = vpop.permute.xlu1 %6003  ;;  %v6012_v25 = vpop.permute.xlu2 %6011 }
 0x695   : > { %v6057_v7 = vsel %vm5966_vm8, %v6004_v10, %v6006_v22  ;;  %6112 = vst.msk [vmem:[#allocation4] sm:$0xff] %vm6111_vm13, %v6004_v10 }
 0x696   : > { %v16544_v8 = vpop.permute.xlu0 %6013  ;;  %6113 = vst [vmem:[#allocation4 + $0x8] sm:$0xff] %v6057_v7 }
 0x697   : > { %v16549_v11 = vsel %vm5966_vm8, %v6012_v25, %v16544_v8 }
 0x698   : > { %6117 = vst [vmem:[#allocation4 + $0x28] sm:$0xff] %v16549_v11 }
 0x69c   : > { %v7319_v49 = vld [vmem:[#allocation4] sm:$0xff]  ;;  %v6022_v63 = vpop.permute.xlu1 %6021  ;;  %v6030_v34 = vpop.permute.xlu2 %6029 }
 0x69d   : > { %v16553_v1 = vsel %vm5966_vm8, %v6022_v63, %v6024_v20  ;;  %6122 = vst.msk [vmem:[#allocation4 + $0x50] sm:$0xff] %vm6111_vm13, %v6022_v63  ;;  %v16555_v46 = vpack.i.bf16 %v6057_v7, %v7319_v49  ;;  %vm6297_vm13 = vcmask 162816  }
 0x69e   : > { %v6026_v40 = vpop.permute.xlu0 %6025  ;;  %6123 = vst [vmem:[#allocation4 + $0x58] sm:$0xff] %v16553_v1 }
 0x69f   : > { %v16558_v42 = vsel %vm5966_vm8, %v6024_v20, %v6026_v40  ;;  %12518 = vrot.lane.b32.xlu0 %v16555_v46, %s13404_s12  ;;  %12523 = vrot.lane.b32.xlu2 %v16555_v46, %s13405_s14 }
 0x6a0   : > { %6124 = vst [vmem:[#allocation4 + $0x60] sm:$0xff] %v16558_v42  ;;  %12498 = vrot.lane.b32.xlu1 %v16555_v46, %s13399_s27 }
 0x6a4   : > { %v6040_v31 = vpop.permute.xlu1 %6039  ;;  %v16584_v23 = vld [vmem:[#allocation4 + $0x50] sm:$0xff]  ;;  %v6048_v17 = vpop.permute.xlu2 %6047 }
 0x6a5   : > { %v6073_v4 = vsel %vm5966_vm8, %v6040_v31, %v6042_v6  ;;  %6133 = vst.msk [vmem:[#allocation4 + $0xa0] sm:$0xf] %vm6132_vm1, %v6040_v31  ;;  %v16588_v0 = vpack.i.bf16 %v16553_v1, %v16584_v23 }
 0x6a6   : > { %v16570_v59 = vpop.permute.xlu0 %6031  ;;  %6134 = vst [vmem:[#allocation4 + $0xa8] sm:$0xf] %v6073_v4 }
 0x6a7   : > { %v16575_v48 = vsel %vm5966_vm8, %v6030_v34, %v16570_v59  ;;  %12533 = vrot.lane.b32.xlu0 %v16555_v46, %s13409_s18  ;;  %12538 = vrot.lane.b32.xlu2 %v16555_v46, %s13410_s19 }
 0x6a8   : > { %6127 = vst [vmem:[#allocation4 + $0x78] sm:$0xff] %v16575_v48  ;;  %12503 = vrot.lane.b32.xlu1 %v16555_v46, %s13400_s29 }
 0x6ac   : > { %v16634_v36 = vld [vmem:[#allocation4 + $0xa0] sm:$0xf] }
 0x6ad   : > { %v6010_v41 = vpop.permute.xlu1 %6009  ;;  %v6018_v60 = vpop.permute.xlu2 %6017  ;;  %v16686_v29 = vld [vmem:[#allocation4 + $0xa8] sm:$0xf]  ;;  %v16691_v53 = vld [vmem:[#allocation4 + $0xa0] sm:$0xf] }
 0x6ae   : > { %v6044_v43 = vpop.permute.xlu0 %6043  ;;  %v16592_v57 = vsel %vm5966_vm8, %v6008_v2, %v6010_v41  ;;  %v16595_v55 = vsel %vm5966_vm8, %v6010_v41, %v6012_v25  ;;  %v6164_v32 = vld [vmem:[#allocation4 + $0xa8] sm:$0xf] }
 0x6af   : > { %v6074_v45 = vsel %vm5966_vm8, %v6042_v6, %v6044_v43  ;;  %12548 = vrot.lane.b32.xlu0 %v16555_v46, %s13414_s11  ;;  %12558 = vrot.lane.b32.xlu2 %v16588_v0, %s13404_s12  ;;  %6115 = vst [vmem:[#allocation4 + $0x18] sm:$0xff] %v16592_v57  ;;  %v16707_v51 = vpack.i.bf16 %v16592_v57, %v16541_v24 }
 0x6b0   : > { %6135 = vst [vmem:[#allocation4 + $0xb0] sm:$0xf] %v6074_v45  ;;  %12508 = vrot.lane.b32.xlu1 %v16555_v46, %s13415_s28  ;;  %v12647_v20 = vpack.i.bf16 %v16549_v11, %v16595_v55 }
 0x6b1   : > { %6116 = vst [vmem:[#allocation4 + $0x20] sm:$0xff] %v16595_v55 }
 0x6b5   : > { %v6028_v47 = vpop.permute.xlu1 %6027  ;;  %v6036_v33 = vpop.permute.xlu2 %6035 }
 0x6b6   : > { %v6050_v12 = vpop.permute.xlu0 %6049  ;;  %v16608_v44 = vsel %vm5966_vm8, %v6026_v40, %v6028_v47  ;;  %v16611_v15 = vsel %vm5966_vm8, %v6028_v47, %v6030_v34 }
 0x6b7   : > { %v6077_v14 = vsel %vm5966_vm8, %v6048_v17, %v6050_v12  ;;  %12553 = vrot.lane.b32.xlu0 %v16588_v0, %s13408_s16  ;;  %12573 = vrot.lane.b32.xlu2 %v16588_v0, %s13409_s18  ;;  %6125 = vst [vmem:[#allocation4 + $0x68] sm:$0xff] %v16608_v44 }
 0x6b8   : > { %6138 = vst [vmem:[#allocation4 + $0xc8] sm:$0xf] %v6077_v14  ;;  %12513 = vrot.lane.b32.xlu1 %v16555_v46, %s13408_s16  ;;  %v12717_v14 = vpack.i.bf16 %v16611_v15, %v16608_v44 }
 0x6b9   : > { %6126 = vst [vmem:[#allocation4 + $0x70] sm:$0xff] %v16611_v15 }
 0x6bd   : > { %v6046_v9 = vpop.permute.xlu1 %6045  ;;  %v6054_v18 = vpop.permute.xlu2 %6053 }
 0x6be   : > { %v6075_v54 = vsel %vm5966_vm8, %v6044_v43, %v6046_v9  ;;  %v6076_v52 = vsel %vm5966_vm8, %v6046_v9, %v6048_v17 }
 0x6bf   : > { %12568 = vrot.lane.b32.xlu0 %v16588_v0, %s13406_s15  ;;  %12588 = vrot.lane.b32.xlu2 %v16588_v0, %s13414_s11  ;;  %6136 = vst [vmem:[#allocation4 + $0xb8] sm:$0xf] %v6075_v54 }
 0x6c0   : > { %12528 = vrot.lane.b32.xlu1 %v16555_v46, %s13406_s15  ;;  %6137 = vst [vmem:[#allocation4 + $0xc0] sm:$0xf] %v6076_v52  ;;  %v12742_v52 = vpack.i.bf16 %v16608_v44, %v16558_v42 }
 0x6c4   : > { %v6020_v39 = vpop.permute.xlu0 %6019 }
 0x6c5   : > { %v16630_v58 = vsel %vm5966_vm8, %v6018_v60, %v6020_v39  ;;  %6121 = vst.msk [vmem:[#allocation4 + $0x48] sm:$0xff] %vm2671_vm14, %v6020_v39  ;;  %v6016_v3 = vpop.permute.xlu1 %6015 }
 0x6c6   : > { %6120 = vst [vmem:[#allocation4 + $0x40] sm:$0xff] %v16630_v58  ;;  %v16638_v37 = vsel %vm5966_vm8, %v16544_v8, %v6016_v3  ;;  %v16641_v62 = vsel %vm5966_vm8, %v6016_v3, %v6018_v60 }
 0x6c7   : > { %12583 = vrot.lane.b32.xlu0 %v16588_v0, %s13411_s25  ;;  %7419 = vrot.lane.b32.xlu2 %v16634_v36, %s13408_s16  ;;  %6118 = vst [vmem:[#allocation4 + $0x30] sm:$0xff] %v16638_v37 }
 0x6c8   : > { %12543 = vrot.lane.b32.xlu1 %v16555_v46, %s13411_s25  ;;  %6119 = vst [vmem:[#allocation4 + $0x38] sm:$0xff] %v16641_v62 }
 0x6cc   : > { %v6038_v13 = vpop.permute.xlu0 %6037  ;;  %v16673_v38 = vld [vmem:[#allocation4 + $0x48] sm:$0xff] }
 0x6cd   : > { %v16652_v16 = vsel %vm5966_vm8, %v6036_v33, %v6038_v13  ;;  %6131 = vst.msk [vmem:[#allocation4 + $0x98] sm:$0xff] %vm2671_vm14, %v6038_v13  ;;  %v6034_v26 = vpop.permute.xlu1 %6033  ;;  %vm6142_vm14 = vcmask 35840  }
 0x6ce   : > { %6130 = vst [vmem:[#allocation4 + $0x90] sm:$0xff] %v16652_v16  ;;  %v16658_v56 = vsel %vm5966_vm8, %v16570_v59, %v6034_v26  ;;  %v16661_v61 = vsel %vm5966_vm8, %v6034_v26, %v6036_v33 }
 0x6cf   : > { %8053 = vrot.lane.b32.xlu0 %v16634_v36, %s13405_s14  ;;  %8370 = vrot.lane.b32.xlu2 %v16634_v36, %s13406_s15  ;;  %6128 = vst [vmem:[#allocation4 + $0x80] sm:$0xff] %v16658_v56 }
 0x6d0   : > { %12563 = vrot.lane.b32.xlu1 %v16588_v0, %s13405_s14  ;;  %6129 = vst [vmem:[#allocation4 + $0x88] sm:$0xff] %v16661_v61 }
 0x6d1   : > { %20801 = vst [vmem:[#allocation44_spill] sm:$0xff] %v16673_v38 }
 0x6d4   : > { %v16671_v5 = vld [vmem:[#allocation4 + $0x98] sm:$0xff]  ;;  %v6056_v35 = vpop.permute.xlu0 %6055 }
 0x6d5   : > { %20800 = vst [vmem:[#allocation47_spill] sm:$0xff] %v16671_v5  ;;  %v6080_v30 = vsel %vm5966_vm8, %v6054_v18, %v6056_v35  ;;  %v6052_v21 = vpop.permute.xlu1 %6051 }
 0x6d6   : > { %6143 = vst.msk [vmem:[#allocation4 + $0xe8] sm:$0xf] %vm6142_vm14, %v6056_v35  ;;  %v6078_v19 = vsel %vm5966_vm8, %v6050_v12, %v6052_v21  ;;  %v6079_v27 = vsel %vm5966_vm8, %v6052_v21, %v6054_v18  ;;  %v16843_v18 = vpack.i.bf16 %v16575_v48, %v16611_v15  ;;  %vm7064_vm8 = vcmask 1022976  }
 0x6d7   : > { %6141 = vst [vmem:[#allocation4 + $0xe0] sm:$0xf] %v6080_v30  ;;  %9004 = vrot.lane.b32.xlu0 %v16634_v36, %s13410_s19  ;;  %9321 = vrot.lane.b32.xlu2 %v16634_v36, %s13411_s25 }
 0x6d8   : > { %6139 = vst [vmem:[#allocation4 + $0xd0] sm:$0xf] %v6078_v19  ;;  %12578 = vrot.lane.b32.xlu1 %v16588_v0, %s13410_s19  ;;  %v12702_v0 = vpack.i.bf16 %v16558_v42, %v16553_v1 }
 0x6d9   : > { %6140 = vst [vmem:[#allocation4 + $0xd8] sm:$0xf] %v6079_v27 }
 0x6da   : > { %20828 = vst [vmem:[#allocation36_spill] sm:$0xff] %v16843_v18 }
 0x6df   : > { %7421 = vrot.lane.b32.xlu0 %v16686_v29, %s13408_s16  ;;  %6239 = vrot.lane.b32.xlu2 %v6164_v32, %s13399_s27 }
 0x6e0   : > { %6237 = vrot.lane.b32.xlu1 %v16691_v53, %s13399_s27 }
 0x6e7   : > { %8372 = vrot.lane.b32.xlu0 %v16686_v29, %s13406_s15  ;;  %6740 = vrot.lane.b32.xlu2 %v6164_v32, %s13400_s29 }
 0x6e8   : > { %6738 = vrot.lane.b32.xlu1 %v16691_v53, %s13400_s29 }
 0x6ef   : > { %9323 = vrot.lane.b32.xlu0 %v16686_v29, %s13411_s25  ;;  %7048 = vrot.lane.b32.xlu2 %v6164_v32, %s13415_s28 }
 0x6f0   : > { %7046 = vrot.lane.b32.xlu1 %v16691_v53, %s13415_s28 }
 0x6f7   : > { %7738 = vrot.lane.b32.xlu2 %v16686_v29, %s13404_s12  ;;  %12618 = vrot.lane.b32.xlu0 %v16707_v51, %s13405_s14 }
 0x6f8   : > { %7736 = vrot.lane.b32.xlu1 %v16634_v36, %s13404_s12 }
 0x6f9   : > { %v16715_v50 = vpop.permute.xlu2 %12523 }
 0x6fa   : > { %20802 = vst [vmem:[#allocation33_spill] sm:$0xff] %v16715_v50 }
 0x6ff   : > { %8689 = vrot.lane.b32.xlu2 %v16686_v29, %s13409_s18  ;;  %12633 = vrot.lane.b32.xlu0 %v16707_v51, %s13410_s19 }
 0x700   : > { %8687 = vrot.lane.b32.xlu1 %v16634_v36, %s13409_s18 }
 0x701   : > { %v16723_v22 = vpop.permute.xlu2 %12538 }
 0x702   : > { %20803 = vst [vmem:[#allocation23_spill] sm:$0xff] %v16723_v22  ;;  %v16943_v22 = vld [vmem:[#allocation4 + $0xc0] sm:$0xf] }
 0x707   : > { %12648 = vrot.lane.b32.xlu0 %v12647_v20, %s13399_s27  ;;  %12593 = vrot.lane.b32.xlu2 %v16707_v51, %s13399_s27 }
 0x708   : > { %9638 = vrot.lane.b32.xlu1 %v16634_v36, %s13414_s11 }
 0x709   : > { %v16732_v6 = vpop.permute.xlu2 %12558 }
 0x70a   : > { %20804 = vst [vmem:[#allocation37_spill] sm:$0xff] %v16732_v6 }
 0x70f   : > { %12653 = vrot.lane.b32.xlu0 %v12647_v20, %s13400_s29  ;;  %12598 = vrot.lane.b32.xlu2 %v16707_v51, %s13400_s29 }
 0x710   : > { %8055 = vrot.lane.b32.xlu1 %v16686_v29, %s13405_s14 }
 0x711   : > { %v16739_v2 = vpop.permute.xlu0 %12518  ;;  %v16741_v24 = vpop.permute.xlu2 %12573 }
 0x712   : > { %20805 = vst [vmem:[#allocation65_spill] sm:$0xff] %v16739_v2  ;;  %v16743_v10 = vpop.permute.xlu1 %12498  ;;  %v17087_v2 = vpack.i.bf16 %v16673_v38, %v16630_v58 }
 0x713   : > { %20806 = vst [vmem:[#allocation48_spill] sm:$0xff] %v16741_v24 }
 0x717   : > { %12658 = vrot.lane.b32.xlu0 %v12647_v20, %s13415_s28  ;;  %12603 = vrot.lane.b32.xlu2 %v16707_v51, %s13415_s28 }
 0x718   : > { %9006 = vrot.lane.b32.xlu1 %v16686_v29, %s13410_s19 }
 0x719   : > { %v16750_v25 = vpop.permute.xlu0 %12533  ;;  %v16752_v8 = vpop.permute.xlu2 %12588 }
 0x71a   : > { %20807 = vst [vmem:[#allocation20_spill] sm:$0xff] %v16750_v25  ;;  %v16754_v7 = vpop.permute.xlu1 %12503 }
 0x71b   : > { %20808 = vst [vmem:[#allocation19_spill] sm:$0xff] %v16752_v8 }
 0x71f   : > { %12663 = vrot.lane.b32.xlu0 %v12647_v20, %s13408_s16  ;;  %12608 = vrot.lane.b32.xlu2 %v16707_v51, %s13408_s16 }
 0x720   : > { %12613 = vrot.lane.b32.xlu1 %v16707_v51, %s13404_s12 }
 0x721   : > { %v16761_v11 = vpop.permute.xlu0 %12548  ;;  %v16763_v49 = vpop.permute.xlu2 %7419 }
 0x722   : > { %20809 = vst [vmem:[#allocation45_spill] sm:$0xff] %v16761_v11  ;;  %v16765_v63 = vpop.permute.xlu1 %12508 }
 0x723   : > { %20810 = vst [vmem:[#allocation39_spill] sm:$0xff] %v16763_v49 }
 0x724   : > { %20811 = vst [vmem:[#allocation40_spill] sm:$0xff] %v16765_v63  ;;  %v17541_v63 = vld [vmem:[#allocation4 + $0x58] sm:$0xff] }
 0x727   : > { %12678 = vrot.lane.b32.xlu0 %v12647_v20, %s13406_s15  ;;  %12623 = vrot.lane.b32.xlu2 %v16707_v51, %s13406_s15 }
 0x728   : > { %12628 = vrot.lane.b32.xlu1 %v16707_v51, %s13409_s18 }
 0x729   : > { %v16772_v40 = vpop.permute.xlu0 %12553  ;;  %v16774_v31 = vpop.permute.xlu2 %8370 }
 0x72a   : > { %20812 = vst [vmem:[#allocation71_spill] sm:$0xff] %v16772_v40  ;;  %v16776_v34 = vpop.permute.xlu1 %12513 }
 0x72b   : > { %20813 = vst [vmem:[#allocation75_spill] sm:$0xff] %v16774_v31 }
 0x72c   : > { %20814 = vst [vmem:[#allocation66_spill] sm:$0xff] %v16776_v34  ;;  %v17398_v34 = vld [vmem:[#allocation4 + $0xe0] sm:$0xf] }
 0x72f   : > { %12693 = vrot.lane.b32.xlu0 %v12647_v20, %s13411_s25  ;;  %12638 = vrot.lane.b32.xlu2 %v16707_v51, %s13411_s25 }
 0x730   : > { %12643 = vrot.lane.b32.xlu1 %v16707_v51, %s13414_s11 }
 0x731   : > { %v16783_v59 = vpop.permute.xlu0 %12568  ;;  %v16785_v4 = vpop.permute.xlu2 %9321 }
 0x732   : > { %20815 = vst [vmem:[#allocation68_spill] sm:$0xff] %v16783_v59  ;;  %v16787_v43 = vpop.permute.xlu1 %12528 }
 0x733   : > { %20816 = vst [vmem:[#allocation57_spill] sm:$0xff] %v16785_v4  ;;  %v16905_v4 = vld [vmem:[#allocation4 + $0xc0] sm:$0xf] }
 0x734   : > { %20817 = vst [vmem:[#allocation52_spill] sm:$0xff] %v16787_v43 }
 0x737   : > { %12703 = vrot.lane.b32.xlu0 %v12702_v0, %s13399_s27  ;;  %12668 = vrot.lane.b32.xlu2 %v12647_v20, %s13404_s12 }
 0x738   : > { %12673 = vrot.lane.b32.xlu1 %v12647_v20, %s13405_s14 }
 0x739   : > { %v16794_v45 = vpop.permute.xlu0 %12583  ;;  %v16796_v41 = vpop.permute.xlu2 %6239 }
 0x73a   : > { %20818 = vst [vmem:[#allocation49_spill] sm:$0xff] %v16794_v45  ;;  %v16798_v57 = vpop.permute.xlu1 %12543 }
 0x73b   : > { %20819 = vst [vmem:[#allocation31_spill] sm:$0xff] %v16798_v57 }
 0x73f   : > { %12708 = vrot.lane.b32.xlu0 %v12702_v0, %s13400_s29  ;;  %12683 = vrot.lane.b32.xlu2 %v12647_v20, %s13409_s18 }
 0x740   : > { %12688 = vrot.lane.b32.xlu1 %v12647_v20, %s13410_s19 }
 0x741   : > { %v16803_v17 = vpop.permute.xlu0 %8053  ;;  %v16805_v1 = vpop.permute.xlu2 %6740 }
 0x742   : > { %20820 = vst [vmem:[#allocation38_spill] sm:$0xff] %v16803_v17  ;;  %v16807_v12 = vpop.permute.xlu1 %12563 }
 0x743   : > { %20821 = vst [vmem:[#allocation67_spill] sm:$0xff] %v16807_v12 }
 0x747   : > { %12713 = vrot.lane.b32.xlu0 %v12702_v0, %s13415_s28  ;;  %12698 = vrot.lane.b32.xlu2 %v12647_v20, %s13414_s11  ;;  %v16877_v0 = vld [vmem:[#allocation4 + $0xb0] sm:$0xf] }
 0x748   : > { %12718 = vrot.lane.b32.xlu1 %v12717_v14, %s13399_s27 }
 0x749   : > { %v16814_v47 = vpop.permute.xlu0 %9004  ;;  %v16816_v9 = vpop.permute.xlu2 %7048 }
 0x74a   : > { %20822 = vst [vmem:[#allocation15_spill] sm:$0xff] %v16814_v47  ;;  %v16818_v54 = vpop.permute.xlu1 %12578 }
 0x74b   : > { %20823 = vst [vmem:[#allocation35_spill] sm:$0xff] %v16818_v54 }
 0x74f   : > { %12743 = vrot.lane.b32.xlu2 %v12742_v52, %s13405_s14  ;;  %12738 = vrot.lane.b32.xlu0 %v12742_v52, %s13404_s12 }
 0x750   : > { %12723 = vrot.lane.b32.xlu1 %v12717_v14, %s13400_s29 }
 0x751   : > { %v16825_v60 = vpop.permute.xlu0 %7421  ;;  %v16827_v39 = vpop.permute.xlu2 %7738 }
 0x752   : > { %20824 = vst [vmem:[#allocation55_spill] sm:$0xff] %v16825_v60  ;;  %v6238_v3 = vpop.permute.xlu1 %6237 }
 0x753   : > { %20825 = vst [vmem:[#allocation73_spill] sm:$0xff] %v16827_v39  ;;  %v6271_v33 = vsel %vm645_vm4, %v6238_v3, %v16796_v41  ;;  %v20337_v39 = vunpack.i.h.bf16 %v16743_v10 }
 0x754   : > { %11952 = vmatpush.msk.msra.mxu2 %vm618_vm0, %v6271_v33 }
 0x757   : > { %12758 = vrot.lane.b32.xlu2 %v12742_v52, %s13410_s19  ;;  %12753 = vrot.lane.b32.xlu0 %v12742_v52, %s13409_s18 }
 0x758   : > { %12728 = vrot.lane.b32.xlu1 %v12717_v14, %s13415_s28  ;;  %v16879_v14 = vld [vmem:[#allocation4 + $0xb0] sm:$0xf] }
 0x759   : > { %v16835_v42 = vpop.permute.xlu0 %8372  ;;  %v16837_v13 = vpop.permute.xlu2 %8689 }
 0x75a   : > { %20826 = vst [vmem:[#allocation76_spill] sm:$0xff] %v16835_v42  ;;  %v16839_v26 = vpop.permute.xlu1 %6738 }
 0x75b   : > { %20827 = vst [vmem:[#allocation69_spill] sm:$0xff] %v16837_v13 }
 0x75f   : > { %12773 = vrot.lane.b32.xlu2 %v16843_v18, %s13408_s16  ;;  %12768 = vrot.lane.b32.xlu0 %v12742_v52, %s13414_s11 }
 0x760   : > { %12733 = vrot.lane.b32.xlu1 %v12742_v52, %s13408_s16 }
 0x761   : > { %v16849_v35 = vpop.permute.xlu0 %9323  ;;  %v16851_v30 = vpop.permute.xlu2 %12593 }
 0x762   : > { %20829 = vst [vmem:[#allocation26_spill] sm:$0xff] %v16849_v35  ;;  %v16853_v21 = vpop.permute.xlu1 %7046 }
 0x763   : > { %20830 = vst [vmem:[#allocation14_spill] sm:$0xff] %v16853_v21 }
 0x767   : > { %12788 = vrot.lane.b32.xlu2 %v16843_v18, %s13406_s15  ;;  %12783 = vrot.lane.b32.xlu0 %v16843_v18, %s13405_s14 }
 0x768   : > { %12748 = vrot.lane.b32.xlu1 %v12742_v52, %s13406_s15 }
 0x769   : > { %v16860_v48 = vpop.permute.xlu0 %12618  ;;  %v16862_v15 = vpop.permute.xlu2 %12598 }
 0x76a   : > { %20831 = vst [vmem:[#allocation43_spill] sm:$0xff] %v16860_v48  ;;  %v16864_v19 = vpop.permute.xlu1 %7736  ;;  %v17011_v48 = vld [vmem:[#allocation4 + $0xc8] sm:$0xf] }
 0x76b   : > { %20832 = vst [vmem:[#allocation28_spill] sm:$0xff] %v16864_v19  ;;  %v20335_v19 = vunpack.i.l.bf16 %v16851_v30 }
 0x76f   : > { %12803 = vrot.lane.b32.xlu2 %v16843_v18, %s13411_s25  ;;  %12798 = vrot.lane.b32.xlu0 %v16843_v18, %s13410_s19 }
 0x770   : > { %12763 = vrot.lane.b32.xlu1 %v12742_v52, %s13411_s25 }
 0x771   : > { %v16871_v27 = vpop.permute.xlu0 %12633  ;;  %v16873_v32 = vpop.permute.xlu2 %12603 }
 0x772   : > { %20833 = vst [vmem:[#allocation56_spill] sm:$0xff] %v16871_v27  ;;  %v16875_v20 = vpop.permute.xlu1 %8687 }
 0x773   : > { %20834 = vst [vmem:[#allocation46_spill] sm:$0xff] %v16873_v32 }
 0x774   : > { %20835 = vst [vmem:[#allocation17_spill] sm:$0xff] %v16875_v20  ;;  %v16945_v20 = vld [vmem:[#allocation4 + $0xb8] sm:$0xf] }
 0x777   : > { %8057 = vrot.lane.b32.xlu2 %v16877_v0, %s13405_s14  ;;  %6241 = vrot.lane.b32.xlu0 %v16879_v14, %s13399_s27 }
 0x778   : > { %12778 = vrot.lane.b32.xlu1 %v16843_v18, %s13404_s12 }
 0x779   : > { %v16887_v52 = vpop.permute.xlu0 %12648  ;;  %v16889_v3 = vpop.permute.xlu2 %12608 }
 0x77a   : > { %20836 = vst [vmem:[#allocation18_spill] sm:$0xff] %v16889_v3  ;;  %v16891_v33 = vpop.permute.xlu1 %9638 }
 0x77b   : > { %20837 = vst [vmem:[#allocation70_spill] sm:$0xff] %v16891_v33 }
 0x77f   : > { %9008 = vrot.lane.b32.xlu2 %v16877_v0, %s13410_s19  ;;  %6742 = vrot.lane.b32.xlu0 %v16879_v14, %s13400_s29 }
 0x780   : > { %12793 = vrot.lane.b32.xlu1 %v16843_v18, %s13409_s18 }
 0x781   : > { %v16899_v28 = vpop.permute.xlu0 %12653  ;;  %v16901_v11 = vpop.permute.xlu2 %12623 }
 0x782   : > { %20838 = vst [vmem:[#allocation50_spill] sm:$0xff] %v16901_v11  ;;  %v16903_v8 = vpop.permute.xlu1 %8055 }
 0x783   : > { %20839 = vst [vmem:[#allocation22_spill] sm:$0xff] %v16903_v8 }
 0x787   : > { %7050 = vrot.lane.b32.xlu0 %v16879_v14, %s13415_s28  ;;  %6245 = vrot.lane.b32.xlu2 %v16905_v4, %s13399_s27 }
 0x788   : > { %12808 = vrot.lane.b32.xlu1 %v16843_v18, %s13414_s11 }
 0x789   : > { %v16913_v33 = vpop.permute.xlu0 %12658  ;;  %v16915_v35 = vpop.permute.xlu2 %12638 }
 0x78a   : > { %20840 = vst [vmem:[#allocation13_spill] sm:$0xff] %v16913_v33  ;;  %v16917_v57 = vpop.permute.xlu1 %9006 }
 0x78b   : > { %20841 = vst [vmem:[#allocation21_spill] sm:$0xff] %v16915_v35 }
 0x78c   : > { %20842 = vst [vmem:[#allocation59_spill] sm:$0xff] %v16917_v57 }
 0x78f   : > { %7740 = vrot.lane.b32.xlu0 %v16877_v0, %s13404_s12  ;;  %6746 = vrot.lane.b32.xlu2 %v16905_v4, %s13400_s29 }
 0x790   : > { %7423 = vrot.lane.b32.xlu1 %v16877_v0, %s13408_s16 }
 0x791   : > { %v16925_v45 = vpop.permute.xlu0 %12663  ;;  %v16927_v27 = vpop.permute.xlu2 %12668 }
 0x792   : > { %20843 = vst [vmem:[#allocation61_spill] sm:$0xff] %v16925_v45  ;;  %v16929_v47 = vpop.permute.xlu1 %12613  ;;  %v20360_v45 = vunpack.i.l.bf16 %v16887_v52 }
 0x793   : > { %20844 = vst [vmem:[#allocation16_spill] sm:$0xff] %v16927_v27 }
 0x794   : > { %20845 = vst [vmem:[#allocation12_spill] sm:$0xff] %v16929_v47 }
 0x797   : > { %8691 = vrot.lane.b32.xlu0 %v16877_v0, %s13409_s18  ;;  %7054 = vrot.lane.b32.xlu2 %v16905_v4, %s13415_s28 }
 0x798   : > { %8374 = vrot.lane.b32.xlu1 %v16877_v0, %s13406_s15 }
 0x799   : > { %v16937_v35 = vpop.permute.xlu0 %12678  ;;  %v16939_v57 = vpop.permute.xlu2 %12683 }
 0x79a   : > { %20846 = vst [vmem:[#allocation30_spill] sm:$0xff] %v16937_v35  ;;  %v16941_v54 = vpop.permute.xlu1 %12628 }
 0x79b   : > { %20847 = vst [vmem:[#allocation72_spill] sm:$0xff] %v16939_v57 }
 0x79c   : > { %20848 = vst [vmem:[#allocation51_spill] sm:$0xff] %v16941_v54  ;;  %v16963_v54 = vld [vmem:[#allocation4 + $0xb8] sm:$0xf] }
 0x79f   : > { %7427 = vrot.lane.b32.xlu0 %v16943_v22, %s13408_s16  ;;  %7425 = vrot.lane.b32.xlu2 %v16945_v20, %s13408_s16 }
 0x7a0   : > { %9325 = vrot.lane.b32.xlu1 %v16877_v0, %s13411_s25 }
 0x7a1   : > { %v16953_v13 = vpop.permute.xlu0 %12693  ;;  %v16955_v25 = vpop.permute.xlu2 %12698 }
 0x7a2   : > { %20849 = vst [vmem:[#allocation29_spill] sm:$0xff] %v16953_v13  ;;  %v16957_v57 = vpop.permute.xlu1 %12643 }
 0x7a3   : > { %20850 = vst [vmem:[#allocation53_spill] sm:$0xff] %v16955_v25 }
 0x7a4   : > { %20851 = vst [vmem:[#allocation58_spill] sm:$0xff] %v16957_v57 }
 0x7a7   : > { %8059 = vrot.lane.b32.xlu0 %v16945_v20, %s13405_s14  ;;  %7744 = vrot.lane.b32.xlu2 %v16943_v22, %s13404_s12 }
 0x7a8   : > { %6243 = vrot.lane.b32.xlu1 %v16963_v54, %s13399_s27 }
 0x7a9   : > { %v16967_v24 = vpop.permute.xlu0 %12703  ;;  %v16969_v31 = vpop.permute.xlu2 %12743 }
 0x7aa   : > { %20852 = vst [vmem:[#allocation24_spill] sm:$0xff] %v16969_v31  ;;  %v16971_v13 = vpop.permute.xlu1 %12673  ;;  %v17009_v31 = vld [vmem:[#allocation4 + $0xc8] sm:$0xf] }
 0x7ab   : > { %20853 = vst [vmem:[#allocation63_spill] sm:$0xff] %v16971_v13 }
 0x7af   : > { %8378 = vrot.lane.b32.xlu0 %v16943_v22, %s13406_s15  ;;  %8376 = vrot.lane.b32.xlu2 %v16945_v20, %s13406_s15 }
 0x7b0   : > { %6744 = vrot.lane.b32.xlu1 %v16963_v54, %s13400_s29 }
 0x7b1   : > { %v16979_v25 = vpop.permute.xlu0 %12708  ;;  %v16981_v57 = vpop.permute.xlu2 %12758 }
 0x7b2   : > { %20854 = vst [vmem:[#allocation60_spill] sm:$0xff] %v16981_v57  ;;  %v16983_v42 = vpop.permute.xlu1 %12688 }
 0x7b3   : > { %20855 = vst [vmem:[#allocation27_spill] sm:$0xff] %v16983_v42 }
 0x7b7   : > { %9010 = vrot.lane.b32.xlu0 %v16945_v20, %s13410_s19  ;;  %8695 = vrot.lane.b32.xlu2 %v16943_v22, %s13409_s18 }
 0x7b8   : > { %7052 = vrot.lane.b32.xlu1 %v16963_v54, %s13415_s28 }
 0x7b9   : > { %v16991_v43 = vpop.permute.xlu0 %12713  ;;  %v16993_v59 = vpop.permute.xlu2 %12773 }
 0x7ba   : > { %20856 = vst [vmem:[#allocation34_spill] sm:$0xff] %v16993_v59  ;;  %v16995_v11 = vpop.permute.xlu1 %12718 }
 0x7bb   : > { %v20361_v6 = vunpack.i.h.bf16 %v16995_v11 }
 0x7bf   : > { %9329 = vrot.lane.b32.xlu0 %v16943_v22, %s13411_s25  ;;  %9327 = vrot.lane.b32.xlu2 %v16945_v20, %s13411_s25 }
 0x7c0   : > { %7742 = vrot.lane.b32.xlu1 %v16945_v20, %s13404_s12 }
 0x7c1   : > { %v17003_v42 = vpop.permute.xlu2 %12788  ;;  %v17005_v57 = vpop.permute.xlu0 %12738 }
 0x7c2   : > { %20857 = vst [vmem:[#allocation74_spill] sm:$0xff] %v17003_v42  ;;  %v17007_v35 = vpop.permute.xlu1 %12723 }
 0x7c3   : > { %20858 = vst [vmem:[#allocation41_spill] sm:$0xff] %v17005_v57 }
 0x7c7   : > { %6247 = vrot.lane.b32.xlu0 %v17009_v31, %s13399_s27  ;;  %8063 = vrot.lane.b32.xlu2 %v17011_v48, %s13405_s14 }
 0x7c8   : > { %8061 = vrot.lane.b32.xlu1 %v16943_v22, %s13405_s14 }
 0x7c9   : > { %v17019_v13 = vpop.permute.xlu2 %12803  ;;  %v17021_v42 = vpop.permute.xlu0 %12753 }
 0x7ca   : > { %20859 = vst [vmem:[#allocation32_spill] sm:$0xff] %v17019_v13  ;;  %v17023_v17 = vpop.permute.xlu1 %12728  ;;  %v12817_v13 = vpack.i.bf16 %v16584_v23, %v16630_v58 }
 0x7cb   : > { %20860 = vst [vmem:[#allocation11_spill] sm:$0xff] %v17021_v42 }
 0x7cc   : > { %20861 = vst [vmem:[#allocation54_spill] sm:$0xff] %v17023_v17 }
 0x7cf   : > { %6748 = vrot.lane.b32.xlu0 %v17009_v31, %s13400_s29  ;;  %9014 = vrot.lane.b32.xlu2 %v17011_v48, %s13410_s19 }
 0x7d0   : > { %8693 = vrot.lane.b32.xlu1 %v16945_v20, %s13409_s18 }
 0x7d1   : > { %v17031_v8 = vpop.permute.xlu2 %8057  ;;  %v17033_v12 = vpop.permute.xlu0 %12768 }
 0x7d2   : > { %20862 = vst [vmem:[#allocation42_spill] sm:$0xff] %v17031_v8  ;;  %v17035_v50 = vpop.permute.xlu1 %12733 }
 0x7d3   : > { %20863 = vst [vmem:[#allocation64_spill] sm:$0xff] %v17033_v12 }
 0x7d4   : > { %20864 = vst [vmem:[#allocation62_spill] sm:$0xff] %v17035_v50 }
 0x7d7   : > { %7056 = vrot.lane.b32.xlu0 %v17009_v31, %s13415_s28  ;;  %12818 = vrot.lane.b32.xlu2 %v12817_v13, %s13399_s27 }
 0x7d8   : > { %9012 = vrot.lane.b32.xlu1 %v16943_v22, %s13410_s19 }
 0x7d9   : > { %v17044_v42 = vpop.permute.xlu2 %9008  ;;  %v17046_v47 = vpop.permute.xlu0 %12783 }
 0x7da   : > { %20865 = vst [vmem:[#allocation25_spill] sm:$0xff] %v17044_v42  ;;  %v17048_v8 = vpop.permute.xlu1 %12748  ;;  %v20336_v42 = vunpack.i.h.bf16 %v16967_v24 }
 0x7db   : > { %20866 = vst [vmem:[#allocation77_spill] sm:$0xff] %v17046_v47 }
 0x7dc   : > { %20867 = vst [vmem:[#allocation78_spill] sm:$0xff] %v17048_v8  ;;  %v20338_v8 = vunpack.i.l.bf16 %v16967_v24 }
 0x7df   : > { %7746 = vrot.lane.b32.xlu0 %v17011_v48, %s13404_s12  ;;  %12828 = vrot.lane.b32.xlu2 %v12817_v13, %s13400_s29 }
 0x7e0   : > { %7429 = vrot.lane.b32.xlu1 %v17011_v48, %s13408_s16 }
 0x7e1   : > { %v17055_v23 = vpop.permute.xlu0 %12798  ;;  %v17057_v12 = vpop.permute.xlu2 %6245 }
 0x7e2   : > { %20868 = vst [vmem:[#allocation79_spill] sm:$0xff] %v17055_v23  ;;  %v17059_v27 = vpop.permute.xlu1 %12763 }
 0x7e3   : > { %20869 = vst [vmem:[#allocation80_spill] sm:$0xff] %v17059_v27 }
 0x7e7   : > { %8697 = vrot.lane.b32.xlu0 %v17011_v48, %s13409_s18  ;;  %12838 = vrot.lane.b32.xlu2 %v12817_v13, %s13415_s28  ;;  %v6264_v13 = vsel %vm645_vm4, %v20338_v8, %v20336_v42 }
 0x7e8   : > { %8380 = vrot.lane.b32.xlu1 %v17011_v48, %s13406_s15 }
 0x7e9   : > { %v17068_v47 = vpop.permute.xlu0 %6241  ;;  %v17070_v57 = vpop.permute.xlu2 %6746 }
 0x7ea   : > { %v6272_v27 = vsel %vm645_vm4, %v16796_v41, %v17068_v47  ;;  %v17075_v23 = vpop.permute.xlu1 %12778  ;;  %v17091_v41 = vpack.i.bf16 %v16641_v62, %v16638_v37 }
 0x7eb   : > { %20870 = vst [vmem:[#allocation81_spill] sm:$0xff] %v17075_v23  ;;  %11954 = vmatpush.msk.msra.mxu3 %vm618_vm0, %v6272_v27  ;;  %v6256_v27 = vsel %vm645_vm4, %v20337_v39, %v20335_v19 }
 0x7ed   : > { %6353 = vmatpush.msra.mxu3 %v6264_v13 }
 0x7ef   : > { %12848 = vrot.lane.b32.xlu2 %v17087_v2, %s13408_s16  ;;  %12853 = vrot.lane.b32.xlu0 %v17091_v41, %s13404_s12 }
 0x7f0   : > { %9331 = vrot.lane.b32.xlu1 %v17011_v48, %s13411_s25  ;;  %6354 = vmatpush.msra.mxu3 %v6256_v27 }
 0x7f1   : > { %v17104_v58 = vpop.permute.xlu0 %6742  ;;  %v17106_v37 = vpop.permute.xlu2 %7054 }
 0x7f2   : > { %20871 = vst [vmem:[#allocation82_spill] sm:$0xff] %v17106_v37  ;;  %v17108_v62 = vpop.permute.xlu1 %12793 }
 0x7f3   : > { %20872 = vst [vmem:[#allocation83_spill] sm:$0xff] %v17108_v62 }
 0x7f7   : > { %12863 = vrot.lane.b32.xlu2 %v17091_v41, %s13405_s14  ;;  %12868 = vrot.lane.b32.xlu0 %v17087_v2, %s13405_s14 }
 0x7f8   : > { %12813 = vrot.lane.b32.xlu1 %v17091_v41, %s13399_s27 }
 0x7f9   : > { %v17116_v13 = vpop.permute.xlu0 %7050  ;;  %v17118_v19 = vpop.permute.xlu2 %7425 }
 0x7fa   : > { %20873 = vst [vmem:[#allocation84_spill] sm:$0xff] %v17118_v19  ;;  %v17120_v27 = vpop.permute.xlu1 %12808 }
 0x7fb   : > { %20874 = vst [vmem:[#allocation85_spill] sm:$0xff] %v17120_v27 }
 0x7ff   : > { %12878 = vrot.lane.b32.xlu2 %v17087_v2, %s13406_s15  ;;  %12883 = vrot.lane.b32.xlu0 %v17091_v41, %s13409_s18 }
 0x800   : > { %12823 = vrot.lane.b32.xlu1 %v17091_v41, %s13400_s29 }
 0x801   : > { %v17128_v42 = vpop.permute.xlu0 %7740  ;;  %v17130_v39 = vpop.permute.xlu2 %7744 }
 0x802   : > { %20875 = vst [vmem:[#allocation86_spill] sm:$0xff] %v17128_v42  ;;  %v17132_v8 = vpop.permute.xlu1 %7423 }
 0x803   : > { %20876 = vst [vmem:[#allocation87_spill] sm:$0xff] %v17130_v39 }
 0x804   : > { %20877 = vst [vmem:[#allocation88_spill] sm:$0xff] %v17132_v8  ;;  %v12596_v8 = vunpack.i.h.bf16 %v16851_v30 }
 0x807   : > { %12893 = vrot.lane.b32.xlu2 %v17091_v41, %s13410_s19  ;;  %12898 = vrot.lane.b32.xlu0 %v17087_v2, %s13410_s19 }
 0x808   : > { %12833 = vrot.lane.b32.xlu1 %v17091_v41, %s13415_s28 }
 0x809   : > { %v17140_v27 = vpop.permute.xlu0 %8691  ;;  %v17142_v38 = vpop.permute.xlu2 %8376 }
 0x80a   : > { %20878 = vst [vmem:[#allocation89_spill] sm:$0xff] %v17140_v27  ;;  %v17144_v62 = vpop.permute.xlu1 %8374  ;;  %v17158_v27 = vld [vmem:[#allocation4 + $0x78] sm:$0xff] }
 0x80b   : > { %20879 = vst [vmem:[#allocation90_spill] sm:$0xff] %v17142_v38  ;;  %v12922_v38 = vpack.i.bf16 %v16658_v56, %v17158_v27 }
 0x80c   : > { %20880 = vst [vmem:[#allocation91_spill] sm:$0xff] %v17144_v62  ;;  %v12937_v62 = vpack.i.bf16 %v16652_v16, %v16661_v61 }
 0x80f   : > { %12908 = vrot.lane.b32.xlu2 %v17087_v2, %s13411_s25  ;;  %12913 = vrot.lane.b32.xlu0 %v17091_v41, %s13414_s11 }
 0x810   : > { %12843 = vrot.lane.b32.xlu1 %v17091_v41, %s13408_s16 }
 0x811   : > { %v17152_v42 = vpop.permute.xlu0 %7427  ;;  %v17154_v39 = vpop.permute.xlu2 %8695 }
 0x812   : > { %20881 = vst [vmem:[#allocation92_spill] sm:$0xff] %v17152_v42  ;;  %v17156_v23 = vpop.permute.xlu1 %9325 }
 0x813   : > { %20882 = vst [vmem:[#allocation93_spill] sm:$0xff] %v17154_v39  ;;  %v12720_v39 = vunpack.i.l.bf16 %v16995_v11 }
 0x814   : > { %20883 = vst [vmem:[#allocation94_spill] sm:$0xff] %v17156_v23 }
 0x815   : > { %v6266_v3 = vsel %vm645_vm4, %v12720_v39, %v20361_v6 }
 0x817   : > { %12938 = vrot.lane.b32.xlu0 %v12937_v62, %s13399_s27  ;;  %12923 = vrot.lane.b32.xlu2 %v12922_v38, %s13399_s27 }
 0x818   : > { %12858 = vrot.lane.b32.xlu1 %v17087_v2, %s13404_s12 }
 0x819   : > { %v17170_v23 = vpop.permute.xlu0 %8059  ;;  %v17172_v19 = vpop.permute.xlu2 %9327 }
 0x81a   : > { %20884 = vst [vmem:[#allocation95_spill] sm:$0xff] %v17170_v23  ;;  %v6244_v42 = vpop.permute.xlu1 %6243 }
 0x81b   : > { %20885 = vst [vmem:[#allocation96_spill] sm:$0xff] %v17172_v19  ;;  %v6274_v59 = vsel %vm645_vm4, %v6244_v42, %v17057_v12  ;;  %v6258_v19 = vsel %vm645_vm4, %v12596_v8, %v20360_v45  ;;  %v6273_v49 = vsel %vm645_vm4, %v17068_v47, %v6244_v42  ;;  %v20897_v42 = vunpack.i.l.bf16 %v16851_v30 }
 0x81c   : > { %11958 = vmatpush.msk.msrb.mxu3 %vm618_vm0, %v6274_v59 }
 0x81e   : > { %6393 = vmatpush.msrb.mxu3 %v6266_v3 }
 0x81f   : > { %12943 = vrot.lane.b32.xlu0 %v12937_v62, %s13400_s29  ;;  %12928 = vrot.lane.b32.xlu2 %v12922_v38, %s13400_s29 }
 0x820   : > { %12873 = vrot.lane.b32.xlu1 %v17091_v41, %s13406_s15  ;;  %6394 = vmatpush.msrb.mxu3 %v6258_v19  ;;  %v17207_v19 = vpack.i.bf16 %v16661_v61, %v16658_v56  ;;  %v12500_v56 = vunpack.i.l.bf16 %v16743_v10  ;;  %v20893_v61 = vunpack.i.l.bf16 %v16967_v24 }
 0x821   : > { %v17189_v59 = vpop.permute.xlu0 %8378  ;;  %v17191_v23 = vpop.permute.xlu2 %8063 }
 0x822   : > { %20886 = vst [vmem:[#allocation97_spill] sm:$0xff] %v17189_v59  ;;  %v17193_v50 = vpop.permute.xlu1 %6744 }
 0x823   : > { %20887 = vst [vmem:[#allocation98_spill] sm:$0xff] %v17191_v23  ;;  %v17228_v23 = vpack.i.bf16 %v16671_v5, %v16652_v16  ;;  %v17308_v5 = vld [vmem:[#allocation4 + $0xe8] sm:$0xf] }
 0x827   : > { %12948 = vrot.lane.b32.xlu0 %v12937_v62, %s13415_s28  ;;  %12933 = vrot.lane.b32.xlu2 %v12922_v38, %s13415_s28 }
 0x828   : > { %12888 = vrot.lane.b32.xlu1 %v17087_v2, %s13409_s18 }
 0x829   : > { %v17199_v3 = vpop.permute.xlu0 %9010  ;;  %v17201_v45 = vpop.permute.xlu2 %9014 }
 0x82a   : > { %20888 = vst [vmem:[#allocation99_spill] sm:$0xff] %v17199_v3  ;;  %v17203_v6 = vpop.permute.xlu1 %7052 }
 0x82b   : > { %20889 = vst [vmem:[#allocation100_spill] sm:$0xff] %v17201_v45 }
 0x82c   : > { %20890 = vst [vmem:[#allocation101_spill] sm:$0xff] %v17203_v6 }
 0x82f   : > { %12953 = vrot.lane.b32.xlu0 %v17207_v19, %s13408_s16  ;;  %12963 = vrot.lane.b32.xlu2 %v17207_v19, %s13404_s12 }
 0x830   : > { %12903 = vrot.lane.b32.xlu1 %v17091_v41, %s13411_s25 }
 0x831   : > { %v17215_v38 = vpop.permute.xlu0 %9329  ;;  %v17217_v62 = vpop.permute.xlu2 %12818 }
 0x832   : > { %20891 = vst [vmem:[#allocation102_spill] sm:$0xff] %v17215_v38  ;;  %v12821_v45 = vunpack.i.h.bf16 %v17217_v62  ;;  %v17220_v3 = vpop.permute.xlu1 %7742  ;;  %v20894_v38 = vunpack.i.h.bf16 %v16743_v10 }
 0x833   : > { %20892 = vst [vmem:[#allocation103_spill] sm:$0xff] %v17220_v3 }
 0x834   : > { %v6263_v59 = vsel %vm645_vm4, %v12821_v45, %v20893_v61  ;;  %v6255_v3 = vsel %vm645_vm4, %v12500_v56, %v20894_v38  ;;  %v20896_v38 = vunpack.i.h.bf16 %v16967_v24 }
 0x835   : > { %6333 = vmatpush.msra.mxu2 %v6263_v59 }
 0x836   : > { %v6265_v47 = vsel %vm645_vm4, %v20896_v38, %v12720_v39  ;;  %v17294_v38 = vld [vmem:[#allocation4 + $0xd0] sm:$0xf] }
 0x837   : > { %12968 = vrot.lane.b32.xlu0 %v17228_v23, %s13404_s12  ;;  %12978 = vrot.lane.b32.xlu2 %v17228_v23, %s13405_s14 }
 0x838   : > { %12918 = vrot.lane.b32.xlu1 %v17087_v2, %s13414_s11  ;;  %6334 = vmatpush.msra.mxu2 %v6255_v3 }
 0x839   : > { %v17242_v16 = vpop.permute.xlu0 %6247  ;;  %v17244_v45 = vpop.permute.xlu2 %12828 }
 0x83a   : > { %11956 = vmatpush.msk.msrb.mxu2 %vm618_vm0, %v6273_v49  ;;  %v6275_v59 = vsel %vm645_vm4, %v17057_v12, %v17242_v16  ;;  %v17249_v10 = vpop.permute.xlu1 %8061  ;;  %v6257_v49 = vsel %vm645_vm4, %v20897_v42, %v12596_v8 }
 0x83b   : > { %20895 = vst [vmem:[#allocation104_spill] sm:$0xff] %v17249_v10  ;;  %11960 = vmatpush.msk.msra.mxu1 %vm618_vm0, %v6275_v59 }
 0x83c   : > { %6373 = vmatpush.msrb.mxu2 %v6265_v47 }
 0x83e   : > { %6374 = vmatpush.msrb.mxu2 %v6257_v49 }
 0x83f   : > { %12983 = vrot.lane.b32.xlu0 %v17207_v19, %s13406_s15  ;;  %12993 = vrot.lane.b32.xlu2 %v17207_v19, %s13409_s18 }
 0x840   : > { %12958 = vrot.lane.b32.xlu1 %v17228_v23, %s13408_s16 }
 0x841   : > { %v17264_v24 = vpop.permute.xlu0 %6748  ;;  %v17266_v12 = vpop.permute.xlu2 %12838 }
 0x842   : > { %20898 = vst [vmem:[#allocation105_spill] sm:$0xff] %v17266_v12  ;;  %v17268_v39 = vpop.permute.xlu1 %8693  ;;  %v17543_v12 = vld [vmem:[#allocation4 + $0x50] sm:$0xff] }
 0x843   : > { %20899 = vst [vmem:[#allocation106_spill] sm:$0xff] %v17268_v39  ;;  %v17547_v32 = vpack.i.bf16 %v17541_v63, %v17543_v12 }
 0x847   : > { %12998 = vrot.lane.b32.xlu0 %v17228_v23, %s13409_s18  ;;  %13008 = vrot.lane.b32.xlu2 %v17228_v23, %s13410_s19 }
 0x848   : > { %12973 = vrot.lane.b32.xlu1 %v17207_v19, %s13405_s14 }
 0x849   : > { %v17276_v8 = vpop.permute.xlu0 %7056  ;;  %v17278_v30 = vpop.permute.xlu2 %12848 }
 0x84a   : > { %20900 = vst [vmem:[#allocation107_spill] sm:$0xff] %v17276_v8  ;;  %v17280_v3 = vpop.permute.xlu1 %9012 }
 0x84b   : > { %20901 = vst [vmem:[#allocation108_spill] sm:$0xff] %v17278_v30  ;;  %v20915_v30 = vunpack.i.h.bf16 %v16995_v11 }
 0x84c   : > { %20902 = vst [vmem:[#allocation109_spill] sm:$0xff] %v17280_v3 }
 0x84f   : > { %13013 = vrot.lane.b32.xlu0 %v17207_v19, %s13411_s25  ;;  %13023 = vrot.lane.b32.xlu2 %v17207_v19, %s13414_s11 }
 0x850   : > { %12988 = vrot.lane.b32.xlu1 %v17228_v23, %s13406_s15 }
 0x851   : > { %v17288_v56 = vpop.permute.xlu0 %7746  ;;  %v17290_v61 = vpop.permute.xlu2 %12863 }
 0x852   : > { %20903 = vst [vmem:[#allocation110_spill] sm:$0xff] %v17288_v56  ;;  %v17292_v59 = vpop.permute.xlu1 %7429 }
 0x853   : > { %20904 = vst [vmem:[#allocation111_spill] sm:$0xff] %v17290_v61 }
 0x854   : > { %20905 = vst [vmem:[#allocation112_spill] sm:$0xff] %v17292_v59 }
 0x857   : > { %13028 = vrot.lane.b32.xlu0 %v17228_v23, %s13414_s11  ;;  %7431 = vrot.lane.b32.xlu2 %v17294_v38, %s13408_s16 }
 0x858   : > { %13003 = vrot.lane.b32.xlu1 %v17207_v19, %s13410_s19 }
 0x859   : > { %v17302_v47 = vpop.permute.xlu0 %8697  ;;  %v17304_v42 = vpop.permute.xlu2 %12878 }
 0x85a   : > { %20906 = vst [vmem:[#allocation113_spill] sm:$0xff] %v17302_v47  ;;  %v17306_v49 = vpop.permute.xlu1 %8380 }
 0x85b   : > { %20907 = vst [vmem:[#allocation114_spill] sm:$0xff] %v17304_v42  ;;  %v17326_v42 = vld [vmem:[#allocation4 + $0xd0] sm:$0xf] }
 0x85c   : > { %20908 = vst [vmem:[#allocation115_spill] sm:$0xff] %v17306_v49 }
 0x85f   : > { %8065 = vrot.lane.b32.xlu0 %v17294_v38, %s13405_s14  ;;  %7437 = vrot.lane.b32.xlu2 %v17308_v5, %s13408_s16 }
 0x860   : > { %13018 = vrot.lane.b32.xlu1 %v17228_v23, %s13411_s25 }
 0x861   : > { %v17316_v3 = vpop.permute.xlu2 %12893  ;;  %v17318_v39 = vpop.permute.xlu0 %12853 }
 0x862   : > { %20909 = vst [vmem:[#allocation116_spill] sm:$0xff] %v17316_v3  ;;  %v17320_v47 = vpop.permute.xlu1 %9331 }
 0x863   : > { %20910 = vst [vmem:[#allocation117_spill] sm:$0xff] %v17318_v39 }
 0x864   : > { %20911 = vst [vmem:[#allocation118_spill] sm:$0xff] %v17320_v47 }
 0x867   : > { %8071 = vrot.lane.b32.xlu0 %v17308_v5, %s13405_s14  ;;  %8382 = vrot.lane.b32.xlu2 %v17294_v38, %s13406_s15 }
 0x868   : > { %6249 = vrot.lane.b32.xlu1 %v17326_v42, %s13399_s27 }
 0x869   : > { %v17330_v49 = vpop.permute.xlu2 %12908  ;;  %v17332_v61 = vpop.permute.xlu0 %12868 }
 0x86a   : > { %20912 = vst [vmem:[#allocation119_spill] sm:$0xff] %v17330_v49  ;;  %v17334_v3 = vpop.permute.xlu1 %12813 }
 0x86b   : > { %20913 = vst [vmem:[#allocation120_spill] sm:$0xff] %v17332_v61  ;;  %v20385_v61 = vunpack.i.h.bf16 %v16887_v52 }
 0x86f   : > { %9016 = vrot.lane.b32.xlu0 %v17294_v38, %s13410_s19  ;;  %8388 = vrot.lane.b32.xlu2 %v17308_v5, %s13406_s15 }
 0x870   : > { %6750 = vrot.lane.b32.xlu1 %v17326_v42, %s13400_s29 }
 0x871   : > { %v17342_v47 = vpop.permute.xlu0 %12883  ;;  %v17344_v10 = vpop.permute.xlu2 %12923 }
 0x872   : > { %20914 = vst [vmem:[#allocation121_spill] sm:$0xff] %v17342_v47  ;;  %v20386_v39 = vunpack.i.l.bf16 %v17344_v10  ;;  %v17347_v49 = vpop.permute.xlu1 %12823  ;;  %v20916_v47 = vunpack.i.l.bf16 %v16887_v52 }
 0x874   : > { %v6267_v56 = vsel %vm645_vm4, %v20915_v30, %v20386_v39  ;;  %v6259_v59 = vsel %vm645_vm4, %v20916_v47, %v20385_v61  ;;  %v17384_v39 = vld [vmem:[#allocation4 + $0xd8] sm:$0xf] }
 0x875   : > { %6413 = vmatpush.msra.mxu1 %v6267_v56 }
 0x877   : > { %9022 = vrot.lane.b32.xlu0 %v17308_v5, %s13410_s19  ;;  %9333 = vrot.lane.b32.xlu2 %v17294_v38, %s13411_s25 }
 0x878   : > { %7058 = vrot.lane.b32.xlu1 %v17326_v42, %s13415_s28  ;;  %6414 = vmatpush.msra.mxu1 %v6259_v59 }
 0x879   : > { %v17366_v11 = vpop.permute.xlu0 %12898  ;;  %v17368_v30 = vpop.permute.xlu2 %12928 }
 0x87a   : > { %20917 = vst [vmem:[#allocation122_spill] sm:$0xff] %v17366_v11  ;;  %v17370_v56 = vpop.permute.xlu1 %12833 }
 0x87b   : > { %20918 = vst [vmem:[#allocation123_spill] sm:$0xff] %v17370_v56 }
 0x87f   : > { %9642 = vrot.lane.b32.xlu0 %v16877_v0, %s13414_s11  ;;  %9339 = vrot.lane.b32.xlu2 %v17308_v5, %s13411_s25 }
 0x880   : > { %7748 = vrot.lane.b32.xlu1 %v17294_v38, %s13404_s12 }
 0x881   : > { %v17378_v47 = vpop.permute.xlu0 %12913  ;;  %v17380_v61 = vpop.permute.xlu2 %12933 }
 0x882   : > { %20919 = vst [vmem:[#allocation124_spill] sm:$0xff] %v17378_v47  ;;  %v17382_v59 = vpop.permute.xlu1 %12843  ;;  %v20403_v6 = vunpack.i.h.bf16 %v17380_v61 }
 0x883   : > { %20920 = vst [vmem:[#allocation125_spill] sm:$0xff] %v17380_v61 }
 0x884   : > { %20921 = vst [vmem:[#allocation126_spill] sm:$0xff] %v17382_v59 }
 0x887   : > { %9648 = vrot.lane.b32.xlu0 %v17011_v48, %s13414_s11  ;;  %6251 = vrot.lane.b32.xlu2 %v17384_v39, %s13399_s27 }
 0x888   : > { %7754 = vrot.lane.b32.xlu1 %v17308_v5, %s13404_s12 }
 0x889   : > { %v17392_v11 = vpop.permute.xlu0 %12938  ;;  %v17394_v60 = vpop.permute.xlu2 %12963 }
 0x88a   : > { %20922 = vst [vmem:[#allocation127_spill] sm:$0xff] %v17394_v60  ;;  %v17396_v47 = vpop.permute.xlu1 %12858 }
 0x88b   : > { %20923 = vst [vmem:[#allocation128_spill] sm:$0xff] %v17396_v47 }
 0x88f   : > { %6253 = vrot.lane.b32.xlu0 %v17398_v34, %s13399_s27  ;;  %9640 = vrot.lane.b32.xlu2 %v16686_v29, %s13414_s11 }
 0x890   : > { %8699 = vrot.lane.b32.xlu1 %v17294_v38, %s13409_s18 }
 0x891   : > { %v17406_v59 = vpop.permute.xlu0 %12943  ;;  %v17408_v40 = vpop.permute.xlu2 %12978 }
 0x892   : > { %v17410_v8 = vpop.permute.xlu1 %12873 }
 0x893   : > { %20924 = vst [vmem:[#allocation129_spill] sm:$0xff] %v17410_v8 }
 0x897   : > { %13038 = vrot.lane.b32.xlu0 %v16707_v51, %s13416_s20  ;;  %9646 = vrot.lane.b32.xlu2 %v16943_v22, %s13414_s11 }
 0x898   : > { %8705 = vrot.lane.b32.xlu1 %v17308_v5, %s13409_s18 }
 0x899   : > { %v17418_v47 = vpop.permute.xlu0 %12948  ;;  %v17420_v56 = vpop.permute.xlu2 %12993 }
 0x89a   : > { %20925 = vst [vmem:[#allocation130_spill] sm:$0xff] %v17418_v47  ;;  %v20402_v37 = vunpack.i.l.bf16 %v17418_v47  ;;  %v17424_v33 = vpop.permute.xlu1 %12888 }
 0x89b   : > { %20926 = vst [vmem:[#allocation131_spill] sm:$0xff] %v17420_v56 }
 0x89c   : > { %20927 = vst [vmem:[#allocation132_spill] sm:$0xff] %v17424_v33  ;;  %v17431_v8 = vsel %vm7064_vm8, %v20403_v6, %v20402_v37  ;;  %v20409_v6 = vunpack.i.h.bf16 %v17394_v60  ;;  %v17501_v60 = vld [vmem:[#allocation4 + $0x28] sm:$0xff] }
 0x89d   : > { %20928 = vst [vmem:[#allocation133_spill] sm:$0xff] %v17431_v8 }
 0x89f   : > { %13053 = vrot.lane.b32.xlu0 %v17087_v2, %s13416_s20  ;;  %13033 = vrot.lane.b32.xlu2 %v16555_v46, %s13416_s20 }
 0x8a0   : > { %9644 = vrot.lane.b32.xlu1 %v16945_v20, %s13414_s11 }
 0x8a1   : > { %v17439_v17 = vpop.permute.xlu0 %12953  ;;  %v17441_v33 = vpop.permute.xlu2 %13008 }
 0x8a2   : > { %20929 = vst [vmem:[#allocation134_spill] sm:$0xff] %v17439_v17  ;;  %v17443_v21 = vpop.permute.xlu1 %12903 }
 0x8a3   : > { %20930 = vst [vmem:[#allocation135_spill] sm:$0xff] %v17441_v33 }
 0x8a4   : > { %20931 = vst [vmem:[#allocation136_spill] sm:$0xff] %v17443_v21 }
 0x8a7   : > { %13068 = vrot.lane.b32.xlu0 %v16843_v18, %s13416_s20  ;;  %13048 = vrot.lane.b32.xlu2 %v17091_v41, %s13416_s20  ;;  %v17466_v41 = vld [vmem:[#allocation4 + $0x60] sm:$0xff] }
 0x8a8   : > { %9650 = vrot.lane.b32.xlu1 %v17294_v38, %s13414_s11  ;;  %v13062_v18 = vpack.i.bf16 %v16608_v44, %v17466_v41 }
 0x8a9   : > { %v17451_v2 = vpop.permute.xlu0 %12968  ;;  %v17453_v37 = vpop.permute.xlu2 %13023 }
 0x8aa   : > { %20932 = vst [vmem:[#allocation137_spill] sm:$0xff] %v17451_v2  ;;  %v20410_v47 = vunpack.i.l.bf16 %v17451_v2  ;;  %v17457_v8 = vpop.permute.xlu1 %12918 }
 0x8ab   : > { %20933 = vst [vmem:[#allocation138_spill] sm:$0xff] %v17453_v37 }
 0x8ac   : > { %20934 = vst [vmem:[#allocation139_spill] sm:$0xff] %v17457_v8  ;;  %v17464_v21 = vsel %vm1273_vm9, %v20409_v6, %v20410_v47  ;;  %v17478_v8 = vld [vmem:[%s20228_s5 + $0x4] sm:$0x7] }
 0x8ad   : > { %20935 = vst [vmem:[#allocation140_spill] sm:$0xff] %v17464_v21  ;;  %11953 = vmatmul.msk.f32.vlgmr.msra.gmra.mxu2 %vm6297_vm13, %v17478_v8  ;;  %11955 = vmatmul.msk.f32.vlgmr.msra.gmra.mxu3 %vm6297_vm13, %v17478_v8 }
 0x8ae   : > { %11961 = vmatmul.msk.f32.vlgmr.msra.gmra.mxu1 %vm6297_vm13, %v17478_v8 }
 0x8af   : > { %6754 = vrot.lane.b32.xlu0 %v17398_v34, %s13400_s29  ;;  %13063 = vrot.lane.b32.xlu2 %v13062_v18, %s13416_s20  ;;  %v20421_v18 = vunpack.i.h.bf16 %v17439_v17 }
 0x8b0   : > { %9656 = vrot.lane.b32.xlu1 %v17308_v5, %s13414_s11 }
 0x8b1   : > { %v17480_v6 = vpop.permute.xlu0 %12983  ;;  %v17482_v47 = vpop.permute.xlu2 %7431 }
 0x8b2   : > { %20936 = vst [vmem:[#allocation141_spill] sm:$0xff] %v17480_v6  ;;  %v17488_v44 = vpop.permute.xlu1 %12958 }
 0x8b3   : > { %20937 = vst [vmem:[#allocation142_spill] sm:$0xff] %v17482_v47  ;;  %v20420_v21 = vunpack.i.l.bf16 %v17488_v44  ;;  %v17505_v47 = vpack.i.bf16 %v17501_v60, %v16595_v55  ;;  %v20428_v55 = vunpack.i.h.bf16 %v17420_v56 }
 0x8b4   : > { %20938 = vst [vmem:[#allocation143_spill] sm:$0xff] %v17488_v44 }
 0x8b5   : > { %v17499_v2 = vsel %vm3705_vm2, %v20421_v18, %v20420_v21  ;;  %11957 = vmatmul.msk.f32.vlgmr.msrb.gmra.mxu2 %vm6297_vm13, %v17478_v8  ;;  %11959 = vmatmul.msk.f32.vlgmr.msrb.gmra.mxu3 %vm6297_vm13, %v17478_v8  ;;  %v20430_v18 = vunpack.i.l.bf16 %v17408_v40 }
 0x8b6   : > { %20939 = vst [vmem:[#allocation144_spill] sm:$0xff] %v17499_v2 }
 0x8b7   : > { %9956 = vrot.lane.b32.xlu0 %v16634_v36, %s13416_s20  ;;  %6752 = vrot.lane.b32.xlu2 %v17384_v39, %s13400_s29  ;;  %s13417_s29 = smov 22  }
 0x8b8   : > { %13043 = vrot.lane.b32.xlu1 %v17505_v47, %s13416_s20 }
 0x8b9   : > { %v17513_v44 = vpop.permute.xlu0 %12998  ;;  %v17515_v17 = vpop.permute.xlu2 %7437 }
 0x8ba   : > { %20940 = vst [vmem:[#allocation145_spill] sm:$0xff] %v17513_v44  ;;  %v20427_v36 = vunpack.i.l.bf16 %v17513_v44  ;;  %v17523_v21 = vpop.permute.xlu1 %12973 }
 0x8bb   : > { %20941 = vst [vmem:[#allocation146_spill] sm:$0xff] %v17515_v17  ;;  %v20429_v2 = vunpack.i.h.bf16 %v17523_v21 }
 0x8bc   : > { %20942 = vst [vmem:[#allocation147_spill] sm:$0xff] %v17523_v21  ;;  %v17532_v17 = vsel %vm4809_vm3, %v20428_v55, %v20427_v36  ;;  %v13097_v21 = vpack.i.bf16 %v17466_v41, %v17541_v63 }
 0x8bd   : > { %20943 = vst [vmem:[#allocation148_spill] sm:$0xff] %v17532_v17  ;;  %v17539_v61 = vsel %vm1382_vm10, %v20429_v2, %v20430_v18  ;;  %v20441_v18 = vunpack.i.h.bf16 %v17480_v6 }
 0x8be   : > { %20944 = vst [vmem:[#allocation149_spill] sm:$0xff] %v17539_v61 }
 0x8bf   : > { %7062 = vrot.lane.b32.xlu0 %v17398_v34, %s13415_s28  ;;  %7060 = vrot.lane.b32.xlu2 %v17384_v39, %s13415_s28  ;;  %s13419_s28 = smov 20  }
 0x8c0   : > { %13058 = vrot.lane.b32.xlu1 %v17547_v32, %s13416_s20 }
 0x8c1   : > { %v17555_v36 = vpop.permute.xlu0 %13013  ;;  %v17557_v55 = vpop.permute.xlu2 %8382 }
 0x8c2   : > { %20945 = vst [vmem:[#allocation150_spill] sm:$0xff] %v17555_v36  ;;  %v17559_v2 = vpop.permute.xlu1 %12988 }
 0x8c3   : > { %20946 = vst [vmem:[#allocation151_spill] sm:$0xff] %v17557_v55  ;;  %v20440_v17 = vunpack.i.l.bf16 %v17559_v2 }
 0x8c4   : > { %20947 = vst [vmem:[#allocation152_spill] sm:$0xff] %v17559_v2  ;;  %v20443_v2 = vunpack.i.h.bf16 %v17453_v37 }
 0x8c5   : > { %v17568_v44 = vsel %vm1491_vm11, %v20441_v18, %v20440_v17  ;;  %v20445_v17 = vunpack.i.l.bf16 %v17441_v33  ;;  %v12831_v33 = vunpack.i.h.bf16 %v17244_v45 }
 0x8c6   : > { %20948 = vst [vmem:[#allocation153_spill] sm:$0xff] %v17568_v44  ;;  %v17600_v44 = vld [vmem:[#allocation4 + $0xd8] sm:$0xf] }
 0x8c7   : > { %9962 = vrot.lane.b32.xlu0 %v16945_v20, %s13416_s20  ;;  %13078 = vrot.lane.b32.xlu2 %v17228_v23, %s13416_s20 }
 0x8c8   : > { %13073 = vrot.lane.b32.xlu1 %v17207_v19, %s13416_s20 }
 0x8c9   : > { %v17576_v56 = vpop.permute.xlu0 %13028  ;;  %v17578_v55 = vpop.permute.xlu2 %8388 }
 0x8ca   : > { %20949 = vst [vmem:[#allocation154_spill] sm:$0xff] %v17576_v56  ;;  %v20442_v6 = vunpack.i.l.bf16 %v17576_v56  ;;  %v17582_v61 = vpop.permute.xlu1 %13003 }
 0x8cb   : > { %20950 = vst [vmem:[#allocation155_spill] sm:$0xff] %v17578_v55  ;;  %v20444_v18 = vunpack.i.h.bf16 %v17582_v61  ;;  %v12505_v55 = vunpack.i.l.bf16 %v16754_v7 }
 0x8cc   : > { %20951 = vst [vmem:[#allocation156_spill] sm:$0xff] %v17582_v61  ;;  %v17591_v23 = vsel %vm9658_vm15, %v20443_v2, %v20442_v6 }
 0x8cd   : > { %20952 = vst [vmem:[#allocation157_spill] sm:$0xff] %v17591_v23  ;;  %v17598_v19 = vsel %vm5169_vm6, %v20444_v18, %v20445_v17  ;;  %v20455_v18 = vunpack.i.h.bf16 %v17555_v36  ;;  %v12815_v36 = vunpack.i.l.bf16 %v17334_v3 }
 0x8ce   : > { %20953 = vst [vmem:[#allocation158_spill] sm:$0xff] %v17598_v19  ;;  %v13273_v19 = vld [vmem:[#allocation4] sm:$0xff] }
 0x8cf   : > { %7433 = vrot.lane.b32.xlu0 %v17600_v44, %s13408_s16  ;;  %9960 = vrot.lane.b32.xlu2 %v16877_v0, %s13416_s20 }
 0x8d0   : > { %9958 = vrot.lane.b32.xlu1 %v16686_v29, %s13416_s20  ;;  %v12926_v29 = vunpack.i.h.bf16 %v17344_v10 }
 0x8d1   : > { %v17608_v6 = vpop.permute.xlu0 %8065  ;;  %v17610_v2 = vpop.permute.xlu2 %9333 }
 0x8d2   : > { %20954 = vst [vmem:[#allocation159_spill] sm:$0xff] %v17608_v6  ;;  %v17612_v23 = vpop.permute.xlu1 %13018  ;;  %v20468_v6 = vunpack.i.h.bf16 %v16862_v15 }
 0x8d3   : > { %20955 = vst [vmem:[#allocation160_spill] sm:$0xff] %v17610_v2  ;;  %v20456_v17 = vunpack.i.l.bf16 %v17612_v23 }
 0x8d4   : > { %20956 = vst [vmem:[#allocation161_spill] sm:$0xff] %v17612_v23 }
 0x8d5   : > { %v17621_v56 = vsel %vm5529_vm7, %v20455_v18, %v20456_v17  ;;  %v20959_v17 = vunpack.i.l.bf16 %v17344_v10 }
 0x8d6   : > { %20957 = vst [vmem:[#allocation162_spill] sm:$0xff] %v17621_v56 }
 0x8d7   : > { %9968 = vrot.lane.b32.xlu0 %v17294_v38, %s13416_s20  ;;  %9966 = vrot.lane.b32.xlu2 %v17011_v48, %s13416_s20  ;;  %v6268_v56 = vsel %vm645_vm4, %v20959_v17, %v12926_v29 }
 0x8d8   : > { %9964 = vrot.lane.b32.xlu1 %v16943_v22, %s13416_s20  ;;  %v17645_v22 = vld [vmem:[#allocation4 + $0xe0] sm:$0xf] }
 0x8d9   : > { %v17630_v37 = vpop.permute.xlu0 %8071  ;;  %v17632_v2 = vpop.permute.xlu2 %9339 }
 0x8da   : > { %20958 = vst [vmem:[#allocation163_spill] sm:$0xff] %v17632_v2  ;;  %v6250_v23 = vpop.permute.xlu1 %6249  ;;  %v20960_v2 = vunpack.i.h.bf16 %v16887_v52 }
 0x8db   : > { %v6276_v18 = vsel %vm645_vm4, %v17242_v16, %v6250_v23 }
 0x8dc   : > { %11962 = vmatpush.msk.msra.mxu2 %vm618_vm0, %v6276_v18  ;;  %v6260_v16 = vsel %vm645_vm4, %v20960_v2, %v12815_v36  ;;  %v20458_v18 = vunpack.i.l.bf16 %v17392_v11  ;;  %v20457_v2 = vunpack.i.h.bf16 %v17334_v3 }
 0x8de   : > { %6433 = vmatpush.msra.mxu2 %v6268_v56 }
 0x8df   : > { %9974 = vrot.lane.b32.xlu0 %v17308_v5, %s13416_s20  ;;  %13088 = vrot.lane.b32.xlu2 %v16707_v51, %s13417_s29 }
 0x8e0   : > { %7435 = vrot.lane.b32.xlu1 %v17645_v22, %s13408_s16  ;;  %6434 = vmatpush.msra.mxu2 %v6260_v16  ;;  %v6269_v16 = vsel %vm645_vm4, %v12926_v29, %v20458_v18  ;;  %v12655_v18 = vunpack.i.l.bf16 %v16899_v28  ;;  %s20162_s16 = scalar_lea.vmem %s20233_s10, %s12266_s21 }
 0x8e1   : > { %11963 = vmatmul.msk.f32.vlgmr.msra.gmra.mxu2 %vm6297_vm13, %v17478_v8  ;;  %v17655_v17 = vpop.permute.xlu0 %9016  ;;  %v17657_v10 = vpop.permute.xlu2 %6251 }
 0x8e2   : > { %20961 = vst [vmem:[#allocation164_spill] sm:$0xff] %v17655_v17  ;;  %11970 = vmatpush.msk.msrb.mxu2 %vm618_vm0, %v16691_v53  ;;  %v6277_v52 = vsel %vm645_vm4, %v6250_v23, %v17657_v10  ;;  %v17663_v56 = vpop.permute.xlu1 %6750  ;;  %v17678_v53 = vld [vmem:[%s20228_s5] sm:$0x7]  ;;  %v6261_v23 = vsel %vm645_vm4, %v12815_v36, %v20457_v2  ;;  %v17701_v36 = vld [vmem:[#allocation4 + $0x20] sm:$0xff] }
 0x8e3   : > { %11964 = vmatpush.msk.msra.mxu3 %vm618_vm0, %v6277_v52  ;;  %v13278_v2 = vld [vmem:[#allocation4 + $0x8] sm:$0xff] }
 0x8e4   : > { %6534 = vmatpush.msrb.mxu2 %v17543_v12 }
 0x8e5   : > { %6453 = vmatpush.msra.mxu3 %v6269_v16  ;;  %v13275_v16 = vld [vmem:[#allocation4 + $0xa8] sm:$0xf] }
 0x8e6   : > { %6535 = vmatpush.msrb.mxu2 %v13273_v19 }
 0x8e7   : > { %7752 = vrot.lane.b32.xlu0 %v17645_v22, %s13404_s12  ;;  %7750 = vrot.lane.b32.xlu2 %v17600_v44, %s13404_s12 }
 0x8e8   : > { %11978 = vmatpush.msk.msra.mxu2 %vm618_vm0, %v16905_v4  ;;  %13083 = vrot.lane.b32.xlu1 %v16555_v46, %s13417_s29  ;;  %v17687_v4 = vld [vmem:[#allocation4 + $0x70] sm:$0xff] }
 0x8e9   : > { %6454 = vmatpush.msra.mxu3 %v6261_v23  ;;  %v17690_v19 = vpop.permute.xlu0 %9022  ;;  %v17692_v29 = vpop.permute.xlu2 %9640  ;;  %11971 = vmatmul.msk.f32.vlgmr.msrb.gmra.mxu2 %vm6297_vm13, %v17678_v53  ;;  %v17707_v23 = vld [vmem:[#allocation4 + $0x90] sm:$0xff] }
 0x8ea   : > { %6614 = vmatpush.msra.mxu2 %v17687_v4  ;;  %20962 = vst [vmem:[#allocation165_spill] sm:$0xff] %v17690_v19  ;;  %11965 = vmatmul.msk.f32.vlgmr.msra.gmra.mxu3 %vm6297_vm13, %v17478_v8  ;;  %v17698_v52 = vpop.permute.xlu1 %7058  ;;  %v17716_v19 = vld [vmem:[#allocation4 + $0x40] sm:$0xff] }
 0x8eb   : > { %20963 = vst [vmem:[#allocation166_spill] sm:$0xff] %v17692_v29  ;;  %11972 = vmatpush.msk.msrb.mxu3 %vm618_vm0, %v13275_v16  ;;  %v12726_v16 = vunpack.i.h.bf16 %v17007_v35 }
 0x8ec   : > { %6615 = vmatpush.msra.mxu2 %v17701_v36 }
 0x8ed   : > { %6554 = vmatpush.msrb.mxu3 %v17541_v63 }
 0x8ee   : > { %11986 = vmatpush.msk.msrb.mxu2 %vm618_vm0, %v17398_v34  ;;  %v17721_v34 = vld [vmem:[#allocation4 + $0xa8] sm:$0xf] }
 0x8ef   : > { %6555 = vmatpush.msrb.mxu3 %v13278_v2  ;;  %13093 = vrot.lane.b32.xlu0 %v17505_v47, %s13417_s29 }
 0x8f0   : > { %6694 = vmatpush.msrb.mxu2 %v17707_v23  ;;  %10278 = vrot.lane.b32.xlu2 %v16877_v0, %s13417_s29 }
 0x8f1   : > { %11980 = vmatpush.msk.msra.mxu3 %vm618_vm0, %v17009_v31  ;;  %10276 = vrot.lane.b32.xlu1 %v17721_v34, %s13417_s29  ;;  %v17725_v47 = vpop.permute.xlu0 %9642  ;;  %v17727_v2 = vpop.permute.xlu2 %9646  ;;  %v6775_v31 = vsel %vm837_vm5, %v17193_v50, %v17070_v57 }
 0x8f2   : > { %6695 = vmatpush.msrb.mxu2 %v17716_v19  ;;  %v17740_v0 = vsel %vm9658_vm15, %v17692_v29, %v17725_v47  ;;  %v17742_v17 = vpop.permute.xlu1 %7748  ;;  %11973 = vmatmul.msk.f32.vlgmr.msrb.gmra.mxu3 %vm6297_vm13, %v17678_v53  ;;  %v20469_v29 = vunpack.i.l.bf16 %v16979_v25 }
 0x8f3   : > { %6634 = vmatpush.msra.mxu3 %v17158_v27  ;;  %11979 = vmatmul.msk.f32.vlgmr.msra.gmra.mxu2 %vm6297_vm13, %v17678_v53  ;;  %20964 = vst [vmem:[#allocation167_spill] sm:$0xff] %v17740_v0  ;;  %v6772_v27 = vsel %vm837_vm5, %v16839_v26, %v16805_v1  ;;  %v20965_v0 = vunpack.i.l.bf16 %v17007_v35  ;;  %v6759_v26 = vsel %vm837_vm5, %v20468_v6, %v12655_v18  ;;  %v17778_v6 = vld [vmem:[#allocation4 + $0xa0] sm:$0xf] }
 0x8f4   : > { %11995 = vmatpush.msk.msra.mxu2 %vm618_vm0, %v6775_v31  ;;  %v6764_v31 = vsel %vm837_vm5, %v12831_v33, %v20469_v29 }
 0x8f5   : > { %6635 = vmatpush.msra.mxu3 %v17501_v60  ;;  %v6767_v61 = vsel %vm837_vm5, %v20965_v0, %v12726_v16  ;;  %v20966_v60 = vunpack.i.h.bf16 %v16754_v7 }
 0x8f6   : > { %6893 = vmatpush.msra.mxu2 %v6767_v61  ;;  %v12930_v61 = vunpack.i.l.bf16 %v17368_v30 }
 0x8f7   : > { %11989 = vmatpush.msk.msrb.mxu3 %vm618_vm0, %v6772_v27  ;;  %v6756_v0 = vsel %vm837_vm5, %v12505_v55, %v20966_v60  ;;  %13098 = vrot.lane.b32.xlu0 %v13097_v21, %s13417_s29  ;;  %v12656_v55 = vunpack.i.h.bf16 %v16899_v28 }
 0x8f8   : > { %6894 = vmatpush.msra.mxu2 %v6759_v26  ;;  %8069 = vrot.lane.b32.xlu2 %v17645_v22, %s13405_s14  ;;  %v6768_v26 = vsel %vm837_vm5, %v12726_v16, %v12930_v61 }
 0x8f9   : > { %6833 = vmatpush.msrb.mxu3 %v6764_v31  ;;  %v17774_v33 = vpop.permute.xlu0 %9648  ;;  %v17776_v27 = vpop.permute.xlu2 %13033  ;;  %10274 = vrot.lane.b32.xlu1 %v17778_v6, %s13417_s29  ;;  %v6776_v31 = vsel %vm837_vm5, %v17070_v57, %v17264_v24  ;;  %v6760_v60 = vsel %vm837_vm5, %v12655_v18, %v12656_v55  ;;  %v17811_v57 = vld [vmem:[%s20228_s5 + $0x8] sm:$0x7] }
 0x8fa   : > { %v17785_v63 = vsel %vm9658_vm15, %v17727_v2, %v17774_v33  ;;  %v17787_v21 = vpop.permute.xlu1 %7754  ;;  %11981 = vmatmul.msk.f32.vlgmr.msra.gmra.mxu3 %vm6297_vm13, %v17678_v53 }
 0x8fb   : > { %6834 = vmatpush.msrb.mxu3 %v6756_v0  ;;  %20967 = vst [vmem:[#allocation168_spill] sm:$0xff] %v17785_v63  ;;  %11987 = vmatmul.msk.f32.vlgmr.msrb.gmra.mxu2 %vm6297_vm13, %v17678_v53  ;;  %v13282_v0 = vld [vmem:[#allocation4 + $0x78] sm:$0xff]  ;;  %v12941_v63 = vunpack.i.h.bf16 %v17392_v11 }
 0x8fc   : > { %v13102_v29 = vpack.i.bf16 %v13282_v0, %v17543_v12  ;;  %v17872_v0 = vld [vmem:[#allocation4 + $0x80] sm:$0xff] }
 0x8fd   : > { %11997 = vmatpush.msk.msra.mxu3 %vm618_vm0, %v6776_v31 }
 0x8ff   : > { %6913 = vmatpush.msra.mxu3 %v6768_v26  ;;  %10284 = vrot.lane.b32.xlu0 %v17011_v48, %s13417_s29  ;;  %v12820_v48 = vunpack.i.l.bf16 %v17217_v62 }
 0x900   : > { %13103 = vrot.lane.b32.xlu2 %v13102_v29, %s13417_s29  ;;  %v20969_v29 = vunpack.i.l.bf16 %v17392_v11  ;;  %v20471_v11 = vunpack.i.h.bf16 %v17776_v27 }
 0x901   : > { %6914 = vmatpush.msra.mxu3 %v6760_v60  ;;  %v6254_v16 = vpop.permute.xlu0 %6253  ;;  %v17814_v31 = vpop.permute.xlu2 %13048  ;;  %8067 = vrot.lane.b32.xlu1 %v17600_v44, %s13405_s14  ;;  %s13418_s14 = smov 21  }
 0x902   : > { %20968 = vst [vmem:[#allocation169_spill] sm:$0xff] %v17814_v31  ;;  %v6278_v12 = vsel %vm645_vm4, %v17657_v10, %v6254_v16  ;;  %v17820_v18 = vpop.permute.xlu1 %8699  ;;  %11968 = vmatpush.msk.msrb.mxu1 %vm618_vm0, %v6254_v16  ;;  %11990 = vmatmul.msk.f32.vlgmr.msrb.gmra.mxu3 %vm6297_vm13, %v17811_v57  ;;  %v6270_v26 = vsel %vm645_vm4, %v20969_v29, %v12941_v63  ;;  %v20970_v10 = vunpack.i.h.bf16 %v17334_v3  ;;  %v17881_v29 = vld [vmem:[#allocation4 + $0x88] sm:$0xff] }
 0x903   : > { %11966 = vmatpush.msk.msra.mxu0 %vm618_vm0, %v6278_v12  ;;  %11996 = vmatmul.msk.f32.vlgmr.msra.gmra.mxu2 %vm6297_vm13, %v17811_v57  ;;  %v13287_v12 = vld [vmem:[#allocation4 + $0x30] sm:$0xff] }
 0x904   : > { %6493 = vmatpush.msrb.mxu1 %v12941_v63  ;;  %v6262_v60 = vsel %vm645_vm4, %v20970_v10, %v12820_v48  ;;  %vm9976_vm4 = vcmask 187392   ;;  %v20473_v10 = vunpack.i.h.bf16 %v17814_v31 }
 0x905   : > { %6473 = vmatpush.msra.mxu0 %v6270_v26 }
 0x906   : > { %6494 = vmatpush.msrb.mxu1 %v12820_v48  ;;  %v13112_v48 = vpack.i.bf16 %v17687_v4, %v13287_v12  ;;  %v6773_v4 = vsel %vm837_vm5, %v16805_v1, %v17104_v58 }
 0x907   : > { %6474 = vmatpush.msra.mxu0 %v6262_v60  ;;  %11969 = vmatmul.msk.f32.vlgmr.msrb.gmra.mxu1 %vm6297_vm13, %v17478_v8 }
 0x908   : > { %8384 = vrot.lane.b32.xlu0 %v17600_v44, %s13406_s15  ;;  %11976 = vmatpush.msk.msra.mxu1 %vm618_vm0, %v16963_v54 }
 0x909   : > { %10280 = vrot.lane.b32.xlu2 %v16945_v20, %s13417_s29  ;;  %11967 = vmatmul.msk.f32.vlgmr.msra.gmra.mxu0 %vm6297_vm13, %v17478_v8  ;;  %v17845_v62 = vpop.permute.xlu0 %13038  ;;  %v17847_v3 = vpop.permute.xlu2 %13063  ;;  %v17857_v20 = vld [vmem:[#allocation4 + $0x68] sm:$0xff]  ;;  %v13284_v8 = vld [vmem:[#allocation4 + $0x18] sm:$0xff] }
 0x90a   : > { %20971 = vst [vmem:[#allocation170_spill] sm:$0xff] %v17845_v62  ;;  %10286 = vrot.lane.b32.xlu1 %v17294_v38, %s13417_s29  ;;  %11974 = vmatpush.msk.msrb.mxu0 %vm618_vm0, %v16879_v14  ;;  %v20470_v54 = vunpack.i.l.bf16 %v17845_v62  ;;  %v17855_v63 = vpop.permute.xlu1 %8705  ;;  %v13285_v38 = vld [vmem:[#allocation4 + $0x10] sm:$0xff]  ;;  %v13107_v16 = vpack.i.bf16 %v17857_v20, %v17872_v0 }
 0x90b   : > { %6594 = vmatpush.msra.mxu1 %v17857_v20  ;;  %11998 = vmatmul.msk.f32.vlgmr.msra.gmra.mxu3 %vm6297_vm13, %v17811_v57 }
 0x90c   : > { %6574 = vmatpush.msrb.mxu0 %v17466_v41  ;;  %v17868_v14 = vsel %vm9976_vm4, %v20471_v11, %v20470_v54  ;;  %v20975_v11 = vunpack.i.l.bf16 %v16979_v25 }
 0x90d   : > { %6595 = vmatpush.msra.mxu1 %v13284_v8 }
 0x90e   : > { %6575 = vmatpush.msrb.mxu0 %v13285_v38  ;;  %v12600_v38 = vunpack.i.l.bf16 %v16862_v15 }
 0x90f   : > { %11984 = vmatpush.msk.msrb.mxu1 %vm618_vm0, %v17384_v39  ;;  %v12711_v39 = vunpack.i.h.bf16 %v16979_v25  ;;  %v12826_v25 = vunpack.i.h.bf16 %v17347_v49 }
 0x910   : > { %11982 = vmatpush.msk.msra.mxu0 %vm618_vm0, %v17326_v42  ;;  %11977 = vmatmul.msk.f32.vlgmr.msra.gmra.mxu1 %vm6297_vm13, %v17678_v53 }
 0x911   : > { %6674 = vmatpush.msrb.mxu1 %v17881_v29  ;;  %13108 = vrot.lane.b32.xlu0 %v13107_v16, %s13417_s29  ;;  %v17888_v26 = vpop.permute.xlu0 %13053  ;;  %v17890_v42 = vpop.permute.xlu2 %6752  ;;  %v6774_v16 = vsel %vm837_vm5, %v17104_v58, %v17193_v50  ;;  %v20974_v58 = vunpack.i.l.bf16 %v17007_v35  ;;  %v12825_v35 = vunpack.i.l.bf16 %v17347_v49 }
 0x912   : > { %13113 = vrot.lane.b32.xlu2 %v13112_v48, %s13417_s29  ;;  %6654 = vmatpush.msra.mxu0 %v17872_v0  ;;  %20972 = vst [vmem:[#allocation171_spill] sm:$0xff] %v17888_v26  ;;  %v20472_v60 = vunpack.i.l.bf16 %v17888_v26  ;;  %v9645_v8 = vpop.permute.xlu1 %9644  ;;  %v17905_v48 = vld [vmem:[#allocation4 + $0x38] sm:$0xff] }
 0x913   : > { %8386 = vrot.lane.b32.xlu1 %v17645_v22, %s13406_s15  ;;  %11975 = vmatmul.msk.f32.vlgmr.msrb.gmra.mxu0 %vm6297_vm13, %v17678_v53  ;;  %v17910_v1 = vsel %vm9658_vm15, %v17725_v47, %v9645_v8  ;;  %v17914_v54 = vsel %vm9658_vm15, %v9645_v8, %v17727_v2  ;;  %v6766_v47 = vsel %vm837_vm5, %v12711_v39, %v20974_v58 }
 0x914   : > { %6675 = vmatpush.msrb.mxu1 %v17905_v48  ;;  %6655 = vmatpush.msra.mxu0 %v13287_v12  ;;  %v17923_v50 = vsel %vm9976_vm4, %v20473_v10, %v20472_v60  ;;  %v6765_v2 = vsel %vm837_vm5, %v20975_v11, %v12711_v39  ;;  %v12945_v12 = vunpack.i.l.bf16 %v17406_v59  ;;  %v12931_v11 = vunpack.i.h.bf16 %v17368_v30  ;;  %v20980_v30 = vld [vmem:[#allocation46_spill] sm:$0xff] }
 0x915   : > { %20973 = vst [vmem:[#allocation172_spill] sm:$0xff] %v17923_v50  ;;  %v20984_v10 = vld [vmem:[#allocation14_spill] sm:$0xff] }
 0x916   : > { %11993 = vmatpush.msk.msra.mxu1 %vm618_vm0, %v6774_v16  ;;  %11991 = vmatpush.msk.msrb.mxu0 %vm618_vm0, %v6773_v4  ;;  %v20976_v4 = vunpack.i.h.bf16 %v16862_v15  ;;  %v20977_v16 = vunpack.i.h.bf16 %v16754_v7  ;;  %v6778_v15 = vsel %vm837_vm5, %v17663_v56, %v17890_v42  ;;  %v21007_v50 = vld [vmem:[#allocation130_spill] sm:$0xff] }
 0x918   : > { %6873 = vmatpush.msra.mxu1 %v6766_v47  ;;  %6853 = vmatpush.msrb.mxu0 %v6765_v2  ;;  %v6758_v8 = vsel %vm837_vm5, %v12600_v38, %v20976_v4  ;;  %v6757_v60 = vsel %vm837_vm5, %v20977_v16, %v12600_v38  ;;  %v17955_v38 = vld [vmem:[#allocation4 + $0xc0] sm:$0xf]  ;;  %v6770_v2 = vsel %vm837_vm5, %v12931_v11, %v12945_v12 }
 0x919   : > { %11985 = vmatmul.msk.f32.vlgmr.msrb.gmra.mxu1 %vm6297_vm13, %v17678_v53  ;;  %10592 = vrot.lane.b32.xlu0 %v17778_v6, %s13418_s14  ;;  %v17950_v7 = vpop.permute.xlu0 %13068  ;;  %v17952_v39 = vpop.permute.xlu2 %7060  ;;  %v6777_v6 = vsel %vm837_vm5, %v17264_v24, %v17663_v56  ;;  %v12715_v24 = vunpack.i.l.bf16 %v16991_v43  ;;  %v6769_v56 = vsel %vm837_vm5, %v12930_v61, %v12931_v11  ;;  %v7082_v16 = vsel %vm7064_vm8, %v16816_v9, %v17116_v13  ;;  %v20981_v61 = vld [vmem:[#allocation105_spill] sm:$0xff] }
 0x91a   : > { %6874 = vmatpush.msra.mxu1 %v6758_v8  ;;  %6854 = vmatpush.msrb.mxu0 %v6757_v60  ;;  %20978 = vst [vmem:[#allocation173_spill] sm:$0xff] %v17950_v7  ;;  %v20475_v60 = vunpack.i.h.bf16 %v17847_v3  ;;  %v20474_v58 = vunpack.i.l.bf16 %v17950_v7  ;;  %v17961_v47 = vpop.permute.xlu1 %9650  ;;  %v20477_v8 = vunpack.i.h.bf16 %v16991_v43  ;;  %v12841_v11 = vunpack.i.h.bf16 %v20981_v61 }
 0x91b   : > { %8701 = vrot.lane.b32.xlu2 %v17600_v44, %s13409_s18  ;;  %10282 = vrot.lane.b32.xlu1 %v17955_v38, %s13417_s29 }
 0x91c   : > { %12001 = vmatpush.msk.msrb.mxu1 %vm618_vm0, %v6778_v15  ;;  %11983 = vmatmul.msk.f32.vlgmr.msra.gmra.mxu0 %vm6297_vm13, %v17678_v53  ;;  %v17977_v4 = vsel %vm9976_vm4, %v20475_v60, %v20474_v58  ;;  %v6762_v53 = vsel %vm837_vm5, %v12825_v35, %v12826_v25  ;;  %v6761_v15 = vsel %vm837_vm5, %v12656_v55, %v12825_v35 }
 0x91d   : > { %11999 = vmatpush.msk.msra.mxu0 %vm618_vm0, %v6777_v6  ;;  %20979 = vst [vmem:[#allocation174_spill] sm:$0xff] %v17977_v4  ;;  %v20476_v6 = vunpack.i.l.bf16 %v20980_v30  ;;  %v7074_v35 = vsel %vm7064_vm8, %v12715_v24, %v20477_v8  ;;  %v7081_v58 = vsel %vm7064_vm8, %v20984_v10, %v16816_v9 }
 0x91e   : > { %6953 = vmatpush.msrb.mxu1 %v6770_v2  ;;  %v12946_v2 = vunpack.i.h.bf16 %v17406_v59 }
 0x91f   : > { %6933 = vmatpush.msra.mxu0 %v6769_v56  ;;  %v20983_v56 = vld [vmem:[#allocation40_spill] sm:$0xff] }
 0x920   : > { %6954 = vmatpush.msrb.mxu1 %v6762_v53  ;;  %v12511_v53 = vunpack.i.h.bf16 %v20983_v56  ;;  %v6771_v9 = vsel %vm837_vm5, %v12945_v12, %v12946_v2 }
 0x921   : > { %11994 = vmatmul.msk.f32.vlgmr.msra.gmra.mxu1 %vm6297_vm13, %v17811_v57  ;;  %6934 = vmatpush.msra.mxu0 %v6761_v15  ;;  %v6755_v28 = vpop.permute.xlu0 %6754  ;;  %v18003_v55 = vpop.permute.xlu2 %13078 }
 0x922   : > { %12010 = vmatpush.msk.msra.mxu1 %vm618_vm0, %v7082_v16  ;;  %8703 = vrot.lane.b32.xlu0 %v17645_v22, %s13409_s18  ;;  %20982 = vst [vmem:[#allocation46_spill] sm:$0xff] %v18003_v55  ;;  %v6779_v16 = vsel %vm837_vm5, %v17890_v42, %v6755_v28  ;;  %v18013_v15 = vpop.permute.xlu1 %9656  ;;  %v12830_v42 = vunpack.i.l.bf16 %v17244_v45 }
 0x923   : > { %13118 = vrot.lane.b32.xlu2 %v17547_v32, %s13418_s14  ;;  %10594 = vrot.lane.b32.xlu1 %v17721_v34, %s13418_s14  ;;  %v12510_v32 = vunpack.i.l.bf16 %v20983_v56  ;;  %v7066_v34 = vsel %vm7064_vm8, %v12511_v53, %v20476_v6 }
 0x924   : > { %7162 = vmatpush.msra.mxu1 %v7074_v35  ;;  %11992 = vmatmul.msk.f32.vlgmr.msrb.gmra.mxu0 %vm6297_vm13, %v17811_v57  ;;  %v7073_v35 = vsel %vm7064_vm8, %v12841_v11, %v12715_v24  ;;  %v6763_v45 = vsel %vm837_vm5, %v12826_v25, %v12830_v42  ;;  %v20985_v24 = vld [vmem:[#allocation54_spill] sm:$0xff]  ;;  %v12606_v11 = vunpack.i.h.bf16 %v20980_v30  ;;  %v20987_v25 = vld [vmem:[#allocation13_spill] sm:$0xff]  ;;  %vm10294_vm5 = vcmask 179200  }
 0x925   : > { %12005 = vmatpush.msk.msrb.mxu3 %vm618_vm0, %v6755_v28  ;;  %12008 = vmatpush.msk.msrb.mxu0 %vm618_vm0, %v7081_v58  ;;  %v7065_v10 = vsel %vm7064_vm8, %v12510_v32, %v12511_v53  ;;  %v18035_v58 = vpack.i.bf16 %v17707_v23, %v17881_v29  ;;  %v12731_v59 = vunpack.i.h.bf16 %v20985_v24  ;;  %v12730_v12 = vunpack.i.l.bf16 %v20985_v24  ;;  %v20989_v32 = vld [vmem:[#allocation101_spill] sm:$0xff] }
 0x926   : > { %12003 = vmatpush.msk.msrb.mxu2 %vm618_vm0, %v6779_v16  ;;  %7163 = vmatpush.msra.mxu1 %v7066_v34  ;;  %v12660_v53 = vunpack.i.l.bf16 %v20987_v25  ;;  %v20988_v16 = vld [vmem:[#allocation82_spill] sm:$0xff]  ;;  %v20481_v24 = vunpack.i.h.bf16 %v17845_v62 }
 0x927   : > { %6993 = vmatpush.msrb.mxu3 %v12946_v2  ;;  %7142 = vmatpush.msrb.mxu0 %v7073_v35  ;;  %v20986_v2 = vld [vmem:[#allocation125_spill] sm:$0xff]  ;;  %v7084_v34 = vsel %vm7064_vm8, %v20989_v32, %v20988_v16  ;;  %v12661_v35 = vunpack.i.h.bf16 %v20987_v25 }
 0x928   : > { %6973 = vmatpush.msrb.mxu2 %v6771_v9  ;;  %v12935_v28 = vunpack.i.l.bf16 %v20986_v2  ;;  %v20991_v9 = vld [vmem:[#allocation107_spill] sm:$0xff]  ;;  %v20993_v25 = vunpack.i.h.bf16 %v20986_v2 }
 0x929   : > { %6994 = vmatpush.msrb.mxu3 %v12830_v42  ;;  %12002 = vmatmul.msk.f32.vlgmr.msrb.gmra.mxu1 %vm6297_vm13, %v17811_v57  ;;  %v18050_v56 = vpop.permute.xlu0 %9956  ;;  %v18052_v49 = vpop.permute.xlu2 %9960  ;;  %v20990_v42 = vld [vmem:[#allocation123_spill] sm:$0xff]  ;;  %v7085_v8 = vsel %vm7064_vm8, %v20988_v16, %v20991_v9 }
 0x92a   : > { %7143 = vmatpush.msrb.mxu0 %v7065_v10  ;;  %6974 = vmatpush.msrb.mxu2 %v6763_v45  ;;  %v7086_v10 = vsel %vm7064_vm8, %v20991_v9, %v17698_v52  ;;  %v20478_v45 = vunpack.i.l.bf16 %v17814_v31  ;;  %v7068_v9 = vsel %vm7064_vm8, %v12606_v11, %v12660_v53  ;;  %v12951_v31 = vunpack.i.h.bf16 %v21007_v50 }
 0x92b   : > { %13123 = vrot.lane.b32.xlu0 %v18035_v58, %s13417_s29  ;;  %13133 = vrot.lane.b32.xlu2 %v16555_v46, %s13418_s14  ;;  %v18066_v46 = vpop.permute.xlu1 %13043 }
 0x92c   : > { %10292 = vrot.lane.b32.xlu1 %v17308_v5, %s13417_s29  ;;  %12006 = vmatmul.msk.f32.vlgmr.msrb.gmra.mxu3 %vm6297_vm13, %v17811_v57  ;;  %20992 = vst [vmem:[#allocation105_spill] sm:$0xff] %v18066_v46  ;;  %v20480_v60 = vunpack.i.h.bf16 %v18066_v46  ;;  %v20479_v6 = vunpack.i.l.bf16 %v18066_v46  ;;  %v7083_v5 = vsel %vm7064_vm8, %v17116_v13, %v20989_v32  ;;  %v7078_v13 = vsel %vm7064_vm8, %v12935_v28, %v20993_v25 }
 0x92d   : > { %12014 = vmatpush.msk.msra.mxu3 %vm618_vm0, %v7084_v34  ;;  %12018 = vmatpush.msk.msrb.mxu1 %vm618_vm0, %v7086_v10  ;;  %v7076_v34 = vsel %vm7064_vm8, %v12730_v12, %v12731_v59  ;;  %v7077_v32 = vsel %vm7064_vm8, %v12731_v59, %v12935_v28  ;;  %v20997_v10 = vunpack.i.l.bf16 %v20990_v42  ;;  %v20998_v25 = vunpack.i.l.bf16 %v20980_v30  ;;  %v18126_v30 = vld [vmem:[#allocation4 + $0x98] sm:$0xff] }
 0x92e   : > { %12000 = vmatmul.msk.f32.vlgmr.msra.gmra.mxu0 %vm6297_vm13, %v17811_v57  ;;  %12004 = vmatmul.msk.f32.vlgmr.msrb.gmra.mxu2 %vm6297_vm13, %v17811_v57  ;;  %v18096_v16 = vsel %vm9976_vm4, %v20481_v24, %v20479_v6  ;;  %v18103_v57 = vsel %vm9976_vm4, %v20480_v60, %v20478_v45  ;;  %v21002_v45 = vld [vmem:[#allocation55_spill] sm:$0xff]  ;;  %v21005_v60 = vld [vmem:[#allocation133_spill] sm:$0xff] }
 0x92f   : > { %12012 = vmatpush.msk.msra.mxu2 %vm618_vm0, %v7083_v5  ;;  %12016 = vmatpush.msk.msra.mxu0 %vm618_vm0, %v7085_v8  ;;  %20994 = vst [vmem:[#allocation40_spill] sm:$0xff] %v18096_v16  ;;  %v20996_v8 = vunpack.i.h.bf16 %v16991_v43  ;;  %v7070_v5 = vsel %vm7064_vm8, %v12661_v35, %v20997_v10  ;;  %v7069_v43 = vsel %vm7064_vm8, %v12660_v53, %v12661_v35  ;;  %v18133_v53 = vld [vmem:[%s20228_s5 + $0xc] sm:$0x7]  ;;  %v20484_v10 = vunpack.i.l.bf16 %v17847_v3 }
 0x930   : > { %20995 = vst [vmem:[#allocation14_spill] sm:$0xff] %v18103_v57  ;;  %7202 = vmatpush.msra.mxu3 %v7076_v34  ;;  %7242 = vmatpush.msrb.mxu1 %v7078_v13  ;;  %v7067_v34 = vsel %vm7064_vm8, %v20998_v25, %v12606_v11  ;;  %v18117_v13 = vld [vmem:[#allocation4 + $0x48] sm:$0xff]  ;;  %v13127_v11 = vpack.i.bf16 %v17905_v48, %v18126_v30  ;;  %v21003_v6 = vld [vmem:[#allocation39_spill] sm:$0xff]  ;;  %v21023_v16 = vld [vmem:[#allocation142_spill] sm:$0xff] }
 0x931   : > { %v7075_v2 = vsel %vm7064_vm8, %v20996_v8, %v12730_v12  ;;  %7222 = vmatpush.msra.mxu0 %v7077_v32  ;;  %v13137_v59 = vpack.i.bf16 %v18117_v13, %v17716_v19  ;;  %v20999_v12 = vld [vmem:[#allocation71_spill] sm:$0xff]  ;;  %v7063_v35 = vpop.permute.xlu0 %7062  ;;  %v18135_v32 = vpop.permute.xlu2 %9966  ;;  %12011 = vmatmul.msk.f32.vlgmr.msra.gmra.mxu1 %vm6297_vm13, %v18133_v53  ;;  %v21019_v57 = vld [vmem:[#allocation92_spill] sm:$0xff] }
 0x932   : > { %7182 = vmatpush.msra.mxu2 %v7075_v2  ;;  %7203 = vmatpush.msra.mxu3 %v7068_v9  ;;  %v12556_v28 = vunpack.i.h.bf16 %v20999_v12  ;;  %v12555_v8 = vunpack.i.l.bf16 %v20999_v12  ;;  %v7087_v2 = vsel %vm7064_vm8, %v17698_v52, %v17952_v39  ;;  %21000 = vst [vmem:[#allocation54_spill] sm:$0xff] %v18135_v32  ;;  %v12836_v9 = vunpack.i.h.bf16 %v20990_v42 }
 0x933   : > { %7243 = vmatpush.msrb.mxu1 %v7070_v5  ;;  %7223 = vmatpush.msra.mxu0 %v7069_v43  ;;  %v18140_v52 = vpop.permute.xlu1 %13058  ;;  %v13293_v5 = vld [vmem:[#allocation4 + $0xc8] sm:$0xf] }
 0x934   : > { %7183 = vmatpush.msra.mxu2 %v7067_v34  ;;  %13138 = vrot.lane.b32.xlu0 %v13137_v59, %s13417_s29  ;;  %v20485_v25 = vunpack.i.h.bf16 %v18140_v52  ;;  %v21001_v34 = vld [vmem:[#allocation66_spill] sm:$0xff] }
 0x935   : > { %10602 = vrot.lane.b32.xlu2 %v13293_v5, %s13418_s14  ;;  %13128 = vrot.lane.b32.xlu1 %v13127_v11, %s13417_s29  ;;  %v12516_v43 = vunpack.i.h.bf16 %v21001_v34  ;;  %v12515_v12 = vunpack.i.l.bf16 %v21001_v34  ;;  %v21004_v59 = vld [vmem:[#allocation62_spill] sm:$0xff]  ;;  %v7448_v11 = vsel %vm3705_vm2, %v12555_v8, %v12556_v28  ;;  %v21008_v8 = vunpack.i.l.bf16 %v20990_v42  ;;  %v21009_v5 = vld [vmem:[#allocation88_spill] sm:$0xff] }
 0x936   : > { %12020 = vmatpush.msk.msrb.mxu2 %vm618_vm0, %v7087_v2  ;;  %v7457_v2 = vsel %vm3705_vm2, %v21003_v6, %v21002_v45  ;;  %12015 = vmatmul.msk.f32.vlgmr.msra.gmra.mxu3 %vm6297_vm13, %v18133_v53  ;;  %v18164_v6 = vsel %vm9976_vm4, %v20485_v25, %v20484_v10  ;;  %v21006_v34 = vld [vmem:[#allocation18_spill] sm:$0xff]  ;;  %v7458_v10 = vsel %vm3705_vm2, %v21002_v45, %v21009_v5  ;;  %v12840_v45 = vunpack.i.l.bf16 %v20981_v61 }
 0x937   : > { %12027 = vmatpush.msk.msra.mxu1 %vm618_vm0, %v7457_v2  ;;  %12009 = vmatmul.msk.f32.vlgmr.msrb.gmra.mxu0 %vm6297_vm13, %v18133_v53  ;;  %v7071_v2 = vsel %vm7064_vm8, %v21008_v8, %v12836_v9  ;;  %v7439_v25 = vsel %vm3705_vm2, %v12515_v12, %v12516_v43  ;;  %v21012_v12 = vunpack.i.l.bf16 %v21006_v34  ;;  %v20492_v61 = vunpack.i.l.bf16 %v18003_v55 }
 0x938   : > { %7262 = vmatpush.msrb.mxu2 %v21005_v60  ;;  %v7088_v60 = vsel %vm7064_vm8, %v17952_v39, %v7063_v35  ;;  %12024 = vmatpush.msk.msrb.mxu0 %vm618_vm0, %v7063_v35  ;;  %v21010_v39 = vunpack.i.l.bf16 %v21004_v59  ;;  %v21011_v35 = vunpack.i.l.bf16 %v21007_v50 }
 0x939   : > { %12013 = vmatmul.msk.f32.vlgmr.msra.gmra.mxu2 %vm6297_vm13, %v18133_v53  ;;  %7519 = vmatpush.msra.mxu1 %v7448_v11  ;;  %v18187_v8 = vpop.permute.xlu0 %9962  ;;  %v18189_v24 = vpop.permute.xlu2 %13088 }
 0x93a   : > { %7263 = vmatpush.msrb.mxu2 %v7071_v2  ;;  %12022 = vmatpush.msk.msrb.mxu3 %vm618_vm0, %v7088_v60  ;;  %v7449_v42 = vsel %vm3705_vm2, %v12556_v28, %v21010_v39  ;;  %v18201_v28 = vsel %vm9976_vm4, %v18052_v49, %v18187_v8  ;;  %v20491_v60 = vunpack.i.h.bf16 %v17950_v7  ;;  %v18207_v2 = vld [vmem:[#allocation4 + $0xb0] sm:$0xf] }
 0x93b   : > { %7520 = vmatpush.msra.mxu1 %v7439_v25  ;;  %7302 = vmatpush.msrb.mxu0 %v12951_v31  ;;  %v7440_v25 = vsel %vm3705_vm2, %v12516_v43, %v21012_v12  ;;  %v18203_v11 = vpop.permute.xlu1 %13073  ;;  %v21014_v43 = vld [vmem:[#allocation34_spill] sm:$0xff] }
 0x93c   : > { %12029 = vmatpush.msk.msra.mxu2 %vm618_vm0, %v7458_v10  ;;  %v7080_v10 = vsel %vm7064_vm8, %v21011_v35, %v12951_v31  ;;  %21013 = vst [vmem:[#allocation125_spill] sm:$0xff] %v18203_v11  ;;  %10596 = vrot.lane.b32.xlu0 %v18207_v2, %s13418_s14  ;;  %v20493_v31 = vunpack.i.h.bf16 %v18203_v11  ;;  %v20490_v50 = vunpack.i.l.bf16 %v18203_v11  ;;  %v12776_v39 = vunpack.i.h.bf16 %v21014_v43 }
 0x93d   : > { %7282 = vmatpush.msrb.mxu3 %v7080_v10  ;;  %7303 = vmatpush.msrb.mxu0 %v12840_v45  ;;  %v7072_v35 = vsel %vm7064_vm8, %v12836_v9, %v12840_v45  ;;  %v12736_v9 = vunpack.i.h.bf16 %v21004_v59  ;;  %v21018_v45 = vld [vmem:[#allocation112_spill] sm:$0xff] }
 0x93e   : > { %7539 = vmatpush.msra.mxu2 %v7449_v42  ;;  %v12775_v42 = vunpack.i.l.bf16 %v21014_v43  ;;  %9020 = vrot.lane.b32.xlu2 %v17645_v22, %s13410_s19  ;;  %v18225_v10 = vsel %vm9976_vm4, %v20491_v60, %v20490_v50  ;;  %v18232_v12 = vsel %vm9976_vm4, %v20493_v31, %v20492_v61  ;;  %v7461_v46 = vsel %vm3705_vm2, %v21019_v57, %v21018_v45  ;;  %v21020_v50 = vld [vmem:[#allocation134_spill] sm:$0xff] }
 0x93f   : > { %9018 = vrot.lane.b32.xlu1 %v17600_v44, %s13410_s19  ;;  %21015 = vst [vmem:[#allocation13_spill] sm:$0xff] %v18225_v10  ;;  %12019 = vmatmul.msk.f32.vlgmr.msrb.gmra.mxu1 %vm6297_vm13, %v18133_v53  ;;  %v12955_v60 = vunpack.i.l.bf16 %v21020_v50  ;;  %v12611_v61 = vunpack.i.h.bf16 %v21006_v34  ;;  %v7462_v55 = vsel %vm3705_vm2, %v21018_v45, %v21023_v16 }
 0x940   : > { %7540 = vmatpush.msra.mxu2 %v7440_v25  ;;  %21016 = vst [vmem:[#allocation82_spill] sm:$0xff] %v18232_v12  ;;  %v21017_v25 = vld [vmem:[#allocation61_spill] sm:$0xff]  ;;  %7283 = vmatpush.msrb.mxu3 %v7072_v35  ;;  %v7451_v10 = vsel %vm3705_vm2, %v12736_v9, %v12775_v42 }
 0x941   : > { %v12666_v43 = vunpack.i.h.bf16 %v21017_v25  ;;  %v12665_v26 = vunpack.i.l.bf16 %v21017_v25  ;;  %12035 = vmatpush.msk.msrb.mxu1 %vm618_vm0, %v7461_v46  ;;  %12017 = vmatmul.msk.f32.vlgmr.msra.gmra.mxu0 %vm6297_vm13, %v18133_v53  ;;  %v21021_v25 = vld [vmem:[#allocation84_spill] sm:$0xff]  ;;  %v21022_v46 = vld [vmem:[#allocation126_spill] sm:$0xff]  ;;  %v18264_v11 = vpop.permute.xlu0 %7433  ;;  %v18272_v45 = vpop.permute.xlu2 %7750 }
 0x942   : > { %v7459_v31 = vsel %vm3705_vm2, %v21009_v5, %v21021_v25  ;;  %v7460_v12 = vsel %vm3705_vm2, %v21021_v25, %v21019_v57  ;;  %12021 = vmatmul.msk.f32.vlgmr.msrb.gmra.mxu2 %vm6297_vm13, %v18133_v53  ;;  %12023 = vmatmul.msk.f32.vlgmr.msrb.gmra.mxu3 %vm6297_vm13, %v18133_v53  ;;  %v12845_v35 = vunpack.i.l.bf16 %v21022_v46  ;;  %v7452_v5 = vsel %vm3705_vm2, %v12775_v42, %v12776_v39 }
 0x943   : > { %12031 = vmatpush.msk.msra.mxu3 %vm618_vm0, %v7459_v31  ;;  %12033 = vmatpush.msk.msra.mxu0 %vm618_vm0, %v7460_v12  ;;  %v21024_v57 = vunpack.i.l.bf16 %v21004_v59  ;;  %v7443_v7 = vsel %vm3705_vm2, %v12665_v26, %v12666_v43  ;;  %v9959_v31 = vpop.permute.xlu1 %9958  ;;  %v7453_v12 = vsel %vm3705_vm2, %v12776_v39, %v12955_v60  ;;  %v21025_v59 = vunpack.i.l.bf16 %v21006_v34  ;;  %v21027_v34 = vld [vmem:[#allocation65_spill] sm:$0xff] }
 0x944   : > { %12037 = vmatpush.msk.msrb.mxu2 %vm618_vm0, %v7462_v55  ;;  %7599 = vmatpush.msrb.mxu1 %v7452_v5  ;;  %v18277_v4 = vsel %vm9976_vm4, %v18050_v56, %v9959_v31  ;;  %v18281_v55 = vsel %vm9976_vm4, %v9959_v31, %v18052_v49  ;;  %v7444_v39 = vsel %vm3705_vm2, %v12666_v43, %v12845_v35  ;;  %v18291_v56 = vld [vmem:[%s20228_s5 + $0x10] sm:$0x7]  ;;  %v12520_v43 = vunpack.i.l.bf16 %v21027_v34 }
 0x945   : > { %v7450_v25 = vsel %vm3705_vm2, %v21024_v57, %v12736_v9  ;;  %7579 = vmatpush.msra.mxu0 %v7451_v10  ;;  %v7441_v42 = vsel %vm3705_vm2, %v21025_v59, %v12611_v61  ;;  %v7442_v9 = vsel %vm3705_vm2, %v12611_v61, %v12665_v26  ;;  %v21026_v10 = vld [vmem:[#allocation37_spill] sm:$0xff]  ;;  %9335 = vrot.lane.b32.xlu0 %v17600_v44, %s13411_s25  ;;  %v12521_v61 = vunpack.i.h.bf16 %v21027_v34 }
 0x946   : > { %7559 = vmatpush.msra.mxu3 %v7450_v25  ;;  %7619 = vmatpush.msrb.mxu2 %v7453_v12  ;;  %v12561_v49 = vunpack.i.h.bf16 %v21026_v10  ;;  %v12560_v5 = vunpack.i.l.bf16 %v21026_v10  ;;  %v7463_v26 = vsel %vm3705_vm2, %v21023_v16, %v18264_v11  ;;  %v21028_v57 = vld [vmem:[#allocation73_spill] sm:$0xff]  ;;  %v21029_v25 = vld [vmem:[#allocation28_spill] sm:$0xff]  ;;  %v20500_v59 = vunpack.i.h.bf16 %v21022_v46 }
 0x947   : > { %7600 = vmatpush.msrb.mxu1 %v7443_v7  ;;  %7580 = vmatpush.msra.mxu0 %v7442_v9  ;;  %v18297_v7 = vld [vmem:[#allocation4 + $0xb8] sm:$0xf]  ;;  %v7774_v31 = vsel %vm1273_vm9, %v21029_v25, %v21028_v57 }
 0x948   : > { %7560 = vmatpush.msra.mxu3 %v7441_v42  ;;  %7620 = vmatpush.msrb.mxu2 %v7444_v39  ;;  %v21031_v42 = vunpack.i.h.bf16 %v21020_v50 }
 0x949   : > { %10598 = vrot.lane.b32.xlu2 %v18297_v7, %s13418_s14  ;;  %10600 = vrot.lane.b32.xlu1 %v17955_v38, %s13418_s14  ;;  %v18319_v16 = vpop.permute.xlu0 %9968 }
 0x94a   : > { %12028 = vmatmul.msk.f32.vlgmr.msra.gmra.mxu1 %vm6297_vm13, %v18291_v56  ;;  %12025 = vmatmul.msk.f32.vlgmr.msrb.gmra.mxu0 %vm6297_vm13, %v18133_v53  ;;  %21030 = vst [vmem:[#allocation101_spill] sm:$0xff] %v18319_v16  ;;  %v7765_v53 = vsel %vm1273_vm9, %v12560_v5, %v12561_v49  ;;  %v7454_v9 = vsel %vm3705_vm2, %v12955_v60, %v21031_v42  ;;  %v18328_v39 = vpop.permute.xlu2 %10278  ;;  %v21034_v60 = vld [vmem:[#allocation81_spill] sm:$0xff]  ;;  %v21038_v42 = vld [vmem:[#allocation87_spill] sm:$0xff] }
 0x94b   : > { %12030 = vmatmul.msk.f32.vlgmr.msra.gmra.mxu2 %vm6297_vm13, %v18291_v56  ;;  %12032 = vmatmul.msk.f32.vlgmr.msra.gmra.mxu3 %vm6297_vm13, %v18291_v56  ;;  %v9965_v12 = vpop.permute.xlu1 %9964  ;;  %v13147_v5 = vpack.i.bf16 %v17701_v36, %v17466_v41  ;;  %v12781_v50 = vunpack.i.h.bf16 %v21034_v60  ;;  %v20503_v25 = vunpack.i.l.bf16 %v21034_v60  ;;  %v21035_v41 = vld [vmem:[#allocation41_spill] sm:$0xff] }
 0x94c   : > { %12046 = vmatpush.msk.msra.mxu2 %vm618_vm0, %v7774_v31  ;;  %12039 = vmatpush.msk.msrb.mxu3 %vm618_vm0, %v7463_v26  ;;  %v18332_v10 = vsel %vm9976_vm4, %v18187_v8, %v9965_v12  ;;  %v18336_v34 = vsel %vm9976_vm4, %v9965_v12, %v18135_v32  ;;  %v7756_v26 = vsel %vm1273_vm9, %v12520_v43, %v12521_v61  ;;  %v21036_v43 = vld [vmem:[#allocation16_spill] sm:$0xff]  ;;  %v21037_v12 = vld [vmem:[#allocation110_spill] sm:$0xff]  ;;  %v21045_v32 = vld [vmem:[#allocation143_spill] sm:$0xff] }
 0x94d   : > { %21032 = vst [vmem:[#allocation123_spill] sm:$0xff] %v18332_v10  ;;  %13148 = vrot.lane.b32.xlu0 %v13147_v5, %s13418_s14  ;;  %v7445_v8 = vsel %vm3705_vm2, %v12845_v35, %v20500_v59  ;;  %v12671_v31 = vunpack.i.h.bf16 %v21036_v43  ;;  %v12961_v16 = vunpack.i.h.bf16 %v21045_v32 }
 0x94e   : > { %21033 = vst [vmem:[#allocation107_spill] sm:$0xff] %v18336_v34  ;;  %7836 = vmatpush.msra.mxu2 %v7765_v53  ;;  %7639 = vmatpush.msrb.mxu3 %v7454_v9  ;;  %v21040_v9 = vld [vmem:[#allocation12_spill] sm:$0xff]  ;;  %v7769_v53 = vsel %vm1273_vm9, %v20503_v25, %v12781_v50  ;;  %v21043_v34 = vunpack.i.l.bf16 %v21035_v41  ;;  %v21046_v25 = vunpack.i.l.bf16 %v21036_v43 }
 0x950   : > { %7837 = vmatpush.msra.mxu2 %v7756_v26  ;;  %7640 = vmatpush.msrb.mxu3 %v7445_v8  ;;  %v21041_v26 = vld [vmem:[#allocation86_spill] sm:$0xff]  ;;  %v7766_v10 = vsel %vm1273_vm9, %v12561_v49, %v21043_v34  ;;  %v7760_v62 = vsel %vm1273_vm9, %v21046_v25, %v12671_v31  ;;  %v18400_v49 = vld [vmem:[%s20228_s5 + $0x14] sm:$0x7]  ;;  %v21049_v25 = vld [vmem:[#allocation117_spill] sm:$0xff] }
 0x951   : > { %13158 = vrot.lane.b32.xlu2 %v16707_v51, %s13418_s14  ;;  %9337 = vrot.lane.b32.xlu1 %v17645_v22, %s13411_s25  ;;  %v7778_v51 = vsel %vm1273_vm9, %v21038_v42, %v21037_v12  ;;  %v18363_v35 = vpop.permute.xlu0 %9974  ;;  %v7775_v8 = vsel %vm1273_vm9, %v21028_v57, %v21041_v26 }
 0x952   : > { %12036 = vmatmul.msk.f32.vlgmr.msrb.gmra.mxu1 %vm6297_vm13, %v18291_v56  ;;  %12034 = vmatmul.msk.f32.vlgmr.msra.gmra.mxu0 %vm6297_vm13, %v18291_v56  ;;  %21039 = vst [vmem:[#allocation71_spill] sm:$0xff] %v18363_v35  ;;  %v18376_v36 = vpop.permute.xlu2 %8069  ;;  %v21042_v35 = vld [vmem:[#allocation146_spill] sm:$0xff] }
 0x953   : > { %12038 = vmatmul.msk.f32.vlgmr.msrb.gmra.mxu2 %vm6297_vm13, %v18291_v56  ;;  %12040 = vmatmul.msk.f32.vlgmr.msrb.gmra.mxu3 %vm6297_vm13, %v18291_v56  ;;  %v7436_v59 = vpop.permute.xlu1 %7435 }
 0x954   : > { %12054 = vmatpush.msk.msrb.mxu2 %vm618_vm0, %v7778_v51  ;;  %12048 = vmatpush.msk.msra.mxu3 %vm618_vm0, %v7775_v8  ;;  %v7464_v5 = vsel %vm3705_vm2, %v18264_v11, %v7436_v59  ;;  %v7465_v57 = vsel %vm3705_vm2, %v7436_v59, %v21042_v35  ;;  %v21044_v51 = vld [vmem:[#allocation127_spill] sm:$0xff]  ;;  %v21047_v11 = vunpack.i.l.bf16 %v21040_v9  ;;  %v20509_v35 = vunpack.i.l.bf16 %v21049_v25 }
 0x955   : > { %12041 = vmatpush.msk.msrb.mxu0 %vm618_vm0, %v7464_v5  ;;  %v20506_v8 = vunpack.i.l.bf16 %v21044_v51  ;;  %12043 = vmatpush.msk.msra.mxu1 %vm618_vm0, %v7465_v57  ;;  %v7779_v5 = vsel %vm1273_vm9, %v21037_v12, %v17742_v17  ;;  %v21052_v12 = vunpack.i.l.bf16 %v21045_v32 }
 0x956   : > { %7916 = vmatpush.msrb.mxu2 %v7769_v53  ;;  %7856 = vmatpush.msra.mxu3 %v7766_v10  ;;  %v7757_v59 = vsel %vm1273_vm9, %v12521_v61, %v21047_v11  ;;  %v21048_v10 = vld [vmem:[#allocation108_spill] sm:$0xff] }
 0x957   : > { %9654 = vrot.lane.b32.xlu0 %v17645_v22, %s13414_s11  ;;  %v12851_v34 = vunpack.i.h.bf16 %v21048_v10  ;;  %v12850_v53 = vunpack.i.l.bf16 %v21048_v10  ;;  %v21050_v22 = vld [vmem:[#allocation36_spill] sm:$0xff]  ;;  %v7456_v57 = vsel %vm3705_vm2, %v21052_v12, %v12961_v16  ;;  %v20507_v16 = vunpack.i.l.bf16 %v18189_v24  ;;  %v21056_v12 = vld [vmem:[#allocation22_spill] sm:$0xff] }
 0x958   : > { %7917 = vmatpush.msrb.mxu2 %v7760_v62  ;;  %7857 = vmatpush.msra.mxu3 %v7757_v59  ;;  %v7770_v62 = vsel %vm1273_vm9, %v12781_v50, %v20506_v8  ;;  %v21051_v61 = vld [vmem:[#allocation144_spill] sm:$0xff]  ;;  %v21053_v59 = vld [vmem:[#allocation33_spill] sm:$0xff]  ;;  %v21055_v8 = vunpack.i.h.bf16 %v21022_v46 }
 0x959   : > { %9652 = vrot.lane.b32.xlu2 %v17600_v44, %s13414_s11  ;;  %13143 = vrot.lane.b32.xlu1 %v21050_v22, %s13418_s14  ;;  %v13162_v44 = vpack.i.bf16 %v18126_v30, %v17707_v23  ;;  %v18424_v11 = vpop.permute.xlu0 %7752  ;;  %v7761_v23 = vsel %vm1273_vm9, %v12671_v31, %v20509_v35  ;;  %v7447_v30 = vsel %vm3705_vm2, %v12850_v53, %v12851_v34  ;;  %v12616_v22 = vunpack.i.h.bf16 %v21040_v9  ;;  %v21068_v35 = vld [vmem:[#allocation98_spill] sm:$0xff] }
 0x95a   : > { %12056 = vmatpush.msk.msrb.mxu3 %vm618_vm0, %v7779_v5  ;;  %7659 = vmatpush.msrb.mxu0 %v21051_v61  ;;  %v21054_v5 = vld [vmem:[#allocation67_spill] sm:$0xff]  ;;  %v7446_v61 = vsel %vm3705_vm2, %v21055_v8, %v12850_v53  ;;  %v12525_v8 = vunpack.i.l.bf16 %v21053_v59  ;;  %v12741_v31 = vunpack.i.h.bf16 %v21035_v41 }
 0x95b   : > { %12047 = vmatmul.msk.f32.vlgmr.msra.gmra.mxu2 %vm6297_vm13, %v18400_v49  ;;  %v12565_v50 = vunpack.i.l.bf16 %v21054_v5  ;;  %7679 = vmatpush.msra.mxu1 %v7456_v57  ;;  %v18432_v32 = vpop.permute.xlu1 %13083  ;;  %v21057_v57 = vld [vmem:[#allocation38_spill] sm:$0xff]  ;;  %v21059_v53 = vunpack.i.h.bf16 %v21054_v5 }
 0x95c   : > { %7936 = vmatpush.msrb.mxu3 %v7770_v62  ;;  %7660 = vmatpush.msrb.mxu0 %v7446_v61  ;;  %v18441_v62 = vpop.permute.xlu2 %13103  ;;  %v20508_v46 = vunpack.i.h.bf16 %v18432_v32  ;;  %v8091_v10 = vsel %vm1382_vm10, %v21057_v57, %v21056_v12 }
 0x95d   : > { %12049 = vmatmul.msk.f32.vlgmr.msra.gmra.mxu3 %vm6297_vm13, %v18400_v49  ;;  %7680 = vmatpush.msra.mxu1 %v7447_v30  ;;  %v8082_v61 = vsel %vm1382_vm10, %v12565_v50, %v21059_v53  ;;  %v21060_v30 = vld [vmem:[#allocation103_spill] sm:$0xff]  ;;  %v21061_v50 = vunpack.i.h.bf16 %v21053_v59  ;;  %v21063_v53 = vld [vmem:[#allocation77_spill] sm:$0xff] }
 0x95e   : > { %7937 = vmatpush.msrb.mxu3 %v7761_v23  ;;  %12042 = vmatmul.msk.f32.vlgmr.msrb.gmra.mxu0 %vm6297_vm13, %v18291_v56  ;;  %v18458_v34 = vsel %vm10294_vm5, %v20508_v46, %v20507_v16  ;;  %v18464_v23 = vld [vmem:[#allocation4 + $0x28] sm:$0xff]  ;;  %v7776_v57 = vsel %vm1273_vm9, %v21041_v26, %v21060_v30  ;;  %v18473_v16 = vld [vmem:[#allocation4 + $0xd0] sm:$0xf] }
 0x95f   : > { %21058 = vst [vmem:[#allocation66_spill] sm:$0xff] %v18458_v34  ;;  %13163 = vrot.lane.b32.xlu0 %v13162_v44, %s13418_s14  ;;  %12044 = vmatmul.msk.f32.vlgmr.msra.gmra.mxu1 %vm6297_vm13, %v18291_v56  ;;  %v7777_v44 = vsel %vm1273_vm9, %v21060_v30, %v21038_v42  ;;  %v21062_v56 = vunpack.i.l.bf16 %v21040_v9  ;;  %v7782_v42 = vsel %vm1273_vm9, %v18424_v11, %v17787_v21  ;;  %v21065_v9 = vld [vmem:[#allocation137_spill] sm:$0xff]  ;;  %v21069_v46 = vld [vmem:[#allocation104_spill] sm:$0xff] }
 0x960   : > { %12065 = vmatpush.msk.msra.mxu3 %vm618_vm0, %v8091_v10  ;;  %v13152_v10 = vpack.i.bf16 %v17857_v20, %v18464_v23  ;;  %v8073_v20 = vsel %vm1382_vm10, %v12525_v8, %v21061_v50  ;;  %12050 = vmatpush.msk.msra.mxu0 %vm618_vm0, %v7776_v57  ;;  %v21064_v8 = vunpack.i.l.bf16 %v21035_v41  ;;  %v12971_v57 = vunpack.i.h.bf16 %v21065_v9  ;;  %v21076_v41 = vld [vmem:[#allocation128_spill] sm:$0xff] }
 0x961   : > { %10604 = vrot.lane.b32.xlu2 %v18473_v16, %s13418_s14  ;;  %v7758_v26 = vsel %vm1273_vm9, %v21062_v56, %v12616_v22  ;;  %12052 = vmatpush.msk.msrb.mxu1 %vm618_vm0, %v7777_v44  ;;  %v18497_v30 = vpop.permute.xlu0 %13093  ;;  %v21066_v44 = vunpack.i.l.bf16 %v21034_v60  ;;  %v21067_v56 = vld [vmem:[#allocation63_spill] sm:$0xff]  ;;  %v12861_v34 = vunpack.i.h.bf16 %v21076_v41 }
 0x962   : > { %8153 = vmatpush.msra.mxu3 %v8082_v61  ;;  %13153 = vrot.lane.b32.xlu1 %v13152_v10, %s13418_s14  ;;  %v7767_v10 = vsel %vm1273_vm9, %v21064_v8, %v12741_v31  ;;  %v20510_v21 = vunpack.i.l.bf16 %v18497_v30  ;;  %v8095_v61 = vsel %vm1382_vm10, %v21069_v46, %v21068_v35 }
 0x963   : > { %12055 = vmatmul.msk.f32.vlgmr.msrb.gmra.mxu2 %vm6297_vm13, %v18400_v49  ;;  %7876 = vmatpush.msra.mxu0 %v7767_v10  ;;  %v21070_v10 = vunpack.i.l.bf16 %v21036_v43  ;;  %v21072_v43 = vunpack.i.h.bf16 %v18189_v24 }
 0x964   : > { %8154 = vmatpush.msra.mxu3 %v8073_v20  ;;  %v7768_v20 = vsel %vm1273_vm9, %v12741_v31, %v21066_v44  ;;  %v18517_v50 = vpop.permute.xlu2 %10280  ;;  %v10277_v31 = vpop.permute.xlu1 %10276  ;;  %12062 = vmatpush.msk.msra.mxu2 %vm618_vm0, %v7782_v42  ;;  %v21074_v42 = vunpack.i.h.bf16 %v21063_v53 }
 0x965   : > { %12057 = vmatmul.msk.f32.vlgmr.msrb.gmra.mxu3 %vm6297_vm13, %v18400_v49  ;;  %7896 = vmatpush.msrb.mxu1 %v7768_v20  ;;  %v7759_v60 = vsel %vm1273_vm9, %v12616_v22, %v21070_v10  ;;  %v18524_v44 = vsel %vm10294_vm5, %v18328_v39, %v18517_v50  ;;  %v18528_v8 = vsel %vm10294_vm5, %v10277_v31, %v18328_v39  ;;  %v21075_v20 = vunpack.i.l.bf16 %v21063_v53 }
 0x966   : > { %12073 = vmatpush.msk.msrb.mxu3 %vm618_vm0, %v8095_v61  ;;  %21071 = vst [vmem:[#allocation55_spill] sm:$0xff] %v18524_v44  ;;  %v18535_v22 = vsel %vm10294_vm5, %v21072_v43, %v20510_v21  ;;  %v7780_v61 = vsel %vm1273_vm9, %v17742_v17, %v18272_v45  ;;  %7877 = vmatpush.msra.mxu0 %v7758_v26  ;;  %v12860_v43 = vunpack.i.l.bf16 %v21076_v41  ;;  %v21077_v17 = vunpack.i.l.bf16 %v21065_v9  ;;  %v21089_v9 = vld [vmem:[#allocation120_spill] sm:$0xff] }
 0x967   : > { %21073 = vst [vmem:[#allocation39_spill] sm:$0xff] %v18535_v22  ;;  %v8086_v10 = vsel %vm1382_vm10, %v21075_v20, %v21074_v42  ;;  %7897 = vmatpush.msrb.mxu1 %v7759_v60  ;;  %v13172_v39 = vpack.i.bf16 %v17881_v29, %v18117_v13  ;;  %v7781_v21 = vsel %vm1273_vm9, %v18272_v45, %v18424_v11  ;;  %v12856_v26 = vunpack.i.h.bf16 %v21049_v25  ;;  %v21080_v11 = vld [vmem:[#allocation43_spill] sm:$0xff] }
 0x968   : > { %8233 = vmatpush.msrb.mxu3 %v8086_v10  ;;  %12058 = vmatpush.msk.msrb.mxu0 %vm618_vm0, %v7780_v61  ;;  %v7773_v42 = vsel %vm1273_vm9, %v21077_v17, %v12971_v57  ;;  %v21078_v60 = vunpack.i.h.bf16 %v21067_v56  ;;  %v21079_v29 = vunpack.i.l.bf16 %v21067_v56  ;;  %v13167_v45 = vpack.i.bf16 %v17716_v19, %v17872_v0  ;;  %v21081_v57 = vld [vmem:[#allocation24_spill] sm:$0xff]  ;;  %v21084_v10 = vld [vmem:[#allocation42_spill] sm:$0xff]  ;;  %v21085_v17 = vld [vmem:[#allocation95_spill] sm:$0xff] }
 0x969   : > { %12060 = vmatpush.msk.msra.mxu1 %vm618_vm0, %v7781_v21  ;;  %7996 = vmatpush.msra.mxu2 %v7773_v42  ;;  %v12746_v41 = vunpack.i.h.bf16 %v21081_v57  ;;  %v18569_v61 = vld [vmem:[#allocation4 + $0xe8] sm:$0xf]  ;;  %v21082_v21 = vunpack.i.h.bf16 %v21044_v51  ;;  %v21083_v20 = vunpack.i.l.bf16 %v21044_v51  ;;  %v12745_v0 = vunpack.i.l.bf16 %v21081_v57  ;;  %v18590_v51 = vld [vmem:[%s20228_s5 + $0x18] sm:$0x7] }
 0x96a   : > { %v8077_v13 = vsel %vm1382_vm10, %v21079_v29, %v21078_v60  ;;  %13173 = vrot.lane.b32.xlu0 %v13172_v39, %s13418_s14  ;;  %13168 = vrot.lane.b32.xlu2 %v13167_v45, %s13418_s14  ;;  %v8092_v39 = vsel %vm1382_vm10, %v21056_v12, %v21084_v10  ;;  %v8094_v42 = vsel %vm1382_vm10, %v21085_v17, %v21069_v46  ;;  %v21086_v60 = vld [vmem:[#allocation140_spill] sm:$0xff]  ;;  %v12981_v45 = vunpack.i.h.bf16 %v17408_v40 }
 0x96b   : > { %8234 = vmatpush.msrb.mxu3 %v8077_v13  ;;  %10610 = vrot.lane.b32.xlu1 %v18569_v61, %s13418_s14  ;;  %v7771_v19 = vsel %vm1273_vm9, %v21083_v20, %v21082_v21  ;;  %v7764_v29 = vsel %vm1273_vm9, %v12860_v43, %v12861_v34  ;;  %v18592_v13 = vpop.permute.xlu0 %13098  ;;  %v13105_v12 = vunpack.i.l.bf16 %v18441_v62  ;;  %v21087_v46 = vunpack.i.l.bf16 %v21049_v25 }
 0x96c   : > { %7956 = vmatpush.msrb.mxu0 %v7771_v19  ;;  %7976 = vmatpush.msra.mxu1 %v21086_v60  ;;  %v18602_v21 = vpop.permute.xlu2 %13113  ;;  %v12871_v34 = vunpack.i.h.bf16 %v21089_v9  ;;  %v8099_v20 = vsel %vm1382_vm10, %v18376_v36, %v17630_v37  ;;  %v21090_v60 = vunpack.i.l.bf16 %v18592_v13  ;;  %v20511_v22 = vunpack.i.l.bf16 %v21089_v9 }
 0x96d   : > { %7997 = vmatpush.msra.mxu2 %v7764_v29  ;;  %12051 = vmatmul.msk.f32.vlgmr.msra.gmra.mxu0 %vm6297_vm13, %v18400_v49  ;;  %v7762_v57 = vsel %vm1273_vm9, %v21087_v46, %v12856_v26  ;;  %v10275_v29 = vpop.permute.xlu1 %10274  ;;  %v18612_v46 = vpop.f32.mrf.mxu2  ;;  %v7763_v37 = vsel %vm1273_vm9, %v12856_v26, %v12860_v43  ;;  %v21092_v44 = vunpack.i.h.bf16 %v18441_v62  ;;  %v8093_v43 = vsel %vm1382_vm10, %v21084_v10, %v21085_v17 }
 0x96e   : > { %12053 = vmatmul.msk.f32.vlgmr.msrb.gmra.mxu1 %vm6297_vm13, %v18400_v49  ;;  %12063 = vmatmul.msk.f32.vlgmr.msra.gmra.mxu2 %vm6297_vm13, %v18400_v49  ;;  %21088 = vst [vmem:[#allocation62_spill] sm:$0xff] %v18612_v46  ;;  %v18622_v19 = vsel %vm10294_vm5, %v10275_v29, %v10277_v31  ;;  %v18627_v25 = vsel %vm10294_vm5, %v13105_v12, %v21090_v60  ;;  %v18632_v46 = vpop.f32.mrf.mxu3  ;;  %v21095_v29 = vunpack.i.l.bf16 %v18602_v21  ;;  %v21096_v12 = vunpack.i.h.bf16 %v18497_v30 }
 0x96f   : > { %12066 = vmatmul.msk.f32.vlgmr.msra.gmra.mxu3 %vm6297_vm13, %v18590_v51  ;;  %12071 = vmatpush.msk.msrb.mxu2 %vm618_vm0, %v8094_v42  ;;  %21091 = vst [vmem:[#allocation133_spill] sm:$0xff] %v18632_v46  ;;  %v21093_v42 = vunpack.i.h.bf16 %v18602_v21  ;;  %v21098_v26 = vunpack.i.l.bf16 %v21063_v53  ;;  %v8084_v10 = vsel %vm1382_vm10, %v12745_v0, %v12746_v41  ;;  %v21138_v46 = vunpack.i.h.bf16 %v18441_v62 }
 0x970   : > { %12081 = vmatpush.msk.msra.mxu3 %vm618_vm0, %v8099_v20  ;;  %7957 = vmatpush.msrb.mxu0 %v7762_v57  ;;  %v18646_v60 = vsel %vm10294_vm5, %v21096_v12, %v21095_v29  ;;  %v12621_v57 = vunpack.i.h.bf16 %v21080_v11  ;;  %v21099_v20 = vunpack.i.l.bf16 %v17408_v40  ;;  %v21100_v29 = vunpack.i.h.bf16 %v21054_v5 }
 0x971   : > { %v18639_v31 = vsel %vm10294_vm5, %v21093_v42, %v21092_v44  ;;  %21097 = vst [vmem:[#allocation130_spill] sm:$0xff] %v18646_v60  ;;  %7977 = vmatpush.msra.mxu1 %v7763_v37  ;;  %v8085_v44 = vsel %vm1382_vm10, %v12746_v41, %v21098_v26  ;;  %v8081_v40 = vsel %vm1382_vm10, %v20511_v22, %v12871_v34  ;;  %v21103_v5 = vunpack.i.h.bf16 %v21053_v59 }
 0x972   : > { %21094 = vst [vmem:[#allocation18_spill] sm:$0xff] %v18639_v31  ;;  %12067 = vmatpush.msk.msra.mxu0 %vm618_vm0, %v8092_v39  ;;  %8213 = vmatpush.msrb.mxu2 %v8085_v44  ;;  %v8090_v42 = vsel %vm1382_vm10, %v21099_v20, %v12981_v45  ;;  %v8083_v12 = vsel %vm1382_vm10, %v21100_v29, %v12745_v0  ;;  %v21101_v39 = vunpack.i.l.bf16 %v21067_v56  ;;  %v21102_v45 = vunpack.i.l.bf16 %v21080_v11  ;;  %v21106_v44 = vld [vmem:[#allocation78_spill] sm:$0xff]  ;;  %v21107_v20 = vld [vmem:[#allocation147_spill] sm:$0xff] }
 0x973   : > { %12069 = vmatpush.msk.msrb.mxu1 %vm618_vm0, %v8093_v43  ;;  %8313 = vmatpush.msra.mxu3 %v8090_v42  ;;  %v18675_v43 = vpop.permute.xlu0 %10284  ;;  %v20513_v59 = vunpack.i.h.bf16 %v21106_v44  ;;  %v12975_v42 = vunpack.i.l.bf16 %v21107_v20  ;;  %v18688_v29 = vld [vmem:[#allocation4 + $0xd8] sm:$0xf]  ;;  %v21116_v22 = vunpack.i.h.bf16 %v21063_v53  ;;  %vm10612_vm9 = vcmask 171008  }
 0x974   : > { %8173 = vmatpush.msra.mxu0 %v8083_v12  ;;  %v8076_v17 = vsel %vm1382_vm10, %v12621_v57, %v21101_v39  ;;  %v8074_v37 = vsel %vm1382_vm10, %v21103_v5, %v21102_v45  ;;  %21104 = vst [vmem:[#allocation88_spill] sm:$0xff] %v18675_v43  ;;  %v21105_v41 = vmov %v21102_v45  ;;  %10918 = vrot.lane.b32.xlu0 %v17955_v38, %s13419_s28  ;;  %v21108_v11 = vld [vmem:[#allocation30_spill] sm:$0xff]  ;;  %v21109_v38 = vld [vmem:[#allocation159_spill] sm:$0xff] }
 0x975   : > { %8193 = vmatpush.msrb.mxu1 %v8084_v10  ;;  %8214 = vmatpush.msrb.mxu2 %v8076_v17  ;;  %v8075_v0 = vsel %vm1382_vm10, %v21105_v41, %v12621_v57  ;;  %v18680_v26 = vpop.permute.xlu2 %8701  ;;  %v8068_v34 = vpop.permute.xlu1 %8067  ;;  %v21111_v39 = vld [vmem:[#allocation74_spill] sm:$0xff]  ;;  %v8087_v57 = vsel %vm1382_vm10, %v21116_v22, %v12975_v42  ;;  %v21118_v22 = vunpack.i.h.bf16 %v21067_v56 }
 0x976   : > { %8314 = vmatpush.msra.mxu3 %v8081_v40  ;;  %8174 = vmatpush.msra.mxu0 %v8074_v37  ;;  %v8097_v12 = vsel %vm1382_vm10, %v21109_v38, %v8068_v34  ;;  %v8098_v10 = vsel %vm1382_vm10, %v8068_v34, %v18376_v36  ;;  %v20512_v17 = vunpack.i.l.bf16 %v21111_v39  ;;  %v21112_v40 = vld [vmem:[#allocation97_spill] sm:$0xff]  ;;  %v21113_v45 = vld [vmem:[#allocation90_spill] sm:$0xff]  ;;  %v21114_v37 = vld [vmem:[#allocation111_spill] sm:$0xff]  ;;  %v18717_v36 = vpop.f32.mrf.mxu3 }
 0x977   : > { %8194 = vmatpush.msrb.mxu1 %v8075_v0  ;;  %10916 = vrot.lane.b32.xlu2 %v18297_v7, %s13419_s28  ;;  %v18701_v7 = vpop.f32.mrf.mxu2  ;;  %v8411_v5 = vsel %vm1491_vm11, %v21113_v45, %v21112_v40  ;;  %v12865_v41 = vunpack.i.l.bf16 %v21114_v37  ;;  %v21115_v0 = vld [vmem:[#allocation50_spill] sm:$0xff]  ;;  %v12866_v53 = vunpack.i.h.bf16 %v21114_v37 }
 0x978   : > { %9970 = vrot.lane.b32.xlu1 %v18688_v29, %s13416_s20  ;;  %12059 = vmatmul.msk.f32.vlgmr.msrb.gmra.mxu0 %vm6297_vm13, %v18400_v49  ;;  %21110 = vst [vmem:[#allocation34_spill] sm:$0xff] %v18701_v7  ;;  %v18747_v37 = vld [vmem:[#allocation4 + $0x30] sm:$0xff] }
 0x979   : > { %12061 = vmatmul.msk.f32.vlgmr.msra.gmra.mxu1 %vm6297_vm13, %v18400_v49  ;;  %v8096_v49 = vsel %vm1382_vm10, %v21068_v35, %v21109_v38  ;;  %12072 = vmatmul.msk.f32.vlgmr.msrb.gmra.mxu2 %vm6297_vm13, %v18590_v51  ;;  %v8402_v35 = vsel %vm1491_vm11, %v20513_v59, %v20512_v17  ;;  %v21117_v38 = vunpack.i.h.bf16 %v21107_v20  ;;  %v8078_v34 = vsel %vm1382_vm10, %v21118_v22, %v12865_v41  ;;  %v21121_v20 = vld [vmem:[#allocation149_spill] sm:$0xff]  ;;  %v18753_v22 = vpop.f32.mrf.mxu1 }
 0x97a   : > { %12074 = vmatmul.msk.f32.vlgmr.msrb.gmra.mxu3 %vm6297_vm13, %v18590_v51  ;;  %12075 = vmatpush.msk.msrb.mxu0 %vm618_vm0, %v8096_v49  ;;  %v21119_v17 = vunpack.i.l.bf16 %v21108_v11  ;;  %v13177_v56 = vpack.i.bf16 %v17905_v48, %v18747_v37  ;;  %v21125_v48 = vld [vmem:[#allocation52_spill] sm:$0xff]  ;;  %v8079_v60 = vsel %vm1382_vm10, %v12865_v41, %v12866_v53 }
 0x97b   : > { %12090 = vmatpush.msk.msrb.mxu3 %vm618_vm0, %v8411_v5  ;;  %12077 = vmatpush.msk.msra.mxu1 %vm618_vm0, %v8097_v12  ;;  %v8088_v5 = vsel %vm1382_vm10, %v12975_v42, %v21117_v38  ;;  %v18733_v49 = vpop.permute.xlu0 %8384  ;;  %v21120_v12 = vunpack.i.h.bf16 %v21115_v0 }
 0x97c   : > { %12079 = vmatpush.msk.msra.mxu2 %vm618_vm0, %v8098_v10  ;;  %8253 = vmatpush.msrb.mxu0 %v8087_v57  ;;  %v13300_v57 = vld [vmem:[#allocation4 + $0x68] sm:$0xff] }
 0x97d   : > { %8530 = vmatpush.msrb.mxu3 %v8402_v35  ;;  %v8393_v10 = vsel %vm1491_vm11, %v21120_v12, %v21119_v17  ;;  %v13301_v35 = vld [vmem:[#allocation4 + $0x70] sm:$0xff]  ;;  %8273 = vmatpush.msra.mxu1 %v8088_v5  ;;  %v18745_v42 = vpop.permute.xlu2 %13118  ;;  %v18751_v38 = vpop.permute.xlu1 %10286  ;;  %v21124_v17 = vld [vmem:[#allocation68_spill] sm:$0xff] }
 0x97e   : > { %v13182_v59 = vpack.i.bf16 %v13301_v35, %v13300_v57  ;;  %8293 = vmatpush.msra.mxu2 %v21121_v20  ;;  %21122 = vst [vmem:[#allocation61_spill] sm:$0xff] %v18745_v42  ;;  %8254 = vmatpush.msrb.mxu0 %v8078_v34  ;;  %v12571_v12 = vunpack.i.h.bf16 %v21124_v17  ;;  %v12570_v57 = vunpack.i.l.bf16 %v21124_v17  ;;  %v18758_v5 = vld [vmem:[#allocation4 + $0xe0] sm:$0xf]  ;;  %v12750_v34 = vunpack.i.l.bf16 %v21106_v44 }
 0x97f   : > { %8531 = vmatpush.msrb.mxu3 %v8393_v10  ;;  %21123 = vst [vmem:[#allocation112_spill] sm:$0xff] %v18751_v38  ;;  %9972 = vrot.lane.b32.xlu2 %v18758_v5, %s13416_s20  ;;  %v12531_v10 = vunpack.i.h.bf16 %v21125_v48  ;;  %v12530_v35 = vunpack.i.l.bf16 %v21125_v48  ;;  %v21126_v20 = vld [vmem:[#allocation76_spill] sm:$0xff]  ;;  %v21127_v17 = vld [vmem:[#allocation75_spill] sm:$0xff]  ;;  %v21129_v48 = vunpack.i.l.bf16 %v21089_v9 }
 0x980   : > { %13183 = vrot.lane.b32.xlu0 %v13182_v59, %s13419_s28  ;;  %13178 = vrot.lane.b32.xlu1 %v13177_v56, %s13418_s14  ;;  %v8408_v59 = vsel %vm1491_vm11, %v21127_v17, %v21126_v20  ;;  %v21128_v56 = vld [vmem:[#allocation91_spill] sm:$0xff]  ;;  %v18783_v17 = vpop.f32.mrf.mxu2  ;;  %v8399_v31 = vsel %vm1491_vm11, %v12570_v57, %v12571_v12  ;;  %v20516_v57 = vunpack.i.h.bf16 %v18592_v13 }
 0x981   : > { %12068 = vmatmul.msk.f32.vlgmr.msra.gmra.mxu0 %vm6297_vm13, %v18590_v51  ;;  %12070 = vmatmul.msk.f32.vlgmr.msrb.gmra.mxu1 %vm6297_vm13, %v18590_v51  ;;  %v8409_v42 = vsel %vm1491_vm11, %v21126_v20, %v21128_v56  ;;  %v8080_v7 = vsel %vm1382_vm10, %v12866_v53, %v21129_v48  ;;  %21130 = vst [vmem:[#allocation92_spill] sm:$0xff] %v18783_v17  ;;  %v18795_v53 = vpop.f32.mrf.mxu3  ;;  %v21140_v17 = vld [vmem:[#allocation115_spill] sm:$0xff] }
 0x982   : > { %12082 = vmatmul.msk.f32.vlgmr.msra.gmra.mxu3 %vm6297_vm13, %v18590_v51  ;;  %12084 = vmatpush.msk.msra.mxu0 %vm618_vm0, %v8408_v59  ;;  %v8410_v41 = vsel %vm1491_vm11, %v21128_v56, %v21113_v45  ;;  %21131 = vst [vmem:[#allocation134_spill] sm:$0xff] %v18795_v53  ;;  %v8390_v20 = vsel %vm1491_vm11, %v12530_v35, %v12531_v10  ;;  %v12791_v59 = vunpack.i.h.bf16 %v21111_v39  ;;  %v13304_v56 = vld [vmem:[#allocation4 + $0xa8] sm:$0xf]  ;;  %v12681_v53 = vunpack.i.h.bf16 %v21108_v11 }
 0x983   : > { %8274 = vmatpush.msra.mxu1 %v8079_v60  ;;  %8294 = vmatpush.msra.mxu2 %v8080_v7  ;;  %v8400_v60 = vsel %vm1491_vm11, %v12571_v12, %v12750_v34  ;;  %v18793_v9 = vpop.permute.xlu0 %13108  ;;  %v18808_v12 = vld [vmem:[%s20228_s5 + $0x1c] sm:$0x7] }
 0x984   : > { %8470 = vmatpush.msra.mxu0 %v8399_v31  ;;  %12080 = vmatmul.msk.f32.vlgmr.msra.gmra.mxu2 %vm6297_vm13, %v18590_v51  ;;  %v13111_v7 = vunpack.i.h.bf16 %v18793_v9  ;;  %v12625_v31 = vunpack.i.l.bf16 %v21115_v0  ;;  %v21137_v38 = vunpack.i.l.bf16 %v18793_v9 }
 0x985   : > { %12086 = vmatpush.msk.msrb.mxu1 %vm618_vm0, %v8409_v42  ;;  %12088 = vmatpush.msk.msrb.mxu2 %vm618_vm0, %v8410_v41  ;;  %v18801_v45 = vpop.permute.xlu2 %13133  ;;  %v8387_v35 = vpop.permute.xlu1 %8386  ;;  %v13305_v41 = vld [vmem:[#allocation4 + $0xa0] sm:$0xf]  ;;  %v21135_v42 = vunpack.i.h.bf16 %v18602_v21 }
 0x986   : > { %21132 = vst [vmem:[#allocation84_spill] sm:$0xff] %v18801_v45  ;;  %8471 = vmatpush.msra.mxu0 %v8390_v20  ;;  %v8415_v48 = vsel %vm1491_vm11, %v18733_v49, %v8387_v35  ;;  %v18824_v20 = vsel %vm10294_vm5, %v20516_v57, %v13111_v7  ;;  %v18849_v62 = vpop.f32.mrf.mxu0  ;;  %v8391_v57 = vsel %vm1491_vm11, %v12531_v10, %v12625_v31  ;;  %v21148_v10 = vunpack.i.l.bf16 %v21108_v11 }
 0x987   : > { %8490 = vmatpush.msrb.mxu1 %v8400_v60  ;;  %10912 = vrot.lane.b32.xlu2 %v13304_v56, %s13419_s28  ;;  %v18819_v60 = vpop.f32.mrf.mxu1  ;;  %21134 = vst [vmem:[#allocation142_spill] sm:$0xff] %v18824_v20  ;;  %v18829_v56 = vsel %vm10294_vm5, %v13111_v7, %v21135_v42  ;;  %v21141_v7 = vunpack.i.h.bf16 %v21106_v44  ;;  %v21167_v20 = vld [vmem:[#allocation114_spill] sm:$0xff] }
 0x988   : > { %10290 = vrot.lane.b32.xlu0 %v18758_v5, %s13417_s29  ;;  %10910 = vrot.lane.b32.xlu1 %v13305_v41, %s13419_s28  ;;  %21133 = vst [vmem:[#allocation126_spill] sm:$0xff] %v18819_v60  ;;  %v18836_v41 = vsel %vm10294_vm5, %v21138_v46, %v21137_v38  ;;  %v8412_v60 = vsel %vm1491_vm11, %v21112_v40, %v21140_v17  ;;  %v21143_v46 = vld [vmem:[#allocation141_spill] sm:$0xff]  ;;  %v21144_v40 = vunpack.i.l.bf16 %v21111_v39  ;;  %v18867_v39 = vpop.f32.mrf.mxu2 }
 0x989   : > { %12076 = vmatmul.msk.f32.vlgmr.msrb.gmra.mxu0 %vm6297_vm13, %v18590_v51  ;;  %21136 = vst [vmem:[#allocation37_spill] sm:$0xff] %v18829_v56  ;;  %12078 = vmatmul.msk.f32.vlgmr.msra.gmra.mxu1 %vm6297_vm13, %v18590_v51  ;;  %v8401_v42 = vsel %vm1491_vm11, %v12750_v34, %v21141_v7  ;;  %v12985_v38 = vunpack.i.l.bf16 %v21143_v46  ;;  %v21146_v34 = vld [vmem:[#allocation151_spill] sm:$0xff] }
 0x98a   : > { %21139 = vst [vmem:[#allocation65_spill] sm:$0xff] %v18836_v41  ;;  %12091 = vmatmul.msk.f32.vlgmr.msrb.gmra.mxu3 %vm6297_vm13, %v18808_v12  ;;  %12092 = vmatpush.msk.msrb.mxu0 %vm618_vm0, %v8412_v60  ;;  %v8403_v51 = vsel %vm1491_vm11, %v21144_v40, %v12791_v59  ;;  %v21145_v41 = vunpack.i.h.bf16 %v21115_v0  ;;  %v8413_v7 = vsel %vm1491_vm11, %v21140_v17, %v21146_v34  ;;  %v21163_v56 = vld [vmem:[#allocation51_spill] sm:$0xff] }
 0x98b   : > { %21142 = vst [vmem:[#allocation73_spill] sm:$0xff] %v18849_v62  ;;  %8510 = vmatpush.msrb.mxu2 %v8401_v42  ;;  %8491 = vmatpush.msrb.mxu1 %v8391_v57  ;;  %v8414_v60 = vsel %vm1491_vm11, %v21146_v34, %v18733_v49  ;;  %v8394_v0 = vsel %vm1491_vm11, %v21148_v10, %v12681_v53  ;;  %v13307_v57 = vld [vmem:[#allocation4 + $0x20] sm:$0xff]  ;;  %v10593_v17 = vpop.permute.xlu0 %10592  ;;  %v21164_v62 = vld [vmem:[#allocation89_spill] sm:$0xff] }
 0x98c   : > { %v8392_v44 = vsel %vm1491_vm11, %v12625_v31, %v21145_v41  ;;  %12098 = vmatpush.msk.msra.mxu3 %vm618_vm0, %v8415_v48  ;;  %8550 = vmatpush.msrb.mxu0 %v8403_v51  ;;  %21147 = vst [vmem:[#allocation28_spill] sm:$0xff] %v18867_v39  ;;  %v13306_v31 = vld [vmem:[#allocation4 + $0x18] sm:$0xff]  ;;  %v21149_v41 = vld [vmem:[#allocation129_spill] sm:$0xff]  ;;  %v8404_v40 = vsel %vm1491_vm11, %v12791_v59, %v12985_v38  ;;  %v18879_v51 = vpop.f32.mrf.mxu3  ;;  %v21155_v10 = vld [vmem:[#allocation152_spill] sm:$0xff] }
 0x98d   : > { %8511 = vmatpush.msrb.mxu2 %v8392_v44  ;;  %12094 = vmatpush.msk.msra.mxu1 %vm618_vm0, %v8413_v7  ;;  %v13192_v48 = vpack.i.bf16 %v13307_v57, %v13306_v31  ;;  %v12875_v49 = vunpack.i.l.bf16 %v21149_v41  ;;  %v10283_v11 = vpop.permute.xlu1 %10282  ;;  %21150 = vst [vmem:[#allocation81_spill] sm:$0xff] %v18879_v51  ;;  %v21151_v44 = vld [vmem:[#allocation155_spill] sm:$0xff]  ;;  %v21156_v31 = vunpack.i.h.bf16 %v21143_v46  ;;  %v21157_v57 = vld [vmem:[#allocation48_spill] sm:$0xff]  ;;  %v21160_v46 = vunpack.i.h.bf16 %v21149_v41 }
 0x98e   : > { %8551 = vmatpush.msrb.mxu0 %v8394_v0  ;;  %12089 = vmatmul.msk.f32.vlgmr.msrb.gmra.mxu2 %vm6297_vm13, %v18808_v12  ;;  %v8416_v34 = vsel %vm1491_vm11, %v8387_v35, %v21151_v44  ;;  %v18894_v59 = vsel %vm10294_vm5, %v10283_v11, %v18675_v43  ;;  %v12991_v0 = vunpack.i.h.bf16 %v21155_v10  ;;  %v12575_v44 = vunpack.i.l.bf16 %v21157_v57 }
 0x98f   : > { %12096 = vmatpush.msk.msra.mxu2 %vm618_vm0, %v8414_v60  ;;  %10288 = vrot.lane.b32.xlu2 %v18688_v29, %s13417_s29  ;;  %v18886_v7 = vpop.permute.xlu2 %10602  ;;  %v18890_v60 = vsel %vm10294_vm5, %v18517_v50, %v10283_v11  ;;  %21154 = vst [vmem:[#allocation110_spill] sm:$0xff] %v18894_v59  ;;  %v8405_v35 = vsel %vm1491_vm11, %v12985_v38, %v21156_v31  ;;  %v21158_v50 = vld [vmem:[#allocation11_spill] sm:$0xff]  ;;  %v21159_v11 = vld [vmem:[#allocation20_spill] sm:$0xff]  ;;  %v12881_v59 = vunpack.i.h.bf16 %v21167_v20 }
 0x990   : > { %13193 = vrot.lane.b32.xlu0 %v13192_v48, %s13419_s28  ;;  %21152 = vst [vmem:[#allocation41_spill] sm:$0xff] %v18886_v7  ;;  %10914 = vrot.lane.b32.xlu1 %v18207_v2, %s13419_s28  ;;  %v12576_v48 = vunpack.i.h.bf16 %v21157_v57  ;;  %v12536_v43 = vunpack.i.h.bf16 %v21159_v11  ;;  %v8395_v2 = vsel %vm1491_vm11, %v12681_v53, %v12875_v49  ;;  %v8396_v38 = vsel %vm1491_vm11, %v12875_v49, %v21160_v46  ;;  %v21162_v57 = vld [vmem:[#allocation17_spill] sm:$0xff]  ;;  %v18925_v51 = vpop.f32.mrf.mxu0 }
 0x991   : > { %21153 = vst [vmem:[#allocation16_spill] sm:$0xff] %v18890_v60  ;;  %8570 = vmatpush.msra.mxu1 %v8404_v40  ;;  %8590 = vmatpush.msra.mxu2 %v8405_v35  ;;  %v18915_v40 = vpop.f32.mrf.mxu1  ;;  %v12535_v31 = vunpack.i.l.bf16 %v21159_v11  ;;  %v21161_v35 = vld [vmem:[#allocation69_spill] sm:$0xff]  ;;  %v21166_v49 = vunpack.i.l.bf16 %v21155_v10  ;;  %v13308_v11 = vld [vmem:[#allocation4 + $0x58] sm:$0xff]  ;;  %v12880_v60 = vunpack.i.l.bf16 %v21167_v20  ;;  %v13310_v10 = vld [vmem:[#allocation4] sm:$0xff] }
 0x992   : > { %12085 = vmatmul.msk.f32.vlgmr.msra.gmra.mxu0 %vm6297_vm13, %v18808_v12  ;;  %12087 = vmatmul.msk.f32.vlgmr.msrb.gmra.mxu1 %vm6297_vm13, %v18808_v12  ;;  %v8725_v42 = vsel %vm4809_vm3, %v21162_v57, %v21161_v35  ;;  %v8726_v53 = vsel %vm4809_vm3, %v21161_v35, %v21164_v62  ;;  %21165 = vst [vmem:[#allocation87_spill] sm:$0xff] %v18925_v51  ;;  %v13309_v46 = vld [vmem:[#allocation4 + $0x50] sm:$0xff] }
 0x993   : > { %12100 = vmatpush.msk.msra.mxu0 %vm618_vm0, %v8416_v34  ;;  %8571 = vmatpush.msra.mxu1 %v8395_v2  ;;  %v8407_v34 = vsel %vm1491_vm11, %v21166_v49, %v12991_v0  ;;  %v13187_v57 = vpack.i.bf16 %v13308_v11, %v13309_v46  ;;  %v8716_v2 = vsel %vm4809_vm3, %v12575_v44, %v12576_v48  ;;  %v13311_v0 = vld [vmem:[#allocation4 + $0x60] sm:$0xff]  ;;  %v18941_v11 = vpop.f32.mrf.mxu2  ;;  %v21170_v46 = vunpack.i.l.bf16 %v21163_v56  ;;  %v21181_v51 = vld [vmem:[#allocation121_spill] sm:$0xff] }
 0x994   : > { %8591 = vmatpush.msra.mxu2 %v8396_v38  ;;  %v21168_v38 = vunpack.i.l.bf16 %v21158_v50  ;;  %v13197_v49 = vpack.i.bf16 %v13310_v10, %v13311_v0  ;;  %v8707_v44 = vsel %vm4809_vm3, %v12535_v31, %v12536_v43  ;;  %v18959_v31 = vpop.f32.mrf.mxu3 }
 0x995   : > { %12103 = vmatpush.msk.msrb.mxu1 %vm618_vm0, %v8725_v42  ;;  %v21169_v42 = vld [vmem:[#allocation153_spill] sm:$0xff]  ;;  %8630 = vmatpush.msra.mxu0 %v8407_v34  ;;  %v18943_v20 = vpop.permute.xlu1 %10594  ;;  %21173 = vst [vmem:[#allocation86_spill] sm:$0xff] %v18959_v31  ;;  %v12885_v31 = vunpack.i.l.bf16 %v21181_v51 }
 0x996   : > { %12105 = vmatpush.msk.msrb.mxu2 %vm618_vm0, %v8726_v53  ;;  %v8717_v35 = vsel %vm4809_vm3, %v12576_v48, %v21168_v38  ;;  %8610 = vmatpush.msra.mxu3 %v21169_v42  ;;  %v18939_v53 = vpop.permute.xlu0 %8703  ;;  %v8708_v48 = vsel %vm4809_vm3, %v12536_v43, %v21170_v46  ;;  %v18954_v34 = vsel %vm10612_vm9, %v10593_v17, %v18943_v20  ;;  %v12756_v17 = vunpack.i.h.bf16 %v21158_v50  ;;  %v21176_v46 = vld [vmem:[#allocation93_spill] sm:$0xff] }
 0x997   : > { %8787 = vmatpush.msrb.mxu1 %v8716_v2  ;;  %13188 = vrot.lane.b32.xlu2 %v13187_v57, %s13419_s28  ;;  %21171 = vst [vmem:[#allocation12_spill] sm:$0xff] %v18954_v34  ;;  %v21172_v2 = vunpack.i.h.bf16 %v21149_v41  ;;  %v8398_v43 = vsel %vm1491_vm11, %v12880_v60, %v12881_v59  ;;  %v21175_v41 = vld [vmem:[#allocation72_spill] sm:$0xff] }
 0x998   : > { %8807 = vmatpush.msrb.mxu2 %v8717_v35  ;;  %10608 = vrot.lane.b32.xlu0 %v18758_v5, %s13418_s14  ;;  %v21174_v35 = vld [vmem:[#allocation83_spill] sm:$0xff]  ;;  %v18964_v57 = vpop.permute.xlu2 %9020  ;;  %v12685_v0 = vunpack.i.l.bf16 %v21175_v41  ;;  %v12686_v59 = vunpack.i.h.bf16 %v21175_v41 }
 0x999   : > { %8788 = vmatpush.msrb.mxu1 %v8707_v44  ;;  %v8397_v38 = vsel %vm1491_vm11, %v21172_v2, %v12880_v60  ;;  %v12795_v42 = vunpack.i.l.bf16 %v21174_v35  ;;  %13198 = vrot.lane.b32.xlu1 %v13197_v49, %s13419_s28  ;;  %v12796_v10 = vunpack.i.h.bf16 %v21174_v35  ;;  %v12631_v44 = vunpack.i.h.bf16 %v21163_v56  ;;  %v21178_v2 = vld [vmem:[#allocation131_spill] sm:$0xff]  ;;  %v21179_v35 = vld [vmem:[#allocation113_spill] sm:$0xff]  ;;  %v18990_v34 = vpop.f32.mrf.mxu1 }
 0x99a   : > { %8808 = vmatpush.msrb.mxu2 %v8708_v48  ;;  %8611 = vmatpush.msra.mxu3 %v8397_v38  ;;  %v21177_v48 = vld [vmem:[#allocation106_spill] sm:$0xff]  ;;  %v12995_v60 = vunpack.i.l.bf16 %v21178_v2  ;;  %21180 = vst [vmem:[#allocation146_spill] sm:$0xff] %v18990_v34  ;;  %v8730_v41 = vsel %vm4809_vm3, %v21179_v35, %v17820_v18 }
 0x99b   : > { %8631 = vmatpush.msra.mxu0 %v8398_v43  ;;  %12095 = vmatmul.msk.f32.vlgmr.msra.gmra.mxu1 %vm6297_vm13, %v18808_v12  ;;  %v8728_v49 = vsel %vm4809_vm3, %v21177_v48, %v21176_v46  ;;  %v8727_v38 = vsel %vm4809_vm3, %v21164_v62, %v21177_v48  ;;  %v8729_v43 = vsel %vm4809_vm3, %v21176_v46, %v21179_v35  ;;  %v18999_v46 = vpop.f32.mrf.mxu0 }
 0x99c   : > { %12093 = vmatmul.msk.f32.vlgmr.msrb.gmra.mxu0 %vm6297_vm13, %v18808_v12  ;;  %12097 = vmatmul.msk.f32.vlgmr.msra.gmra.mxu2 %vm6297_vm13, %v18808_v12  ;;  %v8719_v62 = vsel %vm4809_vm3, %v12756_v17, %v12795_v42  ;;  %21182 = vst [vmem:[#allocation127_spill] sm:$0xff] %v18999_v46  ;;  %v8720_v39 = vsel %vm4809_vm3, %v12795_v42, %v12796_v10  ;;  %v21187_v42 = vunpack.i.l.bf16 %v18793_v9  ;;  %v19035_v9 = vld [vmem:[%s20228_s5 + $0x20] sm:$0x7] }
 0x99d   : > { %12099 = vmatmul.msk.f32.vlgmr.msra.gmra.mxu3 %vm6297_vm13, %v18808_v12  ;;  %12109 = vmatpush.msk.msrb.mxu0 %vm618_vm0, %v8728_v49  ;;  %v21184_v49 = vunpack.i.l.bf16 %v21158_v50  ;;  %v8710_v46 = vsel %vm4809_vm3, %v12631_v44, %v12685_v0 }
 0x99e   : > { %12107 = vmatpush.msk.msrb.mxu3 %vm618_vm0, %v8727_v38  ;;  %12111 = vmatpush.msk.msra.mxu1 %vm618_vm0, %v8729_v43  ;;  %v19001_v48 = vpop.permute.xlu0 %13123  ;;  %v19009_v38 = vpop.permute.xlu1 %10292  ;;  %v8721_v43 = vsel %vm4809_vm3, %v12796_v10, %v12995_v60  ;;  %v13312_v10 = vld [vmem:[#allocation4 + $0x10] sm:$0xff] }
 0x99f   : > { %21183 = vst [vmem:[#allocation143_spill] sm:$0xff] %v19001_v48  ;;  %12113 = vmatpush.msk.msra.mxu2 %vm618_vm0, %v8730_v41  ;;  %v8718_v34 = vsel %vm4809_vm3, %v21184_v49, %v12756_v17  ;;  %8847 = vmatpush.msrb.mxu0 %v8719_v62  ;;  %v20518_v35 = vunpack.i.l.bf16 %v19001_v48  ;;  %v21186_v41 = vunpack.i.l.bf16 %v21163_v56  ;;  %v8711_v17 = vsel %vm4809_vm3, %v12685_v0, %v12686_v59  ;;  %v19017_v62 = vpop.f32.mrf.mxu2  ;;  %v19037_v49 = vpop.f32.mrf.mxu3 }
 0x9a0   : > { %21185 = vst [vmem:[#allocation108_spill] sm:$0xff] %v19009_v38  ;;  %8827 = vmatpush.msrb.mxu3 %v8718_v34  ;;  %8867 = vmatpush.msra.mxu1 %v8720_v39  ;;  %v8731_v34 = vsel %vm4809_vm3, %v17820_v18, %v18680_v26  ;;  %v8712_v56 = vsel %vm4809_vm3, %v12686_v59, %v12885_v31  ;;  %v21190_v18 = vld [vmem:[#allocation23_spill] sm:$0xff]  ;;  %v21191_v59 = vunpack.i.h.bf16 %v21178_v2 }
 0x9a1   : > { %8887 = vmatpush.msra.mxu2 %v8721_v43  ;;  %v8709_v50 = vsel %vm4809_vm3, %v21186_v41, %v12631_v44  ;;  %8848 = vmatpush.msrb.mxu0 %v8710_v46  ;;  %v19024_v39 = vsel %vm10294_vm5, %v21187_v42, %v20518_v35  ;;  %v13313_v44 = vld [vmem:[#allocation4 + $0x8] sm:$0xff]  ;;  %v20519_v46 = vunpack.i.h.bf16 %v21181_v51  ;;  %21189 = vst [vmem:[#allocation36_spill] sm:$0xff] %v19037_v49  ;;  %v12541_v43 = vunpack.i.h.bf16 %v21190_v18  ;;  %v21192_v42 = vld [vmem:[#allocation35_spill] sm:$0xff] }
 0x9a2   : > { %21188 = vst [vmem:[#allocation117_spill] sm:$0xff] %v19024_v39  ;;  %8828 = vmatpush.msrb.mxu3 %v8709_v50  ;;  %8868 = vmatpush.msra.mxu1 %v8711_v17  ;;  %v13202_v0 = vpack.i.bf16 %v13312_v10, %v13313_v44  ;;  %v12540_v41 = vunpack.i.l.bf16 %v21190_v18  ;;  %v8722_v50 = vsel %vm4809_vm3, %v12995_v60, %v21191_v59  ;;  %v21193_v10 = vld [vmem:[#allocation60_spill] sm:$0xff]  ;;  %v21194_v18 = vld [vmem:[#allocation145_spill] sm:$0xff]  ;;  %v21195_v60 = vld [vmem:[#allocation59_spill] sm:$0xff] }
 0x9a3   : > { %8888 = vmatpush.msra.mxu2 %v8712_v56  ;;  %13208 = vrot.lane.b32.xlu0 %v18035_v58, %s13419_s28  ;;  %v19047_v17 = vpop.permute.xlu2 %10598  ;;  %v12580_v56 = vunpack.i.l.bf16 %v21192_v42  ;;  %v13001_v58 = vunpack.i.h.bf16 %v21194_v18  ;;  %v8732_v2 = vsel %vm4809_vm3, %v18680_v26, %v18939_v53  ;;  %v21199_v35 = vld [vmem:[#allocation56_spill] sm:$0xff]  ;;  %v21200_v44 = vld [vmem:[#allocation25_spill] sm:$0xff] }
 0x9a4   : > { %12115 = vmatpush.msk.msra.mxu3 %vm618_vm0, %v8731_v34  ;;  %13203 = vrot.lane.b32.xlu2 %v13202_v0, %s13419_s28  ;;  %v12581_v34 = vunpack.i.h.bf16 %v21192_v42  ;;  %v21196_v0 = vld [vmem:[#allocation15_spill] sm:$0xff]  ;;  %v19075_v42 = vpop.f32.mrf.mxu1  ;;  %v9043_v39 = vsel %vm5169_vm6, %v21195_v60, %v21200_v44  ;;  %v9024_v38 = vsel %vm5169_vm6, %v12540_v41, %v12541_v43  ;;  %v21202_v49 = vld [vmem:[#allocation132_spill] sm:$0xff]  ;;  %v21203_v41 = vunpack.i.l.bf16 %v21193_v10 }
 0x9a5   : > { %10606 = vrot.lane.b32.xlu1 %v18688_v29, %s13418_s14  ;;  %12101 = vmatmul.msk.f32.vlgmr.msra.gmra.mxu0 %vm6297_vm13, %v18808_v12  ;;  %v9042_v59 = vsel %vm5169_vm6, %v21196_v0, %v21195_v60  ;;  %v8733_v12 = vsel %vm4809_vm3, %v18939_v53, %v17855_v63  ;;  %21197 = vst [vmem:[#allocation144_spill] sm:$0xff] %v19075_v42  ;;  %v19085_v63 = vpop.f32.mrf.mxu0 }
 0x9a6   : > { %8907 = vmatpush.msra.mxu3 %v8722_v50  ;;  %12104 = vmatmul.msk.f32.vlgmr.msrb.gmra.mxu1 %vm6297_vm13, %v19035_v9  ;;  %v8713_v50 = vsel %vm4809_vm3, %v12885_v31, %v20519_v46  ;;  %v19077_v26 = vpop.permute.xlu0 %13138  ;;  %21201 = vst [vmem:[#allocation67_spill] sm:$0xff] %v19085_v63  ;;  %v9033_v46 = vsel %vm5169_vm6, %v12580_v56, %v12581_v34  ;;  %v21204_v56 = vunpack.i.l.bf16 %v21194_v18 }
 0x9a7   : > { %12106 = vmatmul.msk.f32.vlgmr.msrb.gmra.mxu2 %vm6297_vm13, %v19035_v9  ;;  %12108 = vmatmul.msk.f32.vlgmr.msrb.gmra.mxu3 %vm6297_vm13, %v19035_v9  ;;  %21198 = vst [vmem:[#allocation33_spill] sm:$0xff] %v19077_v26  ;;  %v13129_v31 = vpop.permute.xlu1 %13128  ;;  %v9034_v53 = vsel %vm5169_vm6, %v12581_v34, %v21203_v41  ;;  %v19102_v0 = vpop.f32.mrf.mxu2  ;;  %v21210_v18 = vunpack.i.l.bf16 %v19077_v26 }
 0x9a8   : > { %12122 = vmatpush.msk.msrb.mxu2 %vm618_vm0, %v9042_v59  ;;  %8908 = vmatpush.msra.mxu3 %v8713_v50  ;;  %v13131_v42 = vunpack.i.h.bf16 %v13129_v31  ;;  %v13130_v60 = vunpack.i.l.bf16 %v13129_v31  ;;  %v12891_v59 = vunpack.i.h.bf16 %v21202_v49  ;;  %v12890_v50 = vunpack.i.l.bf16 %v21202_v49  ;;  %v19104_v31 = vpop.f32.mrf.mxu3 }
 0x9a9   : > { %12117 = vmatpush.msk.msra.mxu0 %vm618_vm0, %v8732_v2  ;;  %12119 = vmatpush.msk.msrb.mxu1 %vm618_vm0, %v8733_v12  ;;  %v21205_v2 = vld [vmem:[#allocation148_spill] sm:$0xff]  ;;  %v21206_v49 = vunpack.i.l.bf16 %v18602_v21  ;;  %v21208_v12 = vunpack.i.h.bf16 %v19001_v48 }
 0x9aa   : > { %12124 = vmatpush.msk.msrb.mxu3 %vm618_vm0, %v9043_v39  ;;  %9104 = vmatpush.msrb.mxu2 %v9033_v46  ;;  %v8724_v39 = vsel %vm4809_vm3, %v21204_v56, %v13001_v58  ;;  %v19119_v58 = vsel %vm10294_vm5, %v13131_v42, %v21210_v18  ;;  %v20521_v56 = vunpack.i.h.bf16 %v18801_v45  ;;  %v21217_v18 = vld [vmem:[#allocation99_spill] sm:$0xff]  ;;  %v21269_v48 = vld [vmem:[#allocation160_spill] sm:$0xff] }
 0x9ab   : > { %8927 = vmatpush.msra.mxu0 %v21205_v2  ;;  %v19109_v46 = vsel %vm10294_vm5, %v21206_v49, %v13131_v42  ;;  %v19114_v34 = vsel %vm10294_vm5, %v21208_v12, %v13130_v60  ;;  %21211 = vst [vmem:[#allocation103_spill] sm:$0xff] %v19119_v58  ;;  %8947 = vmatpush.msrb.mxu1 %v8724_v39  ;;  %v19124_v21 = vpop.permute.xlu2 %13158  ;;  %v13314_v2 = vld [vmem:[#allocation4 + $0xc8] sm:$0xf]  ;;  %v12761_v39 = vunpack.i.h.bf16 %v21193_v10  ;;  %v21215_v49 = vld [vmem:[#allocation79_spill] sm:$0xff] }
 0x9ac   : > { %9124 = vmatpush.msrb.mxu3 %v9034_v53  ;;  %21207 = vst [vmem:[#allocation22_spill] sm:$0xff] %v19109_v46  ;;  %9105 = vmatpush.msrb.mxu2 %v9024_v38  ;;  %v21212_v53 = vunpack.i.l.bf16 %v21199_v35  ;;  %v20520_v60 = vunpack.i.l.bf16 %v19124_v21  ;;  %v21214_v38 = vunpack.i.h.bf16 %v21181_v51  ;;  %v8715_v42 = vsel %vm4809_vm3, %v12890_v50, %v12891_v59  ;;  %v21225_v58 = vld [vmem:[#allocation164_spill] sm:$0xff] }
 0x9ad   : > { %21209 = vst [vmem:[#allocation38_spill] sm:$0xff] %v19114_v34  ;;  %10924 = vrot.lane.b32.xlu0 %v18688_v29, %s13419_s28  ;;  %10920 = vrot.lane.b32.xlu2 %v13314_v2, %s13419_s28  ;;  %v12800_v12 = vunpack.i.l.bf16 %v21215_v49  ;;  %v12801_v51 = vunpack.i.h.bf16 %v21215_v49  ;;  %v9044_v59 = vsel %vm5169_vm6, %v21200_v44, %v21217_v18  ;;  %v21219_v2 = vld [vmem:[#allocation27_spill] sm:$0xff]  ;;  %v19164_v44 = vpop.f32.mrf.mxu1 }
 0x9ae   : > { %v9025_v41 = vsel %vm5169_vm6, %v12541_v43, %v21212_v53  ;;  %21213 = vst [vmem:[#allocation77_spill] sm:$0xff] %v19124_v21  ;;  %10922 = vrot.lane.b32.xlu1 %v18473_v16, %s13419_s28  ;;  %v8714_v43 = vsel %vm4809_vm3, %v21214_v38, %v12890_v50  ;;  %8948 = vmatpush.msrb.mxu1 %v8715_v42  ;;  %v12636_v16 = vunpack.i.h.bf16 %v21199_v35  ;;  %v21218_v50 = vld [vmem:[#allocation156_spill] sm:$0xff]  ;;  %v12690_v38 = vunpack.i.l.bf16 %v21219_v2 }
 0x9af   : > { %9125 = vmatpush.msrb.mxu3 %v9025_v41  ;;  %8928 = vmatpush.msra.mxu0 %v8714_v43  ;;  %v19144_v29 = vsel %vm10612_vm9, %v20521_v56, %v20520_v60  ;;  %v10597_v41 = vpop.permute.xlu0 %10596  ;;  %v21220_v43 = vld [vmem:[#allocation109_spill] sm:$0xff]  ;;  %v12691_v56 = vunpack.i.h.bf16 %v21219_v2  ;;  %v21223_v53 = vld [vmem:[#allocation100_spill] sm:$0xff]  ;;  %v21226_v2 = vunpack.i.l.bf16 %v21193_v10  ;;  %v9036_v21 = vsel %vm5169_vm6, %v12761_v39, %v12800_v12 }
 0x9b0   : > { %21216 = vst [vmem:[#allocation137_spill] sm:$0xff] %v19144_v29  ;;  %12110 = vmatmul.msk.f32.vlgmr.msrb.gmra.mxu0 %vm6297_vm13, %v19035_v9  ;;  %12112 = vmatmul.msk.f32.vlgmr.msra.gmra.mxu1 %vm6297_vm13, %v19035_v9  ;;  %v9045_v42 = vsel %vm5169_vm6, %v21217_v18, %v21220_v43  ;;  %v19168_v49 = vsel %vm10612_vm9, %v18943_v20, %v10597_v41  ;;  %v21224_v29 = vld [vmem:[#allocation116_spill] sm:$0xff]  ;;  %v19184_v20 = vpop.f32.mrf.mxu0  ;;  %v21228_v10 = vunpack.i.l.bf16 %v21199_v35  ;;  %v19211_v35 = vld [vmem:[%s20228_s5 + $0x24] sm:$0x7] }
 0x9b1   : > { %12114 = vmatmul.msk.f32.vlgmr.msra.gmra.mxu2 %vm6297_vm13, %v19035_v9  ;;  %12116 = vmatmul.msk.f32.vlgmr.msra.gmra.mxu3 %vm6297_vm13, %v19035_v9  ;;  %21221 = vst [vmem:[#allocation63_spill] sm:$0xff] %v19168_v49  ;;  %v19172_v60 = vsel %vm10612_vm9, %v10597_v41, %v19047_v17  ;;  %v9046_v18 = vsel %vm5169_vm6, %v21220_v43, %v21223_v53  ;;  %v9019_v41 = vpop.permute.xlu1 %9018  ;;  %v13316_v49 = vld [vmem:[#allocation4 + $0x38] sm:$0xff] }
 0x9b2   : > { %21222 = vst [vmem:[#allocation98_spill] sm:$0xff] %v19172_v60  ;;  %v9047_v34 = vsel %vm5169_vm6, %v21223_v53, %v21225_v58  ;;  %12126 = vmatpush.msk.msrb.mxu0 %vm618_vm0, %v9044_v59  ;;  %12128 = vmatpush.msk.msra.mxu1 %vm618_vm0, %v9045_v42  ;;  %v9035_v43 = vsel %vm5169_vm6, %v21226_v2, %v12761_v39  ;;  %v19192_v60 = vpop.f32.mrf.mxu3  ;;  %v19194_v53 = vpop.f32.mrf.mxu2  ;;  %v21227_v42 = vunpack.i.l.bf16 %v21218_v50  ;;  %v13315_v2 = vld [vmem:[#allocation4 + $0x78] sm:$0xff] }
 0x9b3   : > { %12130 = vmatpush.msk.msra.mxu2 %vm618_vm0, %v9046_v18  ;;  %12132 = vmatpush.msk.msra.mxu3 %vm618_vm0, %v9047_v34  ;;  %v9037_v59 = vsel %vm5169_vm6, %v12800_v12, %v12801_v51  ;;  %v9026_v34 = vsel %vm5169_vm6, %v21228_v10, %v12636_v16  ;;  %v9027_v39 = vsel %vm5169_vm6, %v12636_v16, %v12690_v38  ;;  %v21229_v12 = vunpack.i.l.bf16 %v21224_v29  ;;  %v21230_v16 = vld [vmem:[#allocation49_spill] sm:$0xff]  ;;  %v21231_v10 = vld [vmem:[#allocation135_spill] sm:$0xff] }
 0x9b4   : > { %9144 = vmatpush.msrb.mxu0 %v9035_v43  ;;  %9164 = vmatpush.msra.mxu1 %v9036_v21  ;;  %v9038_v18 = vsel %vm5169_vm6, %v12801_v51, %v21227_v42  ;;  %v13212_v46 = vpack.i.bf16 %v13316_v49, %v13315_v2  ;;  %v9028_v21 = vsel %vm5169_vm6, %v12690_v38, %v12691_v56  ;;  %v13317_v51 = vld [vmem:[#allocation4 + $0x40] sm:$0xff]  ;;  %v20526_v49 = vunpack.i.h.bf16 %v21230_v16 }
 0x9b5   : > { %9184 = vmatpush.msra.mxu2 %v9037_v59  ;;  %9204 = vmatpush.msra.mxu3 %v9038_v18  ;;  %v9029_v43 = vsel %vm5169_vm6, %v12691_v56, %v21229_v12  ;;  %v13318_v59 = vld [vmem:[#allocation4 + $0x80] sm:$0xff]  ;;  %v12585_v18 = vunpack.i.l.bf16 %v21230_v16  ;;  %v13011_v38 = vunpack.i.h.bf16 %v21231_v10  ;;  %v9048_v56 = vsel %vm5169_vm6, %v21225_v58, %v9019_v41 }
 0x9b6   : > { %9145 = vmatpush.msrb.mxu0 %v9026_v34  ;;  %9165 = vmatpush.msra.mxu1 %v9027_v39  ;;  %v13217_v42 = vpack.i.bf16 %v13318_v59, %v13317_v51  ;;  %v21232_v34 = vld [vmem:[#allocation122_spill] sm:$0xff]  ;;  %v21234_v58 = vld [vmem:[#allocation31_spill] sm:$0xff] }
 0x9b7   : > { %9185 = vmatpush.msra.mxu2 %v9028_v21  ;;  %9205 = vmatpush.msra.mxu3 %v9029_v43  ;;  %v12901_v39 = vunpack.i.h.bf16 %v21232_v34  ;;  %v12900_v2 = vunpack.i.l.bf16 %v21232_v34  ;;  %v21233_v21 = vld [vmem:[#allocation165_spill] sm:$0xff]  ;;  %v12545_v51 = vunpack.i.l.bf16 %v21234_v58  ;;  %v21235_v59 = vld [vmem:[#allocation26_spill] sm:$0xff]  ;;  %v9350_v43 = vsel %vm5529_vm7, %v12585_v18, %v20526_v49  ;;  %v21248_v49 = vld [vmem:[#allocation47_spill] sm:$0xff] }
 0x9b8   : > { %13218 = vrot.lane.b32.xlu0 %v13217_v42, %s13419_s28  ;;  %13213 = vrot.lane.b32.xlu2 %v13212_v46, %s13419_s28  ;;  %v9050_v12 = vsel %vm5169_vm6, %v18964_v57, %v21233_v21  ;;  %v9049_v46 = vsel %vm5169_vm6, %v9019_v41, %v18964_v57  ;;  %v21236_v42 = vld [vmem:[#allocation57_spill] sm:$0xff]  ;;  %v19247_v21 = vpop.permute.xlu0 %9335  ;;  %v21238_v57 = vunpack.i.l.bf16 %v21231_v10 }
 0x9b9   : > { %10926 = vrot.lane.b32.xlu1 %v18758_v5, %s13419_s28  ;;  %12118 = vmatmul.msk.f32.vlgmr.msra.gmra.mxu0 %vm6297_vm13, %v19035_v9  ;;  %v19233_v5 = vpop.permute.xlu2 %9652  ;;  %v9359_v34 = vsel %vm5529_vm7, %v21236_v42, %v21235_v59  ;;  %v19257_v42 = vpop.f32.mrf.mxu0 }
 0x9ba   : > { %12120 = vmatmul.msk.f32.vlgmr.msrb.gmra.mxu1 %vm6297_vm13, %v19035_v9  ;;  %12123 = vmatmul.msk.f32.vlgmr.msrb.gmra.mxu2 %vm6297_vm13, %v19211_v35  ;;  %v19245_v9 = vpop.f32.mrf.mxu1  ;;  %v9041_v41 = vsel %vm5169_vm6, %v21238_v57, %v13011_v38  ;;  %21239 = vst [vmem:[#allocation128_spill] sm:$0xff] %v19257_v42 }
 0x9bb   : > { %12125 = vmatmul.msk.f32.vlgmr.msrb.gmra.mxu3 %vm6297_vm13, %v19211_v35  ;;  %12138 = vmatpush.msk.msrb.mxu2 %vm618_vm0, %v9050_v12  ;;  %21237 = vst [vmem:[#allocation104_spill] sm:$0xff] %v19245_v9  ;;  %v10601_v26 = vpop.permute.xlu1 %10600  ;;  %v21240_v12 = vunpack.i.h.bf16 %v21218_v50 }
 0x9bc   : > { %12141 = vmatpush.msk.msrb.mxu3 %vm618_vm0, %v9359_v34  ;;  %12134 = vmatpush.msk.msra.mxu0 %vm618_vm0, %v9048_v56  ;;  %v21241_v34 = vunpack.i.l.bf16 %v21218_v50  ;;  %v19267_v38 = vsel %vm10612_vm9, %v19047_v17, %v10601_v26  ;;  %v19271_v18 = vsel %vm10612_vm9, %v10601_v26, %v18886_v7  ;;  %v19273_v56 = vpop.f32.mrf.mxu3  ;;  %v19275_v57 = vpop.f32.mrf.mxu2  ;;  %v21245_v50 = vunpack.i.h.bf16 %v21234_v58  ;;  %v21251_v7 = vld [vmem:[#allocation80_spill] sm:$0xff] }
 0x9bd   : > { %9264 = vmatpush.msrb.mxu2 %v9041_v41  ;;  %12136 = vmatpush.msk.msrb.mxu1 %vm618_vm0, %v9049_v46  ;;  %21242 = vst [vmem:[#allocation43_spill] sm:$0xff] %v19267_v38  ;;  %v9032_v46 = vsel %vm5169_vm6, %v12900_v2, %v12901_v39  ;;  %v13222_v17 = vpack.i.bf16 %v18747_v37, %v18464_v23  ;;  %v12896_v26 = vunpack.i.h.bf16 %v21224_v29  ;;  %v21250_v39 = vld [vmem:[#allocation32_spill] sm:$0xff]  ;;  %v21252_v23 = vld [vmem:[#allocation29_spill] sm:$0xff] }
 0x9be   : > { %v9039_v10 = vsel %vm5169_vm6, %v21241_v34, %v21240_v12  ;;  %21243 = vst [vmem:[#allocation24_spill] sm:$0xff] %v19271_v18  ;;  %9421 = vmatpush.msrb.mxu3 %v9350_v43  ;;  %v9341_v41 = vsel %vm5529_vm7, %v12545_v51, %v21245_v50  ;;  %v21246_v12 = vld [vmem:[#allocation158_spill] sm:$0xff]  ;;  %v21247_v34 = vld [vmem:[#allocation44_spill] sm:$0xff]  ;;  %v12766_v18 = vunpack.i.h.bf16 %v21251_v7 }
 0x9bf   : > { %21244 = vst [vmem:[#allocation42_spill] sm:$0xff] %v19275_v57  ;;  %9224 = vmatpush.msra.mxu0 %v9039_v10  ;;  %9265 = vmatpush.msrb.mxu2 %v9032_v46  ;;  %v21249_v43 = vpack.i.bf16 %v21247_v34, %v21248_v49  ;;  %v12805_v46 = vunpack.i.l.bf16 %v21250_v39  ;;  %v12695_v49 = vunpack.i.l.bf16 %v21252_v23  ;;  %v21253_v51 = vld [vmem:[#allocation102_spill] sm:$0xff]  ;;  %v21254_v50 = vld [vmem:[#allocation96_spill] sm:$0xff]  ;;  %v12765_v34 = vunpack.i.l.bf16 %v21251_v7  ;;  %v21259_v57 = vld [vmem:[#allocation21_spill] sm:$0xff] }
 0x9c0   : > { %9244 = vmatpush.msrb.mxu1 %v21246_v12  ;;  %9422 = vmatpush.msrb.mxu3 %v9341_v41  ;;  %v9362_v41 = vsel %vm5529_vm7, %v21254_v50, %v21253_v51  ;;  %v21255_v12 = vld [vmem:[#allocation118_spill] sm:$0xff]  ;;  %v12641_v9 = vunpack.i.h.bf16 %v21259_v57 }
 0x9c1   : > { %13228 = vrot.lane.b32.xlu0 %v21249_v43, %s13419_s28  ;;  %10928 = vrot.lane.b32.xlu2 %v18569_v61, %s13419_s28  ;;  %v9363_v61 = vsel %vm5529_vm7, %v21253_v51, %v21255_v12  ;;  %v21257_v43 = vunpack.i.l.bf16 %v21224_v29  ;;  %v9031_v51 = vsel %vm5169_vm6, %v12896_v26, %v12900_v2  ;;  %v19320_v10 = vpop.permute.xlu2 %10604  ;;  %v9353_v42 = vsel %vm5529_vm7, %v12766_v18, %v12805_v46  ;;  %v21261_v29 = vld [vmem:[#allocation94_spill] sm:$0xff] }
 0x9c2   : > { %13223 = vrot.lane.b32.xlu1 %v13222_v17, %s13419_s28  ;;  %12127 = vmatmul.msk.f32.vlgmr.msrb.gmra.mxu0 %vm6297_vm13, %v19211_v35  ;;  %v19311_v17 = vpop.permute.xlu0 %13148  ;;  %21258 = vst [vmem:[#allocation140_spill] sm:$0xff] %v19320_v10  ;;  %v9361_v2 = vsel %vm5529_vm7, %v21261_v29, %v21254_v50  ;;  %v19354_v50 = vld [vmem:[%s20228_s5 + $0x28] sm:$0x7]  ;;  %v21268_v10 = vld [vmem:[#allocation136_spill] sm:$0xff] }
 0x9c3   : > { %12129 = vmatmul.msk.f32.vlgmr.msra.gmra.mxu1 %vm6297_vm13, %v19211_v35  ;;  %12131 = vmatmul.msk.f32.vlgmr.msra.gmra.mxu2 %vm6297_vm13, %v19211_v35  ;;  %21256 = vst [vmem:[#allocation95_spill] sm:$0xff] %v19311_v17  ;;  %v9030_v37 = vsel %vm5169_vm6, %v21257_v43, %v12896_v26  ;;  %v9338_v38 = vpop.permute.xlu1 %9337  ;;  %v21260_v17 = vunpack.i.h.bf16 %v21250_v39  ;;  %v11185_v26 = vld [vmem:[%s20229_s6] sm:$0x7]  ;;  %v19338_v43 = vpop.f32.mrf.mxu0  ;;  %v12905_v63 = vunpack.i.l.bf16 %v21268_v10 }
 0x9c4   : > { %12133 = vmatmul.msk.f32.vlgmr.msra.gmra.mxu3 %vm6297_vm13, %v19211_v35  ;;  %12147 = vmatpush.msk.msra.mxu2 %vm618_vm0, %v9362_v41  ;;  %v19327_v41 = vpop.f32.mrf.mxu1 }
 0x9c5   : > { %12149 = vmatpush.msk.msra.mxu3 %vm618_vm0, %v9363_v61  ;;  %v9354_v7 = vsel %vm5529_vm7, %v12805_v46, %v21260_v17  ;;  %9225 = vmatpush.msra.mxu0 %v9030_v37  ;;  %v9360_v61 = vsel %vm5529_vm7, %v21235_v59, %v21261_v29  ;;  %v19340_v46 = vpop.f32.mrf.mxu2  ;;  %v12640_v37 = vunpack.i.l.bf16 %v21259_v57  ;;  %v9344_v17 = vsel %vm5529_vm7, %v12641_v9, %v12695_v49 }
 0x9c6   : > { %9245 = vmatpush.msrb.mxu1 %v9031_v51  ;;  %9481 = vmatpush.msra.mxu2 %v9353_v42  ;;  %v21262_v59 = vunpack.i.h.bf16 %v21252_v23  ;;  %v19349_v42 = vpop.f32.mrf.mxu3  ;;  %v21263_v57 = vunpack.i.h.bf16 %v21230_v16  ;;  %v9352_v16 = vsel %vm5529_vm7, %v12765_v34, %v12766_v18  ;;  %v21270_v18 = vunpack.i.h.bf16 %v21250_v39 }
 0x9c7   : > { %9501 = vmatpush.msra.mxu3 %v9354_v7  ;;  %12143 = vmatpush.msk.msrb.mxu0 %vm618_vm0, %v9360_v61  ;;  %v9366_v61 = vsel %vm5529_vm7, %v19247_v21, %v9338_v38  ;;  %v9343_v45 = vsel %vm5529_vm7, %v12640_v37, %v12641_v9  ;;  %v12906_v9 = vunpack.i.h.bf16 %v21268_v10  ;;  %v21274_v39 = vunpack.i.h.bf16 %v21252_v23  ;;  %v21278_v23 = vld [vmem:[#allocation64_spill] sm:$0xff] }
 0x9c8   : > { %v9345_v51 = vsel %vm5529_vm7, %v12695_v49, %v21262_v59  ;;  %12145 = vmatpush.msk.msra.mxu1 %vm618_vm0, %v9361_v2  ;;  %9482 = vmatpush.msra.mxu2 %v9344_v17  ;;  %v9351_v7 = vsel %vm5529_vm7, %v21263_v57, %v12765_v34  ;;  %v21264_v49 = vld [vmem:[#allocation150_spill] sm:$0xff]  ;;  %v21265_v2 = vld [vmem:[#allocation161_spill] sm:$0xff] }
 0x9c9   : > { %9502 = vmatpush.msra.mxu3 %v9345_v51  ;;  %9441 = vmatpush.msrb.mxu0 %v9351_v7  ;;  %v13015_v29 = vunpack.i.l.bf16 %v21264_v49  ;;  %v13021_v17 = vunpack.i.h.bf16 %v21265_v2  ;;  %v21267_v51 = vld [vmem:[#allocation163_spill] sm:$0xff] }
 0x9ca   : > { %11188 = vperm.xlu1 %12320, %v11185_v26   ;;  %12135 = vmatmul.msk.f32.vlgmr.msra.gmra.mxu0 %vm6297_vm13, %v19211_v35  ;;  %v21266_v26 = vunpack.i.h.bf16 %v21234_v58  ;;  %v9367_v57 = vsel %vm5529_vm7, %v9338_v38, %v21267_v51  ;;  %v19377_v7 = vpop.permute.xlu0 %9654  ;;  %v9365_v38 = vsel %vm5529_vm7, %v21269_v48, %v19247_v21  ;;  %v21275_v51 = vld [vmem:[#allocation162_spill] sm:$0xff] }
 0x9cb   : > { %12137 = vmatmul.msk.f32.vlgmr.msrb.gmra.mxu1 %vm6297_vm13, %v19211_v35  ;;  %12139 = vmatmul.msk.f32.vlgmr.msrb.gmra.mxu2 %vm6297_vm13, %v19211_v35  ;;  %v9364_v35 = vsel %vm5529_vm7, %v21255_v12, %v21269_v48  ;;  %v19386_v58 = vpop.permute.xlu1 %13143  ;;  %v9355_v34 = vsel %vm5529_vm7, %v21270_v18, %v13015_v29  ;;  %v19394_v12 = vpop.permute.xlu2 %13168  ;;  %v21273_v48 = vunpack.i.h.bf16 %v21264_v49  ;;  %v21279_v18 = vld [vmem:[#allocation45_spill] sm:$0xff] }
 0x9cc   : > { %12142 = vmatmul.msk.f32.vlgmr.msrb.gmra.mxu3 %vm6297_vm13, %v19354_v50  ;;  %v9342_v59 = vsel %vm5529_vm7, %v21266_v26, %v12640_v37  ;;  %9461 = vmatpush.msra.mxu1 %v9352_v16  ;;  %21271 = vst [vmem:[#allocation120_spill] sm:$0xff] %v19394_v12  ;;  %v21272_v37 = vunpack.i.l.bf16 %v21265_v2  ;;  %v9346_v26 = vsel %vm5529_vm7, %v21274_v39, %v12905_v63  ;;  %v19412_v10 = vpop.f32.mrf.mxu1  ;;  %v21276_v2 = vld [vmem:[#allocation19_spill] sm:$0xff] }
 0x9cd   : > { %9442 = vmatpush.msrb.mxu0 %v9342_v59  ;;  %12155 = vmatpush.msk.msrb.mxu2 %vm618_vm0, %v9366_v61  ;;  %v9356_v21 = vsel %vm5529_vm7, %v13015_v29, %v21273_v48  ;;  %v19414_v59 = vpop.f32.mrf.mxu0  ;;  %v12770_v29 = vunpack.i.l.bf16 %v21278_v23  ;;  %v21281_v48 = vld [vmem:[#allocation70_spill] sm:$0xff] }
 0x9ce   : > { %9462 = vmatpush.msra.mxu1 %v9343_v45  ;;  %12157 = vmatpush.msk.msrb.mxu3 %vm618_vm0, %v9367_v57  ;;  %v9358_v61 = vsel %vm5529_vm7, %v21272_v37, %v13021_v17  ;;  %v19402_v16 = vpop.f32.mrf.mxu2  ;;  %v19404_v45 = vpop.f32.mrf.mxu3  ;;  %v12591_v17 = vunpack.i.h.bf16 %v21276_v2  ;;  %v12590_v57 = vunpack.i.l.bf16 %v21276_v2  ;;  %v12550_v37 = vunpack.i.l.bf16 %v21279_v18 }
 0x9cf   : > { %12151 = vmatpush.msk.msra.mxu0 %vm618_vm0, %v9364_v35  ;;  %9561 = vmatpush.msrb.mxu2 %v21275_v51  ;;  %v21277_v35 = vld [vmem:[#allocation119_spill] sm:$0xff]  ;;  %v12771_v2 = vunpack.i.h.bf16 %v21278_v23 }
 0x9d0   : > { %12153 = vmatpush.msk.msrb.mxu1 %vm618_vm0, %v9365_v38  ;;  %9581 = vmatpush.msrb.mxu3 %v9358_v61  ;;  %v12911_v38 = vunpack.i.h.bf16 %v21277_v35  ;;  %v12910_v49 = vunpack.i.l.bf16 %v21277_v35  ;;  %v21280_v61 = vld [vmem:[#allocation166_spill] sm:$0xff] }
 0x9d1   : > { %9521 = vmatpush.msra.mxu0 %v9355_v34  ;;  %v12551_v34 = vunpack.i.h.bf16 %v21279_v18  ;;  %v9677_v39 = vsel %vm9658_vm15, %v21281_v48, %v21280_v61  ;;  %v21283_v18 = vld [vmem:[#allocation167_spill] sm:$0xff]  ;;  %v9668_v61 = vsel %vm9658_vm15, %v12590_v57, %v12591_v17 }
 0x9d2   : > { %9541 = vmatpush.msrb.mxu1 %v9356_v21  ;;  %12144 = vmatmul.msk.f32.vlgmr.msrb.gmra.mxu0 %vm6297_vm13, %v19354_v50  ;;  %v9347_v21 = vsel %vm5529_vm7, %v12905_v63, %v12906_v9  ;;  %v9348_v35 = vsel %vm5529_vm7, %v12906_v9, %v12910_v49  ;;  %v9349_v48 = vsel %vm5529_vm7, %v12910_v49, %v12911_v38  ;;  %v19444_v12 = vpop.permute.xlu0 %13163 }
 0x9d3   : > { %9522 = vmatpush.msra.mxu0 %v9346_v26  ;;  %12146 = vmatmul.msk.f32.vlgmr.msra.gmra.mxu1 %vm6297_vm13, %v19354_v50  ;;  %v21282_v26 = vld [vmem:[#allocation58_spill] sm:$0xff]  ;;  %21284 = vst [vmem:[#allocation78_spill] sm:$0xff] %v19444_v12  ;;  %v9669_v63 = vsel %vm9658_vm15, %v12591_v17, %v12770_v29  ;;  %v9670_v17 = vsel %vm9658_vm15, %v12770_v29, %v12771_v2 }
 0x9d4   : > { %12148 = vmatmul.msk.f32.vlgmr.msra.gmra.mxu2 %vm6297_vm13, %v19354_v50  ;;  %12150 = vmatmul.msk.f32.vlgmr.msra.gmra.mxu3 %vm6297_vm13, %v19354_v50  ;;  %v12645_v51 = vunpack.i.l.bf16 %v21282_v26  ;;  %v19447_v23 = vpop.permute.xlu1 %13153  ;;  %v12646_v57 = vunpack.i.h.bf16 %v21282_v26  ;;  %v21288_v26 = vld [vmem:[#allocation53_spill] sm:$0xff]  ;;  %v9683_v12 = vsel %vm9658_vm15, %v17961_v47, %v19233_v5 }
 0x9d5   : > { %9542 = vmatpush.msrb.mxu1 %v9347_v21  ;;  %12160 = vmatpush.msk.msrb.mxu0 %vm618_vm0, %v9677_v39  ;;  %v9659_v39 = vsel %vm9658_vm15, %v12550_v37, %v12551_v34  ;;  %v21285_v21 = vld [vmem:[#allocation85_spill] sm:$0xff]  ;;  %v19473_v29 = vpop.f32.mrf.mxu0 }
 0x9d6   : > { %9562 = vmatpush.msrb.mxu2 %v9348_v35  ;;  %9582 = vmatpush.msrb.mxu3 %v9349_v48  ;;  %v19452_v9 = vpop.f32.mrf.mxu2  ;;  %v12810_v38 = vunpack.i.l.bf16 %v21285_v21  ;;  %v9660_v49 = vsel %vm9658_vm15, %v12551_v34, %v12645_v51  ;;  %v19460_v35 = vpop.f32.mrf.mxu3  ;;  %v12811_v37 = vunpack.i.h.bf16 %v21285_v21  ;;  %v12700_v48 = vunpack.i.l.bf16 %v21288_v26 }
 0x9d7   : > { %12162 = vmatpush.msk.msra.mxu1 %vm618_vm0, %v21283_v18  ;;  %9739 = vmatpush.msrb.mxu0 %v9668_v61  ;;  %v21286_v18 = vld [vmem:[#allocation138_spill] sm:$0xff]  ;;  %v19464_v61 = vpop.permute.xlu2 %10916  ;;  %v12701_v34 = vunpack.i.h.bf16 %v21288_v26  ;;  %v9682_v21 = vsel %vm9658_vm15, %v17774_v33, %v17961_v47  ;;  %v9661_v26 = vsel %vm9658_vm15, %v12645_v51, %v12646_v57 }
 0x9d8   : > { %12164 = vmatpush.msk.msra.mxu2 %vm618_vm0, %v17910_v1  ;;  %12166 = vmatpush.msk.msra.mxu3 %vm618_vm0, %v17914_v54  ;;  %v13025_v1 = vunpack.i.l.bf16 %v21286_v18  ;;  %21287 = vst [vmem:[#allocation147_spill] sm:$0xff] %v19464_v61  ;;  %v19471_v54 = vpop.f32.mrf.mxu1  ;;  %v9672_v61 = vsel %vm9658_vm15, %v12810_v38, %v12811_v37  ;;  %v19501_v51 = vld [vmem:[%s20228_s5 + $0x2c] sm:$0x7] }
 0x9d9   : > { %9759 = vmatpush.msra.mxu1 %v9669_v63  ;;  %9740 = vmatpush.msrb.mxu0 %v9659_v39  ;;  %v21289_v63 = vld [vmem:[#allocation124_spill] sm:$0xff] }
 0x9da   : > { %9779 = vmatpush.msra.mxu2 %v9670_v17  ;;  %12152 = vmatmul.msk.f32.vlgmr.msra.gmra.mxu0 %vm6297_vm13, %v19354_v50  ;;  %v12915_v39 = vunpack.i.l.bf16 %v21289_v63  ;;  %v9671_v17 = vsel %vm9658_vm15, %v12771_v2, %v12810_v38  ;;  %v9673_v33 = vsel %vm9658_vm15, %v12811_v37, %v13025_v1  ;;  %v12916_v47 = vunpack.i.h.bf16 %v21289_v63 }
 0x9db   : > { %9760 = vmatpush.msra.mxu1 %v9660_v49  ;;  %v21290_v49 = vld [vmem:[#allocation168_spill] sm:$0xff]  ;;  %9799 = vmatpush.msra.mxu3 %v9671_v17  ;;  %v21293_v17 = vld [vmem:[#allocation154_spill] sm:$0xff] }
 0x9dc   : > { %12154 = vmatmul.msk.f32.vlgmr.msrb.gmra.mxu1 %vm6297_vm13, %v19354_v50  ;;  %12156 = vmatmul.msk.f32.vlgmr.msrb.gmra.mxu2 %vm6297_vm13, %v19354_v50  ;;  %v9664_v2 = vsel %vm9658_vm15, %v12701_v34, %v12915_v39  ;;  %v19503_v38 = vpop.permute.xlu0 %13173 }
 0x9dd   : > { %12158 = vmatmul.msk.f32.vlgmr.msrb.gmra.mxu3 %vm6297_vm13, %v19354_v50  ;;  %12168 = vmatpush.msk.msra.mxu0 %vm618_vm0, %v21290_v49  ;;  %v9662_v50 = vsel %vm9658_vm15, %v12646_v57, %v12700_v48  ;;  %v9684_v57 = vsel %vm9658_vm15, %v19233_v5, %v19377_v7  ;;  %v19526_v5 = vpop.f32.mrf.mxu0 }
 0x9de   : > { %12170 = vmatpush.msk.msrb.mxu1 %vm618_vm0, %v9682_v21  ;;  %9780 = vmatpush.msra.mxu2 %v9661_v26  ;;  %v9663_v21 = vsel %vm9658_vm15, %v12700_v48, %v12701_v34  ;;  %v19505_v37 = vpop.f32.mrf.mxu2  ;;  %v19514_v48 = vpop.permute.xlu1 %10610  ;;  %v21292_v34 = vld [vmem:[#allocation139_spill] sm:$0xff]  ;;  %v13031_v26 = vunpack.i.h.bf16 %v21293_v17 }
 0x9df   : > { %9819 = vmatpush.msra.mxu0 %v9672_v61  ;;  %9800 = vmatpush.msra.mxu3 %v9662_v50  ;;  %v21291_v61 = vunpack.i.h.bf16 %v21286_v18  ;;  %v12920_v49 = vunpack.i.l.bf16 %v21292_v34  ;;  %v9685_v50 = vsel %vm9658_vm15, %v19377_v7, %v18013_v15  ;;  %v21295_v7 = vunpack.i.l.bf16 %v21293_v17 }
 0x9e0   : > { %9839 = vmatpush.msrb.mxu1 %v9673_v33  ;;  %12172 = vmatpush.msk.msrb.mxu2 %vm618_vm0, %v9683_v12  ;;  %v19519_v63 = vpop.f32.mrf.mxu3  ;;  %v13060_v33 = vunpack.i.l.bf16 %v18140_v52  ;;  %v19528_v18 = vpop.f32.mrf.mxu1  ;;  %v21299_v17 = vunpack.i.l.bf16 %v17847_v3 }
 0x9e1   : > { %9820 = vmatpush.msra.mxu0 %v9663_v21  ;;  %v9674_v12 = vsel %vm9658_vm15, %v13025_v1, %v21291_v61  ;;  %12174 = vmatpush.msk.msrb.mxu3 %vm618_vm0, %v9684_v57  ;;  %v12921_v1 = vunpack.i.h.bf16 %v21292_v34  ;;  %v21294_v21 = vld [vmem:[#allocation157_spill] sm:$0xff]  ;;  %v13035_v57 = vunpack.i.l.bf16 %v17776_v27  ;;  %v9665_v61 = vsel %vm9658_vm15, %v12915_v39, %v12916_v47 }
 0x9e2   : > { %9840 = vmatpush.msrb.mxu1 %v9664_v2  ;;  %9859 = vmatpush.msrb.mxu2 %v9674_v12  ;;  %v9973_v2 = vpop.permute.xlu2 %9972  ;;  %v9666_v15 = vsel %vm9658_vm15, %v12916_v47, %v12920_v49  ;;  %v9676_v12 = vsel %vm9658_vm15, %v21295_v7, %v13031_v26  ;;  %v21296_v34 = vunpack.i.h.bf16 %v18140_v52  ;;  %v21298_v52 = vunpack.i.h.bf16 %v17847_v3 }
 0x9e3   : > { %12161 = vmatmul.msk.f32.vlgmr.msrb.gmra.mxu0 %vm6297_vm13, %v19501_v51  ;;  %9879 = vmatpush.msrb.mxu3 %v21294_v21  ;;  %v9667_v39 = vsel %vm9658_vm15, %v12920_v49, %v12921_v1 }
 0x9e4   : > { %12163 = vmatmul.msk.f32.vlgmr.msra.gmra.mxu1 %vm6297_vm13, %v19501_v51  ;;  %12165 = vmatmul.msk.f32.vlgmr.msra.gmra.mxu2 %vm6297_vm13, %v19501_v51  ;;  %v9986_v21 = vsel %vm9976_vm4, %v13060_v33, %v21296_v34  ;;  %v9988_v26 = vsel %vm9976_vm4, %v21299_v17, %v21298_v52 }
 0x9e5   : > { %12167 = vmatmul.msk.f32.vlgmr.msra.gmra.mxu3 %vm6297_vm13, %v19501_v51  ;;  %12176 = vmatpush.msk.msrb.mxu0 %vm618_vm0, %v9685_v50  ;;  %v21303_v50 = vld [vmem:[#allocation101_spill] sm:$0xff] }
 0x9e6   : > { %12179 = vmatpush.msk.msra.mxu1 %vm618_vm0, %v18277_v4  ;;  %9860 = vmatpush.msrb.mxu2 %v9665_v61  ;;  %v21297_v4 = vunpack.i.h.bf16 %v17776_v27  ;;  %v19567_v49 = vpop.f32.mrf.mxu2 }
 0x9e7   : > { %9880 = vmatpush.msrb.mxu3 %v9666_v15  ;;  %9899 = vmatpush.msrb.mxu0 %v9676_v12  ;;  %v21305_v12 = vld [vmem:[#allocation123_spill] sm:$0xff] }
 0x9e8   : > { %10057 = vmatpush.msra.mxu1 %v9986_v21  ;;  %12181 = vmatpush.msk.msra.mxu2 %vm618_vm0, %v18281_v55  ;;  %v9977_v47 = vsel %vm9976_vm4, %v13035_v57, %v21297_v4  ;;  %v19565_v55 = vpop.permute.xlu0 %10918  ;;  %v21306_v21 = vld [vmem:[#allocation107_spill] sm:$0xff]  ;;  %v21308_v4 = vld [vmem:[#allocation173_spill] sm:$0xff] }
 0x9e9   : > { %12183 = vmatpush.msk.msra.mxu3 %vm618_vm0, %v18201_v28  ;;  %9900 = vmatpush.msrb.mxu0 %v9667_v39  ;;  %v19571_v28 = vpop.f32.mrf.mxu3  ;;  %v21307_v39 = vld [vmem:[#allocation174_spill] sm:$0xff]  ;;  %v21310_v52 = vunpack.i.l.bf16 %v21308_v4 }
 0x9ea   : > { %10058 = vmatpush.msra.mxu1 %v9977_v47  ;;  %10077 = vmatpush.msra.mxu2 %v18164_v6  ;;  %v9971_v27 = vpop.permute.xlu1 %9970  ;;  %v21300_v6 = vld [vmem:[#allocation170_spill] sm:$0xff]  ;;  %v19585_v61 = vpop.f32.mrf.mxu0  ;;  %v21309_v47 = vunpack.i.h.bf16 %v21308_v4 }
 0x9eb   : > { %10097 = vmatpush.msra.mxu3 %v9988_v26  ;;  %12169 = vmatmul.msk.f32.vlgmr.msra.gmra.mxu0 %vm6297_vm13, %v19501_v51  ;;  %v21301_v33 = vunpack.i.h.bf16 %v21300_v6  ;;  %v21302_v1 = vunpack.i.l.bf16 %v21300_v6  ;;  %v10001_v57 = vsel %vm9976_vm4, %v21303_v50, %v9971_v27  ;;  %v19587_v15 = vpop.f32.mrf.mxu1  ;;  %v19596_v34 = vpop.permute.xlu2 %10912  ;;  %v21311_v26 = vld [vmem:[#allocation13_spill] sm:$0xff]  ;;  %v19612_v6 = vld [vmem:[%s20228_s5 + $0x30] sm:$0x7] }
 0x9ec   : > { %10078 = vmatpush.msra.mxu2 %v17868_v14  ;;  %12171 = vmatmul.msk.f32.vlgmr.msrb.gmra.mxu1 %vm6297_vm13, %v19501_v51  ;;  %v21304_v14 = vld [vmem:[#allocation54_spill] sm:$0xff]  ;;  %v9990_v17 = vsel %vm9976_vm4, %v21310_v52, %v21309_v47  ;;  %v6598_v47 = vadd.f32 %v18915_v40, %v18717_v36  ;;  %v6618_v52 = vadd.f32 %v18941_v11, %v18753_v22  ;;  %v13085_v11 = vunpack.i.l.bf16 %v18432_v32 }
 0x9ed   : > { %v9979_v3 = vsel %vm9976_vm4, %v21302_v1, %v21301_v33  ;;  %12173 = vmatmul.msk.f32.vlgmr.msrb.gmra.mxu2 %vm6297_vm13, %v19501_v51  ;;  %v10000_v7 = vsel %vm9976_vm4, %v21304_v14, %v21303_v50  ;;  %12175 = vmatmul.msk.f32.vlgmr.msrb.gmra.mxu3 %vm6297_vm13, %v19501_v51  ;;  %v21312_v33 = vld [vmem:[#allocation125_spill] sm:$0xff]  ;;  %v21315_v14 = vld [vmem:[#allocation46_spill] sm:$0xff]  ;;  %v10002_v36 = vsel %vm9976_vm4, %v9971_v27, %v9973_v2 }
 0x9ee   : > { %10098 = vmatpush.msra.mxu3 %v9979_v3  ;;  %12185 = vmatpush.msk.msra.mxu0 %vm618_vm0, %v21305_v12  ;;  %v21313_v1 = vunpack.i.h.bf16 %v21312_v33  ;;  %v21314_v3 = vunpack.i.l.bf16 %v21312_v33  ;;  %v21316_v12 = vld [vmem:[#allocation40_spill] sm:$0xff]  ;;  %v21321_v33 = vld [vmem:[#allocation171_spill] sm:$0xff]  ;;  %v7002_v27 = vadd.f32 %v19102_v0, %v6598_v47 }
 0x9ef   : > { %12187 = vmatpush.msk.msrb.mxu1 %vm618_vm0, %v21306_v21  ;;  %12189 = vmatpush.msk.msrb.mxu2 %vm618_vm0, %v10000_v7  ;;  %v13081_v7 = vunpack.i.h.bf16 %v21315_v14  ;;  %v21317_v21 = vld [vmem:[#allocation105_spill] sm:$0xff]  ;;  %v21327_v0 = vunpack.i.l.bf16 %v21321_v33 }
 0x9f0   : > { %10117 = vmatpush.msra.mxu0 %v21307_v39  ;;  %12191 = vmatpush.msk.msrb.mxu3 %vm618_vm0, %v10001_v57  ;;  %v9992_v50 = vsel %vm9976_vm4, %v21314_v3, %v21313_v1  ;;  %v21318_v57 = vunpack.i.h.bf16 %v21317_v21  ;;  %v21319_v39 = vunpack.i.l.bf16 %v21317_v21  ;;  %v13056_v1 = vunpack.i.h.bf16 %v21321_v33  ;;  %v21322_v3 = vld [vmem:[#allocation71_spill] sm:$0xff] }
 0x9f1   : > { %10137 = vmatpush.msrb.mxu1 %v9990_v17  ;;  %10157 = vmatpush.msrb.mxu2 %v21311_v26  ;;  %v21320_v17 = vld [vmem:[#allocation14_spill] sm:$0xff]  ;;  %v19643_v22 = vpop.f32.mrf.mxu2  ;;  %v7003_v21 = vadd.f32 %v19104_v31, %v6618_v52  ;;  %v21328_v52 = vunpack.i.h.bf16 %v18432_v32  ;;  %v21331_v32 = vunpack.i.h.bf16 %v18592_v13 }
 0x9f2   : > { %10118 = vmatpush.msra.mxu0 %v21316_v12  ;;  %v9981_v4 = vsel %vm9976_vm4, %v21319_v39, %v21318_v57  ;;  %10177 = vmatpush.msrb.mxu3 %v9992_v50  ;;  %v19631_v26 = vpop.permute.xlu0 %13183  ;;  %v10003_v12 = vsel %vm9976_vm4, %v9973_v2, %v21322_v3  ;;  %v19641_v40 = vpop.permute.xlu1 %13178  ;;  %v21324_v57 = vld [vmem:[#allocation169_spill] sm:$0xff]  ;;  %v9985_v31 = vsel %vm9976_vm4, %v21327_v0, %v13056_v1  ;;  %v21330_v1 = vld [vmem:[#allocation172_spill] sm:$0xff] }
 0x9f3   : > { %10138 = vmatpush.msrb.mxu1 %v9981_v4  ;;  %10158 = vmatpush.msrb.mxu2 %v21320_v17  ;;  %v19649_v50 = vpop.f32.mrf.mxu3  ;;  %v21325_v39 = vunpack.i.h.bf16 %v21324_v57  ;;  %v21326_v4 = vunpack.i.l.bf16 %v21324_v57  ;;  %v7312_v47 = vadd.f32 %v19338_v43, %v7003_v21  ;;  %v21332_v43 = vunpack.i.l.bf16 %v18592_v13  ;;  %v21337_v57 = vld [vmem:[#allocation126_spill] sm:$0xff]  ;;  %v21340_v0 = vld [vmem:[#allocation28_spill] sm:$0xff] }
 0x9f4   : > { %12177 = vmatmul.msk.f32.vlgmr.msrb.gmra.mxu0 %vm6297_vm13, %v19501_v51  ;;  %12180 = vmatmul.msk.f32.vlgmr.msra.gmra.mxu1 %vm6297_vm13, %v19612_v6  ;;  %v21323_v51 = vunpack.i.l.bf16 %v21315_v14  ;;  %v19670_v14 = vpop.permute.xlu2 %10288 }
 0x9f5   : > { %12182 = vmatmul.msk.f32.vlgmr.msra.gmra.mxu2 %vm6297_vm13, %v19612_v6  ;;  %12195 = vmatpush.msk.msra.mxu1 %vm618_vm0, %v10003_v12  ;;  %v9983_v17 = vsel %vm9976_vm4, %v21326_v4, %v21325_v39  ;;  %v19666_v3 = vpop.f32.mrf.mxu0  ;;  %v10295_v12 = vsel %vm10294_vm5, %v13085_v11, %v21328_v52  ;;  %v6698_v39 = vadd.f32 %v19017_v62, %v21337_v57  ;;  %v21343_v52 = vld [vmem:[#allocation134_spill] sm:$0xff]  ;;  %v21345_v62 = vld [vmem:[#allocation16_spill] sm:$0xff] }
 0x9f6   : > { %12184 = vmatmul.msk.f32.vlgmr.msra.gmra.mxu3 %vm6297_vm13, %v19612_v6  ;;  %12198 = vmatpush.msk.msra.mxu2 %vm618_vm0, %v18622_v19  ;;  %v9994_v2 = vsel %vm9976_vm4, %v21323_v51, %v13081_v7  ;;  %v19668_v19 = vpop.f32.mrf.mxu1  ;;  %v7311_v7 = vadd.f32 %v19273_v56, %v7002_v27  ;;  %v21335_v51 = vunpack.i.h.bf16 %v18497_v30  ;;  %v21350_v57 = vld [vmem:[#allocation146_spill] sm:$0xff] }
 0x9f7   : > { %10217 = vmatpush.msra.mxu1 %v9994_v2  ;;  %12193 = vmatpush.msk.msrb.mxu0 %vm618_vm0, %v10002_v36  ;;  %v21329_v36 = vld [vmem:[#allocation82_spill] sm:$0xff]  ;;  %v21336_v2 = vunpack.i.l.bf16 %v18497_v30 }
 0x9f8   : > { %10375 = vmatpush.msra.mxu2 %v18627_v25  ;;  %10178 = vmatpush.msrb.mxu3 %v9983_v17  ;;  %v7689_v25 = vadd.f32 %v19471_v54, %v7312_v47  ;;  %v7688_v33 = vadd.f32 %v19473_v29, %v7311_v7  ;;  %v21333_v54 = vunpack.i.h.bf16 %v18189_v24  ;;  %v21334_v29 = vunpack.i.l.bf16 %v18189_v24  ;;  %v21338_v24 = vld [vmem:[#allocation55_spill] sm:$0xff]  ;;  %v21339_v17 = vld [vmem:[#allocation62_spill] sm:$0xff] }
 0x9f9   : > { %10218 = vmatpush.msra.mxu1 %v9985_v31  ;;  %10197 = vmatpush.msrb.mxu0 %v21329_v36  ;;  %v10299_v27 = vsel %vm10294_vm5, %v21336_v2, %v21335_v51  ;;  %v6538_v30 = vadd.f32 %v21340_v0, %v21339_v17  ;;  %v21341_v31 = vld [vmem:[#allocation92_spill] sm:$0xff]  ;;  %v21342_v7 = vld [vmem:[#allocation86_spill] sm:$0xff]  ;;  %v21349_v2 = vld [vmem:[#allocation73_spill] sm:$0xff] }
 0x9fa   : > { %10376 = vmatpush.msra.mxu2 %v10295_v12  ;;  %12200 = vmatpush.msk.msra.mxu3 %vm618_vm0, %v18528_v8  ;;  %v19687_v56 = vpop.permute.xlu0 %10290  ;;  %v10305_v8 = vsel %vm10294_vm5, %v21332_v43, %v21331_v32  ;;  %v10297_v11 = vsel %vm10294_vm5, %v21334_v29, %v21333_v54  ;;  %v19708_v21 = vpop.permute.xlu1 %10910  ;;  %v8006_v13 = vadd.f32 %v19567_v49, %v7689_v25  ;;  %v21344_v12 = vld [vmem:[#allocation127_spill] sm:$0xff]  ;;  %v21347_v54 = vld [vmem:[#allocation133_spill] sm:$0xff]  ;;  %v21351_v0 = vld [vmem:[#allocation142_spill] sm:$0xff] }
 0x9fb   : > { %10198 = vmatpush.msrb.mxu0 %v21330_v1  ;;  %v8005_v4 = vadd.f32 %v19587_v15, %v7688_v33  ;;  %v6638_v47 = vadd.f32 %v21342_v7, %v21341_v31  ;;  %v6658_v36 = vadd.f32 %v21344_v12, %v21343_v52  ;;  %v7007_v25 = vadd.f32 %v19192_v60, %v6698_v39  ;;  %v21346_v33 = vld [vmem:[#allocation110_spill] sm:$0xff]  ;;  %v21348_v29 = vld [vmem:[#allocation81_spill] sm:$0xff] }
 0x9fc   : > { %12186 = vmatmul.msk.f32.vlgmr.msra.gmra.mxu0 %vm6297_vm13, %v19612_v6  ;;  %12188 = vmatmul.msk.f32.vlgmr.msrb.gmra.mxu1 %vm6297_vm13, %v19612_v6  ;;  %v8216_v49 = vpop.f32.mrf.mxu2  ;;  %v6558_v51 = vadd.f32 %v21348_v29, %v21347_v54  ;;  %v21352_v60 = vld [vmem:[#allocation37_spill] sm:$0xff]  ;;  %v21355_v52 = vld [vmem:[#allocation18_spill] sm:$0xff] }
 0x9fd   : > { %12190 = vmatmul.msk.f32.vlgmr.msrb.gmra.mxu2 %vm6297_vm13, %v19612_v6  ;;  %12202 = vmatpush.msk.msra.mxu0 %vm618_vm0, %v21338_v24  ;;  %v8236_v15 = vpop.f32.mrf.mxu3  ;;  %v19731_v1 = vadd.f32 %v8216_v49, %v8005_v4  ;;  %v6678_v24 = vadd.f32 %v21350_v57, %v21349_v2  ;;  %v7004_v17 = vadd.f32 %v19184_v20, %v6638_v47  ;;  %v21354_v4 = vld [vmem:[#allocation88_spill] sm:$0xff]  ;;  %v21356_v12 = vld [vmem:[#allocation66_spill] sm:$0xff] }
 0x9fe   : > { %12192 = vmatmul.msk.f32.vlgmr.msrb.gmra.mxu3 %vm6297_vm13, %v19612_v6  ;;  %12204 = vmatpush.msk.msrb.mxu1 %vm618_vm0, %v21345_v62  ;;  %v19733_v32 = vadd.f32 %v8236_v15, %v8006_v13  ;;  %v19735_v43 = vpop.f32.mrf.mxu0  ;;  %v19744_v39 = vpop.f32.mrf.mxu1  ;;  %v7005_v31 = vadd.f32 %v19164_v44, %v6658_v36  ;;  %v7316_v7 = vadd.f32 %v19414_v59, %v7007_v25  ;;  %v21357_v62 = vld [vmem:[#allocation36_spill] sm:$0xff]  ;;  %v21359_v59 = vld [vmem:[#allocation34_spill] sm:$0xff]  ;;  %v21360_v36 = vld [vmem:[#allocation87_spill] sm:$0xff] }
 0x9ff   : > { %12206 = vmatpush.msk.msrb.mxu2 %vm618_vm0, %v21346_v33  ;;  %10395 = vmatpush.msra.mxu3 %v10305_v8  ;;  %v21353_v8 = vld [vmem:[#allocation112_spill] sm:$0xff]  ;;  %v6999_v20 = vadd.f32 %v21357_v62, %v6538_v30  ;;  %v7006_v47 = vadd.f32 %v19194_v53, %v6678_v24  ;;  %v7313_v49 = vadd.f32 %v19327_v41, %v7004_v17  ;;  %v19756_v15 = vpop.permute.xlu2 %13188  ;;  %v21358_v33 = vld [vmem:[#allocation39_spill] sm:$0xff]  ;;  %v21361_v41 = vld [vmem:[#allocation61_spill] sm:$0xff] }
 0xa00   : > { %10415 = vmatpush.msra.mxu0 %v21351_v0  ;;  %10435 = vmatpush.msrb.mxu1 %v21352_v60  ;;  %v10318_v13 = vsel %vm10294_vm5, %v21354_v4, %v21353_v8  ;;  %v19762_v44 = vld [vmem:[%s20228_s5 + $0x34] sm:$0x7]  ;;  %v6578_v25 = vadd.f32 %v21360_v36, %v21359_v59  ;;  %v7314_v54 = vadd.f32 %v19340_v46, %v7005_v31  ;;  %v21362_v24 = vld [vmem:[#allocation65_spill] sm:$0xff]  ;;  %v21365_v4 = vld [vmem:[#allocation130_spill] sm:$0xff] }
 0xa01   : > { %10455 = vmatpush.msrb.mxu2 %v21355_v52  ;;  %10396 = vmatpush.msra.mxu3 %v21356_v12  ;;  %v7693_v30 = vadd.f32 %v19528_v18, %v7316_v7  ;;  %v7315_v29 = vadd.f32 %v19349_v42, %v7006_v47  ;;  %v7690_v2 = vadd.f32 %v19452_v9, %v7313_v49  ;;  %v21369_v12 = vld [vmem:[#allocation67_spill] sm:$0xff]  ;;  %v21370_v62 = vld [vmem:[#allocation33_spill] sm:$0xff] }
 0xa02   : > { %10416 = vmatpush.msra.mxu0 %v10297_v11  ;;  %10436 = vmatpush.msrb.mxu1 %v21358_v33  ;;  %v19769_v53 = vpop.permute.xlu0 %13193  ;;  %v13121_v11 = vunpack.i.h.bf16 %v21361_v41  ;;  %v10320_v46 = vsel %vm10294_vm5, %v19670_v14, %v19687_v56  ;;  %v19781_v18 = vpop.permute.xlu1 %10914  ;;  %v7691_v57 = vadd.f32 %v19460_v35, %v7314_v54  ;;  %v10319_v42 = vsel %vm10294_vm5, %v21353_v8, %v19670_v14  ;;  %v21363_v35 = vld [vmem:[#allocation108_spill] sm:$0xff] }
 0xa03   : > { %10456 = vmatpush.msrb.mxu2 %v10299_v27  ;;  %12208 = vmatpush.msk.msrb.mxu3 %vm618_vm0, %v10318_v13  ;;  %v13120_v27 = vunpack.i.l.bf16 %v21361_v41  ;;  %v8010_v9 = vadd.f32 %v19643_v22, %v7693_v30  ;;  %v8007_v17 = vadd.f32 %v19571_v28, %v7690_v2  ;;  %v10321_v14 = vsel %vm10294_vm5, %v19687_v56, %v21363_v35  ;;  %v21364_v22 = vld [vmem:[#allocation84_spill] sm:$0xff]  ;;  %v21378_v35 = vld [vmem:[#allocation38_spill] sm:$0xff] }
 0xa04   : > { %12194 = vmatmul.msk.f32.vlgmr.msrb.gmra.mxu0 %vm6297_vm13, %v19612_v6  ;;  %12196 = vmatmul.msk.f32.vlgmr.msra.gmra.mxu1 %vm6297_vm13, %v19612_v6  ;;  %v7692_v6 = vadd.f32 %v19526_v5, %v7315_v29  ;;  %v13135_v60 = vunpack.i.l.bf16 %v21364_v22  ;;  %v8008_v8 = vadd.f32 %v19666_v3, %v7691_v57  ;;  %v21366_v5 = vld [vmem:[#allocation143_spill] sm:$0xff]  ;;  %v7000_v56 = vadd.f32 %v21369_v12, %v6558_v51  ;;  %v21371_v3 = vld [vmem:[#allocation117_spill] sm:$0xff]  ;;  %v21372_v33 = vld [vmem:[#allocation12_spill] sm:$0xff] }
 0xa05   : > { %10475 = vmatpush.msrb.mxu3 %v21362_v24  ;;  %12199 = vmatmul.msk.f32.vlgmr.msra.gmra.mxu2 %vm6297_vm13, %v19762_v44  ;;  %v8316_v0 = vpop.f32.mrf.mxu3  ;;  %v21367_v28 = vunpack.i.h.bf16 %v21366_v5  ;;  %v21368_v13 = vunpack.i.l.bf16 %v21366_v5  ;;  %v13141_v47 = vunpack.i.h.bf16 %v21370_v62  ;;  %v21373_v54 = vld [vmem:[#allocation128_spill] sm:$0xff]  ;;  %v10622_v51 = vsel %vm10612_vm9, %v13120_v27, %v13121_v11 }
 0xa06   : > { %12201 = vmatmul.msk.f32.vlgmr.msra.gmra.mxu3 %vm6297_vm13, %v19762_v44  ;;  %12210 = vmatpush.msk.msrb.mxu0 %vm618_vm0, %v10319_v42  ;;  %v19809_v7 = vadd.f32 %v8316_v0, %v8010_v9  ;;  %v8256_v52 = vpop.f32.mrf.mxu0  ;;  %v8009_v49 = vadd.f32 %v19668_v19, %v7692_v6  ;;  %v8276_v36 = vpop.f32.mrf.mxu1  ;;  %v7308_v30 = vadd.f32 %v21373_v54, %v6999_v20  ;;  %v21374_v2 = vld [vmem:[#allocation144_spill] sm:$0xff]  ;;  %v21376_v9 = vld [vmem:[#allocation22_spill] sm:$0xff]  ;;  %v21377_v20 = vld [vmem:[#allocation95_spill] sm:$0xff]  ;;  %v21379_v27 = vunpack.i.h.bf16 %v21364_v22 }
 0xa07   : > { %10476 = vmatpush.msrb.mxu3 %v21365_v4  ;;  %12212 = vmatpush.msk.msra.mxu1 %vm618_vm0, %v10320_v46  ;;  %v10311_v31 = vsel %vm10294_vm5, %v21368_v13, %v21367_v28  ;;  %v19817_v59 = vadd.f32 %v8256_v52, %v8007_v17  ;;  %v19824_v29 = vadd.f32 %v8276_v36, %v8008_v8  ;;  %v8296_v19 = vpop.f32.mrf.mxu2  ;;  %v21375_v57 = vld [vmem:[#allocation104_spill] sm:$0xff]  ;;  %v13150_v6 = vunpack.i.l.bf16 %v21377_v20  ;;  %v21380_v0 = vld [vmem:[#allocation103_spill] sm:$0xff]  ;;  %v19841_v28 = vpop.permute.xlu2 %13203  ;;  %v21383_v52 = vld [vmem:[#allocation77_spill] sm:$0xff] }
 0xa08   : > { %10495 = vmatpush.msrb.mxu0 %v21371_v3  ;;  %12214 = vmatpush.msk.msra.mxu2 %vm618_vm0, %v10321_v14  ;;  %v7001_v46 = vadd.f32 %v21374_v2, %v6578_v25  ;;  %v7309_v42 = vadd.f32 %v21375_v57, %v7000_v56  ;;  %v19829_v24 = vadd.f32 %v8296_v19, %v8009_v49  ;;  %v21381_v25 = vld [vmem:[#allocation42_spill] sm:$0xff]  ;;  %v13156_v5 = vunpack.i.h.bf16 %v19447_v23  ;;  %v21384_v36 = vld [vmem:[#allocation63_spill] sm:$0xff] }
 0xa09   : > { %12217 = vmatpush.msk.msra.mxu3 %vm618_vm0, %v21372_v33  ;;  %10515 = vmatpush.msra.mxu1 %v10311_v31  ;;  %v7685_v17 = vadd.f32 %v19412_v10, %v7308_v30  ;;  %v10613_v14 = vsel %vm10612_vm9, %v13135_v60, %v21379_v27  ;;  %v21382_v13 = vunpack.i.l.bf16 %v21370_v62  ;;  %v13146_v22 = vunpack.i.h.bf16 %v19386_v58  ;;  %v21385_v54 = vld [vmem:[#allocation98_spill] sm:$0xff] }
 0xa0a   : > { %10496 = vmatpush.msrb.mxu0 %v21376_v9  ;;  %10535 = vmatpush.msra.mxu2 %v21378_v35  ;;  %v7310_v8 = vadd.f32 %v21381_v25, %v7001_v46  ;;  %v7686_v4 = vadd.f32 %v19402_v16, %v7309_v42  ;;  %v13145_v60 = vunpack.i.l.bf16 %v19386_v58  ;;  %v19853_v16 = vpop.permute.xlu0 %10608  ;;  %v13161_v12 = vunpack.i.h.bf16 %v21383_v52  ;;  %v21389_v9 = vld [vmem:[#allocation137_spill] sm:$0xff]  ;;  %v21390_v35 = vld [vmem:[#allocation78_spill] sm:$0xff] }
 0xa0b   : > { %10693 = vmatpush.msra.mxu3 %v10622_v51  ;;  %10516 = vmatpush.msra.mxu1 %v21380_v0  ;;  %v10303_v10 = vsel %vm10294_vm5, %v21382_v13, %v13141_v47  ;;  %v8002_v31 = vadd.f32 %v19505_v37, %v7685_v17  ;;  %v13151_v56 = vunpack.i.h.bf16 %v21377_v20  ;;  %v19863_v37 = vpop.permute.xlu1 %13198  ;;  %v13155_v3 = vunpack.i.l.bf16 %v19447_v23  ;;  %v21386_v23 = vld [vmem:[#allocation43_spill] sm:$0xff]  ;;  %v19902_v17 = vld [vmem:[%s20228_s5 + $0x38] sm:$0x7] }
 0xa0c   : > { %12203 = vmatmul.msk.f32.vlgmr.msra.gmra.mxu0 %vm6297_vm13, %v19762_v44  ;;  %10536 = vmatpush.msra.mxu2 %v10303_v10  ;;  %v7687_v62 = vadd.f32 %v19404_v45, %v7310_v8  ;;  %v8003_v47 = vadd.f32 %v19519_v63, %v7686_v4  ;;  %v10623_v45 = vsel %vm10612_vm9, %v13121_v11, %v13150_v6  ;;  %v21388_v46 = vunpack.i.l.bf16 %v21383_v52  ;;  %v21391_v8 = vld [vmem:[#allocation140_spill] sm:$0xff]  ;;  %v21392_v4 = vld [vmem:[#allocation41_spill] sm:$0xff] }
 0xa0d   : > { %10694 = vmatpush.msra.mxu3 %v10613_v14  ;;  %12205 = vmatmul.msk.f32.vlgmr.msrb.gmra.mxu1 %vm6297_vm13, %v19762_v44  ;;  %v8533_v49 = vpop.f32.mrf.mxu3  ;;  %v8319_v33 = vadd.f32 %v19649_v50, %v8002_v31  ;;  %v21387_v50 = vld [vmem:[#allocation24_spill] sm:$0xff]  ;;  %v10624_v19 = vsel %vm10612_vm9, %v13150_v6, %v13156_v5  ;;  %v10625_v41 = vsel %vm10612_vm9, %v13156_v5, %v13145_v60  ;;  %v13166_v27 = vunpack.i.h.bf16 %v21390_v35 }
 0xa0e   : > { %12207 = vmatmul.msk.f32.vlgmr.msrb.gmra.mxu2 %vm6297_vm13, %v19762_v44  ;;  %12209 = vmatmul.msk.f32.vlgmr.msrb.gmra.mxu3 %vm6297_vm13, %v19762_v44  ;;  %v19875_v63 = vadd.f32 %v8533_v49, %v19731_v1  ;;  %v8004_v30 = vadd.f32 %v19585_v61, %v7687_v62  ;;  %v8320_v51 = vadd.f32 %v19735_v43, %v8003_v47  ;;  %v13165_v14 = vunpack.i.l.bf16 %v21390_v35  ;;  %v21393_v13 = vld [vmem:[#allocation120_spill] sm:$0xff] }
 0xa0f   : > { %12219 = vmatpush.msk.msra.mxu0 %vm618_vm0, %v21384_v36  ;;  %12221 = vmatpush.msk.msrb.mxu1 %vm618_vm0, %v21385_v54  ;;  %v8473_v2 = vpop.f32.mrf.mxu0  ;;  %v10626_v1 = vsel %vm10612_vm9, %v13145_v60, %v13146_v22  ;;  %v8493_v43 = vpop.f32.mrf.mxu1  ;;  %v10615_v57 = vsel %vm10612_vm9, %v21388_v46, %v13161_v12  ;;  %v10616_v20 = vsel %vm10612_vm9, %v13161_v12, %v13151_v56  ;;  %v13170_v10 = vunpack.i.l.bf16 %v21393_v13 }
 0xa10   : > { %12223 = vmatpush.msk.msrb.mxu2 %vm618_vm0, %v21386_v23  ;;  %12225 = vmatpush.msk.msrb.mxu3 %vm618_vm0, %v21387_v50  ;;  %v19888_v61 = vadd.f32 %v8473_v2, %v8319_v33  ;;  %v8321_v11 = vadd.f32 %v19744_v39, %v8004_v30  ;;  %v19894_v42 = vadd.f32 %v8493_v43, %v8320_v51  ;;  %v13175_v60 = vunpack.i.l.bf16 %v19503_v38  ;;  %v19921_v52 = vpop.permute.xlu2 %10920 }
 0xa11   : > { %10713 = vmatpush.msra.mxu0 %v10623_v45  ;;  %10733 = vmatpush.msrb.mxu1 %v10624_v19  ;;  %v10617_v6 = vsel %vm10612_vm9, %v13151_v56, %v13155_v3  ;;  %v8513_v39 = vpop.f32.mrf.mxu2  ;;  %v10639_v0 = vsel %vm10612_vm9, %v19853_v16, %v19514_v48  ;;  %v10636_v5 = vsel %vm10612_vm9, %v21392_v4, %v21391_v8  ;;  %v13180_v31 = vunpack.i.l.bf16 %v19641_v40 }
 0xa12   : > { %10753 = vmatpush.msrb.mxu2 %v10625_v41  ;;  %10773 = vmatpush.msrb.mxu3 %v10626_v1  ;;  %v19909_v25 = vadd.f32 %v8513_v39, %v8321_v11  ;;  %v13176_v48 = vunpack.i.h.bf16 %v19503_v38  ;;  %v13171_v56 = vunpack.i.h.bf16 %v21393_v13  ;;  %v10627_v62 = vsel %vm10612_vm9, %v13146_v22, %v13170_v10 }
 0xa13   : > { %10714 = vmatpush.msra.mxu0 %v21389_v9  ;;  %10734 = vmatpush.msrb.mxu1 %v10615_v57  ;;  %v10630_v47 = vsel %vm10612_vm9, %v13165_v14, %v13166_v27  ;;  %v10618_v36 = vsel %vm10612_vm9, %v13155_v3, %v13180_v31  ;;  %v13181_v45 = vunpack.i.h.bf16 %v19641_v40  ;;  %v13186_v51 = vunpack.i.h.bf16 %v19631_v26  ;;  %v21394_v40 = vld [vmem:[#allocation147_spill] sm:$0xff] }
 0xa14   : > { %10754 = vmatpush.msrb.mxu2 %v10616_v20  ;;  %10774 = vmatpush.msrb.mxu3 %v10617_v6  ;;  %v10621_v54 = vsel %vm10612_vm9, %v13171_v56, %v13175_v60  ;;  %v10629_v3 = vsel %vm10612_vm9, %v13176_v48, %v13165_v14  ;;  %v13185_v23 = vunpack.i.l.bf16 %v19631_v26  ;;  %v13191_v50 = vunpack.i.h.bf16 %v19756_v15 }
 0xa15   : > { %12211 = vmatmul.msk.f32.vlgmr.msrb.gmra.mxu0 %vm6297_vm13, %v19762_v44  ;;  %12213 = vmatmul.msk.f32.vlgmr.msra.gmra.mxu1 %vm6297_vm13, %v19762_v44  ;;  %v19930_v12 = vpop.permute.xlu0 %13208  ;;  %v10951_v19 = vsel %vm6297_vm13, %v21394_v40, %v19565_v55  ;;  %v13196_v2 = vunpack.i.h.bf16 %v19769_v53  ;;  %v13201_v41 = vunpack.i.h.bf16 %v19863_v37  ;;  %v13200_v1 = vunpack.i.l.bf16 %v19863_v37 }
 0xa16   : > { %12215 = vmatmul.msk.f32.vlgmr.msra.gmra.mxu2 %vm6297_vm13, %v19762_v44  ;;  %12218 = vmatmul.msk.f32.vlgmr.msra.gmra.mxu3 %vm6297_vm13, %v19902_v17  ;;  %v10620_v43 = vsel %vm10612_vm9, %v13181_v45, %v13171_v56  ;;  %v13205_v11 = vunpack.i.l.bf16 %v19841_v28  ;;  %v10942_v9 = vsel %vm6297_vm13, %v13185_v23, %v13186_v51  ;;  %v10949_v20 = vsel %vm6297_vm13, %v19596_v34, %v19781_v18 }
 0xa17   : > { %12227 = vmatpush.msk.msrb.mxu0 %vm618_vm0, %v10636_v5  ;;  %12233 = vmatpush.msk.msra.mxu3 %vm618_vm0, %v10639_v0  ;;  %v10607_v44 = vpop.permute.xlu1 %10606  ;;  %v10950_v6 = vsel %vm6297_vm13, %v19781_v18, %v21394_v40  ;;  %v13206_v14 = vunpack.i.h.bf16 %v19841_v28  ;;  %v10941_v28 = vsel %vm6297_vm13, %v13200_v1, %v13185_v23  ;;  %v10952_v60 = vsel %vm6297_vm13, %v19565_v55, %v19921_v52 }
 0xa18   : > { %v10637_v38 = vsel %vm10612_vm9, %v21391_v8, %v10607_v44  ;;  %v10638_v49 = vsel %vm10612_vm9, %v10607_v44, %v19853_v16  ;;  %v8573_v33 = vpop.f32.mrf.mxu1  ;;  %v10628_v16 = vsel %vm10612_vm9, %v13170_v10, %v13176_v48  ;;  %v19981_v46 = vpop.permute.xlu2 %13213  ;;  %v10930_v0 = vsel %vm6297_vm13, %v13201_v41, %v13205_v11 }
 0xa19   : > { %10793 = vmatpush.msrb.mxu0 %v10627_v62  ;;  %10853 = vmatpush.msra.mxu3 %v10630_v47  ;;  %v8553_v58 = vpop.f32.mrf.mxu0  ;;  %v19946_v22 = vadd.f32 %v8573_v33, %v19817_v59  ;;  %v13190_v59 = vunpack.i.l.bf16 %v19756_v15  ;;  %v13195_v15 = vunpack.i.l.bf16 %v19769_v53  ;;  %v13215_v4 = vunpack.i.l.bf16 %v19981_v46 }
 0xa1a   : > { %12229 = vmatpush.msk.msra.mxu1 %vm618_vm0, %v10637_v38  ;;  %12231 = vmatpush.msk.msra.mxu2 %vm618_vm0, %v10638_v49  ;;  %v19950_v30 = vadd.f32 %v8553_v58, %v19733_v32  ;;  %v10948_v32 = vsel %vm6297_vm13, %v19708_v21, %v19596_v34  ;;  %v10619_v21 = vsel %vm10612_vm9, %v13180_v31, %v13181_v45  ;;  %v13211_v62 = vunpack.i.h.bf16 %v19930_v12 }
 0xa1b   : > { %10794 = vmatpush.msrb.mxu0 %v10618_v36  ;;  %10854 = vmatpush.msra.mxu3 %v10621_v54  ;;  %v10939_v57 = vsel %vm6297_vm13, %v13190_v59, %v13191_v50  ;;  %v10933_v8 = vsel %vm6297_vm13, %v13195_v15, %v13196_v2  ;;  %v10931_v31 = vsel %vm6297_vm13, %v13205_v11, %v13206_v14  ;;  %v13210_v47 = vunpack.i.l.bf16 %v19930_v12 }
 0xa1c   : > { %10813 = vmatpush.msra.mxu1 %v10628_v16  ;;  %10833 = vmatpush.msra.mxu2 %v10629_v3  ;;  %v10943_v55 = vsel %vm6297_vm13, %v13186_v51, %v13215_v4 }
 0xa1d   : > { %12220 = vmatmul.msk.f32.vlgmr.msra.gmra.mxu0 %vm6297_vm13, %v19902_v17  ;;  %12222 = vmatmul.msk.f32.vlgmr.msrb.gmra.mxu1 %vm6297_vm13, %v19902_v17  ;;  %v10946_v51 = vsel %vm6297_vm13, %v13210_v47, %v13211_v62 }
 0xa1e   : > { %12224 = vmatmul.msk.f32.vlgmr.msrb.gmra.mxu2 %vm6297_vm13, %v19902_v17  ;;  %12226 = vmatmul.msk.f32.vlgmr.msrb.gmra.mxu3 %vm6297_vm13, %v19902_v17 }
 0xa1f   : > { %12236 = vmatpush.msk.msra.mxu0 %vm618_vm0, %v10948_v32  ;;  %12242 = vmatpush.msk.msrb.mxu3 %vm618_vm0, %v10951_v19  ;;  %v8593_v37 = vpop.f32.mrf.mxu2  ;;  %v10925_v39 = vpop.permute.xlu0 %10924 }
 0xa20   : > { %10814 = vmatpush.msra.mxu1 %v10619_v21  ;;  %10834 = vmatpush.msra.mxu2 %v10620_v43  ;;  %v19994_v35 = vadd.f32 %v8593_v37, %v19824_v29  ;;  %v8613_v27 = vpop.f32.mrf.mxu3  ;;  %v10923_v34 = vpop.permute.xlu1 %10922  ;;  %v10940_v29 = vsel %vm6297_vm13, %v13191_v50, %v13200_v1 }
 0xa21   : > { %11010 = vmatpush.msra.mxu0 %v10939_v57  ;;  %11070 = vmatpush.msrb.mxu3 %v10942_v9  ;;  %v20004_v18 = vadd.f32 %v8613_v27, %v19829_v24  ;;  %v10954_v48 = vsel %vm6297_vm13, %v10923_v34, %v10925_v39  ;;  %v10929_v9 = vpop.permute.xlu2 %10928 }
 0xa22   : > { %12238 = vmatpush.msk.msrb.mxu1 %vm618_vm0, %v10949_v20  ;;  %12240 = vmatpush.msk.msrb.mxu2 %vm618_vm0, %v10950_v6  ;;  %v8633_v5 = vpop.f32.mrf.mxu0 }
 0xa23   : > { %11011 = vmatpush.msra.mxu0 %v10930_v0  ;;  %11071 = vmatpush.msrb.mxu3 %v10933_v8  ;;  %v8790_v13 = vpop.f32.mrf.mxu1  ;;  %v20014_v24 = vadd.f32 %v8633_v5, %v19809_v7  ;;  %v10953_v7 = vsel %vm6297_vm13, %v19921_v52, %v10923_v34 }
 0xa24   : > { %11030 = vmatpush.msrb.mxu1 %v10940_v29  ;;  %11050 = vmatpush.msrb.mxu2 %v10941_v28  ;;  %v20017_v10 = vadd.f32 %v8790_v13, %v19888_v61  ;;  %v10932_v61 = vsel %vm6297_vm13, %v13206_v14, %v13195_v15 }
 0xa25   : > { %12228 = vmatmul.msk.f32.vlgmr.msrb.gmra.mxu0 %vm6297_vm13, %v19902_v17  ;;  %12230 = vmatmul.msk.f32.vlgmr.msra.gmra.mxu1 %vm6297_vm13, %v19902_v17 }
 0xa26   : > { %12232 = vmatmul.msk.f32.vlgmr.msra.gmra.mxu2 %vm6297_vm13, %v19902_v17  ;;  %12234 = vmatmul.msk.f32.vlgmr.msra.gmra.mxu3 %vm6297_vm13, %v19902_v17  ;;  %v20040_v17 = vld [vmem:[%s20228_s5 + $0x3c] sm:$0x7] }
 0xa27   : > { %12244 = vmatpush.msk.msrb.mxu0 %vm618_vm0, %v10952_v60  ;;  %11031 = vmatpush.msrb.mxu1 %v10931_v31 }
 0xa28   : > { %11051 = vmatpush.msrb.mxu2 %v10932_v61 }
 0xa29   : > { %12246 = vmatpush.msk.msra.mxu1 %vm618_vm0, %v10953_v7  ;;  %11090 = vmatpush.msrb.mxu0 %v10943_v55 }
 0xa2a   : > { %12248 = vmatpush.msk.msra.mxu2 %vm618_vm0, %v10954_v48  ;;  %v13219_v52 = vpop.permute.xlu0 %13218  ;;  %v8810_v56 = vpop.f32.mrf.mxu2 }
 0xa2b   : > { %v13221_v26 = vunpack.i.h.bf16 %v13219_v52  ;;  %v10927_v44 = vpop.permute.xlu1 %10926  ;;  %v8954_v38 = vadd.f32 %v8810_v56, %v19894_v42  ;;  %v8830_v49 = vpop.f32.mrf.mxu3  ;;  %v13220_v12 = vunpack.i.l.bf16 %v13219_v52 }
 0xa2c   : > { %v10955_v33 = vsel %vm6297_vm13, %v10925_v39, %v10927_v44  ;;  %v8955_v36 = vadd.f32 %v8830_v49, %v19909_v25  ;;  %v13216_v25 = vunpack.i.h.bf16 %v19981_v46  ;;  %v10956_v53 = vsel %vm6297_vm13, %v10927_v44, %v10929_v9 }
 0xa2d   : > { %12237 = vmatmul.msk.f32.vlgmr.msra.gmra.mxu0 %vm6297_vm13, %v20040_v17  ;;  %12239 = vmatmul.msk.f32.vlgmr.msrb.gmra.mxu1 %vm6297_vm13, %v20040_v17  ;;  %v8850_v54 = vpop.f32.mrf.mxu0  ;;  %v8870_v42 = vpop.f32.mrf.mxu1  ;;  %v10944_v58 = vsel %vm6297_vm13, %v13215_v4, %v13221_v26  ;;  %v10945_v45 = vsel %vm6297_vm13, %v13221_v26, %v13210_v47 }
 0xa2e   : > { %12241 = vmatmul.msk.f32.vlgmr.msrb.gmra.mxu2 %vm6297_vm13, %v20040_v17  ;;  %12243 = vmatmul.msk.f32.vlgmr.msrb.gmra.mxu3 %vm6297_vm13, %v20040_v17  ;;  %v8956_v16 = vadd.f32 %v8850_v54, %v19875_v63  ;;  %v8957_v3 = vadd.f32 %v8870_v42, %v19950_v30  ;;  %v10937_v23 = vsel %vm6297_vm13, %v13216_v25, %v13220_v12 }
 0xa2f   : > { %12250 = vmatpush.msk.msra.mxu3 %vm618_vm0, %v10955_v33  ;;  %11110 = vmatpush.msra.mxu1 %v10944_v58 }
 0xa30   : > { %11130 = vmatpush.msra.mxu2 %v10945_v45 }
 0xa31   : > { %11150 = vmatpush.msra.mxu3 %v10946_v51 }
 0xa33   : > { %11151 = vmatpush.msra.mxu3 %v10937_v23  ;;  %v13229_v50 = vpop.permute.xlu0 %13228 }
 0xa34   : > { %v13224_v59 = vpop.permute.xlu1 %13223  ;;  %v8890_v32 = vpop.f32.mrf.mxu2  ;;  %v13230_v11 = vunpack.i.l.bf16 %v13229_v50 }
 0xa35   : > { %v13226_v40 = vunpack.i.h.bf16 %v13224_v59  ;;  %v13225_v19 = vunpack.i.l.bf16 %v13224_v59  ;;  %v8910_v15 = vpop.f32.mrf.mxu3  ;;  %v8958_v63 = vadd.f32 %v8890_v32, %v19946_v22 }
 0xa36   : > { %12251 = vmatmul.msk.f32.vlgmr.msra.gmra.mxu3 %vm6297_vm13, %v20040_v17  ;;  %v8959_v30 = vadd.f32 %v8910_v15, %v19994_v35  ;;  %v8930_v41 = vpop.f32.mrf.mxu0  ;;  %v10947_v37 = vsel %vm6297_vm13, %v13211_v62, %v13230_v11 }
 0xa37   : > { %v10934_v1 = vsel %vm6297_vm13, %v13196_v2, %v13225_v19  ;;  %v10935_v21 = vsel %vm6297_vm13, %v13225_v19, %v13226_v40  ;;  %v10936_v43 = vsel %vm6297_vm13, %v13226_v40, %v13216_v25  ;;  %v8960_v46 = vadd.f32 %v8930_v41, %v20004_v18  ;;  %v8950_v57 = vpop.f32.mrf.mxu1 }
 0xa38   : > { %11091 = vmatpush.msrb.mxu0 %v10934_v1  ;;  %11111 = vmatpush.msra.mxu1 %v10935_v21  ;;  %v8961_v22 = vadd.f32 %v8950_v57, %v20014_v24  ;;  %v13231_v2 = vunpack.i.h.bf16 %v13229_v50 }
 0xa39   : > { %11131 = vmatpush.msra.mxu2 %v10936_v43  ;;  %12245 = vmatmul.msk.f32.vlgmr.msrb.gmra.mxu0 %vm6297_vm13, %v20040_v17 }
 0xa3a   : > { %12247 = vmatmul.msk.f32.vlgmr.msra.gmra.mxu1 %vm6297_vm13, %v20040_v17  ;;  %12249 = vmatmul.msk.f32.vlgmr.msra.gmra.mxu2 %vm6297_vm13, %v20040_v17  ;;  %v10938_v20 = vsel %vm6297_vm13, %v13220_v12, %v13231_v2 }
 0xa3b   : > { %12252 = vmatpush.msk.msra.mxu0 %vm618_vm0, %v10956_v53 }
 0xa3d   : > { %11170 = vmatpush.msra.mxu0 %v10947_v37  ;;  %v9107_v6 = vpop.f32.mrf.mxu2 }
 0xa3e   : > { %v9270_v39 = vadd.f32 %v9107_v6, %v20017_v10  ;;  %v9127_v35 = vpop.f32.mrf.mxu3 }
 0xa3f   : > { %11171 = vmatpush.msra.mxu0 %v10938_v20  ;;  %v9271_v27 = vadd.f32 %v9127_v35, %v8954_v38  ;;  %v9147_v14 = vpop.f32.mrf.mxu0 }
 0xa40   : > { %v9167_v0 = vpop.f32.mrf.mxu1  ;;  %v9272_v8 = vadd.f32 %v9147_v14, %v8955_v36 }
 0xa41   : > { %v9273_v34 = vadd.f32 %v9167_v0, %v8956_v16  ;;  %12253 = vmatmul.msk.f32.vlgmr.msra.gmra.mxu0 %vm6297_vm13, %v20040_v17 }
 0xa46   : > { %v9187_v18 = vpop.f32.mrf.mxu2 }
 0xa47   : > { %v9207_v29 = vpop.f32.mrf.mxu3  ;;  %v9274_v28 = vadd.f32 %v9187_v18, %v8957_v3  ;;  %v9227_v5 = vpop.f32.mrf.mxu0 }
 0xa48   : > { %v9275_v4 = vadd.f32 %v9207_v29, %v8958_v63  ;;  %v9247_v13 = vpop.f32.mrf.mxu1  ;;  %v9276_v24 = vadd.f32 %v9227_v5, %v8959_v30 }
 0xa49   : > { %v9277_v60 = vadd.f32 %v9247_v13, %v8960_v46 }
 0xa4e   : > { %v9267_v31 = vpop.f32.mrf.mxu2 }
 0xa4f   : > { %v9424_v7 = vpop.f32.mrf.mxu3  ;;  %v9278_v10 = vadd.f32 %v9267_v31, %v8961_v22  ;;  %v9444_v48 = vpop.f32.mrf.mxu0 }
 0xa50   : > { %v9587_v61 = vadd.f32 %v9424_v7, %v9270_v39  ;;  %v9464_v55 = vpop.f32.mrf.mxu1  ;;  %v9588_v52 = vadd.f32 %v9444_v48, %v9271_v27 }
 0xa51   : > { %v9589_v56 = vadd.f32 %v9464_v55, %v9272_v8 }
 0xa57   : > { %v9484_v62 = vpop.f32.mrf.mxu2  ;;  %v9504_v47 = vpop.f32.mrf.mxu3 }
 0xa58   : > { %v9590_v26 = vadd.f32 %v9484_v62, %v9273_v34  ;;  %v9591_v17 = vadd.f32 %v9504_v47, %v9274_v28  ;;  %v9524_v44 = vpop.f32.mrf.mxu0 }
 0xa59   : > { %v9544_v38 = vpop.f32.mrf.mxu1  ;;  %v9592_v49 = vadd.f32 %v9524_v44, %v9275_v4  ;;  %v20103_v44 = vpop.permute.xlu1 %11188 }
 0xa5a   : > { %v9593_v33 = vadd.f32 %v9544_v38, %v9276_v24 }
 0xa5f   : > { %v9564_v36 = vpop.f32.mrf.mxu2 }
 0xa60   : > { %v9584_v12 = vpop.f32.mrf.mxu3  ;;  %v9594_v54 = vadd.f32 %v9564_v36, %v9277_v60  ;;  %v9742_v58 = vpop.f32.mrf.mxu0 }
 0xa61   : > { %v9595_v42 = vadd.f32 %v9584_v12, %v9278_v10  ;;  %v9762_v45 = vpop.f32.mrf.mxu1  ;;  %v9905_v16 = vadd.f32 %v9742_v58, %v9587_v61 }
 0xa62   : > { %v9906_v3 = vadd.f32 %v9762_v45, %v9588_v52 }
 0xa67   : > { %v9782_v25 = vpop.f32.mrf.mxu2 }
 0xa68   : > { %v9907_v51 = vadd.f32 %v9782_v25, %v9589_v56  ;;  %v9802_v23 = vpop.f32.mrf.mxu3  ;;  %v9822_v50 = vpop.f32.mrf.mxu0 }
 0xa69   : > { %v9908_v59 = vadd.f32 %v9802_v23, %v9590_v26  ;;  %v9909_v40 = vadd.f32 %v9822_v50, %v9591_v17  ;;  %v9842_v19 = vpop.f32.mrf.mxu1 }
 0xa6a   : > { %v9910_v32 = vadd.f32 %v9842_v19, %v9592_v49 }
 0xa70   : > { %v9862_v15 = vpop.f32.mrf.mxu2  ;;  %v9882_v30 = vpop.f32.mrf.mxu3 }
 0xa71   : > { %v20087_v63 = vadd.f32 %v9862_v15, %v9593_v33  ;;  %v9902_v41 = vpop.f32.mrf.mxu0  ;;  %v20089_v1 = vadd.f32 %v9882_v30, %v9594_v54  ;;  %v10060_v43 = vpop.f32.mrf.mxu1 }
 0xa72   : > { %v9913_v21 = vadd.f32 %v9902_v41, %v9595_v42  ;;  %v10223_v31 = vadd.f32 %v10060_v43, %v9905_v16 }
 0xa78   : > { %v10080_v11 = vpop.f32.mrf.mxu2 }
 0xa79   : > { %v10100_v46 = vpop.f32.mrf.mxu3  ;;  %v10120_v57 = vpop.f32.mrf.mxu0  ;;  %v10224_v7 = vadd.f32 %v10080_v11, %v9906_v3 }
 0xa7a   : > { %v10140_v9 = vpop.f32.mrf.mxu1  ;;  %v10225_v38 = vadd.f32 %v10100_v46, %v9907_v51  ;;  %v10226_v49 = vadd.f32 %v10120_v57, %v9908_v59 }
 0xa7b   : > { %v10227_v3 = vadd.f32 %v10140_v9, %v9909_v40 }
 0xa80   : > { %v10160_v22 = vpop.f32.mrf.mxu2 }
 0xa81   : > { %v20091_v53 = vpop.f32.mrf.mxu3  ;;  %v10200_v2 = vpop.f32.mrf.mxu0  ;;  %v10228_v50 = vadd.f32 %v10160_v22, %v9910_v32 }
 0xa82   : > { %v10220_v37 = vpop.f32.mrf.mxu1  ;;  %v10230_v40 = vadd.f32 %v10200_v2, %v20089_v1 }
 0xa83   : > { %v20093_v20 = vadd.f32 %v10220_v37, %v9913_v21 }
 0xa88   : > { %v10378_v6 = vpop.f32.mrf.mxu2 }
 0xa89   : > { %v10398_v39 = vpop.f32.mrf.mxu3  ;;  %v10418_v35 = vpop.f32.mrf.mxu0  ;;  %v10541_v10 = vadd.f32 %v10378_v6, %v10223_v31 }
 0xa8a   : > { %v10438_v27 = vpop.f32.mrf.mxu1  ;;  %v10542_v61 = vadd.f32 %v10398_v39, %v10224_v7  ;;  %v10543_v12 = vadd.f32 %v10418_v35, %v10225_v38 }
 0xa8b   : > { %v10544_v54 = vadd.f32 %v10438_v27, %v10226_v49 }
 0xa91   : > { %v10458_v14 = vpop.f32.mrf.mxu2  ;;  %v10478_v0 = vpop.f32.mrf.mxu3 }
 0xa92   : > { %v20095_v8 = vpop.f32.mrf.mxu0  ;;  %v10518_v34 = vpop.f32.mrf.mxu1  ;;  %v10545_v51 = vadd.f32 %v10458_v14, %v10227_v3  ;;  %v10546_v59 = vadd.f32 %v10478_v0, %v10228_v50  ;;  %v10229_v0 = vadd.f32 %v20091_v53, %v20087_v63 }
 0xa93   : > { %v10548_v35 = vadd.f32 %v10518_v34, %v10230_v40 }
 0xa94   : > { %v10547_v1 = vadd.f32 %v20095_v8, %v10229_v0 }
 0xa99   : > { %v20097_v18 = vpop.f32.mrf.mxu2  ;;  %v10696_v29 = vpop.f32.mrf.mxu3 }
 0xa9a   : > { %v10716_v28 = vpop.f32.mrf.mxu0  ;;  %v10736_v4 = vpop.f32.mrf.mxu1  ;;  %v10859_v48 = vadd.f32 %v10696_v29, %v10541_v10  ;;  %v10549_v53 = vadd.f32 %v20097_v18, %v20093_v20 }
 0xa9b   : > { %v10860_v55 = vadd.f32 %v10716_v28, %v10542_v61  ;;  %v10861_v45 = vadd.f32 %v10736_v4, %v10543_v12 }
 0xaa1   : > { %v10756_v5 = vpop.f32.mrf.mxu2  ;;  %v10776_v13 = vpop.f32.mrf.mxu3 }
 0xaa2   : > { %v10796_v24 = vpop.f32.mrf.mxu0  ;;  %v20099_v60 = vpop.f32.mrf.mxu1  ;;  %v10862_v16 = vadd.f32 %v10756_v5, %v10544_v54  ;;  %v10863_v21 = vadd.f32 %v10776_v13, %v10545_v51 }
 0xaa3   : > { %v10864_v43 = vadd.f32 %v10796_v24, %v10546_v59  ;;  %v10865_v34 = vadd.f32 %v20099_v60, %v10547_v1 }
 0xaa9   : > { %v10836_v52 = vpop.f32.mrf.mxu2  ;;  %v20101_v56 = vpop.f32.mrf.mxu3 }
 0xaaa   : > { %v11013_v62 = vpop.f32.mrf.mxu0  ;;  %v11033_v47 = vpop.f32.mrf.mxu1  ;;  %v10866_v28 = vadd.f32 %v10836_v52, %v10548_v35 }
 0xaab   : > { %v11176_v26 = vadd.f32 %v11013_v62, %v10859_v48  ;;  %v11177_v17 = vadd.f32 %v11033_v47, %v10860_v55  ;;  %v10867_v62 = vadd.f32 %v20101_v56, %v10549_v53 }
 0xaad   : > { %v11191_v33 = vadd.f32 %v20103_v44, %v11176_v26  ;;  %v11192_v36 = vadd.f32 %v20103_v44, %v11177_v17 }
 0xaaf   : > { %v12254_v42 = vmul.f32 -1.442695, %v11191_v33  ;;  %v12255_v58 = vmul.f32 -1.442695, %v11192_v36 }
 0xab1   : > { %13233 = vpow2.f32 %v12254_v42  ;;  %v11053_v25 = vpop.f32.mrf.mxu2  ;;  %v11073_v23 = vpop.f32.mrf.mxu3 }
 0xab2   : > { %13235 = vpow2.f32 %v12255_v58  ;;  %v11178_v19 = vadd.f32 %v11053_v25, %v10861_v45  ;;  %v11179_v15 = vadd.f32 %v11073_v23, %v10862_v16 }
 0xab4   : > { %v11193_v30 = vadd.f32 %v20103_v44, %v11178_v19  ;;  %v11194_v41 = vadd.f32 %v20103_v44, %v11179_v15 }
 0xab6   : > { %v12256_v11 = vmul.f32 -1.442695, %v11193_v30  ;;  %v12257_v46 = vmul.f32 -1.442695, %v11194_v41  ;;  %v11093_v57 = vpop.f32.mrf.mxu0 }
 0xab7   : > { %v13234_v37 = vpop.eup %13233  ;;  %v11180_v9 = vadd.f32 %v11093_v57, %v10863_v21  ;;  %v11113_v6 = vpop.f32.mrf.mxu1 }
 0xab8   : > { %v13236_v32 = vpop.eup %13235  ;;  %v11227_v22 = vadd.f32 1.0, %v13234_v37  ;;  %13237 = vpow2.f32 %v12256_v11  ;;  %v11181_v39 = vadd.f32 %v11113_v6, %v10864_v43 }
 0xab9   : > { %v11228_v27 = vadd.f32 1.0, %v13236_v32  ;;  %13239 = vpow2.f32 %v12257_v46  ;;  %v11195_v14 = vadd.f32 %v20103_v44, %v11180_v9  ;;  %v11153_v29 = vpop.f32.mrf.mxu3 }
 0xaba   : > { %13241 = vrcp.f32 %v11227_v22  ;;  %v11196_v4 = vadd.f32 %v20103_v44, %v11181_v39  ;;  %v11183_v5 = vadd.f32 %v11153_v29, %v10866_v28  ;;  %v11245_v47 = vand.u32 2147483647, %v11227_v22 }
 0xabb   : > { %13243 = vrcp.f32 %v11228_v27  ;;  %v12258_v2 = vmul.f32 -1.442695, %v11195_v14  ;;  %v11247_v38 = vand.u32 2147483648, %v11227_v22  ;;  %v11260_v49 = vand.u32 2147483647, %v11228_v27 }
 0xabc   : > { %v12259_v31 = vmul.f32 -1.442695, %v11196_v4  ;;  %v11198_v60 = vadd.f32 %v20103_v44, %v11183_v5  ;;  %v11262_v33 = vand.u32 2147483648, %v11228_v27  ;;  %vm11241_vm11 = vweird.f32 %v11227_v22 }
 0xabd   : > { %v11133_v13 = vpop.f32.mrf.mxu2  ;;  %13245 = vpow2.f32 %v12258_v2  ;;  %vm11256_vm2 = vweird.f32 %v11228_v27  ;;  %vm20137_vm6 = vcmp.eq.f32.partialorder %v11245_v47, 8.507059e+37  ;;  %v11248_v23 = vor.u32 1.1754944e-38, %v11247_v38 }
 0xabe   : > { %v13238_v24 = vpop.eup %13237  ;;  %13247 = vpow2.f32 %v12259_v31  ;;  %v11182_v8 = vadd.f32 %v11133_v13, %v10865_v34  ;;  %v11173_v52 = vpop.f32.mrf.mxu0  ;;  %v12261_v56 = vmul.f32 -1.442695, %v11198_v60  ;;  %vm11261_vm1 = vcmp.eq.f32.partialorder %v11260_v49, 8.507059e+37 }
 0xabf   : > { %v13240_v7 = vpop.eup %13239  ;;  %v20116_v10 = vadd.f32 1.0, %v13238_v24  ;;  %v11184_v12 = vadd.f32 %v11173_v52, %v10867_v62  ;;  %v11263_v15 = vor.u32 1.1754944e-38, %v11262_v33 }
 0xac0   : > { %v20118_v63 = vpop.eup %13241  ;;  %v20122_v61 = vadd.f32 1.0, %v13240_v7  ;;  %v11197_v36 = vadd.f32 %v20103_v44, %v11182_v8 }
 0xac1   : > { %v13244_v48 = vpop.eup %13243  ;;  %v11237_v55 = vmul.f32 %v20118_v63, %v11227_v22  ;;  %13249 = vrcp.f32 %v20116_v10  ;;  %vm11242_vm10 = vweird.f32 %v20118_v63  ;;  %v11199_v21 = vadd.f32 %v20103_v44, %v11184_v12 }
 0xac2   : > { %v11252_v26 = vmul.f32 %v13244_v48, %v11228_v27  ;;  %13251 = vrcp.f32 %v20122_v61  ;;  %vm11257_vm3 = vweird.f32 %v13244_v48  ;;  %vm20142_vm7 = vmor %vm11241_vm11, %vm11242_vm10  ;;  %v12260_v41 = vmul.f32 -1.442695, %v11197_v36 }
 0xac3   : > { %v11238_v17 = vsub.f32 1.0, %v11237_v55  ;;  %v13246_v20 = vpop.eup %13245  ;;  %vm11258_vm12 = vmor %vm11256_vm2, %vm11257_vm3  ;;  %v11290_v40 = vand.u32 2147483647, %v20122_v61  ;;  %v11292_v9 = vand.u32 2147483648, %v20122_v61  ;;  %v12262_v35 = vmul.f32 -1.442695, %v11199_v21 }
 0xac4   : > { %v11253_v18 = vsub.f32 1.0, %v11252_v26  ;;  %v20132_v42 = vadd.f32 1.0, %v13246_v20  ;;  %v13248_v58 = vpop.eup %13247  ;;  %vm11271_vm13 = vweird.f32 %v20116_v10  ;;  %v11275_v1 = vand.u32 2147483647, %v20116_v10 }
 0xac5   : > { %v11239_v54 = vmul.f32 %v20118_v63, %v11238_v17  ;;  %v20149_v30 = vadd.f32 1.0, %v13248_v58  ;;  %v11277_v2 = vand.u32 2147483648, %v20116_v10  ;;  %vm11286_vm4 = vweird.f32 %v20122_v61 }
 0xac6   : > { %v11254_v45 = vmul.f32 %v13244_v48, %v11253_v18  ;;  %13253 = vrcp.f32 %v20132_v42  ;;  %vm11291_vm9 = vcmp.eq.f32.partialorder %v11290_v40, 8.507059e+37  ;;  %v11293_v31 = vor.u32 1.1754944e-38, %v11292_v9 }
 0xac7   : > { %v20134_v16 = vpop.eup %13249  ;;  %v11240_v3 = vadd.f32 %v20118_v63, %v11239_v54  ;;  %13255 = vpow2.f32 %v12261_v56  ;;  %vm11276_vm10 = vcmp.eq.f32.partialorder %v11275_v1, 8.507059e+37  ;;  %v11320_v52 = vand.u32 2147483647, %v20149_v30 }
 0xac8   : > { %v11255_v19 = vadd.f32 %v13244_v48, %v11254_v45  ;;  %v11267_v51 = vmul.f32 %v20134_v16, %v20116_v10  ;;  %v13252_v59 = vpop.eup %13251  ;;  %13257 = vrcp.f32 %v20149_v30  ;;  %vm11272_vm14 = vweird.f32 %v20134_v16 }
 0xac9   : > { %v11244_v43 = vsel %vm20142_vm7, %v20118_v63, %v11240_v3  ;;  %v11282_v57 = vmul.f32 %v13252_v59, %v20122_v61  ;;  %vm11287_vm8 = vweird.f32 %v13252_v59  ;;  %13259 = vpow2.f32 %v12260_v41  ;;  %vm20180_vm15 = vmor %vm11271_vm13, %vm11272_vm14 }
 0xaca   : > { %v11259_v11 = vsel %vm11258_vm12, %v13244_v48, %v11255_v19  ;;  %v11268_v46 = vsub.f32 1.0, %v11267_v51  ;;  %v11249_v39 = vsel %vm20137_vm6, %v11248_v23, %v11244_v43  ;;  %13261 = vpow2.f32 %v12262_v35  ;;  %vm11288_vm5 = vmor %vm11286_vm4, %vm11287_vm8 }
 0xacb   : > { %v11264_v37 = vsel %vm11261_vm1, %v11263_v15, %v11259_v11  ;;  %v11283_v32 = vsub.f32 1.0, %v11282_v57  ;;  %v11278_v48 = vor.u32 1.1754944e-38, %v11277_v2  ;;  %v11322_v26 = vand.u32 2147483648, %v20149_v30 }
 0xacc   : > { %v11379_v44 = vrot.slane %v11264_v37, 4  ;;  %v11269_v6 = vmul.f32 %v20134_v16, %v11268_v46  ;;  %v20166_v22 = vpop.eup %13253  ;;  %vm11301_vm3 = vweird.f32 %v20132_v42  ;;  %v11307_v18 = vand.u32 2147483648, %v20132_v42 }
 0xacd   : > { %v11284_v0 = vmul.f32 %v13252_v59, %v11283_v32  ;;  %v11297_v29 = vmul.f32 %v20166_v22, %v20132_v42  ;;  %v13256_v28 = vpop.eup %13255  ;;  %vm11302_vm11 = vweird.f32 %v20166_v22  ;;  %v11305_v36 = vand.u32 2147483647, %v20132_v42 }
 0xace   : > { %v11383_v27 = vsel %vm618_vm0, %v11249_v39, %v11379_v44  ;;  %v11270_v14 = vadd.f32 %v20134_v16, %v11269_v6  ;;  %v20185_v24 = vadd.f32 1.0, %v13256_v28  ;;  %v13258_v34 = vpop.eup %13257  ;;  %vm20202_vm6 = vmor %vm11301_vm3, %vm11302_vm11  ;;  %vm11316_vm7 = vweird.f32 %v20149_v30 }
 0xacf   : > { %11391 = vst [vmem:[%s20162_s16] sm:$0x77] %v11383_v27  ;;  %v11285_v5 = vadd.f32 %v13252_v59, %v11284_v0  ;;  %v11298_v13 = vsub.f32 1.0, %v11297_v29  ;;  %v11312_v53 = vmul.f32 %v13258_v34, %v20149_v30  ;;  %v13260_v8 = vpop.eup %13259  ;;  %vm11317_vm2 = vweird.f32 %v13258_v34 }
 0xad0   : > { %v11274_v7 = vsel %vm20180_vm15, %v20134_v16, %v11270_v14  ;;  %13263 = vrcp.f32 %v20185_v24  ;;  %v13262_v62 = vpop.eup %13261  ;;  %v11233_v17 = vadd.f32 1.0, %v13260_v8  ;;  %vm11318_vm1 = vmor %vm11316_vm7, %vm11317_vm2  ;;  %v11323_v58 = vor.u32 1.1754944e-38, %v11322_v26 }
 0xad1   : > { %v11289_v10 = vsel %vm11288_vm5, %v13252_v59, %v11285_v5  ;;  %v11299_v63 = vmul.f32 %v20166_v22, %v11298_v13  ;;  %v11313_v60 = vsub.f32 1.0, %v11312_v53  ;;  %v11279_v47 = vsel %vm11276_vm10, %v11278_v48, %v11274_v7 }
 0xad2   : > { %v11294_v61 = vsel %vm11291_vm9, %v11293_v31, %v11289_v10  ;;  %13265 = vrcp.f32 %v11233_v17  ;;  %v11235_v54 = vadd.f32 1.0, %v13262_v62  ;;  %vm11321_vm12 = vcmp.eq.f32.partialorder %v11320_v52, 8.507059e+37 }
 0xad3   : > { %v11380_v55 = vrot.slane %v11294_v61, 4  ;;  %v11300_v49 = vadd.f32 %v20166_v22, %v11299_v63  ;;  %v11314_v20 = vmul.f32 %v13258_v34, %v11313_v60  ;;  %v11308_v25 = vor.u32 1.1754944e-38, %v11307_v18 }
 0xad4   : > { %13267 = vrcp.f32 %v11235_v54  ;;  %vm11306_vm14 = vcmp.eq.f32.partialorder %v11305_v36, 8.507059e+37  ;;  %v11350_v51 = vand.u32 2147483647, %v20185_v24  ;;  %v11352_v59 = vand.u32 2147483648, %v20185_v24 }
 0xad5   : > { %v11384_v38 = vsel %vm618_vm0, %v11279_v47, %v11380_v55  ;;  %v11315_v12 = vadd.f32 %v13258_v34, %v11314_v20  ;;  %v11304_v45 = vsel %vm20202_vm6, %v20166_v22, %v11300_v49  ;;  %vm11346_vm13 = vweird.f32 %v20185_v24 }
 0xad6   : > { %11392 = vst [vmem:[%s20162_s16 + $0x8] sm:$0x77] %v11384_v38  ;;  %v13264_v56 = vpop.eup %13263  ;;  %v11309_v15 = vsel %vm11306_vm14, %v11308_v25, %v11304_v45  ;;  %vm11351_vm4 = vcmp.eq.f32.partialorder %v11350_v51, 8.507059e+37  ;;  %v11353_v57 = vor.u32 1.1754944e-38, %v11352_v59  ;;  %v11335_v37 = vand.u32 2147483647, %v11233_v17 }
 0xad7   : > { %v11319_v16 = vsel %vm11318_vm1, %v13258_v34, %v11315_v12  ;;  %v11342_v3 = vmul.f32 %v13264_v56, %v20185_v24  ;;  %vm11347_vm8 = vweird.f32 %v13264_v56  ;;  %v11337_v40 = vand.u32 2147483648, %v11233_v17 }
 0xad8   : > { %v11324_v23 = vsel %vm11321_vm12, %v11323_v58, %v11319_v16  ;;  %v13266_v19 = vpop.eup %13265  ;;  %vm11348_vm15 = vmor %vm11346_vm13, %vm11347_vm8  ;;  %vm11331_vm9 = vweird.f32 %v11233_v17  ;;  %vm11336_vm11 = vcmp.eq.f32.partialorder %v11335_v37, 8.507059e+37  ;;  %v11365_v27 = vand.u32 2147483647, %v11235_v54 }
 0xad9   : > { %v11381_v42 = vrot.slane %v11324_v23, 4  ;;  %v11343_v50 = vsub.f32 1.0, %v11342_v3  ;;  %v11327_v21 = vmul.f32 %v13266_v19, %v11233_v17  ;;  %vm11332_vm5 = vweird.f32 %v13266_v19 }
 0xada   : > { %v13268_v46 = vpop.eup %13267  ;;  %vm11333_vm10 = vmor %vm11331_vm9, %vm11332_vm5  ;;  %v11338_v35 = vor.u32 1.1754944e-38, %v11337_v40  ;;  %v11367_v14 = vand.u32 2147483648, %v11235_v54  ;;  %vm11361_vm3 = vweird.f32 %v11235_v54  ;;  %vm11395_vm7 = vcmask 780288  }
 0xadb   : > { %v11385_v30 = vsel %vm618_vm0, %v11309_v15, %v11381_v42  ;;  %v11344_v41 = vmul.f32 %v13264_v56, %v11343_v50  ;;  %v11328_v11 = vsub.f32 1.0, %v11327_v21  ;;  %v11357_v6 = vmul.f32 %v13268_v46, %v11235_v54 }
 0xadc   : > { %11393 = vst [vmem:[%s20162_s16 + $0x10] sm:$0x77] %v11385_v30  ;;  %vm11362_vm2 = vweird.f32 %v13268_v46  ;;  %v11368_v5 = vor.u32 1.1754944e-38, %v11367_v14  ;;  %vm11366_vm1 = vcmp.eq.f32.partialorder %v11365_v27, 8.507059e+37 }
 0xadd   : > { %v11345_v43 = vadd.f32 %v13264_v56, %v11344_v41  ;;  %v11329_v44 = vmul.f32 %v13266_v19, %v11328_v11  ;;  %v11358_v39 = vsub.f32 1.0, %v11357_v6  ;;  %vm11363_vm6 = vmor %vm11361_vm3, %vm11362_vm2 }
 0xadf   : > { %v11349_v9 = vsel %vm11348_vm15, %v13264_v56, %v11345_v43  ;;  %v11330_v22 = vadd.f32 %v13266_v19, %v11329_v44  ;;  %v11359_v28 = vmul.f32 %v13268_v46, %v11358_v39 }
 0xae0   : > { %v11354_v32 = vsel %vm11351_vm4, %v11353_v57, %v11349_v9 }
 0xae1   : > { %v11382_v0 = vrot.slane %v11354_v32, 4  ;;  %v11334_v29 = vsel %vm11333_vm10, %v13266_v19, %v11330_v22  ;;  %v11360_v4 = vadd.f32 %v13268_v46, %v11359_v28 }
 0xae2   : > { %v11339_v1 = vsel %vm11336_vm11, %v11338_v35, %v11334_v29 }
 0xae3   : > { %v11386_v2 = vsel %vm618_vm0, %v11339_v1, %v11382_v0  ;;  %v11364_v13 = vsel %vm11363_vm6, %v13268_v46, %v11360_v4 }
 0xae4   : > { %11394 = vst [vmem:[%s20162_s16 + $0x18] sm:$0x77] %v11386_v2  ;;  %v11369_v24 = vsel %vm11366_vm1, %v11368_v5, %v11364_v13 }
 0xae5   : > { %11396 = vst.msk [vmem:[%s20162_s16 + $0x20] sm:$0x7] %vm11395_vm7, %v11369_v24 }
 0xae6 PF: > { %s22_s13 = sadd.s32 1, %s13393_s13  }
 0xae7   : > { %p19_p7 = scmp.ge.s32.totalorder %s22_s13, 4  }
 0xae9   :  { %21 = sbr.rel (!%p19_p7) target bundleno = 2 (0x2), region = 139 }
 0xaee   :  { %11418 = vsyncpa [#allocation6], 1 }
 0xaef   :  { %11420 = vsyncpa [#allocation6 + $0x1], 1 }
 0xaf0   :  { %11421 = vsyncpa [#allocation8], 1 }

</bundles_post_ra>
